<compile_context>
chip_gen: v7x
topology: tpu7x:2x2x1
jax: 0.10.0
libtpu: 0.0.40
codegen_flags: <defaults>
</compile_context>

<pallas_src>
import functools

import jax
import jax.numpy as jnp
from jax.experimental import pallas as pl
from jax.experimental.pallas import tpu as pltpu


def _round_up(v, m):
    return (v + m - 1) // m * m


_MAX_ACC_BYTES = 512 * 1024      # cap on the per-dot f32 intermediate


# ---------------------------------------------------------------------------
# Fused im2col-conv (BN scale folded into weights) + bias + ReLU + MaxPool
# ---------------------------------------------------------------------------
def _conv_bn_relu_pool_kernel(x_ref, w_ref, b_ref, o_ref, *, n_win, pq_pad,
                              win_chunk, cout_major):
    """One image per grid step.

    K-major layout (layers 2-4):
      x_ref: (NW*PQp, K)  w_ref: (K, Cout)  b_ref: (1, Cout)  o_ref: (PQp, Cout)
    Cout-major layout (layer 1, Cin=1):
      x_ref: (K, NW*PQp)  w_ref: (Cout, K)  b_ref: (Cout, 1)  o_ref: (Cout, PQp)

    The NW pool-window slabs are merged into the matmul in groups of
    `win_chunk`; max-pool is a running max over tile-aligned slabs of the dot
    result.  BN scale is pre-folded into w; bias + ReLU are applied once at
    the end (constant across the pool window, ReLU monotonic).
    """
    w = w_ref[...]
    r = None
    for g in range(n_win // win_chunk):            # static, short
        lo, hi = g * win_chunk * pq_pad, (g + 1) * win_chunk * pq_pad
        if cout_major:
            y = jnp.dot(w, x_ref[:, lo:hi], preferred_element_type=jnp.float32)
        else:
            y = jnp.dot(x_ref[lo:hi, :], w, preferred_element_type=jnp.float32)
        for t in range(win_chunk):                 # aligned slab slices
            if cout_major:
                v = y[:, t * pq_pad:(t + 1) * pq_pad]
            else:
                v = y[t * pq_pad:(t + 1) * pq_pad, :]
            r = v if r is None else jnp.maximum(r, v)
    # max_t(relu(z_t + b)) == relu(max_t(z_t) + b): one bias + ReLU pass.
    o_ref[...] = jnp.maximum(r + b_ref[...], 0.0).astype(o_ref.dtype)


def conv_bn_relu_pool(x, w, b, ph, pw, *, out_dtype, cout_major=False):
    """x: (N, H, W, Cin) NHWC.  w has the BN scale folded in; b is the folded
    conv-bias + BN shift.  Returns pooled activations (N, Po, Qo, Cout)."""
    N, H, W, Cin = x.shape
    Ho, Wo = H - 2, W - 2                        # valid 3x3 conv output extent
    Po, Qo = Ho // ph, Wo // pw                  # floor-mode pooled extent
    PQ, NW, K = Po * Qo, ph * pw, 9 * Cin
    Cout = w.shape[0] if cout_major else w.shape[1]
    # Pad pooled positions so every window slab starts on a tile boundary
    # (full 128-lane tiles for the Cout-major layer-1 layout -> unmasked vst).
    PQp = _round_up(PQ, 128 if cout_major else 8)
    # Windows per dot: as many as fit the f32-intermediate budget (layers 2-4:
    # all NW -> one merged matmul; layer 1: 3 of the 33 windows per dot).
    win_chunk = NW
    while win_chunk > 1 and (win_chunk * PQp * Cout * 4 > _MAX_ACC_BYTES
                             or NW % win_chunk):
        win_chunk -= 1

    # im2col over exactly the conv-output region the pool uses (no junk cols),
    # reordered so the pool-window offset is the slab axis and the pooled
    # position the in-slab axis.  Junk pad rows are zero and cropped after.
    # TODO(synk): move this gather into the kernel to cut ~9x activation HBM
    #             traffic and the XLA transpose glue between pallas_calls.
    cols = [x[:, dy:dy + Po * ph, dx:dx + Qo * pw, :]
            for dy in range(3) for dx in range(3)]
    p = jnp.concatenate(cols, axis=-1)                      # (N, Po*ph, Qo*pw, K)
    p = p.reshape(N, Po, ph, Qo, pw, K).transpose(0, 2, 4, 1, 3, 5)
    p = p.reshape(N, NW, PQ, K)
    if PQp != PQ:
        p = jnp.pad(p, ((0, 0), (0, 0), (0, PQp - PQ), (0, 0)))

    if cout_major:
        p = jnp.transpose(p, (0, 3, 1, 2)).reshape(N, K, NW * PQp)
        in_block = (None, K, NW * PQp)
        out_shape = jax.ShapeDtypeStruct((N, Cout, PQp), out_dtype)
        out_block = (None, Cout, PQp)
    else:
        p = p.reshape(N, NW * PQp, K)
        in_block = (None, NW * PQp, K)
        out_shape = jax.ShapeDtypeStruct((N, PQp, Cout), out_dtype)
        out_block = (None, PQp, Cout)

    kern = functools.partial(_conv_bn_relu_pool_kernel, n_win=NW, pq_pad=PQp,
                             win_chunk=win_chunk, cout_major=cout_major)
    out = pl.pallas_call(
        kern,
        out_shape=out_shape,
        grid_spec=pltpu.PrefetchScalarGridSpec(
            num_scalar_prefetch=0,
            grid=(N,),
            in_specs=[
                pl.BlockSpec(in_block, lambda n: (n, 0, 0)),
                pl.BlockSpec(w.shape, lambda n: (0, 0)),
                pl.BlockSpec(b.shape, lambda n: (0, 0)),
            ],
            out_specs=pl.BlockSpec(out_block, lambda n: (n, 0, 0)),
        ),
        # TODO(synk): CORE_PARALLEL here to split the batch across both
        #             TensorCores on v7x-class parts.
        compiler_params=pltpu.CompilerParams(
            dimension_semantics=("parallel",),
        ),
    )(p, w, b)

    if cout_major:
        out = jnp.swapaxes(out[:, :, :PQ], 1, 2)            # (N, PQ, Cout)
    else:
        out = out[:, :PQ, :]
    return out.reshape(N, Po, Qo, Cout)


# ---------------------------------------------------------------------------
# FeatureBlock parameters + forward
# ---------------------------------------------------------------------------
def init_feature_block_params(key):
    cfgs = [(1, 64), (64, 128), (128, 256), (256, 256)]
    eps = 1e-5
    params = []
    for i, (cin, cout) in enumerate(cfgs):
        kw, kb, kg, kbe = jax.random.split(jax.random.fold_in(key, i), 4)
        std = 1.0 / float(cin * 9) ** 0.5
        w = jax.random.normal(kw, (cout, cin, 3, 3), jnp.float32) * std   # OIHW
        b_conv = jax.random.normal(kb, (cout,), jnp.float32) * 0.05
        gamma = 1.0 + 0.1 * jax.random.normal(kg, (cout,), jnp.float32)
        beta = 0.1 * jax.random.normal(kbe, (cout,), jnp.float32)
        run_mean = jnp.zeros((cout,), jnp.float32)
        run_var = jnp.ones((cout,), jnp.float32)
        # Fold conv bias + eval-mode BatchNorm: scale goes INTO the weights,
        # the shift becomes a single post-max bias.
        s = gamma / jnp.sqrt(run_var + eps)
        t = (b_conv - run_mean) * s + beta
        if i == 0:
            # Cout-major weights for the Cin=1 first layer: (Cout, 9),
            # column index = dy*3 + dx, scale folded per output row.
            w_k = (jnp.transpose(w, (0, 2, 3, 1)).reshape(cout, 9 * cin)
                   * s[:, None]).astype(jnp.bfloat16)
            params.append((w_k, t.reshape(cout, 1)))
        else:
            # K-major weights: (9*Cin, Cout), row index = (dy*3 + dx)*Cin + c,
            # scale folded per output column.
            w_k = (jnp.transpose(w, (2, 3, 1, 0)).reshape(9 * cin, cout)
                   * s[None, :]).astype(jnp.bfloat16)
            params.append((w_k, t.reshape(1, cout)))
    return params


def feature_block(x_nchw, params):
    x = jnp.transpose(x_nchw, (0, 2, 3, 1)).astype(jnp.bfloat16)  # NCHW -> NHWC
    pools = [(3, 11), (2, 2), (2, 2), (2, 2)]
    n_layers = len(params)
    for idx, ((w, b), (ph, pw)) in enumerate(zip(params, pools)):
        last = idx == n_layers - 1
        x = conv_bn_relu_pool(
            x, w, b, ph, pw,
            out_dtype=jnp.float32 if last else jnp.bfloat16,
            cout_major=(idx == 0))
    return jnp.transpose(x, (0, 3, 1, 2))                          # NHWC -> NCHW


if __name__ == "__main__":
    key = jax.random.PRNGKey(0)
    kx, kp = jax.random.split(key)
    # Smallest spatial extent that survives conv1/pool(3,11) .. conv4/pool(2,2).
    N, H, W = 2, 68, 244
    x = jax.random.normal(kx, (N, 1, H, W), jnp.float32)   # NCHW like PyTorch
    params = init_feature_block_params(kp)
    fwd = jax.jit(feature_block)
    y = jax.block_until_ready(fwd(x, params))
    assert y.shape == (N, 256, 1, 1), y.shape
    assert bool(jnp.all(jnp.isfinite(y)))
    print("KERNEL_OK")
</pallas_src>

<mosaic_0001>
module attributes {stable_mosaic.version = 11 : i64} {
  func.func @_conv_bn_relu_pool_kernel(%arg0: i32, %arg1: memref<1x9x16896xbf16, #tpu.memory_space<vmem>>, %arg2: memref<64x9xbf16, #tpu.memory_space<vmem>>, %arg3: memref<64x1xf32, #tpu.memory_space<vmem>>, %arg4: memref<1x64x512xbf16, #tpu.memory_space<vmem>>) attributes {dimension_semantics = [#tpu.dimension_semantics<parallel>], iteration_bounds = array<i64: 2>, scalar_prefetch = 0 : i64, scratch_operands = 0 : i64, tpu.core_type = #tpu.core_type<tc>, window_params = [{transform_indices = @transform_0, window_bounds = array<i64: 1, 9, 16896>}, {pipeline_mode = #tpu.pipeline_mode<synchronous>, transform_indices = @transform_1, window_bounds = array<i64: 64, 9>}, {pipeline_mode = #tpu.pipeline_mode<synchronous>, transform_indices = @transform_2, window_bounds = array<i64: 64, 1>}, {transform_indices = @transform_3, window_bounds = array<i64: 1, 64, 512>}]} {
    %c0 = arith.constant 0 : index
    %c0_0 = arith.constant 0 : index
    %0 = vector.load %arg2[%c0, %c0_0] : memref<64x9xbf16, #tpu.memory_space<vmem>>, vector<64x9xbf16>
    %c0_1 = arith.constant 0 : index
    %c0_2 = arith.constant 0 : index
    %c0_3 = arith.constant 0 : index
    %1 = vector.load %arg1[%c0_1, %c0_2, %c0_3] : memref<1x9x16896xbf16, #tpu.memory_space<vmem>>, vector<1x9x1536xbf16>
    %2 = vector.shape_cast %1 : vector<1x9x1536xbf16> to vector<9x1536xbf16>
    %cst = arith.constant dense<0.000000e+00> : vector<64x1536xf32>
    %3 = tpu.matmul %0, %2, %cst {dimension_numbers = #tpu.dot_dimension_numbers<[1], [0], [0], [1], [0, 0, 1, 1], [], []>} : vector<64x9xbf16>, vector<9x1536xbf16>, vector<64x1536xf32> -> vector<64x1536xf32>
    %4 = vector.extract_strided_slice %3 {offsets = [0, 0], sizes = [64, 512], strides = [1, 1]} : vector<64x1536xf32> to vector<64x512xf32>
    %5 = vector.extract_strided_slice %3 {offsets = [0, 512], sizes = [64, 512], strides = [1, 1]} : vector<64x1536xf32> to vector<64x512xf32>
    %6 = arith.maximumf %4, %5 : vector<64x512xf32>
    %7 = vector.extract_strided_slice %3 {offsets = [0, 1024], sizes = [64, 512], strides = [1, 1]} : vector<64x1536xf32> to vector<64x512xf32>
    %8 = arith.maximumf %6, %7 : vector<64x512xf32>
    %c0_4 = arith.constant 0 : index
    %c0_5 = arith.constant 0 : index
    %c1536 = arith.constant 1536 : index
    %9 = vector.load %arg1[%c0_4, %c0_5, %c1536] : memref<1x9x16896xbf16, #tpu.memory_space<vmem>>, vector<1x9x1536xbf16>
    %10 = vector.shape_cast %9 : vector<1x9x1536xbf16> to vector<9x1536xbf16>
    %cst_6 = arith.constant dense<0.000000e+00> : vector<64x1536xf32>
    %11 = tpu.matmul %0, %10, %cst_6 {dimension_numbers = #tpu.dot_dimension_numbers<[1], [0], [0], [1], [0, 0, 1, 1], [], []>} : vector<64x9xbf16>, vector<9x1536xbf16>, vector<64x1536xf32> -> vector<64x1536xf32>
    %12 = vector.extract_strided_slice %11 {offsets = [0, 0], sizes = [64, 512], strides = [1, 1]} : vector<64x1536xf32> to vector<64x512xf32>
    %13 = arith.maximumf %8, %12 : vector<64x512xf32>
    %14 = vector.extract_strided_slice %11 {offsets = [0, 512], sizes = [64, 512], strides = [1, 1]} : vector<64x1536xf32> to vector<64x512xf32>
    %15 = arith.maximumf %13, %14 : vector<64x512xf32>
    %16 = vector.extract_strided_slice %11 {offsets = [0, 1024], sizes = [64, 512], strides = [1, 1]} : vector<64x1536xf32> to vector<64x512xf32>
    %17 = arith.maximumf %15, %16 : vector<64x512xf32>
    %c0_7 = arith.constant 0 : index
    %c0_8 = arith.constant 0 : index
    %c3072 = arith.constant 3072 : index
    %18 = vector.load %arg1[%c0_7, %c0_8, %c3072] : memref<1x9x16896xbf16, #tpu.memory_space<vmem>>, vector<1x9x1536xbf16>
    %19 = vector.shape_cast %18 : vector<1x9x1536xbf16> to vector<9x1536xbf16>
    %cst_9 = arith.constant dense<0.000000e+00> : vector<64x1536xf32>
    %20 = tpu.matmul %0, %19, %cst_9 {dimension_numbers = #tpu.dot_dimension_numbers<[1], [0], [0], [1], [0, 0, 1, 1], [], []>} : vector<64x9xbf16>, vector<9x1536xbf16>, vector<64x1536xf32> -> vector<64x1536xf32>
    %21 = vector.extract_strided_slice %20 {offsets = [0, 0], sizes = [64, 512], strides = [1, 1]} : vector<64x1536xf32> to vector<64x512xf32>
    %22 = arith.maximumf %17, %21 : vector<64x512xf32>
    %23 = vector.extract_strided_slice %20 {offsets = [0, 512], sizes = [64, 512], strides = [1, 1]} : vector<64x1536xf32> to vector<64x512xf32>
    %24 = arith.maximumf %22, %23 : vector<64x512xf32>
    %25 = vector.extract_strided_slice %20 {offsets = [0, 1024], sizes = [64, 512], strides = [1, 1]} : vector<64x1536xf32> to vector<64x512xf32>
    %26 = arith.maximumf %24, %25 : vector<64x512xf32>
    %c0_10 = arith.constant 0 : index
    %c0_11 = arith.constant 0 : index
    %c4608 = arith.constant 4608 : index
    %27 = vector.load %arg1[%c0_10, %c0_11, %c4608] : memref<1x9x16896xbf16, #tpu.memory_space<vmem>>, vector<1x9x1536xbf16>
    %28 = vector.shape_cast %27 : vector<1x9x1536xbf16> to vector<9x1536xbf16>
    %cst_12 = arith.constant dense<0.000000e+00> : vector<64x1536xf32>
    %29 = tpu.matmul %0, %28, %cst_12 {dimension_numbers = #tpu.dot_dimension_numbers<[1], [0], [0], [1], [0, 0, 1, 1], [], []>} : vector<64x9xbf16>, vector<9x1536xbf16>, vector<64x1536xf32> -> vector<64x1536xf32>
    %30 = vector.extract_strided_slice %29 {offsets = [0, 0], sizes = [64, 512], strides = [1, 1]} : vector<64x1536xf32> to vector<64x512xf32>
    %31 = arith.maximumf %26, %30 : vector<64x512xf32>
    %32 = vector.extract_strided_slice %29 {offsets = [0, 512], sizes = [64, 512], strides = [1, 1]} : vector<64x1536xf32> to vector<64x512xf32>
    %33 = arith.maximumf %31, %32 : vector<64x512xf32>
    %34 = vector.extract_strided_slice %29 {offsets = [0, 1024], sizes = [64, 512], strides = [1, 1]} : vector<64x1536xf32> to vector<64x512xf32>
    %35 = arith.maximumf %33, %34 : vector<64x512xf32>
    %c0_13 = arith.constant 0 : index
    %c0_14 = arith.constant 0 : index
    %c6144 = arith.constant 6144 : index
    %36 = vector.load %arg1[%c0_13, %c0_14, %c6144] : memref<1x9x16896xbf16, #tpu.memory_space<vmem>>, vector<1x9x1536xbf16>
    %37 = vector.shape_cast %36 : vector<1x9x1536xbf16> to vector<9x1536xbf16>
    %cst_15 = arith.constant dense<0.000000e+00> : vector<64x1536xf32>
    %38 = tpu.matmul %0, %37, %cst_15 {dimension_numbers = #tpu.dot_dimension_numbers<[1], [0], [0], [1], [0, 0, 1, 1], [], []>} : vector<64x9xbf16>, vector<9x1536xbf16>, vector<64x1536xf32> -> vector<64x1536xf32>
    %39 = vector.extract_strided_slice %38 {offsets = [0, 0], sizes = [64, 512], strides = [1, 1]} : vector<64x1536xf32> to vector<64x512xf32>
    %40 = arith.maximumf %35, %39 : vector<64x512xf32>
    %41 = vector.extract_strided_slice %38 {offsets = [0, 512], sizes = [64, 512], strides = [1, 1]} : vector<64x1536xf32> to vector<64x512xf32>
    %42 = arith.maximumf %40, %41 : vector<64x512xf32>
    %43 = vector.extract_strided_slice %38 {offsets = [0, 1024], sizes = [64, 512], strides = [1, 1]} : vector<64x1536xf32> to vector<64x512xf32>
    %44 = arith.maximumf %42, %43 : vector<64x512xf32>
    %c0_16 = arith.constant 0 : index
    %c0_17 = arith.constant 0 : index
    %c7680 = arith.constant 7680 : index
    %45 = vector.load %arg1[%c0_16, %c0_17, %c7680] : memref<1x9x16896xbf16, #tpu.memory_space<vmem>>, vector<1x9x1536xbf16>
    %46 = vector.shape_cast %45 : vector<1x9x1536xbf16> to vector<9x1536xbf16>
    %cst_18 = arith.constant dense<0.000000e+00> : vector<64x1536xf32>
    %47 = tpu.matmul %0, %46, %cst_18 {dimension_numbers = #tpu.dot_dimension_numbers<[1], [0], [0], [1], [0, 0, 1, 1], [], []>} : vector<64x9xbf16>, vector<9x1536xbf16>, vector<64x1536xf32> -> vector<64x1536xf32>
    %48 = vector.extract_strided_slice %47 {offsets = [0, 0], sizes = [64, 512], strides = [1, 1]} : vector<64x1536xf32> to vector<64x512xf32>
    %49 = arith.maximumf %44, %48 : vector<64x512xf32>
    %50 = vector.extract_strided_slice %47 {offsets = [0, 512], sizes = [64, 512], strides = [1, 1]} : vector<64x1536xf32> to vector<64x512xf32>
    %51 = arith.maximumf %49, %50 : vector<64x512xf32>
    %52 = vector.extract_strided_slice %47 {offsets = [0, 1024], sizes = [64, 512], strides = [1, 1]} : vector<64x1536xf32> to vector<64x512xf32>
    %53 = arith.maximumf %51, %52 : vector<64x512xf32>
    %c0_19 = arith.constant 0 : index
    %c0_20 = arith.constant 0 : index
    %c9216 = arith.constant 9216 : index
    %54 = vector.load %arg1[%c0_19, %c0_20, %c9216] : memref<1x9x16896xbf16, #tpu.memory_space<vmem>>, vector<1x9x1536xbf16>
    %55 = vector.shape_cast %54 : vector<1x9x1536xbf16> to vector<9x1536xbf16>
    %cst_21 = arith.constant dense<0.000000e+00> : vector<64x1536xf32>
    %56 = tpu.matmul %0, %55, %cst_21 {dimension_numbers = #tpu.dot_dimension_numbers<[1], [0], [0], [1], [0, 0, 1, 1], [], []>} : vector<64x9xbf16>, vector<9x1536xbf16>, vector<64x1536xf32> -> vector<64x1536xf32>
    %57 = vector.extract_strided_slice %56 {offsets = [0, 0], sizes = [64, 512], strides = [1, 1]} : vector<64x1536xf32> to vector<64x512xf32>
    %58 = arith.maximumf %53, %57 : vector<64x512xf32>
    %59 = vector.extract_strided_slice %56 {offsets = [0, 512], sizes = [64, 512], strides = [1, 1]} : vector<64x1536xf32> to vector<64x512xf32>
    %60 = arith.maximumf %58, %59 : vector<64x512xf32>
    %61 = vector.extract_strided_slice %56 {offsets = [0, 1024], sizes = [64, 512], strides = [1, 1]} : vector<64x1536xf32> to vector<64x512xf32>
    %62 = arith.maximumf %60, %61 : vector<64x512xf32>
    %c0_22 = arith.constant 0 : index
    %c0_23 = arith.constant 0 : index
    %c10752 = arith.constant 10752 : index
    %63 = vector.load %arg1[%c0_22, %c0_23, %c10752] : memref<1x9x16896xbf16, #tpu.memory_space<vmem>>, vector<1x9x1536xbf16>
    %64 = vector.shape_cast %63 : vector<1x9x1536xbf16> to vector<9x1536xbf16>
    %cst_24 = arith.constant dense<0.000000e+00> : vector<64x1536xf32>
    %65 = tpu.matmul %0, %64, %cst_24 {dimension_numbers = #tpu.dot_dimension_numbers<[1], [0], [0], [1], [0, 0, 1, 1], [], []>} : vector<64x9xbf16>, vector<9x1536xbf16>, vector<64x1536xf32> -> vector<64x1536xf32>
    %66 = vector.extract_strided_slice %65 {offsets = [0, 0], sizes = [64, 512], strides = [1, 1]} : vector<64x1536xf32> to vector<64x512xf32>
    %67 = arith.maximumf %62, %66 : vector<64x512xf32>
    %68 = vector.extract_strided_slice %65 {offsets = [0, 512], sizes = [64, 512], strides = [1, 1]} : vector<64x1536xf32> to vector<64x512xf32>
    %69 = arith.maximumf %67, %68 : vector<64x512xf32>
    %70 = vector.extract_strided_slice %65 {offsets = [0, 1024], sizes = [64, 512], strides = [1, 1]} : vector<64x1536xf32> to vector<64x512xf32>
    %71 = arith.maximumf %69, %70 : vector<64x512xf32>
    %c0_25 = arith.constant 0 : index
    %c0_26 = arith.constant 0 : index
    %c12288 = arith.constant 12288 : index
    %72 = vector.load %arg1[%c0_25, %c0_26, %c12288] : memref<1x9x16896xbf16, #tpu.memory_space<vmem>>, vector<1x9x1536xbf16>
    %73 = vector.shape_cast %72 : vector<1x9x1536xbf16> to vector<9x1536xbf16>
    %cst_27 = arith.constant dense<0.000000e+00> : vector<64x1536xf32>
    %74 = tpu.matmul %0, %73, %cst_27 {dimension_numbers = #tpu.dot_dimension_numbers<[1], [0], [0], [1], [0, 0, 1, 1], [], []>} : vector<64x9xbf16>, vector<9x1536xbf16>, vector<64x1536xf32> -> vector<64x1536xf32>
    %75 = vector.extract_strided_slice %74 {offsets = [0, 0], sizes = [64, 512], strides = [1, 1]} : vector<64x1536xf32> to vector<64x512xf32>
    %76 = arith.maximumf %71, %75 : vector<64x512xf32>
    %77 = vector.extract_strided_slice %74 {offsets = [0, 512], sizes = [64, 512], strides = [1, 1]} : vector<64x1536xf32> to vector<64x512xf32>
    %78 = arith.maximumf %76, %77 : vector<64x512xf32>
    %79 = vector.extract_strided_slice %74 {offsets = [0, 1024], sizes = [64, 512], strides = [1, 1]} : vector<64x1536xf32> to vector<64x512xf32>
    %80 = arith.maximumf %78, %79 : vector<64x512xf32>
    %c0_28 = arith.constant 0 : index
    %c0_29 = arith.constant 0 : index
    %c13824 = arith.constant 13824 : index
    %81 = vector.load %arg1[%c0_28, %c0_29, %c13824] : memref<1x9x16896xbf16, #tpu.memory_space<vmem>>, vector<1x9x1536xbf16>
    %82 = vector.shape_cast %81 : vector<1x9x1536xbf16> to vector<9x1536xbf16>
    %cst_30 = arith.constant dense<0.000000e+00> : vector<64x1536xf32>
    %83 = tpu.matmul %0, %82, %cst_30 {dimension_numbers = #tpu.dot_dimension_numbers<[1], [0], [0], [1], [0, 0, 1, 1], [], []>} : vector<64x9xbf16>, vector<9x1536xbf16>, vector<64x1536xf32> -> vector<64x1536xf32>
    %84 = vector.extract_strided_slice %83 {offsets = [0, 0], sizes = [64, 512], strides = [1, 1]} : vector<64x1536xf32> to vector<64x512xf32>
    %85 = arith.maximumf %80, %84 : vector<64x512xf32>
    %86 = vector.extract_strided_slice %83 {offsets = [0, 512], sizes = [64, 512], strides = [1, 1]} : vector<64x1536xf32> to vector<64x512xf32>
    %87 = arith.maximumf %85, %86 : vector<64x512xf32>
    %88 = vector.extract_strided_slice %83 {offsets = [0, 1024], sizes = [64, 512], strides = [1, 1]} : vector<64x1536xf32> to vector<64x512xf32>
    %89 = arith.maximumf %87, %88 : vector<64x512xf32>
    %c0_31 = arith.constant 0 : index
    %c0_32 = arith.constant 0 : index
    %c15360 = arith.constant 15360 : index
    %90 = vector.load %arg1[%c0_31, %c0_32, %c15360] : memref<1x9x16896xbf16, #tpu.memory_space<vmem>>, vector<1x9x1536xbf16>
    %91 = vector.shape_cast %90 : vector<1x9x1536xbf16> to vector<9x1536xbf16>
    %cst_33 = arith.constant dense<0.000000e+00> : vector<64x1536xf32>
    %92 = tpu.matmul %0, %91, %cst_33 {dimension_numbers = #tpu.dot_dimension_numbers<[1], [0], [0], [1], [0, 0, 1, 1], [], []>} : vector<64x9xbf16>, vector<9x1536xbf16>, vector<64x1536xf32> -> vector<64x1536xf32>
    %93 = vector.extract_strided_slice %92 {offsets = [0, 0], sizes = [64, 512], strides = [1, 1]} : vector<64x1536xf32> to vector<64x512xf32>
    %94 = arith.maximumf %89, %93 : vector<64x512xf32>
    %95 = vector.extract_strided_slice %92 {offsets = [0, 512], sizes = [64, 512], strides = [1, 1]} : vector<64x1536xf32> to vector<64x512xf32>
    %96 = arith.maximumf %94, %95 : vector<64x512xf32>
    %97 = vector.extract_strided_slice %92 {offsets = [0, 1024], sizes = [64, 512], strides = [1, 1]} : vector<64x1536xf32> to vector<64x512xf32>
    %98 = arith.maximumf %96, %97 : vector<64x512xf32>
    %c0_34 = arith.constant 0 : index
    %c0_35 = arith.constant 0 : index
    %99 = vector.load %arg3[%c0_34, %c0_35] : memref<64x1xf32, #tpu.memory_space<vmem>>, vector<64x1xf32>
    %100 = vector.broadcast %99 : vector<64x1xf32> to vector<64x512xf32>
    %101 = arith.addf %98, %100 : vector<64x512xf32>
    %cst_36 = arith.constant 0.000000e+00 : f32
    %102 = vector.broadcast %cst_36 : f32 to vector<64x512xf32>
    %103 = arith.maximumf %101, %102 : vector<64x512xf32>
    %104 = arith.truncf %103 : vector<64x512xf32> to vector<64x512xbf16>
    %c0_37 = arith.constant 0 : index
    %c0_38 = arith.constant 0 : index
    %c0_39 = arith.constant 0 : index
    %105 = vector.load %arg4[%c0_37, %c0_38, %c0_39] : memref<1x64x512xbf16, #tpu.memory_space<vmem>>, vector<1x64x512xbf16>
    %106 = vector.shape_cast %105 : vector<1x64x512xbf16> to vector<64x512xbf16>
    %107 = vector.shape_cast %104 : vector<64x512xbf16> to vector<1x64x512xbf16>
    tpu.vector_store %arg4[%c0_37, %c0_38, %c0_39], %107 {strides = array<i32>} : memref<1x64x512xbf16, #tpu.memory_space<vmem>>, vector<1x64x512xbf16>,
    return
  }
  func.func @transform_0(%arg0: i32) -> (i32, i32, i32) {
    %c0_i32 = arith.constant 0 : i32
    %c0_i32_0 = arith.constant 0 : i32
    %c0_i32_1 = arith.constant 0 : i32
    return %arg0, %c0_i32, %c0_i32_0 : i32, i32, i32
  }
  func.func @transform_1(%arg0: i32) -> (i32, i32) {
    %c0_i32 = arith.constant 0 : i32
    %c0_i32_0 = arith.constant 0 : i32
    %c0_i32_1 = arith.constant 0 : i32
    return %c0_i32, %c0_i32_0 : i32, i32
  }
  func.func @transform_2(%arg0: i32) -> (i32, i32) {
    %c0_i32 = arith.constant 0 : i32
    %c0_i32_0 = arith.constant 0 : i32
    %c0_i32_1 = arith.constant 0 : i32
    return %c0_i32, %c0_i32_0 : i32, i32
  }
  func.func @transform_3(%arg0: i32) -> (i32, i32, i32) {
    %c0_i32 = arith.constant 0 : i32
    %c0_i32_0 = arith.constant 0 : i32
    %c0_i32_1 = arith.constant 0 : i32
    return %arg0, %c0_i32, %c0_i32_0 : i32, i32, i32
  }
}

module attributes {stable_mosaic.version = 11 : i64} {
  func.func @_conv_bn_relu_pool_kernel(%arg0: i32, %arg1: memref<1x416x576xbf16, #tpu.memory_space<vmem>>, %arg2: memref<576x128xbf16, #tpu.memory_space<vmem>>, %arg3: memref<1x128xf32, #tpu.memory_space<vmem>>, %arg4: memref<1x104x128xbf16, #tpu.memory_space<vmem>>) attributes {dimension_semantics = [#tpu.dimension_semantics<parallel>], iteration_bounds = array<i64: 2>, scalar_prefetch = 0 : i64, scratch_operands = 0 : i64, tpu.core_type = #tpu.core_type<tc>, window_params = [{transform_indices = @transform_0, window_bounds = array<i64: 1, 416, 576>}, {pipeline_mode = #tpu.pipeline_mode<synchronous>, transform_indices = @transform_1, window_bounds = array<i64: 576, 128>}, {pipeline_mode = #tpu.pipeline_mode<synchronous>, transform_indices = @transform_2, window_bounds = array<i64: 1, 128>}, {transform_indices = @transform_3, window_bounds = array<i64: 1, 104, 128>}]} {
    %c0 = arith.constant 0 : index
    %c0_0 = arith.constant 0 : index
    %0 = vector.load %arg2[%c0, %c0_0] : memref<576x128xbf16, #tpu.memory_space<vmem>>, vector<576x128xbf16>
    %c0_1 = arith.constant 0 : index
    %c0_2 = arith.constant 0 : index
    %c0_3 = arith.constant 0 : index
    %1 = vector.load %arg1[%c0_1, %c0_2, %c0_3] : memref<1x416x576xbf16, #tpu.memory_space<vmem>>, vector<1x416x576xbf16>
    %2 = vector.shape_cast %1 : vector<1x416x576xbf16> to vector<416x576xbf16>
    %cst = arith.constant dense<0.000000e+00> : vector<416x128xf32>
    %3 = tpu.matmul %2, %0, %cst {dimension_numbers = #tpu.dot_dimension_numbers<[1], [0], [0], [1], [0, 0, 1, 1], [], []>} : vector<416x576xbf16>, vector<576x128xbf16>, vector<416x128xf32> -> vector<416x128xf32>
    %4 = vector.extract_strided_slice %3 {offsets = [0, 0], sizes = [104, 128], strides = [1, 1]} : vector<416x128xf32> to vector<104x128xf32>
    %5 = vector.extract_strided_slice %3 {offsets = [104, 0], sizes = [104, 128], strides = [1, 1]} : vector<416x128xf32> to vector<104x128xf32>
    %6 = arith.maximumf %4, %5 : vector<104x128xf32>
    %7 = vector.extract_strided_slice %3 {offsets = [208, 0], sizes = [104, 128], strides = [1, 1]} : vector<416x128xf32> to vector<104x128xf32>
    %8 = arith.maximumf %6, %7 : vector<104x128xf32>
    %9 = vector.extract_strided_slice %3 {offsets = [312, 0], sizes = [104, 128], strides = [1, 1]} : vector<416x128xf32> to vector<104x128xf32>
    %10 = arith.maximumf %8, %9 : vector<104x128xf32>
    %c0_4 = arith.constant 0 : index
    %c0_5 = arith.constant 0 : index
    %11 = vector.load %arg3[%c0_4, %c0_5] : memref<1x128xf32, #tpu.memory_space<vmem>>, vector<1x128xf32>
    %12 = vector.broadcast %11 : vector<1x128xf32> to vector<104x128xf32>
    %13 = arith.addf %10, %12 : vector<104x128xf32>
    %cst_6 = arith.constant 0.000000e+00 : f32
    %14 = vector.broadcast %cst_6 : f32 to vector<104x128xf32>
    %15 = arith.maximumf %13, %14 : vector<104x128xf32>
    %16 = arith.truncf %15 : vector<104x128xf32> to vector<104x128xbf16>
    %c0_7 = arith.constant 0 : index
    %c0_8 = arith.constant 0 : index
    %c0_9 = arith.constant 0 : index
    %17 = vector.load %arg4[%c0_7, %c0_8, %c0_9] : memref<1x104x128xbf16, #tpu.memory_space<vmem>>, vector<1x104x128xbf16>
    %18 = vector.shape_cast %17 : vector<1x104x128xbf16> to vector<104x128xbf16>
    %19 = vector.shape_cast %16 : vector<104x128xbf16> to vector<1x104x128xbf16>
    tpu.vector_store %arg4[%c0_7, %c0_8, %c0_9], %19 {strides = array<i32>} : memref<1x104x128xbf16, #tpu.memory_space<vmem>>, vector<1x104x128xbf16>,
    return
  }
  func.func @transform_0(%arg0: i32) -> (i32, i32, i32) {
    %c0_i32 = arith.constant 0 : i32
    %c0_i32_0 = arith.constant 0 : i32
    %c0_i32_1 = arith.constant 0 : i32
    return %arg0, %c0_i32, %c0_i32_0 : i32, i32, i32
  }
  func.func @transform_1(%arg0: i32) -> (i32, i32) {
    %c0_i32 = arith.constant 0 : i32
    %c0_i32_0 = arith.constant 0 : i32
    %c0_i32_1 = arith.constant 0 : i32
    return %c0_i32, %c0_i32_0 : i32, i32
  }
  func.func @transform_2(%arg0: i32) -> (i32, i32) {
    %c0_i32 = arith.constant 0 : i32
    %c0_i32_0 = arith.constant 0 : i32
    %c0_i32_1 = arith.constant 0 : i32
    return %c0_i32, %c0_i32_0 : i32, i32
  }
  func.func @transform_3(%arg0: i32) -> (i32, i32, i32) {
    %c0_i32 = arith.constant 0 : i32
    %c0_i32_0 = arith.constant 0 : i32
    %c0_i32_1 = arith.constant 0 : i32
    return %arg0, %c0_i32, %c0_i32_0 : i32, i32, i32
  }
}

module attributes {stable_mosaic.version = 11 : i64} {
  func.func @_conv_bn_relu_pool_kernel(%arg0: i32, %arg1: memref<1x64x1152xbf16, #tpu.memory_space<vmem>>, %arg2: memref<1152x256xbf16, #tpu.memory_space<vmem>>, %arg3: memref<1x256xf32, #tpu.memory_space<vmem>>, %arg4: memref<1x16x256xbf16, #tpu.memory_space<vmem>>) attributes {dimension_semantics = [#tpu.dimension_semantics<parallel>], iteration_bounds = array<i64: 2>, scalar_prefetch = 0 : i64, scratch_operands = 0 : i64, tpu.core_type = #tpu.core_type<tc>, window_params = [{transform_indices = @transform_0, window_bounds = array<i64: 1, 64, 1152>}, {pipeline_mode = #tpu.pipeline_mode<synchronous>, transform_indices = @transform_1, window_bounds = array<i64: 1152, 256>}, {pipeline_mode = #tpu.pipeline_mode<synchronous>, transform_indices = @transform_2, window_bounds = array<i64: 1, 256>}, {transform_indices = @transform_3, window_bounds = array<i64: 1, 16, 256>}]} {
    %c0 = arith.constant 0 : index
    %c0_0 = arith.constant 0 : index
    %0 = vector.load %arg2[%c0, %c0_0] : memref<1152x256xbf16, #tpu.memory_space<vmem>>, vector<1152x256xbf16>
    %c0_1 = arith.constant 0 : index
    %c0_2 = arith.constant 0 : index
    %c0_3 = arith.constant 0 : index
    %1 = vector.load %arg1[%c0_1, %c0_2, %c0_3] : memref<1x64x1152xbf16, #tpu.memory_space<vmem>>, vector<1x64x1152xbf16>
    %2 = vector.shape_cast %1 : vector<1x64x1152xbf16> to vector<64x1152xbf16>
    %cst = arith.constant dense<0.000000e+00> : vector<64x256xf32>
    %3 = tpu.matmul %2, %0, %cst {dimension_numbers = #tpu.dot_dimension_numbers<[1], [0], [0], [1], [0, 0, 1, 1], [], []>} : vector<64x1152xbf16>, vector<1152x256xbf16>, vector<64x256xf32> -> vector<64x256xf32>
    %4 = vector.extract_strided_slice %3 {offsets = [0, 0], sizes = [16, 256], strides = [1, 1]} : vector<64x256xf32> to vector<16x256xf32>
    %5 = vector.extract_strided_slice %3 {offsets = [16, 0], sizes = [16, 256], strides = [1, 1]} : vector<64x256xf32> to vector<16x256xf32>
    %6 = arith.maximumf %4, %5 : vector<16x256xf32>
    %7 = vector.extract_strided_slice %3 {offsets = [32, 0], sizes = [16, 256], strides = [1, 1]} : vector<64x256xf32> to vector<16x256xf32>
    %8 = arith.maximumf %6, %7 : vector<16x256xf32>
    %9 = vector.extract_strided_slice %3 {offsets = [48, 0], sizes = [16, 256], strides = [1, 1]} : vector<64x256xf32> to vector<16x256xf32>
    %10 = arith.maximumf %8, %9 : vector<16x256xf32>
    %c0_4 = arith.constant 0 : index
    %c0_5 = arith.constant 0 : index
    %11 = vector.load %arg3[%c0_4, %c0_5] : memref<1x256xf32, #tpu.memory_space<vmem>>, vector<1x256xf32>
    %12 = vector.broadcast %11 : vector<1x256xf32> to vector<16x256xf32>
    %13 = arith.addf %10, %12 : vector<16x256xf32>
    %cst_6 = arith.constant 0.000000e+00 : f32
    %14 = vector.broadcast %cst_6 : f32 to vector<16x256xf32>
    %15 = arith.maximumf %13, %14 : vector<16x256xf32>
    %16 = arith.truncf %15 : vector<16x256xf32> to vector<16x256xbf16>
    %c0_7 = arith.constant 0 : index
    %c0_8 = arith.constant 0 : index
    %c0_9 = arith.constant 0 : index
    %17 = vector.load %arg4[%c0_7, %c0_8, %c0_9] : memref<1x16x256xbf16, #tpu.memory_space<vmem>>, vector<1x16x256xbf16>
    %18 = vector.shape_cast %17 : vector<1x16x256xbf16> to vector<16x256xbf16>
    %19 = vector.shape_cast %16 : vector<16x256xbf16> to vector<1x16x256xbf16>
    tpu.vector_store %arg4[%c0_7, %c0_8, %c0_9], %19 {strides = array<i32>} : memref<1x16x256xbf16, #tpu.memory_space<vmem>>, vector<1x16x256xbf16>,
    return
  }
  func.func @transform_0(%arg0: i32) -> (i32, i32, i32) {
    %c0_i32 = arith.constant 0 : i32
    %c0_i32_0 = arith.constant 0 : i32
    %c0_i32_1 = arith.constant 0 : i32
    return %arg0, %c0_i32, %c0_i32_0 : i32, i32, i32
  }
  func.func @transform_1(%arg0: i32) -> (i32, i32) {
    %c0_i32 = arith.constant 0 : i32
    %c0_i32_0 = arith.constant 0 : i32
    %c0_i32_1 = arith.constant 0 : i32
    return %c0_i32, %c0_i32_0 : i32, i32
  }
  func.func @transform_2(%arg0: i32) -> (i32, i32) {
    %c0_i32 = arith.constant 0 : i32
    %c0_i32_0 = arith.constant 0 : i32
    %c0_i32_1 = arith.constant 0 : i32
    return %c0_i32, %c0_i32_0 : i32, i32
  }
  func.func @transform_3(%arg0: i32) -> (i32, i32, i32) {
    %c0_i32 = arith.constant 0 : i32
    %c0_i32_0 = arith.constant 0 : i32
    %c0_i32_1 = arith.constant 0 : i32
    return %arg0, %c0_i32, %c0_i32_0 : i32, i32, i32
  }
}

module attributes {stable_mosaic.version = 11 : i64} {
  func.func @_conv_bn_relu_pool_kernel(%arg0: i32, %arg1: memref<1x32x2304xbf16, #tpu.memory_space<vmem>>, %arg2: memref<2304x256xbf16, #tpu.memory_space<vmem>>, %arg3: memref<1x256xf32, #tpu.memory_space<vmem>>, %arg4: memref<1x8x256xf32, #tpu.memory_space<vmem>>) attributes {dimension_semantics = [#tpu.dimension_semantics<parallel>], iteration_bounds = array<i64: 2>, scalar_prefetch = 0 : i64, scratch_operands = 0 : i64, tpu.core_type = #tpu.core_type<tc>, window_params = [{transform_indices = @transform_0, window_bounds = array<i64: 1, 32, 2304>}, {pipeline_mode = #tpu.pipeline_mode<synchronous>, transform_indices = @transform_1, window_bounds = array<i64: 2304, 256>}, {pipeline_mode = #tpu.pipeline_mode<synchronous>, transform_indices = @transform_2, window_bounds = array<i64: 1, 256>}, {transform_indices = @transform_3, window_bounds = array<i64: 1, 8, 256>}]} {
    %c0 = arith.constant 0 : index
    %c0_0 = arith.constant 0 : index
    %0 = vector.load %arg2[%c0, %c0_0] : memref<2304x256xbf16, #tpu.memory_space<vmem>>, vector<2304x256xbf16>
    %c0_1 = arith.constant 0 : index
    %c0_2 = arith.constant 0 : index
    %c0_3 = arith.constant 0 : index
    %1 = vector.load %arg1[%c0_1, %c0_2, %c0_3] : memref<1x32x2304xbf16, #tpu.memory_space<vmem>>, vector<1x32x2304xbf16>
    %2 = vector.shape_cast %1 : vector<1x32x2304xbf16> to vector<32x2304xbf16>
    %cst = arith.constant dense<0.000000e+00> : vector<32x256xf32>
    %3 = tpu.matmul %2, %0, %cst {dimension_numbers = #tpu.dot_dimension_numbers<[1], [0], [0], [1], [0, 0, 1, 1], [], []>} : vector<32x2304xbf16>, vector<2304x256xbf16>, vector<32x256xf32> -> vector<32x256xf32>
    %4 = vector.extract_strided_slice %3 {offsets = [0, 0], sizes = [8, 256], strides = [1, 1]} : vector<32x256xf32> to vector<8x256xf32>
    %5 = vector.extract_strided_slice %3 {offsets = [8, 0], sizes = [8, 256], strides = [1, 1]} : vector<32x256xf32> to vector<8x256xf32>
    %6 = arith.maximumf %4, %5 : vector<8x256xf32>
    %7 = vector.extract_strided_slice %3 {offsets = [16, 0], sizes = [8, 256], strides = [1, 1]} : vector<32x256xf32> to vector<8x256xf32>
    %8 = arith.maximumf %6, %7 : vector<8x256xf32>
    %9 = vector.extract_strided_slice %3 {offsets = [24, 0], sizes = [8, 256], strides = [1, 1]} : vector<32x256xf32> to vector<8x256xf32>
    %10 = arith.maximumf %8, %9 : vector<8x256xf32>
    %c0_4 = arith.constant 0 : index
    %c0_5 = arith.constant 0 : index
    %11 = vector.load %arg3[%c0_4, %c0_5] : memref<1x256xf32, #tpu.memory_space<vmem>>, vector<1x256xf32>
    %12 = vector.broadcast %11 : vector<1x256xf32> to vector<8x256xf32>
    %13 = arith.addf %10, %12 : vector<8x256xf32>
    %cst_6 = arith.constant 0.000000e+00 : f32
    %14 = vector.broadcast %cst_6 : f32 to vector<8x256xf32>
    %15 = arith.maximumf %13, %14 : vector<8x256xf32>
    %c0_7 = arith.constant 0 : index
    %c0_8 = arith.constant 0 : index
    %c0_9 = arith.constant 0 : index
    %16 = vector.load %arg4[%c0_7, %c0_8, %c0_9] : memref<1x8x256xf32, #tpu.memory_space<vmem>>, vector<1x8x256xf32>
    %17 = vector.shape_cast %16 : vector<1x8x256xf32> to vector<8x256xf32>
    %18 = vector.shape_cast %15 : vector<8x256xf32> to vector<1x8x256xf32>
    tpu.vector_store %arg4[%c0_7, %c0_8, %c0_9], %18 {strides = array<i32>} : memref<1x8x256xf32, #tpu.memory_space<vmem>>, vector<1x8x256xf32>,
    return
  }
  func.func @transform_0(%arg0: i32) -> (i32, i32, i32) {
    %c0_i32 = arith.constant 0 : i32
    %c0_i32_0 = arith.constant 0 : i32
    %c0_i32_1 = arith.constant 0 : i32
    return %arg0, %c0_i32, %c0_i32_0 : i32, i32, i32
  }
  func.func @transform_1(%arg0: i32) -> (i32, i32) {
    %c0_i32 = arith.constant 0 : i32
    %c0_i32_0 = arith.constant 0 : i32
    %c0_i32_1 = arith.constant 0 : i32
    return %c0_i32, %c0_i32_0 : i32, i32
  }
  func.func @transform_2(%arg0: i32) -> (i32, i32) {
    %c0_i32 = arith.constant 0 : i32
    %c0_i32_0 = arith.constant 0 : i32
    %c0_i32_1 = arith.constant 0 : i32
    return %c0_i32, %c0_i32_0 : i32, i32
  }
  func.func @transform_3(%arg0: i32) -> (i32, i32, i32) {
    %c0_i32 = arith.constant 0 : i32
    %c0_i32_0 = arith.constant 0 : i32
    %c0_i32_1 = arith.constant 0 : i32
    return %arg0, %c0_i32, %c0_i32_0 : i32, i32, i32
  }
}

</mosaic_0001>

<bundles_post_ra>
// kernel: feature_block.4
= control target key start
LH: loop header
LB: loop body
LE: loop exit
PB: predicated region body
PF: predicated region fallthrough
CT: control target
= control target key end

     0   :  { %s8098_s12 = smov 0   ;;  %s13931_s0 = inlined_call_operand.vmem [shape: bf16[2,9,16896], index: 0, kind: input, shape index: {}]   ;;  %s13932_s1 = inlined_call_operand.vmem [shape: bf16[64,9], index: 1, kind: input, shape index: {}]   ;;  %s13933_s2 = inlined_call_operand.vmem [shape: f32[64,1], index: 2, kind: input, shape index: {}]   ;;  %s13934_s3 = inlined_call_operand.vmem [shape: bf16[2,64,512], index: 3, kind: output, shape index: {}]  }
   0x1 LB: > { %s7394_s13 = sadd.s32 4294967295, %s8074_s12   ;;  %p7398_p0 = scmp.ge.s32.totalorder %s8074_s12, 1  ;;  %s8074_s12 = sphi %s8098_s12, %s13_s12  }
   0x2   : > { %p137_p1 = scmp.lt.s32.totalorder %s8074_s12, 3 }
   0x4   : > { %p138_p2 = pnand %p7398_p0, %p137_p1 }
   0x6   : > { %141 = sbr.rel (%p138_p2) target bundleno = 1302 (0x516), region = 32 }
   0xd   : > { %p161_p3 = scmp.lt.s32.totalorder %s7394_s13, 1  ;;  %vm273_vm0 = vcmask 1043456   ;;  %v13935_v0 = vmov 0   ;;  %vm274_vm1 = vcmask 1044480   ;;  %v8077_v1 = vmov 65535   ;;  %v8129_v10 = vld [vmem:[%s13932_s1] sm:$0xff]  }
   0xe   : > { %345 = vmatprep.mubr.bf16.mxu0 %v13935_v0  ;;  %418 = vmatprep.mubr.bf16.mxu1 %v13935_v0  ;;  %v275_v2 = vsel %vm273_vm0, 4294967295, %v8077_v1  ;;  %vm260_vm2 = vcmask 72704   ;;  %v8154_v25 = vld [vmem:[%s13932_s1 + $0x8] sm:$0xff]   ;;  %v8165_v26 = vld [vmem:[%s13932_s1 + $0x10] sm:$0xff]   ;;  %v8176_v27 = vld [vmem:[%s13932_s1 + $0x18] sm:$0xff]  }
   0xf   : > { %s15187_s13 = smov (!%p161_p3, %s7394_s13), 1  ;;  %7848 = vset.pattern.permute.xlu0 %v13935_v0  ;;  %7849 = vset.pattern.permute.xlu1 %v13935_v0  ;;  %v8118_v3 = vsel %vm274_vm1, %v275_v2, 0 }
  0x10   : > { %s7837_s14 = smul.u32 1056, %s15187_s13  ;;  %s7820_s25 = sshll.u32 %s15187_s13, 7 }
  0x11   : > { %s13838_s27 = scalar_lea.vmem %s13934_s3, %s7820_s25 }
  0x12   : > { %s8116_s17 = scalar_lea.vmem %s13931_s0, %s7837_s14 }
  0x13   : > { %v7850_v4 = vld [vmem:[%s8116_s17 + $0x4] ss:$528 sps:$4 sm:$0x1f]   ;;  %v7852_v5 = vld [vmem:[%s8116_s17 + $0xc] ss:$528 sps:$4 sm:$0x1f]  }
  0x14   : > { %v281_v6 = vand.u32 %v7850_v4, %v8118_v3  ;;  %v7854_v7 = vld [vmem:[%s8116_s17] ss:$528 sps:$4 sm:$0x1f]   ;;  %v7855_v8 = vld [vmem:[%s8116_s17 + $0x8] ss:$528 sps:$4 sm:$0x1f]   ;;  %v287_v9 = vand.u32 %v7852_v5, %v8118_v3 }
  0x15   : > { %v7857_v11 = vld [vmem:[%s8116_s17 + $0x10] ss:$528 sps:$4 sm:$0x1f]   ;;  %v278_v12 = vand.u32 %v7854_v7, %v8118_v3  ;;  %v284_v13 = vand.u32 %v7855_v8, %v8118_v3  ;;  %v7859_v14 = vld [vmem:[%s8116_s17 + $0x14] ss:$528 sps:$4 sm:$0x1f]  }
  0x16   : > { %313 = vmatprep.subr.bf16.mxu0 %v281_v6  ;;  %386 = vmatprep.subr.bf16.mxu1 %v287_v9  ;;  %v7860_v15 = vld [vmem:[%s8116_s17 + $0x18] ss:$528 sps:$4 sm:$0x1f]   ;;  %v7862_v16 = vld [vmem:[%s8116_s17 + $0x1c] ss:$528 sps:$4 sm:$0x1f]   ;;  %v293_v17 = vand.u32 %v7859_v14, %v8118_v3  ;;  %v290_v18 = vand.u32 %v7857_v11, %v8118_v3 }
  0x17   : > { %314 = vmatpush1.bf16.msra.mxu0 %v278_v12  ;;  %387 = vmatpush1.bf16.msra.mxu1 %v284_v13  ;;  %v299_v19 = vand.u32 %v7862_v16, %v8118_v3  ;;  %v296_v20 = vand.u32 %v7860_v15, %v8118_v3  ;;  %v7868_v21 = vld [vmem:[%s8116_s17 + $0x24] ss:$528 sps:$4 sm:$0x1f]   ;;  %v7871_v22 = vld [vmem:[%s8116_s17 + $0x2c] ss:$528 sps:$4 sm:$0x1f]  }
  0x18   : > { %459 = vmatprep.subr.bf16.mxu0 %v293_v17  ;;  %v305_v23 = vand.u32 %v7868_v21, %v8118_v3  ;;  %v311_v24 = vand.u32 %v7871_v22, %v8118_v3  ;;  %v7866_v28 = vld [vmem:[%s8116_s17 + $0x20] ss:$528 sps:$4 sm:$0x1f]   ;;  %v7869_v29 = vld [vmem:[%s8116_s17 + $0x28] ss:$528 sps:$4 sm:$0x1f]  }
  0x19   : > { %532 = vmatprep.subr.bf16.mxu1 %v299_v19  ;;  %v7874_v30 = vld [vmem:[%s8116_s17 + $0x34] ss:$528 sps:$4 sm:$0x1f]   ;;  %v7877_v31 = vld [vmem:[%s8116_s17 + $0x3c] ss:$528 sps:$4 sm:$0x1f]   ;;  %v302_v32 = vand.u32 %v7866_v28, %v8118_v3  ;;  %v308_v33 = vand.u32 %v7869_v29, %v8118_v3 }
  0x1a   : > { %7418 = vmatmul.mubr.msk.bf16.vlgmr.msra.gmra.mrb[0].mxu0 %vm260_vm2, %v8129_v10  ;;  %7422 = vmatmul.mubr.msk.bf16.vlgmr.msra.gmra.mrb[0].mxu1 %vm260_vm2, %v8129_v10  ;;  %v879_v34 = vand.u32 %v7874_v30, %v8118_v3  ;;  %v885_v35 = vand.u32 %v7877_v31, %v8118_v3  ;;  %v7872_v36 = vld [vmem:[%s8116_s17 + $0x30] ss:$528 sps:$4 sm:$0x1f]   ;;  %v7875_v37 = vld [vmem:[%s8116_s17 + $0x38] ss:$528 sps:$4 sm:$0x1f]  }
  0x1b   : > { %460 = vmatpush1.bf16.msra.mxu0 %v290_v18  ;;  %533 = vmatpush1.bf16.msra.mxu1 %v296_v20  ;;  %v7880_v38 = vld [vmem:[%s8116_s17 + $0x44] ss:$528 sps:$4 sm:$0x1f]   ;;  %v7883_v39 = vld [vmem:[%s8116_s17 + $0x4c] ss:$528 sps:$4 sm:$0x1f]   ;;  %v876_v40 = vand.u32 %v7872_v36, %v8118_v3  ;;  %v882_v41 = vand.u32 %v7875_v37, %v8118_v3 }
  0x1c   : > { %355 = vmatprep.mubr.bf16.mxu0 %v13935_v0  ;;  %428 = vmatprep.mubr.bf16.mxu1 %v13935_v0  ;;  %v891_v42 = vand.u32 %v7880_v38, %v8118_v3  ;;  %v897_v43 = vand.u32 %v7883_v39, %v8118_v3  ;;  %v7878_v44 = vld [vmem:[%s8116_s17 + $0x40] ss:$528 sps:$4 sm:$0x1f]   ;;  %v7881_v45 = vld [vmem:[%s8116_s17 + $0x48] ss:$528 sps:$4 sm:$0x1f]  }
  0x1d   : > { %605 = vmatprep.subr.bf16.mxu0 %v305_v23  ;;  %678 = vmatprep.subr.bf16.mxu1 %v311_v24  ;;  %v7886_v46 = vld [vmem:[%s8116_s17 + $0x54] ss:$528 sps:$4 sm:$0x1f]   ;;  %v7889_v47 = vld [vmem:[%s8116_s17 + $0x5c] ss:$528 sps:$4 sm:$0x1f]   ;;  %v888_v48 = vand.u32 %v7878_v44, %v8118_v3  ;;  %v894_v49 = vand.u32 %v7881_v45, %v8118_v3 }
  0x1e   : > { %v903_v50 = vand.u32 %v7886_v46, %v8118_v3  ;;  %v909_v51 = vand.u32 %v7889_v47, %v8118_v3  ;;  %v7884_v52 = vld [vmem:[%s8116_s17 + $0x50] ss:$528 sps:$4 sm:$0x1f]   ;;  %v7887_v53 = vld [vmem:[%s8116_s17 + $0x58] ss:$528 sps:$4 sm:$0x1f]  }
  0x1f   : > { %v7892_v54 = vld [vmem:[%s8116_s17 + $0x64] ss:$528 sps:$4 sm:$0x1f]   ;;  %v7895_v55 = vld [vmem:[%s8116_s17 + $0x6c] ss:$528 sps:$4 sm:$0x1f]   ;;  %v900_v56 = vand.u32 %v7884_v52, %v8118_v3  ;;  %v906_v57 = vand.u32 %v7887_v53, %v8118_v3 }
  0x20   : > { %v1509_v58 = vand.u32 %v7892_v54, %v8118_v3  ;;  %v1515_v59 = vand.u32 %v7895_v55, %v8118_v3  ;;  %v7890_v60 = vld [vmem:[%s8116_s17 + $0x60] ss:$528 sps:$4 sm:$0x1f]   ;;  %v7893_v61 = vld [vmem:[%s8116_s17 + $0x68] ss:$528 sps:$4 sm:$0x1f]  }
  0x21   : > { %v7898_v62 = vld [vmem:[%s8116_s17 + $0x74] ss:$528 sps:$4 sm:$0x1f]   ;;  %v7901_v63 = vld [vmem:[%s8116_s17 + $0x7c] ss:$528 sps:$4 sm:$0x1f]   ;;  %v1506_v1 = vand.u32 %v7890_v60, %v8118_v3  ;;  %v1512_v2 = vand.u32 %v7893_v61, %v8118_v3 }
  0x22   : > { %7419 = vmatmul.mubr.msk.bf16.gmra.mrb[4].mxu0 %vm260_vm2, %v8154_v25  ;;  %7423 = vmatmul.mubr.msk.bf16.gmra.mrb[4].mxu1 %vm260_vm2, %v8154_v25  ;;  %v1521_v4 = vand.u32 %v7898_v62, %v8118_v3  ;;  %v1527_v5 = vand.u32 %v7901_v63, %v8118_v3  ;;  %v7896_v6 = vld [vmem:[%s8116_s17 + $0x70] ss:$528 sps:$4 sm:$0x1f]   ;;  %v7899_v7 = vld [vmem:[%s8116_s17 + $0x78] ss:$528 sps:$4 sm:$0x1f]  }
  0x23   : > { %365 = vmatprep.mubr.bf16.mxu0 %v13935_v0  ;;  %438 = vmatprep.mubr.bf16.mxu1 %v13935_v0  ;;  %v7904_v8 = vld [vmem:[%s8116_s17 + $0x84] ss:$528 sps:$4 sm:$0x1f]   ;;  %v7907_v9 = vld [vmem:[%s8116_s17 + $0x8c] ss:$528 sps:$4 sm:$0x1f]   ;;  %v1518_v11 = vand.u32 %v7896_v6, %v8118_v3  ;;  %v1524_v12 = vand.u32 %v7899_v7, %v8118_v3 }
  0x24   : > { %v1533_v13 = vand.u32 %v7904_v8, %v8118_v3  ;;  %v1539_v14 = vand.u32 %v7907_v9, %v8118_v3  ;;  %v7902_v23 = vld [vmem:[%s8116_s17 + $0x80] ss:$528 sps:$4 sm:$0x1f]   ;;  %v7905_v24 = vld [vmem:[%s8116_s17 + $0x88] ss:$528 sps:$4 sm:$0x1f]  }
  0x25   : > { %v7910_v28 = vld [vmem:[%s8116_s17 + $0x94] ss:$528 sps:$4 sm:$0x1f]   ;;  %v7913_v31 = vld [vmem:[%s8116_s17 + $0x9c] ss:$528 sps:$4 sm:$0x1f]   ;;  %v1530_v36 = vand.u32 %v7902_v23, %v8118_v3  ;;  %v1536_v37 = vand.u32 %v7905_v24, %v8118_v3 }
  0x26   : > { %v7916_v23 = vld [vmem:[%s8116_s17 + $0xa4] ss:$528 sps:$4 sm:$0x1f]  }
  0x2a   : > { %7420 = vmatmul.mubr.msk.bf16.gmra.mrb[8].mxu0 %vm260_vm2, %v8165_v26  ;;  %7424 = vmatmul.mubr.msk.bf16.gmra.mrb[8].mxu1 %vm260_vm2, %v8165_v26 }
  0x2b   : > { %375 = vmatprep.mubr.bf16.mxu0 %v13935_v0  ;;  %448 = vmatprep.mubr.bf16.mxu1 %v13935_v0 }
  0x32   : > { %7421 = vmatmul.mubr.msk.bf16.gmra.mrb[12].mxu0 %vm260_vm2, %v8176_v27  ;;  %7425 = vmatmul.mubr.msk.bf16.gmra.mrb[12].mxu1 %vm260_vm2, %v8176_v27 }
  0x33   : > { %491 = vmatprep.mubr.bf16.mxu0 %v13935_v0  ;;  %564 = vmatprep.mubr.bf16.mxu1 %v13935_v0 }
  0x3a   : > { %7426 = vmatmul.mubr.msk.bf16.vlgmr.msra.gmra.mrb[16].mxu0 %vm260_vm2, %v8129_v10  ;;  %7430 = vmatmul.mubr.msk.bf16.vlgmr.msra.gmra.mrb[16].mxu1 %vm260_vm2, %v8129_v10 }
  0x3b   : > { %606 = vmatpush1.bf16.msra.mxu0 %v302_v32  ;;  %679 = vmatpush1.bf16.msra.mxu1 %v308_v33 }
  0x3c   : > { %501 = vmatprep.mubr.bf16.mxu0 %v13935_v0  ;;  %574 = vmatprep.mubr.bf16.mxu1 %v13935_v0 }
  0x3d   : > { %911 = vmatprep.subr.bf16.mxu0 %v879_v34  ;;  %984 = vmatprep.subr.bf16.mxu1 %v885_v35 }
  0x42   : > { %7427 = vmatmul.mubr.msk.bf16.gmra.mrb[20].mxu0 %vm260_vm2, %v8154_v25  ;;  %7431 = vmatmul.mubr.msk.bf16.gmra.mrb[20].mxu1 %vm260_vm2, %v8154_v25 }
  0x43   : > { %511 = vmatprep.mubr.bf16.mxu0 %v13935_v0  ;;  %584 = vmatprep.mubr.bf16.mxu1 %v13935_v0 }
  0x4a   : > { %7428 = vmatmul.mubr.msk.bf16.gmra.mrb[24].mxu0 %vm260_vm2, %v8165_v26  ;;  %7432 = vmatmul.mubr.msk.bf16.gmra.mrb[24].mxu1 %vm260_vm2, %v8165_v26 }
  0x4b   : > { %521 = vmatprep.mubr.bf16.mxu0 %v13935_v0  ;;  %594 = vmatprep.mubr.bf16.mxu1 %v13935_v0 }
  0x52   : > { %7429 = vmatmul.mubr.msk.bf16.gmra.mrb[28].mxu0 %vm260_vm2, %v8176_v27  ;;  %7433 = vmatmul.mubr.msk.bf16.gmra.mrb[28].mxu1 %vm260_vm2, %v8176_v27 }
  0x53   : > { %637 = vmatprep.mubr.bf16.mxu0 %v13935_v0  ;;  %710 = vmatprep.mubr.bf16.mxu1 %v13935_v0 }
  0x5a   : > { %7434 = vmatmul.mubr.msk.bf16.vlgmr.msra.gmra.mrb[32].mxu0 %vm260_vm2, %v8129_v10  ;;  %7438 = vmatmul.mubr.msk.bf16.vlgmr.msra.gmra.mrb[32].mxu1 %vm260_vm2, %v8129_v10 }
  0x5b   : > { %912 = vmatpush1.bf16.msra.mxu0 %v876_v40  ;;  %985 = vmatpush1.bf16.msra.mxu1 %v882_v41  ;;  %v2139_v40 = vand.u32 %v7910_v28, %v8118_v3  ;;  %v2145_v41 = vand.u32 %v7913_v31, %v8118_v3  ;;  %v7919_v31 = vld [vmem:[%s8116_s17 + $0xac] ss:$528 sps:$4 sm:$0x1f]  }
  0x5c   : > { %647 = vmatprep.mubr.bf16.mxu0 %v13935_v0  ;;  %720 = vmatprep.mubr.bf16.mxu1 %v13935_v0 }
  0x5d   : > { %1057 = vmatprep.subr.bf16.mxu0 %v891_v42  ;;  %1130 = vmatprep.subr.bf16.mxu1 %v897_v43 }
  0x62   : > { %7435 = vmatmul.mubr.msk.bf16.gmra.mrb[36].mxu0 %vm260_vm2, %v8154_v25  ;;  %7439 = vmatmul.mubr.msk.bf16.gmra.mrb[36].mxu1 %vm260_vm2, %v8154_v25 }
  0x63   : > { %657 = vmatprep.mubr.bf16.mxu0 %v13935_v0  ;;  %730 = vmatprep.mubr.bf16.mxu1 %v13935_v0 }
  0x6a   : > { %7436 = vmatmul.mubr.msk.bf16.gmra.mrb[40].mxu0 %vm260_vm2, %v8165_v26  ;;  %7440 = vmatmul.mubr.msk.bf16.gmra.mrb[40].mxu1 %vm260_vm2, %v8165_v26 }
  0x6b   : > { %667 = vmatprep.mubr.bf16.mxu0 %v13935_v0  ;;  %740 = vmatprep.mubr.bf16.mxu1 %v13935_v0 }
  0x72   : > { %7437 = vmatmul.mubr.msk.bf16.gmra.mrb[44].mxu0 %vm260_vm2, %v8176_v27  ;;  %7441 = vmatmul.mubr.msk.bf16.gmra.mrb[44].mxu1 %vm260_vm2, %v8176_v27 }
  0x73   : > { %943 = vmatprep.mubr.bf16.mxu0 %v13935_v0  ;;  %1016 = vmatprep.mubr.bf16.mxu1 %v13935_v0 }
  0x7a   : > { %7454 = vmatmul.mubr.msk.bf16.vlgmr.msra.gmra.mrb[48].mxu0 %vm260_vm2, %v8129_v10  ;;  %7458 = vmatmul.mubr.msk.bf16.vlgmr.msra.gmra.mrb[48].mxu1 %vm260_vm2, %v8129_v10 }
  0x7b   : > { %1058 = vmatpush1.bf16.msra.mxu0 %v888_v48  ;;  %1131 = vmatpush1.bf16.msra.mxu1 %v894_v49 }
  0x7c   : > { %953 = vmatprep.mubr.bf16.mxu0 %v13935_v0  ;;  %1026 = vmatprep.mubr.bf16.mxu1 %v13935_v0 }
  0x7d   : > { %1203 = vmatprep.subr.bf16.mxu0 %v903_v50  ;;  %1276 = vmatprep.subr.bf16.mxu1 %v909_v51 }
  0x82   : > { %7455 = vmatmul.mubr.msk.bf16.gmra.mrb[52].mxu0 %vm260_vm2, %v8154_v25  ;;  %7459 = vmatmul.mubr.msk.bf16.gmra.mrb[52].mxu1 %vm260_vm2, %v8154_v25 }
  0x83   : > { %963 = vmatprep.mubr.bf16.mxu0 %v13935_v0  ;;  %1036 = vmatprep.mubr.bf16.mxu1 %v13935_v0 }
  0x8a   : > { %7456 = vmatmul.mubr.msk.bf16.gmra.mrb[56].mxu0 %vm260_vm2, %v8165_v26  ;;  %7460 = vmatmul.mubr.msk.bf16.gmra.mrb[56].mxu1 %vm260_vm2, %v8165_v26 }
  0x8b   : > { %973 = vmatprep.mubr.bf16.mxu0 %v13935_v0  ;;  %1046 = vmatprep.mubr.bf16.mxu1 %v13935_v0 }
  0x92   : > { %7457 = vmatmul.mubr.msk.bf16.gmra.mrb[60].mxu0 %vm260_vm2, %v8176_v27  ;;  %7461 = vmatmul.mubr.msk.bf16.gmra.mrb[60].mxu1 %vm260_vm2, %v8176_v27 }
  0x93   : > { %1089 = vmatprep.mubr.bf16.mxu0 %v13935_v0  ;;  %1162 = vmatprep.mubr.bf16.mxu1 %v13935_v0 }
  0x9a   : > { %7462 = vmatmul.mubr.msk.bf16.vlgmr.msra.gmra.mrb[64].mxu0 %vm260_vm2, %v8129_v10  ;;  %7466 = vmatmul.mubr.msk.bf16.vlgmr.msra.gmra.mrb[64].mxu1 %vm260_vm2, %v8129_v10 }
  0x9b   : > { %1204 = vmatpush1.bf16.msra.mxu0 %v900_v56  ;;  %1277 = vmatpush1.bf16.msra.mxu1 %v906_v57 }
  0x9c   : > { %1099 = vmatprep.mubr.bf16.mxu0 %v13935_v0  ;;  %1172 = vmatprep.mubr.bf16.mxu1 %v13935_v0 }
  0x9d   : > { %1541 = vmatprep.subr.bf16.mxu0 %v1509_v58  ;;  %1614 = vmatprep.subr.bf16.mxu1 %v1515_v59 }
  0xa2   : > { %7463 = vmatmul.mubr.msk.bf16.gmra.mrb[68].mxu0 %vm260_vm2, %v8154_v25  ;;  %7467 = vmatmul.mubr.msk.bf16.gmra.mrb[68].mxu1 %vm260_vm2, %v8154_v25 }
  0xa3   : > { %1109 = vmatprep.mubr.bf16.mxu0 %v13935_v0  ;;  %1182 = vmatprep.mubr.bf16.mxu1 %v13935_v0 }
  0xaa   : > { %7464 = vmatmul.mubr.msk.bf16.gmra.mrb[72].mxu0 %vm260_vm2, %v8165_v26  ;;  %7468 = vmatmul.mubr.msk.bf16.gmra.mrb[72].mxu1 %vm260_vm2, %v8165_v26 }
  0xab   : > { %1119 = vmatprep.mubr.bf16.mxu0 %v13935_v0  ;;  %1192 = vmatprep.mubr.bf16.mxu1 %v13935_v0 }
  0xb2   : > { %7465 = vmatmul.mubr.msk.bf16.gmra.mrb[76].mxu0 %vm260_vm2, %v8176_v27  ;;  %7469 = vmatmul.mubr.msk.bf16.gmra.mrb[76].mxu1 %vm260_vm2, %v8176_v27 }
  0xb3   : > { %1235 = vmatprep.mubr.bf16.mxu0 %v13935_v0  ;;  %1308 = vmatprep.mubr.bf16.mxu1 %v13935_v0 }
  0xba   : > { %7470 = vmatmul.mubr.msk.bf16.vlgmr.msra.gmra.mrb[80].mxu0 %vm260_vm2, %v8129_v10  ;;  %7474 = vmatmul.mubr.msk.bf16.vlgmr.msra.gmra.mrb[80].mxu1 %vm260_vm2, %v8129_v10 }
  0xbb   : > { %1542 = vmatpush1.bf16.msra.mxu0 %v1506_v1  ;;  %1615 = vmatpush1.bf16.msra.mxu1 %v1512_v2 }
  0xbc   : > { %1245 = vmatprep.mubr.bf16.mxu0 %v13935_v0  ;;  %1318 = vmatprep.mubr.bf16.mxu1 %v13935_v0 }
  0xbd   : > { %1687 = vmatprep.subr.bf16.mxu0 %v1521_v4  ;;  %1760 = vmatprep.subr.bf16.mxu1 %v1527_v5 }
  0xc2   : > { %7471 = vmatmul.mubr.msk.bf16.gmra.mrb[84].mxu0 %vm260_vm2, %v8154_v25  ;;  %7475 = vmatmul.mubr.msk.bf16.gmra.mrb[84].mxu1 %vm260_vm2, %v8154_v25 }
  0xc3   : > { %1255 = vmatprep.mubr.bf16.mxu0 %v13935_v0  ;;  %1328 = vmatprep.mubr.bf16.mxu1 %v13935_v0 }
  0xca   : > { %7472 = vmatmul.mubr.msk.bf16.gmra.mrb[88].mxu0 %vm260_vm2, %v8165_v26  ;;  %7476 = vmatmul.mubr.msk.bf16.gmra.mrb[88].mxu1 %vm260_vm2, %v8165_v26 }
  0xcb   : > { %1265 = vmatprep.mubr.bf16.mxu0 %v13935_v0  ;;  %1338 = vmatprep.mubr.bf16.mxu1 %v13935_v0 }
  0xd2   : > { %7473 = vmatmul.mubr.msk.bf16.gmra.mrb[92].mxu0 %vm260_vm2, %v8176_v27  ;;  %7477 = vmatmul.mubr.msk.bf16.gmra.mrb[92].mxu1 %vm260_vm2, %v8176_v27 }
  0xd3   : > { %1573 = vmatprep.mubr.bf16.mxu0 %v13935_v0  ;;  %1646 = vmatprep.mubr.bf16.mxu1 %v13935_v0 }
  0xda   : > { %7490 = vmatmul.mubr.msk.bf16.vlgmr.msra.gmra.mrb[96].mxu0 %vm260_vm2, %v8129_v10  ;;  %7494 = vmatmul.mubr.msk.bf16.vlgmr.msra.gmra.mrb[96].mxu1 %vm260_vm2, %v8129_v10 }
  0xdb   : > { %1688 = vmatpush1.bf16.msra.mxu0 %v1518_v11  ;;  %1761 = vmatpush1.bf16.msra.mxu1 %v1524_v12 }
  0xdc   : > { %1583 = vmatprep.mubr.bf16.mxu0 %v13935_v0  ;;  %1656 = vmatprep.mubr.bf16.mxu1 %v13935_v0 }
  0xdd   : > { %1833 = vmatprep.subr.bf16.mxu0 %v1533_v13  ;;  %1906 = vmatprep.subr.bf16.mxu1 %v1539_v14  ;;  %v7908_v13 = vld [vmem:[%s8116_s17 + $0x90] ss:$528 sps:$4 sm:$0x1f]   ;;  %v7911_v14 = vld [vmem:[%s8116_s17 + $0x98] ss:$528 sps:$4 sm:$0x1f]  }
  0xde   : > { %v2136_v2 = vand.u32 %v7908_v13, %v8118_v3  ;;  %v2151_v13 = vand.u32 %v7916_v23, %v8118_v3 }
  0xe2   : > { %7491 = vmatmul.mubr.msk.bf16.gmra.mrb[100].mxu0 %vm260_vm2, %v8154_v25  ;;  %7495 = vmatmul.mubr.msk.bf16.gmra.mrb[100].mxu1 %vm260_vm2, %v8154_v25 }
  0xe3   : > { %1593 = vmatprep.mubr.bf16.mxu0 %v13935_v0  ;;  %1666 = vmatprep.mubr.bf16.mxu1 %v13935_v0 }
  0xea   : > { %7492 = vmatmul.mubr.msk.bf16.gmra.mrb[104].mxu0 %vm260_vm2, %v8165_v26  ;;  %7496 = vmatmul.mubr.msk.bf16.gmra.mrb[104].mxu1 %vm260_vm2, %v8165_v26 }
  0xeb   : > { %1603 = vmatprep.mubr.bf16.mxu0 %v13935_v0  ;;  %1676 = vmatprep.mubr.bf16.mxu1 %v13935_v0 }
  0xed   : > { %v8370_v15 = vpop.f32.mrb[0].mxu0  ;;  %v8372_v16 = vpop.f32.mrb[0].mxu1 }
  0xee   : > { %v8374_v17 = vpop.f32.mrb[1].mxu0  ;;  %v8376_v18 = vpop.f32.mrb[1].mxu1 }
  0xef   : > { %v8378_v19 = vpop.f32.mrb[2].mxu0  ;;  %v8380_v20 = vpop.f32.mrb[2].mxu1 }
  0xf0   : > { %v8382_v21 = vpop.f32.mrb[3].mxu0  ;;  %v8384_v22 = vpop.f32.mrb[3].mxu1 }
  0xf2   : > { %7493 = vmatmul.mubr.msk.bf16.gmra.mrb[108].mxu0 %vm260_vm2, %v8176_v27  ;;  %7497 = vmatmul.mubr.msk.bf16.gmra.mrb[108].mxu1 %vm260_vm2, %v8176_v27 }
  0xf3   : > { %1719 = vmatprep.mubr.bf16.mxu0 %v13935_v0  ;;  %1792 = vmatprep.mubr.bf16.mxu1 %v13935_v0 }
  0xf5   : > { %v8395_v29 = vpop.f32.mrb[4].mxu0  ;;  %v8397_v30 = vpop.f32.mrb[4].mxu1 }
  0xf6   : > { %v8400_v32 = vpop.f32.mrb[5].mxu0  ;;  %v8402_v33 = vpop.f32.mrb[5].mxu1 }
  0xf7   : > { %v8404_v34 = vpop.f32.mrb[6].mxu0  ;;  %v8406_v35 = vpop.f32.mrb[6].mxu1 }
  0xf8   : > { %v8410_v38 = vpop.f32.mrb[7].mxu0  ;;  %v8412_v39 = vpop.f32.mrb[7].mxu1 }
  0xfa   : > { %7498 = vmatmul.mubr.msk.bf16.vlgmr.msra.gmra.mrb[112].mxu0 %vm260_vm2, %v8129_v10  ;;  %7502 = vmatmul.mubr.msk.bf16.vlgmr.msra.gmra.mrb[112].mxu1 %vm260_vm2, %v8129_v10 }
  0xfb   : > { %1834 = vmatpush1.bf16.msra.mxu0 %v1530_v36  ;;  %1907 = vmatpush1.bf16.msra.mxu1 %v1536_v37  ;;  %v2142_v36 = vand.u32 %v7911_v14, %v8118_v3  ;;  %v2157_v14 = vand.u32 %v7919_v31, %v8118_v3 }
  0xfc   : > { %1729 = vmatprep.mubr.bf16.mxu0 %v13935_v0  ;;  %1802 = vmatprep.mubr.bf16.mxu1 %v13935_v0 }
  0xfd   : > { %v8422_v42 = vpop.f32.mrb[8].mxu0  ;;  %v8424_v43 = vpop.f32.mrb[8].mxu1  ;;  %2171 = vmatprep.subr.bf16.mxu0 %v2139_v40  ;;  %2244 = vmatprep.subr.bf16.mxu1 %v2145_v41 }
  0xfe   : > { %v8426_v44 = vpop.f32.mrb[9].mxu0  ;;  %v8428_v45 = vpop.f32.mrb[9].mxu1 }
  0xff   : > { %v8430_v46 = vpop.f32.mrb[10].mxu0  ;;  %v8432_v47 = vpop.f32.mrb[10].mxu1 }
 0x100   : > { %14193 = vst [vmem:[#allocation2_spill] sm:$0xff] %v8432_v47  ;;  %v8434_v48 = vpop.f32.mrb[11].mxu0  ;;  %v8436_v49 = vpop.f32.mrb[11].mxu1 }
 0x101   : > { %14194 = vst [vmem:[#allocation3_spill] sm:$0xff] %v8434_v48  ;;  %14195 = vst [vmem:[#allocation4_spill] sm:$0xff] %v8436_v49 }
 0x102   : > { %7499 = vmatmul.mubr.msk.bf16.gmra.mrb[116].mxu0 %vm260_vm2, %v8154_v25  ;;  %7503 = vmatmul.mubr.msk.bf16.gmra.mrb[116].mxu1 %vm260_vm2, %v8154_v25 }
 0x103   : > { %1739 = vmatprep.mubr.bf16.mxu0 %v13935_v0  ;;  %1812 = vmatprep.mubr.bf16.mxu1 %v13935_v0 }
 0x105   : > { %v8444_v50 = vpop.f32.mrb[12].mxu0  ;;  %v8446_v51 = vpop.f32.mrb[12].mxu1 }
 0x106   : > { %14196 = vst [vmem:[#allocation5_spill] sm:$0xff] %v8446_v51  ;;  %v8448_v52 = vpop.f32.mrb[13].mxu0  ;;  %v8450_v53 = vpop.f32.mrb[13].mxu1 }
 0x107   : > { %v8452_v54 = vpop.f32.mrb[14].mxu0  ;;  %v8454_v55 = vpop.f32.mrb[14].mxu1 }
 0x108   : > { %14197 = vst [vmem:[#allocation6_spill] sm:$0xff] %v8454_v55  ;;  %v8456_v56 = vpop.f32.mrb[15].mxu0  ;;  %v8458_v57 = vpop.f32.mrb[15].mxu1 }
 0x109   : > { %14198 = vst [vmem:[#allocation7_spill] sm:$0xff] %v8456_v56  ;;  %14199 = vst [vmem:[#allocation8_spill] sm:$0xff] %v8458_v57 }
 0x10a   : > { %7500 = vmatmul.mubr.msk.bf16.gmra.mrb[120].mxu0 %vm260_vm2, %v8165_v26  ;;  %7504 = vmatmul.mubr.msk.bf16.gmra.mrb[120].mxu1 %vm260_vm2, %v8165_v26 }
 0x10b   : > { %1749 = vmatprep.mubr.bf16.mxu0 %v13935_v0  ;;  %1822 = vmatprep.mubr.bf16.mxu1 %v13935_v0 }
 0x10d   : > { %v8466_v58 = vpop.f32.mrb[16].mxu0  ;;  %v8468_v59 = vpop.f32.mrb[16].mxu1 }
 0x10e   : > { %v8474_v62 = vpop.f32.mrb[17].mxu0  ;;  %v8476_v63 = vpop.f32.mrb[17].mxu1 }
 0x10f   : > { %v8482_v4 = vpop.f32.mrb[18].mxu0  ;;  %v8484_v5 = vpop.f32.mrb[18].mxu1  ;;  %v14211_v56 = vmax.f32 %v8376_v18, %v8476_v63 }
 0x110   : > { %v8490_v8 = vpop.f32.mrb[19].mxu0  ;;  %v8492_v9 = vpop.f32.mrb[19].mxu1 }
 0x111   : > { %v14214_v18 = vmax.f32 %v8382_v21, %v8490_v8  ;;  %v7922_v21 = vld [vmem:[%s8116_s17 + $0xb4] ss:$528 sps:$4 sm:$0x1f]   ;;  %v7925_v8 = vld [vmem:[%s8116_s17 + $0xbc] ss:$528 sps:$4 sm:$0x1f]  }
 0x112   : > { %7501 = vmatmul.mubr.msk.bf16.gmra.mrb[124].mxu0 %vm260_vm2, %v8176_v27  ;;  %7505 = vmatmul.mubr.msk.bf16.gmra.mrb[124].mxu1 %vm260_vm2, %v8176_v27 }
 0x113   : > { %1865 = vmatprep.mubr.bf16.mxu0 %v13935_v0  ;;  %1938 = vmatprep.mubr.bf16.mxu1 %v13935_v0 }
 0x115   : > { %v8507_v24 = vpop.f32.mrb[20].mxu0  ;;  %v8509_v28 = vpop.f32.mrb[20].mxu1 }
 0x116   : > { %v8516_v40 = vpop.f32.mrb[21].mxu0  ;;  %v8518_v41 = vpop.f32.mrb[21].mxu1 }
 0x117   : > { %v8524_v7 = vpop.f32.mrb[22].mxu0  ;;  %v8526_v6 = vpop.f32.mrb[22].mxu1 }
 0x118   : > { %v8534_v61 = vpop.f32.mrb[23].mxu0  ;;  %v8536_v12 = vpop.f32.mrb[23].mxu1 }
 0x11a   : > { %7506 = vmatmul.mubr.msk.bf16.vlgmr.msra.gmra.mrb[128].mxu0 %vm260_vm2, %v8129_v10  ;;  %7510 = vmatmul.mubr.msk.bf16.vlgmr.msra.gmra.mrb[128].mxu1 %vm260_vm2, %v8129_v10 }
 0x11b   : > { %2172 = vmatpush1.bf16.msra.mxu0 %v2136_v2  ;;  %2245 = vmatpush1.bf16.msra.mxu1 %v2142_v36 }
 0x11c   : > { %1875 = vmatprep.mubr.bf16.mxu0 %v13935_v0  ;;  %1948 = vmatprep.mubr.bf16.mxu1 %v13935_v0 }
 0x11d   : > { %v8550_v11 = vpop.f32.mrb[24].mxu0  ;;  %v8552_v1 = vpop.f32.mrb[24].mxu1  ;;  %2317 = vmatprep.subr.bf16.mxu0 %v2151_v13  ;;  %2390 = vmatprep.subr.bf16.mxu1 %v2157_v14  ;;  %v14203_v14 = vmov 0  }
 0x11e   : > { %v8558_v60 = vpop.f32.mrb[25].mxu0  ;;  %v8560_v10 = vpop.f32.mrb[25].mxu1 }
 0x11f   : > { %v8566_v37 = vpop.f32.mrb[26].mxu0  ;;  %v8568_v13 = vpop.f32.mrb[26].mxu1 }
 0x120   : > { %14200 = vst [vmem:[#allocation9_spill] sm:$0xff] %v8568_v13  ;;  %v8574_v23 = vpop.f32.mrb[27].mxu0  ;;  %v8576_v0 = vpop.f32.mrb[27].mxu1 }
 0x121   : > { %14201 = vst [vmem:[#allocation10_spill] sm:$0xff] %v8574_v23  ;;  %14202 = vst [vmem:[#allocation11_spill] sm:$0xff] %v8576_v0  ;;  %v14209_v23 = vmax.f32 %v8372_v16, %v8468_v59  ;;  %v14212_v16 = vmax.f32 %v8378_v19, %v8482_v4  ;;  %v7914_v19 = vld [vmem:[%s8116_s17 + $0xa0] ss:$528 sps:$4 sm:$0x1f]  }
 0x122   : > { %7507 = vmatmul.mubr.msk.bf16.gmra.mrb[132].mxu0 %vm260_vm2, %v8154_v25  ;;  %7511 = vmatmul.mubr.msk.bf16.gmra.mrb[132].mxu1 %vm260_vm2, %v8154_v25 }
 0x123   : > { %1885 = vmatprep.mubr.bf16.mxu0 %v14203_v14  ;;  %1958 = vmatprep.mubr.bf16.mxu1 %v14203_v14 }
 0x125   : > { %v8588_v31 = vpop.f32.mrb[28].mxu0  ;;  %v8590_v13 = vpop.f32.mrb[28].mxu1 }
 0x126   : > { %14204 = vst [vmem:[#allocation12_spill] sm:$0xff] %v8590_v13  ;;  %v8596_v0 = vpop.f32.mrb[29].mxu0  ;;  %v8598_v49 = vpop.f32.mrb[29].mxu1 }
 0x127   : > { %v8604_v48 = vpop.f32.mrb[30].mxu0  ;;  %v8606_v47 = vpop.f32.mrb[30].mxu1 }
 0x128   : > { %14205 = vst [vmem:[#allocation13_spill] sm:$0xff] %v8606_v47  ;;  %v8612_v13 = vpop.f32.mrb[31].mxu0  ;;  %v8614_v51 = vpop.f32.mrb[31].mxu1  ;;  %v14208_v47 = vmax.f32 %v8370_v15, %v8466_v58 }
 0x129   : > { %14206 = vst [vmem:[#allocation14_spill] sm:$0xff] %v8612_v13  ;;  %14207 = vst [vmem:[#allocation15_spill] sm:$0xff] %v8614_v51 }
 0x12a   : > { %7508 = vmatmul.mubr.msk.bf16.gmra.mrb[136].mxu0 %vm260_vm2, %v8165_v26  ;;  %7512 = vmatmul.mubr.msk.bf16.gmra.mrb[136].mxu1 %vm260_vm2, %v8165_v26  ;;  %v14210_v26 = vmax.f32 %v8374_v17, %v8474_v62  ;;  %v14213_v17 = vmax.f32 %v8380_v20, %v8484_v5  ;;  %v7917_v20 = vld [vmem:[%s8116_s17 + $0xa8] ss:$528 sps:$4 sm:$0x1f]  }
 0x12b   : > { %1895 = vmatprep.mubr.bf16.mxu0 %v14203_v14  ;;  %1968 = vmatprep.mubr.bf16.mxu1 %v14203_v14 }
 0x12d   : > { %v639_v36 = vpop.f32.mrb[32].mxu0  ;;  %v712_v2 = vpop.f32.mrb[32].mxu1 }
 0x12e   : > { %v8629_v55 = vmax.f32 %v14208_v47, %v639_v36  ;;  %v8634_v25 = vmax.f32 %v14209_v23, %v712_v2  ;;  %v641_v51 = vpop.f32.mrb[33].mxu0  ;;  %v714_v57 = vpop.f32.mrb[33].mxu1  ;;  %v14217_v2 = vmax.f32 %v8397_v30, %v8509_v28  ;;  %v2154_v30 = vand.u32 %v7917_v20, %v8118_v3 }
 0x12f   : > { %v8639_v13 = vmax.f32 %v14210_v26, %v641_v51  ;;  %v8644_v15 = vmax.f32 %v14211_v56, %v714_v57  ;;  %v643_v47 = vpop.f32.mrb[34].mxu0  ;;  %v716_v58 = vpop.f32.mrb[34].mxu1  ;;  %v14215_v57 = vmax.f32 %v8384_v22, %v8492_v9  ;;  %v14216_v22 = vmax.f32 %v8395_v29, %v8507_v24 }
 0x130   : > { %v8649_v59 = vmax.f32 %v14212_v16, %v643_v47  ;;  %v8654_v62 = vmax.f32 %v14213_v17, %v716_v58  ;;  %v645_v51 = vpop.f32.mrb[35].mxu0  ;;  %v718_v23 = vpop.f32.mrb[35].mxu1  ;;  %v14218_v58 = vmax.f32 %v8400_v32, %v8516_v40  ;;  %v14219_v17 = vmax.f32 %v8402_v33, %v8518_v41 }
 0x131   : > { %v8659_v56 = vmax.f32 %v14214_v18, %v645_v51  ;;  %v8664_v63 = vmax.f32 %v14215_v57, %v718_v23  ;;  %v2148_v23 = vand.u32 %v7914_v19, %v8118_v3  ;;  %v14220_v28 = vmax.f32 %v8404_v34, %v8524_v7 }
 0x132   : > { %7509 = vmatmul.mubr.msk.bf16.gmra.mrb[140].mxu0 %vm260_vm2, %v8176_v27  ;;  %7513 = vmatmul.mubr.msk.bf16.gmra.mrb[140].mxu1 %vm260_vm2, %v8176_v27  ;;  %v14221_v32 = vmax.f32 %v8406_v35, %v8526_v6  ;;  %v14222_v41 = vmax.f32 %v8410_v38, %v8534_v61  ;;  %v14223_v19 = vmax.f32 %v8412_v39, %v8536_v12  ;;  %v8723_v35 = vld [vmem:[%s13932_s1] sm:$0xff]  }
 0x133   : > { %2203 = vmatprep.mubr.bf16.mxu0 %v14203_v14  ;;  %2276 = vmatprep.mubr.bf16.mxu1 %v14203_v14  ;;  %v2163_v34 = vand.u32 %v7922_v21, %v8118_v3  ;;  %v2169_v7 = vand.u32 %v7925_v8, %v8118_v3  ;;  %14224 = vst [vmem:[#allocation16_spill] sm:$0xff] %v8723_v35 }
 0x134   : > { %v14225_v61 = vmax.f32 %v8422_v42, %v8550_v11  ;;  %v14226_v12 = vmax.f32 %v8424_v43, %v8552_v1  ;;  %v14230_v1 = vld [vmem:[#allocation2_spill] sm:$0xff] }
 0x135   : > { %v649_v4 = vpop.f32.mrb[36].mxu0  ;;  %v722_v5 = vpop.f32.mrb[36].mxu1 }
 0x136   : > { %v8679_v9 = vmax.f32 %v14216_v22, %v649_v4  ;;  %v8684_v36 = vmax.f32 %v14217_v2, %v722_v5  ;;  %v651_v26 = vpop.f32.mrb[37].mxu0  ;;  %v724_v47 = vpop.f32.mrb[37].mxu1  ;;  %v14227_v22 = vmax.f32 %v8426_v44, %v8558_v60 }
 0x137   : > { %v8689_v16 = vmax.f32 %v14218_v58, %v651_v26  ;;  %v8694_v51 = vmax.f32 %v14219_v17, %v724_v47  ;;  %v653_v29 = vpop.f32.mrb[38].mxu0  ;;  %v726_v24 = vpop.f32.mrb[38].mxu1  ;;  %v14228_v26 = vmax.f32 %v8428_v45, %v8560_v10  ;;  %v14229_v58 = vmax.f32 %v8430_v46, %v8566_v37  ;;  %v14231_v17 = vld [vmem:[#allocation9_spill] sm:$0xff]  ;;  %v14237_v10 = vld [vmem:[#allocation4_spill] sm:$0xff]  ;;  %v8774_v46 = vld [vmem:[%s13932_s1 + $0x8] sm:$0xff]  }
 0x138   : > { %v8701_v18 = vmax.f32 %v14220_v28, %v653_v29  ;;  %v8706_v40 = vmax.f32 %v14221_v32, %v726_v24  ;;  %v655_v57 = vpop.f32.mrb[39].mxu0  ;;  %v728_v33 = vpop.f32.mrb[39].mxu1  ;;  %v14232_v29 = vmax.f32 %v14230_v1, %v14231_v17  ;;  %v14238_v32 = vld [vmem:[#allocation11_spill] sm:$0xff]  ;;  %v14250_v1 = vld [vmem:[#allocation6_spill] sm:$0xff]  ;;  %v14251_v17 = vld [vmem:[#allocation13_spill] sm:$0xff] }
 0x139   : > { %v8711_v4 = vmax.f32 %v14222_v41, %v655_v57  ;;  %v8716_v20 = vmax.f32 %v14223_v19, %v728_v33  ;;  %v14239_v57 = vmax.f32 %v14237_v10, %v14238_v32  ;;  %v14242_v19 = vmax.f32 %v8444_v50, %v8588_v31 }
 0x13a   : > { %7526 = vmatmul.mubr.msk.bf16.vlgmr.msra.gmra.mrb[144].mxu0 %vm260_vm2, %v8723_v35  ;;  %7530 = vmatmul.mubr.msk.bf16.vlgmr.msra.gmra.mrb[144].mxu1 %vm260_vm2, %v8723_v35 }
 0x13b   : > { %2318 = vmatpush1.bf16.msra.mxu0 %v2148_v23  ;;  %2391 = vmatpush1.bf16.msra.mxu1 %v2154_v30  ;;  %v14233_v23 = vld [vmem:[#allocation3_spill] sm:$0xff]  ;;  %v14234_v30 = vld [vmem:[#allocation10_spill] sm:$0xff] }
 0x13c   : > { %2213 = vmatprep.mubr.bf16.mxu0 %v14203_v14  ;;  %2286 = vmatprep.mubr.bf16.mxu1 %v14203_v14  ;;  %v14235_v28 = vmax.f32 %v14233_v23, %v14234_v30  ;;  %14241 = vst [vmem:[#allocation3_spill] sm:$0xff] %v8774_v46  ;;  %v14255_v23 = vld [vmem:[#allocation14_spill] sm:$0xff] }
 0x13d   : > { %v659_v38 = vpop.f32.mrb[40].mxu0  ;;  %v732_v39 = vpop.f32.mrb[40].mxu1  ;;  %2463 = vmatprep.subr.bf16.mxu0 %v2163_v34  ;;  %2536 = vmatprep.subr.bf16.mxu1 %v2169_v7  ;;  %v14243_v7 = vld [vmem:[#allocation5_spill] sm:$0xff] }
 0x13e   : > { %v8734_v6 = vmax.f32 %v14225_v61, %v659_v38  ;;  %v8739_v21 = vmax.f32 %v14226_v12, %v732_v39  ;;  %v661_v5 = vpop.f32.mrb[41].mxu0  ;;  %v734_v8 = vpop.f32.mrb[41].mxu1  ;;  %v14244_v38 = vld [vmem:[#allocation12_spill] sm:$0xff] }
 0x13f   : > { %v8744_v2 = vmax.f32 %v14227_v22, %v661_v5  ;;  %v8749_v47 = vmax.f32 %v14228_v26, %v734_v8  ;;  %v663_v42 = vpop.f32.mrb[42].mxu0  ;;  %v736_v11 = vpop.f32.mrb[42].mxu1  ;;  %v14245_v39 = vmax.f32 %v14243_v7, %v14244_v38  ;;  %v14247_v8 = vmax.f32 %v8448_v52, %v8596_v0 }
 0x140   : > { %v8754_v43 = vmax.f32 %v14229_v58, %v663_v42  ;;  %v8759_v24 = vmax.f32 %v14232_v29, %v736_v11  ;;  %v665_v44 = vpop.f32.mrb[43].mxu0  ;;  %v738_v60 = vpop.f32.mrb[43].mxu1  ;;  %v14248_v26 = vmax.f32 %v8450_v53, %v8598_v49  ;;  %v14249_v11 = vmax.f32 %v8452_v54, %v8604_v48  ;;  %v14258_v53 = vld [vmem:[#allocation8_spill] sm:$0xff] }
 0x141   : > { %v8764_v45 = vmax.f32 %v14235_v28, %v665_v44  ;;  %v8769_v33 = vmax.f32 %v14239_v57, %v738_v60  ;;  %v14252_v29 = vmax.f32 %v14250_v1, %v14251_v17  ;;  %v14254_v60 = vld [vmem:[#allocation7_spill] sm:$0xff]  ;;  %v8825_v48 = vld [vmem:[%s13932_s1 + $0x10] sm:$0xff]  }
 0x142   : > { %7527 = vmatmul.mubr.msk.bf16.gmra.mrb[148].mxu0 %vm260_vm2, %v8774_v46  ;;  %7531 = vmatmul.mubr.msk.bf16.gmra.mrb[148].mxu1 %vm260_vm2, %v8774_v46  ;;  %v14256_v30 = vmax.f32 %v14254_v60, %v14255_v23  ;;  %v14259_v28 = vld [vmem:[#allocation15_spill] sm:$0xff]  ;;  %14262 = vst [vmem:[#allocation12_spill] sm:$0xff] %v8825_v48  ;;  %v7920_v17 = vld [vmem:[%s8116_s17 + $0xb0] ss:$528 sps:$4 sm:$0x1f]  }
 0x143   : > { %14236 = vst [vmem:[#allocation2_spill] sm:$0xff] %v8764_v45  ;;  %14240 = vst [vmem:[#allocation9_spill] sm:$0xff] %v8769_v33  ;;  %2223 = vmatprep.mubr.bf16.mxu0 %v14203_v14  ;;  %2296 = vmatprep.mubr.bf16.mxu1 %v14203_v14  ;;  %v14260_v10 = vmax.f32 %v14258_v53, %v14259_v28  ;;  %v7931_v23 = vld [vmem:[%s8116_s17 + $0xcc] ss:$528 sps:$4 sm:$0x1f]  }
 0x145   : > { %v669_v37 = vpop.f32.mrb[44].mxu0  ;;  %v742_v41 = vpop.f32.mrb[44].mxu1 }
 0x146   : > { %v8785_v34 = vmax.f32 %v14242_v19, %v669_v37  ;;  %v8790_v61 = vmax.f32 %v14245_v39, %v742_v41  ;;  %v671_v12 = vpop.f32.mrb[45].mxu0  ;;  %v744_v5 = vpop.f32.mrb[45].mxu1 }
 0x147   : > { %v8795_v22 = vmax.f32 %v14247_v8, %v671_v12  ;;  %v8800_v42 = vmax.f32 %v14248_v26, %v744_v5  ;;  %v673_v50 = vpop.f32.mrb[46].mxu0  ;;  %v746_v31 = vpop.f32.mrb[46].mxu1  ;;  %v2160_v8 = vand.u32 %v7920_v17, %v8118_v3 }
 0x148   : > { %14246 = vst [vmem:[#allocation10_spill] sm:$0xff] %v8790_v61  ;;  %v8805_v58 = vmax.f32 %v14249_v11, %v673_v50  ;;  %v8810_v44 = vmax.f32 %v14252_v29, %v746_v31  ;;  %v675_v0 = vpop.f32.mrb[47].mxu0  ;;  %v748_v52 = vpop.f32.mrb[47].mxu1  ;;  %v7923_v29 = vld [vmem:[%s8116_s17 + $0xb8] ss:$528 sps:$4 sm:$0x1f]  }
 0x149   : > { %v8815_v49 = vmax.f32 %v14256_v30, %v675_v0  ;;  %v8820_v32 = vmax.f32 %v14260_v10, %v748_v52  ;;  %v7928_v0 = vld [vmem:[%s8116_s17 + $0xc4] ss:$528 sps:$4 sm:$0x1f]   ;;  %v2166_v30 = vand.u32 %v7923_v29, %v8118_v3  ;;  %v2775_v29 = vand.u32 %v7931_v23, %v8118_v3 }
 0x14a   : > { %14253 = vst [vmem:[#allocation4_spill] sm:$0xff] %v8810_v44  ;;  %7528 = vmatmul.mubr.msk.bf16.gmra.mrb[152].mxu0 %vm260_vm2, %v8825_v48  ;;  %7532 = vmatmul.mubr.msk.bf16.gmra.mrb[152].mxu1 %vm260_vm2, %v8825_v48  ;;  %v2769_v17 = vand.u32 %v7928_v0, %v8118_v3 }
 0x14b   : > { %14257 = vst [vmem:[#allocation11_spill] sm:$0xff] %v8815_v49  ;;  %14261 = vst [vmem:[#allocation5_spill] sm:$0xff] %v8820_v32  ;;  %2233 = vmatprep.mubr.bf16.mxu0 %v14203_v14  ;;  %2306 = vmatprep.mubr.bf16.mxu1 %v14203_v14 }
 0x14d   : > { %v8833_v54 = vpop.f32.mrb[48].mxu0  ;;  %v8835_v57 = vpop.f32.mrb[48].mxu1 }
 0x14e   : > { %v8841_v19 = vpop.f32.mrb[49].mxu0  ;;  %v8843_v7 = vpop.f32.mrb[49].mxu1 }
 0x14f   : > { %v8849_v12 = vpop.f32.mrb[50].mxu0  ;;  %v8851_v5 = vpop.f32.mrb[50].mxu1  ;;  %v14274_v49 = vmax.f32 %v8644_v15, %v8843_v7 }
 0x150   : > { %v8857_v50 = vpop.f32.mrb[51].mxu0  ;;  %v8859_v31 = vpop.f32.mrb[51].mxu1 }
 0x151   : > { %v14277_v15 = vmax.f32 %v8659_v56, %v8857_v50  ;;  %v7929_v56 = vld [vmem:[%s8116_s17 + $0xc8] ss:$528 sps:$4 sm:$0x1f]   ;;  %v7937_v50 = vld [vmem:[%s8116_s17 + $0xdc] ss:$528 sps:$4 sm:$0x1f]  }
 0x152   : > { %7529 = vmatmul.mubr.msk.bf16.gmra.mrb[156].mxu0 %vm260_vm2, %v8176_v27  ;;  %7533 = vmatmul.mubr.msk.bf16.gmra.mrb[156].mxu1 %vm260_vm2, %v8176_v27 }
 0x153   : > { %2349 = vmatprep.mubr.bf16.mxu0 %v14203_v14  ;;  %2422 = vmatprep.mubr.bf16.mxu1 %v14203_v14 }
 0x155   : > { %v8874_v52 = vpop.f32.mrb[52].mxu0  ;;  %v8876_v60 = vpop.f32.mrb[52].mxu1 }
 0x156   : > { %v8883_v28 = vpop.f32.mrb[53].mxu0  ;;  %v8885_v27 = vpop.f32.mrb[53].mxu1 }
 0x157   : > { %v8891_v11 = vpop.f32.mrb[54].mxu0  ;;  %v8893_v26 = vpop.f32.mrb[54].mxu1 }
 0x158   : > { %v8901_v38 = vpop.f32.mrb[55].mxu0  ;;  %v8903_v10 = vpop.f32.mrb[55].mxu1 }
 0x15a   : > { %7534 = vmatmul.mubr.msk.bf16.vlgmr.msra.gmra.mrb[160].mxu0 %vm260_vm2, %v8723_v35  ;;  %7538 = vmatmul.mubr.msk.bf16.vlgmr.msra.gmra.mrb[160].mxu1 %vm260_vm2, %v8723_v35 }
 0x15b   : > { %2464 = vmatpush1.bf16.msra.mxu0 %v2160_v8  ;;  %2537 = vmatpush1.bf16.msra.mxu1 %v2166_v30 }
 0x15c   : > { %2359 = vmatprep.mubr.bf16.mxu0 %v14203_v14  ;;  %2432 = vmatprep.mubr.bf16.mxu1 %v14203_v14 }
 0x15d   : > { %v8917_v1 = vpop.f32.mrb[56].mxu0  ;;  %v8919_v39 = vpop.f32.mrb[56].mxu1  ;;  %2801 = vmatprep.subr.bf16.mxu0 %v2769_v17  ;;  %2874 = vmatprep.subr.bf16.mxu1 %v2775_v29 }
 0x15e   : > { %14263 = vst [vmem:[#allocation6_spill] sm:$0xff] %v8919_v39  ;;  %v8925_v41 = vpop.f32.mrb[57].mxu0  ;;  %v8927_v8 = vpop.f32.mrb[57].mxu1 }
 0x15f   : > { %v8933_v37 = vpop.f32.mrb[58].mxu0  ;;  %v8935_v17 = vpop.f32.mrb[58].mxu1 }
 0x160   : > { %14264 = vst [vmem:[#allocation13_spill] sm:$0xff] %v8935_v17  ;;  %v8941_v0 = vpop.f32.mrb[59].mxu0  ;;  %v8943_v39 = vpop.f32.mrb[59].mxu1 }
 0x161   : > { %14265 = vst [vmem:[#allocation7_spill] sm:$0xff] %v8941_v0  ;;  %14266 = vst [vmem:[#allocation14_spill] sm:$0xff] %v8943_v39  ;;  %v14272_v0 = vmax.f32 %v8634_v25, %v8835_v57  ;;  %v14275_v25 = vmax.f32 %v8649_v59, %v8849_v12  ;;  %v9036_v59 = vld [vmem:[%s13932_s1 + $0x18] sm:$0xff]  }
 0x162   : > { %7535 = vmatmul.mubr.msk.bf16.gmra.mrb[164].mxu0 %vm260_vm2, %v8774_v46  ;;  %7539 = vmatmul.mubr.msk.bf16.gmra.mrb[164].mxu1 %vm260_vm2, %v8774_v46 }
 0x163   : > { %2369 = vmatprep.mubr.bf16.mxu0 %v14203_v14  ;;  %2442 = vmatprep.mubr.bf16.mxu1 %v14203_v14 }
 0x165   : > { %v8955_v23 = vpop.f32.mrb[60].mxu0  ;;  %v8957_v29 = vpop.f32.mrb[60].mxu1 }
 0x166   : > { %14267 = vst [vmem:[#allocation8_spill] sm:$0xff] %v8957_v29  ;;  %v8963_v39 = vpop.f32.mrb[61].mxu0  ;;  %v8965_v33 = vpop.f32.mrb[61].mxu1 }
 0x167   : > { %v8971_v45 = vpop.f32.mrb[62].mxu0  ;;  %v8973_v17 = vpop.f32.mrb[62].mxu1 }
 0x168   : > { %14268 = vst [vmem:[#allocation15_spill] sm:$0xff] %v8973_v17  ;;  %v8979_v29 = vpop.f32.mrb[63].mxu0  ;;  %v8981_v61 = vpop.f32.mrb[63].mxu1  ;;  %v14271_v17 = vmax.f32 %v8629_v55, %v8833_v54 }
 0x169   : > { %14269 = vst [vmem:[#allocation17_spill] sm:$0xff] %v8979_v29  ;;  %14270 = vst [vmem:[#allocation18_spill] sm:$0xff] %v8981_v61 }
 0x16a   : > { %7536 = vmatmul.mubr.msk.bf16.gmra.mrb[168].mxu0 %vm260_vm2, %v8825_v48  ;;  %7540 = vmatmul.mubr.msk.bf16.gmra.mrb[168].mxu1 %vm260_vm2, %v8825_v48  ;;  %v14273_v48 = vmax.f32 %v8639_v13, %v8841_v19  ;;  %v14276_v13 = vmax.f32 %v8654_v62, %v8851_v5  ;;  %v7926_v62 = vld [vmem:[%s8116_s17 + $0xc0] ss:$528 sps:$4 sm:$0x1f]  }
 0x16b   : > { %2379 = vmatprep.mubr.bf16.mxu0 %v14203_v14  ;;  %2452 = vmatprep.mubr.bf16.mxu1 %v14203_v14 }
 0x16d   : > { %v1091_v53 = vpop.f32.mrb[64].mxu0  ;;  %v1164_v30 = vpop.f32.mrb[64].mxu1 }
 0x16e   : > { %v8996_v44 = vmax.f32 %v14271_v17, %v1091_v53  ;;  %v9001_v46 = vmax.f32 %v14272_v0, %v1164_v30  ;;  %v1093_v61 = vpop.f32.mrb[65].mxu0  ;;  %v1166_v32 = vpop.f32.mrb[65].mxu1  ;;  %v14280_v30 = vmax.f32 %v8684_v36, %v8876_v60  ;;  %v2772_v36 = vand.u32 %v7929_v56, %v8118_v3 }
 0x16f   : > { %v9006_v29 = vmax.f32 %v14273_v48, %v1093_v61  ;;  %v9011_v55 = vmax.f32 %v14274_v49, %v1166_v32  ;;  %v1095_v54 = vpop.f32.mrb[66].mxu0  ;;  %v1168_v53 = vpop.f32.mrb[66].mxu1  ;;  %v14278_v32 = vmax.f32 %v8664_v63, %v8859_v31  ;;  %v7934_v63 = vld [vmem:[%s8116_s17 + $0xd4] ss:$528 sps:$4 sm:$0x1f]   ;;  %v14279_v31 = vmax.f32 %v8679_v9, %v8874_v52 }
 0x170   : > { %v9016_v57 = vmax.f32 %v14275_v25, %v1095_v54  ;;  %v9021_v61 = vmax.f32 %v14276_v13, %v1168_v53  ;;  %v1097_v48 = vpop.f32.mrb[67].mxu0  ;;  %v1170_v19 = vpop.f32.mrb[67].mxu1  ;;  %v14281_v25 = vmax.f32 %v8689_v16, %v8883_v28  ;;  %v14283_v60 = vmax.f32 %v8701_v18, %v8891_v11 }
 0x171   : > { %v9026_v49 = vmax.f32 %v14277_v15, %v1097_v48  ;;  %v9031_v7 = vmax.f32 %v14278_v32, %v1170_v19  ;;  %v14282_v48 = vmax.f32 %v8694_v51, %v8885_v27  ;;  %v2766_v15 = vand.u32 %v7926_v62, %v8118_v3 }
 0x172   : > { %7537 = vmatmul.mubr.msk.bf16.gmra.mrb[172].mxu0 %vm260_vm2, %v9036_v59  ;;  %7541 = vmatmul.mubr.msk.bf16.gmra.mrb[172].mxu1 %vm260_vm2, %v9036_v59  ;;  %v14284_v16 = vmax.f32 %v8706_v40, %v8893_v26  ;;  %v14285_v27 = vmax.f32 %v8711_v4, %v8901_v38  ;;  %v14286_v62 = vmax.f32 %v8716_v20, %v8903_v10  ;;  %v14288_v26 = vld [vmem:[#allocation6_spill] sm:$0xff] }
 0x173   : > { %2495 = vmatprep.mubr.bf16.mxu0 %v14203_v14  ;;  %2568 = vmatprep.mubr.bf16.mxu1 %v14203_v14  ;;  %v2781_v18 = vand.u32 %v7934_v63, %v8118_v3  ;;  %v2787_v11 = vand.u32 %v7937_v50, %v8118_v3  ;;  %v14287_v20 = vmax.f32 %v8734_v6, %v8917_v1 }
 0x174   : > { %v14289_v10 = vmax.f32 %v8739_v21, %v14288_v26 }
 0x175   : > { %v1101_v12 = vpop.f32.mrb[68].mxu0  ;;  %v1174_v5 = vpop.f32.mrb[68].mxu1 }
 0x176   : > { %v9051_v0 = vmax.f32 %v14279_v31, %v1101_v12  ;;  %v9056_v17 = vmax.f32 %v14280_v30, %v1174_v5  ;;  %v1103_v54 = vpop.f32.mrb[69].mxu0  ;;  %v1176_v53 = vpop.f32.mrb[69].mxu1  ;;  %v14290_v30 = vmax.f32 %v8744_v2, %v8925_v41 }
 0x177   : > { %v9061_v13 = vmax.f32 %v14281_v25, %v1103_v54  ;;  %v9066_v19 = vmax.f32 %v14282_v48, %v1176_v53  ;;  %v1105_v9 = vpop.f32.mrb[70].mxu0  ;;  %v1178_v52 = vpop.f32.mrb[70].mxu1  ;;  %v14291_v53 = vmax.f32 %v8749_v47, %v8927_v8  ;;  %v14292_v48 = vmax.f32 %v8754_v43, %v8933_v37  ;;  %v14299_v8 = vld [vmem:[#allocation9_spill] sm:$0xff]  ;;  %v14303_v43 = vld [vmem:[#allocation3_spill] sm:$0xff] }
 0x178   : > { %v9073_v32 = vmax.f32 %v14283_v60, %v1105_v9  ;;  %v9078_v28 = vmax.f32 %v14284_v16, %v1178_v52  ;;  %v1107_v12 = vpop.f32.mrb[71].mxu0  ;;  %v1180_v51 = vpop.f32.mrb[71].mxu1  ;;  %v14293_v9 = vld [vmem:[#allocation13_spill] sm:$0xff]  ;;  %v14296_v60 = vld [vmem:[#allocation7_spill] sm:$0xff] }
 0x179   : > { %v9083_v5 = vmax.f32 %v14285_v27, %v1107_v12  ;;  %v9088_v56 = vmax.f32 %v14286_v62, %v1180_v51  ;;  %v14294_v52 = vmax.f32 %v8759_v24, %v14293_v9  ;;  %v14300_v12 = vld [vmem:[#allocation14_spill] sm:$0xff]  ;;  %v14304_v62 = vmax.f32 %v8785_v34, %v8955_v23  ;;  %v14313_v9 = vld [vmem:[#allocation15_spill] sm:$0xff] }
 0x17a   : > { %7542 = vmatmul.mubr.msk.bf16.vlgmr.msra.gmra.mrb[176].mxu0 %vm260_vm2, %v8723_v35  ;;  %7546 = vmatmul.mubr.msk.bf16.vlgmr.msra.gmra.mrb[176].mxu1 %vm260_vm2, %v8723_v35  ;;  %v14301_v51 = vmax.f32 %v14299_v8, %v14300_v12 }
 0x17b   : > { %2802 = vmatpush1.bf16.msra.mxu0 %v2766_v15  ;;  %2875 = vmatpush1.bf16.msra.mxu1 %v2772_v36  ;;  %v14295_v36 = vld [vmem:[#allocation2_spill] sm:$0xff] }
 0x17c   : > { %2505 = vmatprep.mubr.bf16.mxu0 %v14203_v14  ;;  %2578 = vmatprep.mubr.bf16.mxu1 %v14203_v14  ;;  %v14297_v16 = vmax.f32 %v14295_v36, %v14296_v60  ;;  %v14317_v36 = vld [vmem:[#allocation17_spill] sm:$0xff] }
 0x17d   : > { %v1111_v40 = vpop.f32.mrb[72].mxu0  ;;  %v1184_v4 = vpop.f32.mrb[72].mxu1  ;;  %2947 = vmatprep.subr.bf16.mxu0 %v2781_v18  ;;  %3020 = vmatprep.subr.bf16.mxu1 %v2787_v11  ;;  %v14305_v11 = vld [vmem:[#allocation10_spill] sm:$0xff] }
 0x17e   : > { %v9101_v38 = vmax.f32 %v14287_v20, %v1111_v40  ;;  %v9106_v63 = vmax.f32 %v14289_v10, %v1184_v4  ;;  %v1113_v50 = vpop.f32.mrb[73].mxu0  ;;  %v1186_v31 = vpop.f32.mrb[73].mxu1  ;;  %v14306_v40 = vld [vmem:[#allocation8_spill] sm:$0xff] }
 0x17f   : > { %v9111_v54 = vmax.f32 %v14290_v30, %v1113_v50  ;;  %v9116_v25 = vmax.f32 %v14291_v53, %v1186_v31  ;;  %v1115_v6 = vpop.f32.mrb[74].mxu0  ;;  %v1188_v1 = vpop.f32.mrb[74].mxu1  ;;  %v14307_v4 = vmax.f32 %v14305_v11, %v14306_v40  ;;  %v14309_v50 = vmax.f32 %v8795_v22, %v8963_v39 }
 0x180   : > { %v9121_v21 = vmax.f32 %v14292_v48, %v1115_v6  ;;  %v9126_v15 = vmax.f32 %v14294_v52, %v1188_v1  ;;  %v1117_v2 = vpop.f32.mrb[75].mxu0  ;;  %v1190_v41 = vpop.f32.mrb[75].mxu1  ;;  %v14310_v30 = vmax.f32 %v8800_v42, %v8965_v33  ;;  %v14311_v6 = vmax.f32 %v8805_v58, %v8971_v45  ;;  %v14312_v48 = vld [vmem:[#allocation4_spill] sm:$0xff]  ;;  %v14320_v42 = vld [vmem:[#allocation5_spill] sm:$0xff] }
 0x181   : > { %v9131_v47 = vmax.f32 %v14297_v16, %v1117_v2  ;;  %v9136_v27 = vmax.f32 %v14301_v51, %v1190_v41  ;;  %v14314_v52 = vmax.f32 %v14312_v48, %v14313_v9  ;;  %v14316_v41 = vld [vmem:[#allocation11_spill] sm:$0xff]  ;;  %v14321_v16 = vld [vmem:[#allocation18_spill] sm:$0xff]  ;;  %v14324_v45 = vld [vmem:[#allocation12_spill] sm:$0xff] }
 0x182   : > { %7543 = vmatmul.mubr.msk.bf16.gmra.mrb[180].mxu0 %vm260_vm2, %v14303_v43  ;;  %7547 = vmatmul.mubr.msk.bf16.gmra.mrb[180].mxu1 %vm260_vm2, %v14303_v43  ;;  %v14318_v60 = vmax.f32 %v14316_v41, %v14317_v36  ;;  %v14322_v8 = vmax.f32 %v14320_v42, %v14321_v16  ;;  %v7932_v9 = vld [vmem:[%s8116_s17 + $0xd0] ss:$528 sps:$4 sm:$0x1f]   ;;  %v7943_v36 = vld [vmem:[%s8116_s17 + $0xec] ss:$528 sps:$4 sm:$0x1f]  }
 0x183   : > { %14298 = vst [vmem:[#allocation6_spill] sm:$0xff] %v9131_v47  ;;  %14302 = vst [vmem:[#allocation13_spill] sm:$0xff] %v9136_v27  ;;  %2515 = vmatprep.mubr.bf16.mxu0 %v14203_v14  ;;  %2588 = vmatprep.mubr.bf16.mxu1 %v14203_v14 }
 0x185   : > { %v1121_v24 = vpop.f32.mrb[76].mxu0  ;;  %v1194_v37 = vpop.f32.mrb[76].mxu1 }
 0x186   : > { %v9147_v18 = vmax.f32 %v14304_v62, %v1121_v24  ;;  %v9152_v20 = vmax.f32 %v14307_v4, %v1194_v37  ;;  %v1123_v26 = vpop.f32.mrb[77].mxu0  ;;  %v1196_v10 = vpop.f32.mrb[77].mxu1  ;;  %v2778_v4 = vand.u32 %v7932_v9, %v8118_v3 }
 0x187   : > { %v9157_v31 = vmax.f32 %v14309_v50, %v1123_v26  ;;  %v9162_v53 = vmax.f32 %v14310_v30, %v1196_v10  ;;  %v1125_v34 = vpop.f32.mrb[78].mxu0  ;;  %v1198_v23 = vpop.f32.mrb[78].mxu1 }
 0x188   : > { %14308 = vst [vmem:[#allocation2_spill] sm:$0xff] %v9152_v20  ;;  %v9167_v1 = vmax.f32 %v14311_v6, %v1125_v34  ;;  %v9172_v2 = vmax.f32 %v14314_v52, %v1198_v23  ;;  %v1127_v22 = vpop.f32.mrb[79].mxu0  ;;  %v1200_v39 = vpop.f32.mrb[79].mxu1  ;;  %v7935_v52 = vld [vmem:[%s8116_s17 + $0xd8] ss:$528 sps:$4 sm:$0x1f]  }
 0x189   : > { %v9177_v33 = vmax.f32 %v14318_v60, %v1127_v22  ;;  %v9182_v12 = vmax.f32 %v14322_v8, %v1200_v39  ;;  %v7940_v22 = vld [vmem:[%s8116_s17 + $0xe4] ss:$528 sps:$4 sm:$0x1f]   ;;  %v2784_v60 = vand.u32 %v7935_v52, %v8118_v3  ;;  %v2799_v52 = vand.u32 %v7943_v36, %v8118_v3 }
 0x18a   : > { %14315 = vst [vmem:[#allocation7_spill] sm:$0xff] %v9172_v2  ;;  %7544 = vmatmul.mubr.msk.bf16.gmra.mrb[184].mxu0 %vm260_vm2, %v14324_v45  ;;  %7548 = vmatmul.mubr.msk.bf16.gmra.mrb[184].mxu1 %vm260_vm2, %v14324_v45  ;;  %v2793_v9 = vand.u32 %v7940_v22, %v8118_v3 }
 0x18b   : > { %14319 = vst [vmem:[#allocation9_spill] sm:$0xff] %v9177_v33  ;;  %14323 = vst [vmem:[#allocation14_spill] sm:$0xff] %v9182_v12  ;;  %2525 = vmatprep.mubr.bf16.mxu0 %v14203_v14  ;;  %2598 = vmatprep.mubr.bf16.mxu1 %v14203_v14 }
 0x18d   : > { %v9190_v58 = vpop.f32.mrb[80].mxu0  ;;  %v9192_v51 = vpop.f32.mrb[80].mxu1 }
 0x18e   : > { %v9198_v62 = vpop.f32.mrb[81].mxu0  ;;  %v9200_v11 = vpop.f32.mrb[81].mxu1 }
 0x18f   : > { %v9206_v26 = vpop.f32.mrb[82].mxu0  ;;  %v9208_v10 = vpop.f32.mrb[82].mxu1  ;;  %v14336_v33 = vmax.f32 %v9011_v55, %v9200_v11 }
 0x190   : > { %v9214_v34 = vpop.f32.mrb[83].mxu0  ;;  %v9216_v23 = vpop.f32.mrb[83].mxu1 }
 0x191   : > { %v14339_v55 = vmax.f32 %v9026_v49, %v9214_v34  ;;  %v7946_v49 = vld [vmem:[%s8116_s17 + $0xf4] ss:$528 sps:$4 sm:$0x1f]   ;;  %v7949_v34 = vld [vmem:[%s8116_s17 + $0xfc] ss:$528 sps:$4 sm:$0x1f]  }
 0x192   : > { %7545 = vmatmul.mubr.msk.bf16.gmra.mrb[188].mxu0 %vm260_vm2, %v9036_v59  ;;  %7549 = vmatmul.mubr.msk.bf16.gmra.mrb[188].mxu1 %vm260_vm2, %v9036_v59 }
 0x193   : > { %2833 = vmatprep.mubr.bf16.mxu0 %v14203_v14  ;;  %2906 = vmatprep.mubr.bf16.mxu1 %v14203_v14 }
 0x195   : > { %v9231_v39 = vpop.f32.mrb[84].mxu0  ;;  %v9233_v41 = vpop.f32.mrb[84].mxu1 }
 0x196   : > { %v9240_v16 = vpop.f32.mrb[85].mxu0  ;;  %v9242_v8 = vpop.f32.mrb[85].mxu1 }
 0x197   : > { %v9248_v30 = vpop.f32.mrb[86].mxu0  ;;  %v9250_v50 = vpop.f32.mrb[86].mxu1 }
 0x198   : > { %v9258_v37 = vpop.f32.mrb[87].mxu0  ;;  %v9260_v48 = vpop.f32.mrb[87].mxu1 }
 0x19a   : > { %7562 = vmatmul.mubr.msk.bf16.vlgmr.msra.gmra.mrb[192].mxu0 %vm260_vm2, %v8723_v35  ;;  %7566 = vmatmul.mubr.msk.bf16.vlgmr.msra.gmra.mrb[192].mxu1 %vm260_vm2, %v8723_v35 }
 0x19b   : > { %2948 = vmatpush1.bf16.msra.mxu0 %v2778_v4  ;;  %3021 = vmatpush1.bf16.msra.mxu1 %v2784_v60 }
 0x19c   : > { %2843 = vmatprep.mubr.bf16.mxu0 %v14203_v14  ;;  %2916 = vmatprep.mubr.bf16.mxu1 %v14203_v14 }
 0x19d   : > { %v9274_v6 = vpop.f32.mrb[88].mxu0  ;;  %v9276_v40 = vpop.f32.mrb[88].mxu1  ;;  %3093 = vmatprep.subr.bf16.mxu0 %v2793_v9  ;;  %3166 = vmatprep.subr.bf16.mxu1 %v2799_v52 }
 0x19e   : > { %14325 = vst [vmem:[#allocation10_spill] sm:$0xff] %v9276_v40  ;;  %v9282_v24 = vpop.f32.mrb[89].mxu0  ;;  %v9284_v4 = vpop.f32.mrb[89].mxu1 }
 0x19f   : > { %v9290_v35 = vpop.f32.mrb[90].mxu0  ;;  %v9292_v9 = vpop.f32.mrb[90].mxu1 }
 0x1a0   : > { %14326 = vst [vmem:[#allocation8_spill] sm:$0xff] %v9292_v9  ;;  %v9298_v22 = vpop.f32.mrb[91].mxu0  ;;  %v9300_v40 = vpop.f32.mrb[91].mxu1 }
 0x1a1   : > { %14327 = vst [vmem:[#allocation4_spill] sm:$0xff] %v9298_v22  ;;  %14328 = vst [vmem:[#allocation15_spill] sm:$0xff] %v9300_v40  ;;  %v14334_v22 = vmax.f32 %v9001_v46, %v9192_v51  ;;  %v14337_v46 = vmax.f32 %v9016_v57, %v9206_v26  ;;  %v7938_v57 = vld [vmem:[%s8116_s17 + $0xe0] ss:$528 sps:$4 sm:$0x1f]  }
 0x1a2   : > { %7563 = vmatmul.mubr.msk.bf16.gmra.mrb[196].mxu0 %vm260_vm2, %v14303_v43  ;;  %7567 = vmatmul.mubr.msk.bf16.gmra.mrb[196].mxu1 %vm260_vm2, %v14303_v43 }
 0x1a3   : > { %2853 = vmatprep.mubr.bf16.mxu0 %v14203_v14  ;;  %2926 = vmatprep.mubr.bf16.mxu1 %v14203_v14 }
 0x1a5   : > { %v9312_v36 = vpop.f32.mrb[92].mxu0  ;;  %v9314_v52 = vpop.f32.mrb[92].mxu1 }
 0x1a6   : > { %14329 = vst [vmem:[#allocation11_spill] sm:$0xff] %v9314_v52  ;;  %v9320_v40 = vpop.f32.mrb[93].mxu0  ;;  %v9322_v27 = vpop.f32.mrb[93].mxu1 }
 0x1a7   : > { %v9328_v47 = vpop.f32.mrb[94].mxu0  ;;  %v9330_v9 = vpop.f32.mrb[94].mxu1 }
 0x1a8   : > { %14330 = vst [vmem:[#allocation17_spill] sm:$0xff] %v9330_v9  ;;  %v9336_v52 = vpop.f32.mrb[95].mxu0  ;;  %v9338_v20 = vpop.f32.mrb[95].mxu1  ;;  %v14333_v9 = vmax.f32 %v8996_v44, %v9190_v58 }
 0x1a9   : > { %14331 = vst [vmem:[#allocation5_spill] sm:$0xff] %v9336_v52  ;;  %14332 = vst [vmem:[#allocation18_spill] sm:$0xff] %v9338_v20 }
 0x1aa   : > { %7564 = vmatmul.mubr.msk.bf16.gmra.mrb[200].mxu0 %vm260_vm2, %v14324_v45  ;;  %7568 = vmatmul.mubr.msk.bf16.gmra.mrb[200].mxu1 %vm260_vm2, %v14324_v45  ;;  %v14335_v45 = vmax.f32 %v9006_v29, %v9198_v62  ;;  %v14338_v29 = vmax.f32 %v9021_v61, %v9208_v10  ;;  %v7941_v61 = vld [vmem:[%s8116_s17 + $0xe8] ss:$528 sps:$4 sm:$0x1f]  }
 0x1ab   : > { %2863 = vmatprep.mubr.bf16.mxu0 %v14203_v14  ;;  %2936 = vmatprep.mubr.bf16.mxu1 %v14203_v14 }
 0x1ad   : > { %v1575_v42 = vpop.f32.mrb[96].mxu0  ;;  %v1648_v60 = vpop.f32.mrb[96].mxu1 }
 0x1ae   : > { %v9353_v2 = vmax.f32 %v14333_v9, %v1575_v42  ;;  %v9358_v43 = vmax.f32 %v14334_v22, %v1648_v60  ;;  %v1577_v20 = vpop.f32.mrb[97].mxu0  ;;  %v1650_v12 = vpop.f32.mrb[97].mxu1  ;;  %v14342_v22 = vmax.f32 %v9056_v17, %v9233_v41  ;;  %v2796_v17 = vand.u32 %v7941_v61, %v8118_v3 }
 0x1af   : > { %v9363_v52 = vmax.f32 %v14335_v45, %v1577_v20  ;;  %v9368_v44 = vmax.f32 %v14336_v33, %v1650_v12  ;;  %v1579_v58 = vpop.f32.mrb[98].mxu0  ;;  %v1652_v42 = vpop.f32.mrb[98].mxu1  ;;  %v14340_v12 = vmax.f32 %v9031_v7, %v9216_v23  ;;  %v14341_v7 = vmax.f32 %v9051_v0, %v9231_v39 }
 0x1b0   : > { %v9373_v51 = vmax.f32 %v14337_v46, %v1579_v58  ;;  %v9378_v62 = vmax.f32 %v14338_v29, %v1652_v42  ;;  %v1581_v20 = vpop.f32.mrb[99].mxu0  ;;  %v1654_v45 = vpop.f32.mrb[99].mxu1  ;;  %v14343_v42 = vmax.f32 %v9061_v13, %v9240_v16  ;;  %v14344_v29 = vmax.f32 %v9066_v19, %v9242_v8 }
 0x1b1   : > { %v9383_v33 = vmax.f32 %v14339_v55, %v1581_v20  ;;  %v9388_v11 = vmax.f32 %v14340_v12, %v1654_v45  ;;  %v2790_v45 = vand.u32 %v7938_v57, %v8118_v3  ;;  %v14345_v41 = vmax.f32 %v9073_v32, %v9248_v30 }
 0x1b2   : > { %7565 = vmatmul.mubr.msk.bf16.gmra.mrb[204].mxu0 %vm260_vm2, %v9036_v59  ;;  %7569 = vmatmul.mubr.msk.bf16.gmra.mrb[204].mxu1 %vm260_vm2, %v9036_v59  ;;  %v14346_v13 = vmax.f32 %v9078_v28, %v9250_v50  ;;  %v14347_v8 = vmax.f32 %v9083_v5, %v9258_v37  ;;  %v14348_v57 = vmax.f32 %v9088_v56, %v9260_v48  ;;  %v14351_v50 = vld [vmem:[#allocation10_spill] sm:$0xff] }
 0x1b3   : > { %2979 = vmatprep.mubr.bf16.mxu0 %v14203_v14  ;;  %3052 = vmatprep.mubr.bf16.mxu1 %v14203_v14  ;;  %v3399_v32 = vand.u32 %v7946_v49, %v8118_v3  ;;  %v3405_v30 = vand.u32 %v7949_v34, %v8118_v3  ;;  %v14350_v56 = vmax.f32 %v9101_v38, %v9274_v6 }
 0x1b4   : > { %v14352_v48 = vmax.f32 %v9106_v63, %v14351_v50 }
 0x1b5   : > { %v1585_v26 = vpop.f32.mrb[100].mxu0  ;;  %v1658_v10 = vpop.f32.mrb[100].mxu1 }
 0x1b6   : > { %v9403_v23 = vmax.f32 %v14341_v7, %v1585_v26  ;;  %v9408_v60 = vmax.f32 %v14342_v22, %v1658_v10  ;;  %v1587_v9 = vpop.f32.mrb[101].mxu0  ;;  %v1660_v58 = vpop.f32.mrb[101].mxu1  ;;  %v14349_v10 = vld [vmem:[#allocation16_spill] sm:$0xff]  ;;  %v14353_v22 = vmax.f32 %v9111_v54, %v9282_v24 }
 0x1b7   : > { %v9413_v46 = vmax.f32 %v14343_v42, %v1587_v9  ;;  %v9418_v20 = vmax.f32 %v14344_v29, %v1660_v58  ;;  %v1589_v0 = vpop.f32.mrb[102].mxu0  ;;  %v1662_v39 = vpop.f32.mrb[102].mxu1  ;;  %v14354_v58 = vmax.f32 %v9116_v25, %v9284_v4  ;;  %v14355_v29 = vmax.f32 %v9121_v21, %v9290_v35  ;;  %v14362_v4 = vld [vmem:[#allocation13_spill] sm:$0xff]  ;;  %v14366_v35 = vld [vmem:[#allocation3_spill] sm:$0xff] }
 0x1b8   : > { %v9425_v55 = vmax.f32 %v14345_v41, %v1589_v0  ;;  %v9430_v16 = vmax.f32 %v14346_v13, %v1662_v39  ;;  %v1591_v12 = vpop.f32.mrb[103].mxu0  ;;  %v1664_v19 = vpop.f32.mrb[103].mxu1  ;;  %v14356_v0 = vld [vmem:[#allocation8_spill] sm:$0xff] }
 0x1b9   : > { %v9435_v26 = vmax.f32 %v14347_v8, %v1591_v12  ;;  %v9440_v61 = vmax.f32 %v14348_v57, %v1664_v19  ;;  %v14357_v39 = vmax.f32 %v9126_v15, %v14356_v0  ;;  %v14359_v41 = vld [vmem:[#allocation4_spill] sm:$0xff]  ;;  %v14363_v12 = vld [vmem:[#allocation15_spill] sm:$0xff]  ;;  %v14367_v57 = vmax.f32 %v9147_v18, %v9312_v36  ;;  %v14376_v0 = vld [vmem:[#allocation17_spill] sm:$0xff] }
 0x1ba   : > { %7570 = vmatmul.mubr.msk.bf16.vlgmr.msra.gmra.mrb[208].mxu0 %vm260_vm2, %v14349_v10  ;;  %7574 = vmatmul.mubr.msk.bf16.vlgmr.msra.gmra.mrb[208].mxu1 %vm260_vm2, %v14349_v10  ;;  %v14364_v19 = vmax.f32 %v14362_v4, %v14363_v12 }
 0x1bb   : > { %3094 = vmatpush1.bf16.msra.mxu0 %v2790_v45  ;;  %3167 = vmatpush1.bf16.msra.mxu1 %v2796_v17  ;;  %v14358_v17 = vld [vmem:[#allocation6_spill] sm:$0xff] }
 0x1bc   : > { %2989 = vmatprep.mubr.bf16.mxu0 %v14203_v14  ;;  %3062 = vmatprep.mubr.bf16.mxu1 %v14203_v14  ;;  %v14360_v13 = vmax.f32 %v14358_v17, %v14359_v41  ;;  %v14380_v17 = vld [vmem:[#allocation5_spill] sm:$0xff] }
 0x1bd   : > { %v1595_v28 = vpop.f32.mrb[104].mxu0  ;;  %v1668_v5 = vpop.f32.mrb[104].mxu1  ;;  %3431 = vmatprep.subr.bf16.mxu0 %v3399_v32  ;;  %3504 = vmatprep.subr.bf16.mxu1 %v3405_v30  ;;  %v14368_v30 = vld [vmem:[#allocation2_spill] sm:$0xff] }
 0x1be   : > { %v9453_v37 = vmax.f32 %v14350_v56, %v1595_v28  ;;  %v9458_v49 = vmax.f32 %v14352_v48, %v1668_v5  ;;  %v1597_v34 = vpop.f32.mrb[105].mxu0  ;;  %v1670_v7 = vpop.f32.mrb[105].mxu1  ;;  %v14369_v28 = vld [vmem:[#allocation11_spill] sm:$0xff] }
 0x1bf   : > { %v9463_v9 = vmax.f32 %v14353_v22, %v1597_v34  ;;  %v9468_v42 = vmax.f32 %v14354_v58, %v1670_v7  ;;  %v1599_v38 = vpop.f32.mrb[106].mxu0  ;;  %v1672_v6 = vpop.f32.mrb[106].mxu1  ;;  %v14370_v5 = vmax.f32 %v14368_v30, %v14369_v28  ;;  %v14372_v34 = vmax.f32 %v9157_v31, %v9320_v40 }
 0x1c0   : > { %v9473_v63 = vmax.f32 %v14355_v29, %v1599_v38  ;;  %v9478_v45 = vmax.f32 %v14357_v39, %v1672_v6  ;;  %v1601_v54 = vpop.f32.mrb[107].mxu0  ;;  %v1674_v24 = vpop.f32.mrb[107].mxu1  ;;  %v14373_v22 = vmax.f32 %v9162_v53, %v9322_v27  ;;  %v14374_v38 = vmax.f32 %v9167_v1, %v9328_v47  ;;  %v14375_v29 = vld [vmem:[#allocation7_spill] sm:$0xff]  ;;  %v14383_v53 = vld [vmem:[#allocation14_spill] sm:$0xff]  ;;  %v14387_v47 = vld [vmem:[#allocation12_spill] sm:$0xff] }
 0x1c1   : > { %v9483_v25 = vmax.f32 %v14360_v13, %v1601_v54  ;;  %v9488_v8 = vmax.f32 %v14364_v19, %v1674_v24  ;;  %v14377_v39 = vmax.f32 %v14375_v29, %v14376_v0  ;;  %v14379_v24 = vld [vmem:[#allocation9_spill] sm:$0xff]  ;;  %v14384_v13 = vld [vmem:[#allocation18_spill] sm:$0xff] }
 0x1c2   : > { %7571 = vmatmul.mubr.msk.bf16.gmra.mrb[212].mxu0 %vm260_vm2, %v14366_v35  ;;  %7575 = vmatmul.mubr.msk.bf16.gmra.mrb[212].mxu1 %vm260_vm2, %v14366_v35  ;;  %v14381_v41 = vmax.f32 %v14379_v24, %v14380_v17  ;;  %v14385_v4 = vmax.f32 %v14383_v53, %v14384_v13  ;;  %v7944_v0 = vld [vmem:[%s8116_s17 + $0xf0] ss:$528 sps:$4 sm:$0x1f]   ;;  %v7955_v17 = vld [vmem:[%s8116_s17 + $0x10c] ss:$528 sps:$4 sm:$0x1f]  }
 0x1c3   : > { %14361 = vst [vmem:[#allocation16_spill] sm:$0xff] %v9483_v25  ;;  %14365 = vst [vmem:[#allocation10_spill] sm:$0xff] %v9488_v8  ;;  %2999 = vmatprep.mubr.bf16.mxu0 %v14203_v14  ;;  %3072 = vmatprep.mubr.bf16.mxu1 %v14203_v14 }
 0x1c5   : > { %v1605_v21 = vpop.f32.mrb[108].mxu0  ;;  %v1678_v15 = vpop.f32.mrb[108].mxu1 }
 0x1c6   : > { %v9499_v32 = vmax.f32 %v14367_v57, %v1605_v21  ;;  %v9504_v56 = vmax.f32 %v14370_v5, %v1678_v15  ;;  %v1607_v50 = vpop.f32.mrb[109].mxu0  ;;  %v1680_v48 = vpop.f32.mrb[109].mxu1  ;;  %v3396_v5 = vand.u32 %v7944_v0, %v8118_v3 }
 0x1c7   : > { %v9509_v7 = vmax.f32 %v14372_v34, %v1607_v50  ;;  %v9514_v58 = vmax.f32 %v14373_v22, %v1680_v48  ;;  %v1609_v18 = vpop.f32.mrb[110].mxu0  ;;  %v1682_v36 = vpop.f32.mrb[110].mxu1 }
 0x1c8   : > { %14371 = vst [vmem:[#allocation8_spill] sm:$0xff] %v9504_v56  ;;  %v9519_v6 = vmax.f32 %v14374_v38, %v1609_v18  ;;  %v9524_v54 = vmax.f32 %v14377_v39, %v1682_v36  ;;  %v1611_v31 = vpop.f32.mrb[111].mxu0  ;;  %v1684_v40 = vpop.f32.mrb[111].mxu1  ;;  %v7947_v39 = vld [vmem:[%s8116_s17 + $0xf8] ss:$528 sps:$4 sm:$0x1f]  }
 0x1c9   : > { %v9529_v27 = vmax.f32 %v14381_v41, %v1611_v31  ;;  %v9534_v12 = vmax.f32 %v14385_v4, %v1684_v40  ;;  %v7952_v31 = vld [vmem:[%s8116_s17 + $0x104] ss:$528 sps:$4 sm:$0x1f]   ;;  %v3402_v41 = vand.u32 %v7947_v39, %v8118_v3  ;;  %v3417_v39 = vand.u32 %v7955_v17, %v8118_v3 }
 0x1ca   : > { %14378 = vst [vmem:[#allocation6_spill] sm:$0xff] %v9524_v54  ;;  %7572 = vmatmul.mubr.msk.bf16.gmra.mrb[216].mxu0 %vm260_vm2, %v14387_v47  ;;  %7576 = vmatmul.mubr.msk.bf16.gmra.mrb[216].mxu1 %vm260_vm2, %v14387_v47  ;;  %v3411_v0 = vand.u32 %v7952_v31, %v8118_v3 }
 0x1cb   : > { %14382 = vst [vmem:[#allocation4_spill] sm:$0xff] %v9529_v27  ;;  %14386 = vst [vmem:[#allocation13_spill] sm:$0xff] %v9534_v12  ;;  %3009 = vmatprep.mubr.bf16.mxu0 %v14203_v14  ;;  %3082 = vmatprep.mubr.bf16.mxu1 %v14203_v14 }
 0x1cd   : > { %v9542_v1 = vpop.f32.mrb[112].mxu0  ;;  %v9544_v19 = vpop.f32.mrb[112].mxu1 }
 0x1ce   : > { %v9550_v57 = vpop.f32.mrb[113].mxu0  ;;  %v9552_v30 = vpop.f32.mrb[113].mxu1 }
 0x1cf   : > { %v9558_v50 = vpop.f32.mrb[114].mxu0  ;;  %v9560_v48 = vpop.f32.mrb[114].mxu1  ;;  %v14399_v27 = vmax.f32 %v9368_v44, %v9552_v30 }
 0x1d0   : > { %v9566_v18 = vpop.f32.mrb[115].mxu0  ;;  %v9568_v36 = vpop.f32.mrb[115].mxu1 }
 0x1d1   : > { %v14402_v44 = vmax.f32 %v9383_v33, %v9566_v18  ;;  %v7958_v33 = vld [vmem:[%s8116_s17 + $0x114] ss:$528 sps:$4 sm:$0x1f]   ;;  %v7961_v18 = vld [vmem:[%s8116_s17 + $0x11c] ss:$528 sps:$4 sm:$0x1f]  }
 0x1d2   : > { %7573 = vmatmul.mubr.msk.bf16.gmra.mrb[220].mxu0 %vm260_vm2, %v9036_v59  ;;  %7577 = vmatmul.mubr.msk.bf16.gmra.mrb[220].mxu1 %vm260_vm2, %v9036_v59 }
 0x1d3   : > { %3125 = vmatprep.mubr.bf16.mxu0 %v14203_v14  ;;  %3198 = vmatprep.mubr.bf16.mxu1 %v14203_v14 }
 0x1d5   : > { %v9583_v40 = vpop.f32.mrb[116].mxu0  ;;  %v9585_v24 = vpop.f32.mrb[116].mxu1 }
 0x1d6   : > { %v9592_v13 = vpop.f32.mrb[117].mxu0  ;;  %v9594_v4 = vpop.f32.mrb[117].mxu1 }
 0x1d7   : > { %v9600_v22 = vpop.f32.mrb[118].mxu0  ;;  %v9602_v34 = vpop.f32.mrb[118].mxu1 }
 0x1d8   : > { %v9610_v15 = vpop.f32.mrb[119].mxu0  ;;  %v9612_v29 = vpop.f32.mrb[119].mxu1 }
 0x1da   : > { %7578 = vmatmul.mubr.msk.bf16.vlgmr.msra.gmra.mrb[224].mxu0 %vm260_vm2, %v14349_v10  ;;  %7582 = vmatmul.mubr.msk.bf16.vlgmr.msra.gmra.mrb[224].mxu1 %vm260_vm2, %v14349_v10 }
 0x1db   : > { %3432 = vmatpush1.bf16.msra.mxu0 %v3396_v5  ;;  %3505 = vmatpush1.bf16.msra.mxu1 %v3402_v41 }
 0x1dc   : > { %3135 = vmatprep.mubr.bf16.mxu0 %v14203_v14  ;;  %3208 = vmatprep.mubr.bf16.mxu1 %v14203_v14 }
 0x1dd   : > { %v9626_v38 = vpop.f32.mrb[120].mxu0  ;;  %v9628_v28 = vpop.f32.mrb[120].mxu1  ;;  %3577 = vmatprep.subr.bf16.mxu0 %v3411_v0  ;;  %3650 = vmatprep.subr.bf16.mxu1 %v3417_v39 }
 0x1de   : > { %14388 = vst [vmem:[#allocation15_spill] sm:$0xff] %v9628_v28  ;;  %v9634_v21 = vpop.f32.mrb[121].mxu0  ;;  %v9636_v10 = vpop.f32.mrb[121].mxu1 }
 0x1df   : > { %v9642_v53 = vpop.f32.mrb[122].mxu0  ;;  %v9644_v0 = vpop.f32.mrb[122].mxu1 }
 0x1e0   : > { %14389 = vst [vmem:[#allocation3_spill] sm:$0xff] %v9644_v0  ;;  %v9650_v31 = vpop.f32.mrb[123].mxu0  ;;  %v9652_v28 = vpop.f32.mrb[123].mxu1 }
 0x1e1   : > { %14390 = vst [vmem:[#allocation2_spill] sm:$0xff] %v9650_v31  ;;  %14391 = vst [vmem:[#allocation11_spill] sm:$0xff] %v9652_v28  ;;  %v14397_v31 = vmax.f32 %v9358_v43, %v9544_v19  ;;  %v14400_v43 = vmax.f32 %v9373_v51, %v9558_v50  ;;  %v7950_v51 = vld [vmem:[%s8116_s17 + $0x100] ss:$528 sps:$4 sm:$0x1f]  }
 0x1e2   : > { %7579 = vmatmul.mubr.msk.bf16.gmra.mrb[228].mxu0 %vm260_vm2, %v14366_v35  ;;  %7583 = vmatmul.mubr.msk.bf16.gmra.mrb[228].mxu1 %vm260_vm2, %v14366_v35 }
 0x1e3   : > { %3145 = vmatprep.mubr.bf16.mxu0 %v14203_v14  ;;  %3218 = vmatprep.mubr.bf16.mxu1 %v14203_v14 }
 0x1e5   : > { %v9664_v17 = vpop.f32.mrb[124].mxu0  ;;  %v9666_v39 = vpop.f32.mrb[124].mxu1 }
 0x1e6   : > { %14392 = vst [vmem:[#allocation7_spill] sm:$0xff] %v9666_v39  ;;  %v9672_v28 = vpop.f32.mrb[125].mxu0  ;;  %v9674_v8 = vpop.f32.mrb[125].mxu1 }
 0x1e7   : > { %v9680_v25 = vpop.f32.mrb[126].mxu0  ;;  %v9682_v0 = vpop.f32.mrb[126].mxu1 }
 0x1e8   : > { %14393 = vst [vmem:[#allocation17_spill] sm:$0xff] %v9682_v0  ;;  %v9688_v39 = vpop.f32.mrb[127].mxu0  ;;  %v9690_v56 = vpop.f32.mrb[127].mxu1  ;;  %v14396_v0 = vmax.f32 %v9353_v2, %v9542_v1 }
 0x1e9   : > { %14394 = vst [vmem:[#allocation9_spill] sm:$0xff] %v9688_v39  ;;  %14395 = vst [vmem:[#allocation5_spill] sm:$0xff] %v9690_v56 }
 0x1ea   : > { %7580 = vmatmul.mubr.msk.bf16.gmra.mrb[232].mxu0 %vm260_vm2, %v14387_v47  ;;  %7584 = vmatmul.mubr.msk.bf16.gmra.mrb[232].mxu1 %vm260_vm2, %v14387_v47  ;;  %v14398_v47 = vmax.f32 %v9363_v52, %v9550_v57  ;;  %v14401_v52 = vmax.f32 %v9378_v62, %v9560_v48  ;;  %v7953_v62 = vld [vmem:[%s8116_s17 + $0x108] ss:$528 sps:$4 sm:$0x1f]  }
 0x1eb   : > { %3155 = vmatprep.mubr.bf16.mxu0 %v14203_v14  ;;  %3228 = vmatprep.mubr.bf16.mxu1 %v14203_v14 }
 0x1ed   : > { %v1867_v41 = vpop.f32.mrb[128].mxu0  ;;  %v1940_v5 = vpop.f32.mrb[128].mxu1 }
 0x1ee   : > { %v9705_v54 = vmax.f32 %v14396_v0, %v1867_v41  ;;  %v9710_v35 = vmax.f32 %v14397_v31, %v1940_v5  ;;  %v1869_v56 = vpop.f32.mrb[129].mxu0  ;;  %v1942_v12 = vpop.f32.mrb[129].mxu1  ;;  %v14405_v5 = vmax.f32 %v9408_v60, %v9585_v24  ;;  %v3414_v60 = vand.u32 %v7953_v62, %v8118_v3 }
 0x1ef   : > { %v9715_v39 = vmax.f32 %v14398_v47, %v1869_v56  ;;  %v9720_v2 = vmax.f32 %v14399_v27, %v1942_v12  ;;  %v1871_v1 = vpop.f32.mrb[130].mxu0  ;;  %v1944_v41 = vpop.f32.mrb[130].mxu1  ;;  %v14403_v12 = vmax.f32 %v9388_v11, %v9568_v36  ;;  %v14404_v11 = vmax.f32 %v9403_v23, %v9583_v40 }
 0x1f0   : > { %v9725_v19 = vmax.f32 %v14400_v43, %v1871_v1  ;;  %v9730_v57 = vmax.f32 %v14401_v52, %v1944_v41  ;;  %v1873_v56 = vpop.f32.mrb[131].mxu0  ;;  %v1946_v31 = vpop.f32.mrb[131].mxu1  ;;  %v14406_v41 = vmax.f32 %v9413_v46, %v9592_v13  ;;  %v14407_v52 = vmax.f32 %v9418_v20, %v9594_v4 }
 0x1f1   : > { %v9735_v27 = vmax.f32 %v14402_v44, %v1873_v56  ;;  %v9740_v30 = vmax.f32 %v14403_v12, %v1946_v31  ;;  %v3408_v31 = vand.u32 %v7950_v51, %v8118_v3  ;;  %v14408_v24 = vmax.f32 %v9425_v55, %v9600_v22 }
 0x1f2   : > { %7581 = vmatmul.mubr.msk.bf16.gmra.mrb[236].mxu0 %vm260_vm2, %v9036_v59  ;;  %7585 = vmatmul.mubr.msk.bf16.gmra.mrb[236].mxu1 %vm260_vm2, %v9036_v59  ;;  %v14409_v46 = vmax.f32 %v9430_v16, %v9602_v34  ;;  %v14410_v4 = vmax.f32 %v9435_v26, %v9610_v15  ;;  %v14411_v51 = vmax.f32 %v9440_v61, %v9612_v29  ;;  %v9799_v16 = vld [vmem:[%s13932_s1] sm:$0xff]   ;;  %v14414_v29 = vld [vmem:[#allocation15_spill] sm:$0xff] }
 0x1f3   : > { %3463 = vmatprep.mubr.bf16.mxu0 %v14203_v14  ;;  %3536 = vmatprep.mubr.bf16.mxu1 %v14203_v14  ;;  %v3423_v55 = vand.u32 %v7958_v33, %v8118_v3  ;;  %v3429_v22 = vand.u32 %v7961_v18, %v8118_v3  ;;  %14412 = vst [vmem:[#allocation14_spill] sm:$0xff] %v9799_v16 }
 0x1f4   : > { %v14413_v15 = vmax.f32 %v9453_v37, %v9626_v38  ;;  %v14415_v33 = vmax.f32 %v9458_v49, %v14414_v29 }
 0x1f5   : > { %v1877_v50 = vpop.f32.mrb[132].mxu0  ;;  %v1950_v48 = vpop.f32.mrb[132].mxu1 }
 0x1f6   : > { %v9755_v36 = vmax.f32 %v14404_v11, %v1877_v50  ;;  %v9760_v0 = vmax.f32 %v14405_v5, %v1950_v48  ;;  %v1879_v47 = vpop.f32.mrb[133].mxu0  ;;  %v1952_v1 = vpop.f32.mrb[133].mxu1  ;;  %v14416_v5 = vmax.f32 %v9463_v9, %v9634_v21 }
 0x1f7   : > { %v9765_v43 = vmax.f32 %v14406_v41, %v1879_v47  ;;  %v9770_v56 = vmax.f32 %v14407_v52, %v1952_v1  ;;  %v1881_v23 = vpop.f32.mrb[134].mxu0  ;;  %v1954_v40 = vpop.f32.mrb[134].mxu1  ;;  %v14417_v1 = vmax.f32 %v9468_v42, %v9636_v10  ;;  %v14418_v52 = vmax.f32 %v9473_v63, %v9642_v53  ;;  %v14425_v10 = vld [vmem:[#allocation10_spill] sm:$0xff]  ;;  %v9850_v63 = vld [vmem:[%s13932_s1 + $0x8] sm:$0xff]  }
 0x1f8   : > { %v9777_v44 = vmax.f32 %v14408_v24, %v1881_v23  ;;  %v9782_v13 = vmax.f32 %v14409_v46, %v1954_v40  ;;  %v1883_v12 = vpop.f32.mrb[135].mxu0  ;;  %v1956_v20 = vpop.f32.mrb[135].mxu1  ;;  %v14419_v23 = vld [vmem:[#allocation3_spill] sm:$0xff]  ;;  %v14422_v24 = vld [vmem:[#allocation2_spill] sm:$0xff]  ;;  %14429 = vst [vmem:[#allocation15_spill] sm:$0xff] %v9850_v63 }
 0x1f9   : > { %v9787_v50 = vmax.f32 %v14410_v4, %v1883_v12  ;;  %v9792_v62 = vmax.f32 %v14411_v51, %v1956_v20  ;;  %v14420_v40 = vmax.f32 %v9478_v45, %v14419_v23  ;;  %v14426_v12 = vld [vmem:[#allocation11_spill] sm:$0xff]  ;;  %v14430_v51 = vmax.f32 %v9499_v32, %v9664_v17  ;;  %v14439_v23 = vld [vmem:[#allocation17_spill] sm:$0xff] }
 0x1fa   : > { %7598 = vmatmul.mubr.msk.bf16.vlgmr.msra.gmra.mrb[240].mxu0 %vm260_vm2, %v9799_v16  ;;  %7602 = vmatmul.mubr.msk.bf16.vlgmr.msra.gmra.mrb[240].mxu1 %vm260_vm2, %v9799_v16  ;;  %v14427_v20 = vmax.f32 %v14425_v10, %v14426_v12 }
 0x1fb   : > { %3578 = vmatpush1.bf16.msra.mxu0 %v3408_v31  ;;  %3651 = vmatpush1.bf16.msra.mxu1 %v3414_v60  ;;  %v14421_v60 = vld [vmem:[#allocation16_spill] sm:$0xff] }
 0x1fc   : > { %3473 = vmatprep.mubr.bf16.mxu0 %v14203_v14  ;;  %3546 = vmatprep.mubr.bf16.mxu1 %v14203_v14  ;;  %v14423_v46 = vmax.f32 %v14421_v60, %v14422_v24  ;;  %v14443_v60 = vld [vmem:[#allocation9_spill] sm:$0xff] }
 0x1fd   : > { %v1887_v26 = vpop.f32.mrb[136].mxu0  ;;  %v1960_v61 = vpop.f32.mrb[136].mxu1  ;;  %3723 = vmatprep.subr.bf16.mxu0 %v3423_v55  ;;  %3796 = vmatprep.subr.bf16.mxu1 %v3429_v22  ;;  %v14431_v22 = vld [vmem:[#allocation8_spill] sm:$0xff] }
 0x1fe   : > { %v9810_v34 = vmax.f32 %v14413_v15, %v1887_v26  ;;  %v9815_v48 = vmax.f32 %v14415_v33, %v1960_v61  ;;  %v1889_v18 = vpop.f32.mrb[137].mxu0  ;;  %v1962_v11 = vpop.f32.mrb[137].mxu1  ;;  %v14432_v26 = vld [vmem:[#allocation7_spill] sm:$0xff] }
 0x1ff   : > { %v9820_v47 = vmax.f32 %v14416_v5, %v1889_v18  ;;  %v9825_v41 = vmax.f32 %v14417_v1, %v1962_v11  ;;  %v1891_v37 = vpop.f32.mrb[138].mxu0  ;;  %v1964_v38 = vpop.f32.mrb[138].mxu1  ;;  %v14433_v61 = vmax.f32 %v14431_v22, %v14432_v26  ;;  %v14435_v18 = vmax.f32 %v9509_v7, %v9672_v28 }
 0x200   : > { %v9830_v49 = vmax.f32 %v14418_v52, %v1891_v37  ;;  %v9835_v31 = vmax.f32 %v14420_v40, %v1964_v38  ;;  %v1893_v9 = vpop.f32.mrb[139].mxu0  ;;  %v1966_v21 = vpop.f32.mrb[139].mxu1  ;;  %v14436_v5 = vmax.f32 %v9514_v58, %v9674_v8  ;;  %v14437_v37 = vmax.f32 %v9519_v6, %v9680_v25  ;;  %v14438_v52 = vld [vmem:[#allocation6_spill] sm:$0xff]  ;;  %v14446_v58 = vld [vmem:[#allocation13_spill] sm:$0xff]  ;;  %v9901_v25 = vld [vmem:[%s13932_s1 + $0x10] sm:$0xff]  }
 0x201   : > { %v9840_v42 = vmax.f32 %v14423_v46, %v1893_v9  ;;  %v9845_v4 = vmax.f32 %v14427_v20, %v1966_v21  ;;  %v14440_v40 = vmax.f32 %v14438_v52, %v14439_v23  ;;  %v14442_v21 = vld [vmem:[#allocation4_spill] sm:$0xff]  ;;  %v14447_v46 = vld [vmem:[#allocation5_spill] sm:$0xff]  ;;  %14450 = vst [vmem:[#allocation11_spill] sm:$0xff] %v9901_v25 }
 0x202   : > { %7599 = vmatmul.mubr.msk.bf16.gmra.mrb[244].mxu0 %vm260_vm2, %v9850_v63  ;;  %7603 = vmatmul.mubr.msk.bf16.gmra.mrb[244].mxu1 %vm260_vm2, %v9850_v63  ;;  %v14444_v24 = vmax.f32 %v14442_v21, %v14443_v60  ;;  %v14448_v10 = vmax.f32 %v14446_v58, %v14447_v46  ;;  %v7956_v23 = vld [vmem:[%s8116_s17 + $0x110] ss:$528 sps:$4 sm:$0x1f]   ;;  %v7967_v60 = vld [vmem:[%s8116_s17 + $0x12c] ss:$528 sps:$4 sm:$0x1f]  }
 0x203   : > { %14424 = vst [vmem:[#allocation18_spill] sm:$0xff] %v9840_v42  ;;  %14428 = vst [vmem:[#allocation12_spill] sm:$0xff] %v9845_v4  ;;  %3483 = vmatprep.mubr.bf16.mxu0 %v14203_v14  ;;  %3556 = vmatprep.mubr.bf16.mxu1 %v14203_v14 }
 0x205   : > { %v1897_v45 = vpop.f32.mrb[140].mxu0  ;;  %v1970_v53 = vpop.f32.mrb[140].mxu1 }
 0x206   : > { %v9861_v55 = vmax.f32 %v14430_v51, %v1897_v45  ;;  %v9866_v15 = vmax.f32 %v14433_v61, %v1970_v53  ;;  %v1899_v29 = vpop.f32.mrb[141].mxu0  ;;  %v1972_v33 = vpop.f32.mrb[141].mxu1 }
 0x207   : > { %v9871_v11 = vmax.f32 %v14435_v18, %v1899_v29  ;;  %v9876_v1 = vmax.f32 %v14436_v5, %v1972_v33  ;;  %v1901_v32 = vpop.f32.mrb[142].mxu0  ;;  %v1974_v17 = vpop.f32.mrb[142].mxu1  ;;  %v3420_v18 = vand.u32 %v7956_v23, %v8118_v3 }
 0x208   : > { %14434 = vst [vmem:[#allocation3_spill] sm:$0xff] %v9866_v15  ;;  %v9881_v38 = vmax.f32 %v14437_v37, %v1901_v32  ;;  %v9886_v9 = vmax.f32 %v14440_v40, %v1974_v17  ;;  %v1903_v7 = vpop.f32.mrb[143].mxu0  ;;  %v1976_v28 = vpop.f32.mrb[143].mxu1  ;;  %v7959_v40 = vld [vmem:[%s8116_s17 + $0x118] ss:$528 sps:$4 sm:$0x1f]  }
 0x209   : > { %v9891_v8 = vmax.f32 %v14444_v24, %v1903_v7  ;;  %v9896_v12 = vmax.f32 %v14448_v10, %v1976_v28  ;;  %v7964_v7 = vld [vmem:[%s8116_s17 + $0x124] ss:$528 sps:$4 sm:$0x1f]   ;;  %v3426_v24 = vand.u32 %v7959_v40, %v8118_v3  ;;  %v4035_v40 = vand.u32 %v7967_v60, %v8118_v3 }
 0x20a   : > { %14441 = vst [vmem:[#allocation16_spill] sm:$0xff] %v9886_v9  ;;  %7600 = vmatmul.mubr.msk.bf16.gmra.mrb[248].mxu0 %vm260_vm2, %v9901_v25  ;;  %7604 = vmatmul.mubr.msk.bf16.gmra.mrb[248].mxu1 %vm260_vm2, %v9901_v25  ;;  %v4029_v23 = vand.u32 %v7964_v7, %v8118_v3 }
 0x20b   : > { %14445 = vst [vmem:[#allocation2_spill] sm:$0xff] %v9891_v8  ;;  %14449 = vst [vmem:[#allocation10_spill] sm:$0xff] %v9896_v12  ;;  %3493 = vmatprep.mubr.bf16.mxu0 %v14203_v14  ;;  %3566 = vmatprep.mubr.bf16.mxu1 %v14203_v14 }
 0x20d   : > { %v9909_v6 = vpop.f32.mrb[144].mxu0  ;;  %v9911_v20 = vpop.f32.mrb[144].mxu1 }
 0x20e   : > { %v9917_v51 = vpop.f32.mrb[145].mxu0  ;;  %v9919_v22 = vpop.f32.mrb[145].mxu1 }
 0x20f   : > { %v9925_v29 = vpop.f32.mrb[146].mxu0  ;;  %v9927_v33 = vpop.f32.mrb[146].mxu1  ;;  %v14462_v8 = vmax.f32 %v9720_v2, %v9919_v22 }
 0x210   : > { %v9933_v32 = vpop.f32.mrb[147].mxu0  ;;  %v9935_v17 = vpop.f32.mrb[147].mxu1 }
 0x211   : > { %v14465_v2 = vmax.f32 %v9735_v27, %v9933_v32  ;;  %v7965_v27 = vld [vmem:[%s8116_s17 + $0x128] ss:$528 sps:$4 sm:$0x1f]   ;;  %v7973_v32 = vld [vmem:[%s8116_s17 + $0x13c] ss:$528 sps:$4 sm:$0x1f]  }
 0x212   : > { %7601 = vmatmul.mubr.msk.bf16.gmra.mrb[252].mxu0 %vm260_vm2, %v9036_v59  ;;  %7605 = vmatmul.mubr.msk.bf16.gmra.mrb[252].mxu1 %vm260_vm2, %v9036_v59 }
 0x213   : > { %3609 = vmatprep.mubr.bf16.mxu0 %v14203_v14  ;;  %3682 = vmatprep.mubr.bf16.mxu1 %v14203_v14 }
 0x215   : > { %v9950_v28 = vpop.f32.mrb[148].mxu0  ;;  %v9952_v21 = vpop.f32.mrb[148].mxu1 }
 0x216   : > { %v9959_v46 = vpop.f32.mrb[149].mxu0  ;;  %v9961_v59 = vpop.f32.mrb[149].mxu1 }
 0x217   : > { %v9967_v37 = vpop.f32.mrb[150].mxu0  ;;  %v9969_v5 = vpop.f32.mrb[150].mxu1 }
 0x218   : > { %v9977_v26 = vpop.f32.mrb[151].mxu0  ;;  %v9979_v10 = vpop.f32.mrb[151].mxu1 }
 0x21a   : > { %7606 = vmatmul.mubr.msk.bf16.vlgmr.msra.gmra.mrb[0].mxu0 %vm260_vm2, %v9799_v16  ;;  %7610 = vmatmul.mubr.msk.bf16.vlgmr.msra.gmra.mrb[0].mxu1 %vm260_vm2, %v9799_v16 }
 0x21b   : > { %3724 = vmatpush1.bf16.msra.mxu0 %v3420_v18  ;;  %3797 = vmatpush1.bf16.msra.mxu1 %v3426_v24 }
 0x21c   : > { %3619 = vmatprep.mubr.bf16.mxu0 %v14203_v14  ;;  %3692 = vmatprep.mubr.bf16.mxu1 %v14203_v14 }
 0x21d   : > { %v9993_v52 = vpop.f32.mrb[152].mxu0  ;;  %v9995_v61 = vpop.f32.mrb[152].mxu1  ;;  %4061 = vmatprep.subr.bf16.mxu0 %v4029_v23  ;;  %4134 = vmatprep.subr.bf16.mxu1 %v4035_v40 }
 0x21e   : > { %14451 = vst [vmem:[#allocation8_spill] sm:$0xff] %v9995_v61  ;;  %v10001_v53 = vpop.f32.mrb[153].mxu0  ;;  %v10003_v18 = vpop.f32.mrb[153].mxu1 }
 0x21f   : > { %v10009_v45 = vpop.f32.mrb[154].mxu0  ;;  %v10011_v23 = vpop.f32.mrb[154].mxu1 }
 0x220   : > { %14452 = vst [vmem:[#allocation7_spill] sm:$0xff] %v10011_v23  ;;  %v10017_v7 = vpop.f32.mrb[155].mxu0  ;;  %v10019_v61 = vpop.f32.mrb[155].mxu1 }
 0x221   : > { %14453 = vst [vmem:[#allocation6_spill] sm:$0xff] %v10017_v7  ;;  %14454 = vst [vmem:[#allocation17_spill] sm:$0xff] %v10019_v61  ;;  %v14460_v7 = vmax.f32 %v9710_v35, %v9911_v20  ;;  %v14463_v35 = vmax.f32 %v9725_v19, %v9925_v29  ;;  %v10112_v19 = vld [vmem:[%s13932_s1 + $0x18] sm:$0xff]  }
 0x222   : > { %7607 = vmatmul.mubr.msk.bf16.gmra.mrb[4].mxu0 %vm260_vm2, %v9850_v63  ;;  %7611 = vmatmul.mubr.msk.bf16.gmra.mrb[4].mxu1 %vm260_vm2, %v9850_v63 }
 0x223   : > { %3629 = vmatprep.mubr.bf16.mxu0 %v14203_v14  ;;  %3702 = vmatprep.mubr.bf16.mxu1 %v14203_v14 }
 0x225   : > { %v10031_v60 = vpop.f32.mrb[156].mxu0  ;;  %v10033_v40 = vpop.f32.mrb[156].mxu1 }
 0x226   : > { %14455 = vst [vmem:[#allocation4_spill] sm:$0xff] %v10033_v40  ;;  %v10039_v61 = vpop.f32.mrb[157].mxu0  ;;  %v10041_v4 = vpop.f32.mrb[157].mxu1 }
 0x227   : > { %v10047_v42 = vpop.f32.mrb[158].mxu0  ;;  %v10049_v23 = vpop.f32.mrb[158].mxu1 }
 0x228   : > { %14456 = vst [vmem:[#allocation9_spill] sm:$0xff] %v10049_v23  ;;  %v10055_v40 = vpop.f32.mrb[159].mxu0  ;;  %v10057_v15 = vpop.f32.mrb[159].mxu1  ;;  %v14459_v23 = vmax.f32 %v9705_v54, %v9909_v6 }
 0x229   : > { %14457 = vst [vmem:[#allocation13_spill] sm:$0xff] %v10055_v40  ;;  %14458 = vst [vmem:[#allocation5_spill] sm:$0xff] %v10057_v15 }
 0x22a   : > { %7608 = vmatmul.mubr.msk.bf16.gmra.mrb[8].mxu0 %vm260_vm2, %v9901_v25  ;;  %7612 = vmatmul.mubr.msk.bf16.gmra.mrb[8].mxu1 %vm260_vm2, %v9901_v25  ;;  %v14461_v25 = vmax.f32 %v9715_v39, %v9917_v51  ;;  %v14464_v39 = vmax.f32 %v9730_v57, %v9927_v33  ;;  %v7962_v57 = vld [vmem:[%s8116_s17 + $0x120] ss:$528 sps:$4 sm:$0x1f]  }
 0x22b   : > { %3639 = vmatprep.mubr.bf16.mxu0 %v14203_v14  ;;  %3712 = vmatprep.mubr.bf16.mxu1 %v14203_v14 }
 0x22d   : > { %v2351_v58 = vpop.f32.mrb[160].mxu0  ;;  %v2424_v24 = vpop.f32.mrb[160].mxu1 }
 0x22e   : > { %v10072_v9 = vmax.f32 %v14459_v23, %v2351_v58  ;;  %v10077_v63 = vmax.f32 %v14460_v7, %v2424_v24  ;;  %v2353_v15 = vpop.f32.mrb[161].mxu0  ;;  %v2426_v12 = vpop.f32.mrb[161].mxu1  ;;  %v14468_v24 = vmax.f32 %v9760_v0, %v9952_v21  ;;  %v4032_v0 = vand.u32 %v7965_v27, %v8118_v3 }
 0x22f   : > { %v10082_v40 = vmax.f32 %v14461_v25, %v2353_v15  ;;  %v10087_v54 = vmax.f32 %v14462_v8, %v2426_v12  ;;  %v2355_v6 = vpop.f32.mrb[162].mxu0  ;;  %v2428_v58 = vpop.f32.mrb[162].mxu1  ;;  %v14466_v12 = vmax.f32 %v9740_v30, %v9935_v17  ;;  %v7970_v30 = vld [vmem:[%s8116_s17 + $0x134] ss:$528 sps:$4 sm:$0x1f]   ;;  %v14467_v17 = vmax.f32 %v9755_v36, %v9950_v28 }
 0x230   : > { %v10092_v20 = vmax.f32 %v14463_v35, %v2355_v6  ;;  %v10097_v15 = vmax.f32 %v14464_v39, %v2428_v58  ;;  %v2357_v25 = vpop.f32.mrb[163].mxu0  ;;  %v2430_v51 = vpop.f32.mrb[163].mxu1  ;;  %v14469_v35 = vmax.f32 %v9765_v43, %v9959_v46  ;;  %v14471_v21 = vmax.f32 %v9777_v44, %v9967_v37 }
 0x231   : > { %v10102_v8 = vmax.f32 %v14465_v2, %v2357_v25  ;;  %v10107_v22 = vmax.f32 %v14466_v12, %v2430_v51  ;;  %v14470_v25 = vmax.f32 %v9770_v56, %v9961_v59  ;;  %v4026_v2 = vand.u32 %v7962_v57, %v8118_v3 }
 0x232   : > { %7609 = vmatmul.mubr.msk.bf16.gmra.mrb[12].mxu0 %vm260_vm2, %v10112_v19  ;;  %7613 = vmatmul.mubr.msk.bf16.gmra.mrb[12].mxu1 %vm260_vm2, %v10112_v19  ;;  %v14472_v43 = vmax.f32 %v9782_v13, %v9969_v5  ;;  %v14473_v59 = vmax.f32 %v9787_v50, %v9977_v26  ;;  %v14474_v57 = vmax.f32 %v9792_v62, %v9979_v10  ;;  %v14476_v5 = vld [vmem:[#allocation8_spill] sm:$0xff] }
 0x233   : > { %3755 = vmatprep.mubr.bf16.mxu0 %v14203_v14  ;;  %3828 = vmatprep.mubr.bf16.mxu1 %v14203_v14  ;;  %v4041_v44 = vand.u32 %v7970_v30, %v8118_v3  ;;  %v4047_v37 = vand.u32 %v7973_v32, %v8118_v3  ;;  %v14475_v62 = vmax.f32 %v9810_v34, %v9993_v52 }
 0x234   : > { %v14477_v10 = vmax.f32 %v9815_v48, %v14476_v5 }
 0x235   : > { %v2361_v29 = vpop.f32.mrb[164].mxu0  ;;  %v2434_v33 = vpop.f32.mrb[164].mxu1 }
 0x236   : > { %v10127_v7 = vmax.f32 %v14467_v17, %v2361_v29  ;;  %v10132_v23 = vmax.f32 %v14468_v24, %v2434_v33  ;;  %v2363_v6 = vpop.f32.mrb[165].mxu0  ;;  %v2436_v58 = vpop.f32.mrb[165].mxu1  ;;  %v14478_v24 = vmax.f32 %v9820_v47, %v10001_v53 }
 0x237   : > { %v10137_v39 = vmax.f32 %v14469_v35, %v2363_v6  ;;  %v10142_v51 = vmax.f32 %v14470_v25, %v2436_v58  ;;  %v2365_v36 = vpop.f32.mrb[166].mxu0  ;;  %v2438_v28 = vpop.f32.mrb[166].mxu1  ;;  %v14479_v58 = vmax.f32 %v9825_v41, %v10003_v18  ;;  %v14480_v25 = vmax.f32 %v9830_v49, %v10009_v45  ;;  %v14487_v18 = vld [vmem:[#allocation12_spill] sm:$0xff]  ;;  %v14491_v49 = vld [vmem:[#allocation15_spill] sm:$0xff] }
 0x238   : > { %v10149_v12 = vmax.f32 %v14471_v21, %v2365_v36  ;;  %v10154_v46 = vmax.f32 %v14472_v43, %v2438_v28  ;;  %v2367_v29 = vpop.f32.mrb[167].mxu0  ;;  %v2440_v56 = vpop.f32.mrb[167].mxu1  ;;  %v14481_v36 = vld [vmem:[#allocation7_spill] sm:$0xff]  ;;  %v14484_v21 = vld [vmem:[#allocation6_spill] sm:$0xff] }
 0x239   : > { %v10159_v33 = vmax.f32 %v14473_v59, %v2367_v29  ;;  %v10164_v27 = vmax.f32 %v14474_v57, %v2440_v56  ;;  %v14482_v28 = vmax.f32 %v9835_v31, %v14481_v36  ;;  %v14488_v29 = vld [vmem:[#allocation17_spill] sm:$0xff]  ;;  %v14492_v57 = vmax.f32 %v9861_v55, %v10031_v60 }
 0x23a   : > { %7614 = vmatmul.mubr.msk.bf16.vlgmr.msra.gmra.mrb[16].mxu0 %vm260_vm2, %v9799_v16  ;;  %7618 = vmatmul.mubr.msk.bf16.vlgmr.msra.gmra.mrb[16].mxu1 %vm260_vm2, %v9799_v16  ;;  %v14489_v56 = vmax.f32 %v14487_v18, %v14488_v29  ;;  %v14501_v36 = vld [vmem:[#allocation9_spill] sm:$0xff] }
 0x23b   : > { %4062 = vmatpush1.bf16.msra.mxu0 %v4026_v2  ;;  %4135 = vmatpush1.bf16.msra.mxu1 %v4032_v0  ;;  %v14483_v0 = vld [vmem:[#allocation18_spill] sm:$0xff] }
 0x23c   : > { %3765 = vmatprep.mubr.bf16.mxu0 %v14203_v14  ;;  %3838 = vmatprep.mubr.bf16.mxu1 %v14203_v14  ;;  %v14485_v43 = vmax.f32 %v14483_v0, %v14484_v21  ;;  %v14505_v0 = vld [vmem:[#allocation13_spill] sm:$0xff] }
 0x23d   : > { %v2371_v13 = vpop.f32.mrb[168].mxu0  ;;  %v2444_v50 = vpop.f32.mrb[168].mxu1  ;;  %4207 = vmatprep.subr.bf16.mxu0 %v4041_v44  ;;  %4280 = vmatprep.subr.bf16.mxu1 %v4047_v37  ;;  %v14493_v37 = vld [vmem:[#allocation3_spill] sm:$0xff] }
 0x23e   : > { %v10177_v26 = vmax.f32 %v14475_v62, %v2371_v13  ;;  %v10182_v30 = vmax.f32 %v14477_v10, %v2444_v50  ;;  %v2373_v32 = vpop.f32.mrb[169].mxu0  ;;  %v2446_v17 = vpop.f32.mrb[169].mxu1  ;;  %v14494_v13 = vld [vmem:[#allocation4_spill] sm:$0xff] }
 0x23f   : > { %v10187_v6 = vmax.f32 %v14478_v24, %v2373_v32  ;;  %v10192_v35 = vmax.f32 %v14479_v58, %v2446_v17  ;;  %v2375_v34 = vpop.f32.mrb[170].mxu0  ;;  %v2448_v52 = vpop.f32.mrb[170].mxu1  ;;  %v14495_v50 = vmax.f32 %v14493_v37, %v14494_v13  ;;  %v14497_v32 = vmax.f32 %v9871_v11, %v10039_v61 }
 0x240   : > { %v10197_v48 = vmax.f32 %v14480_v25, %v2375_v34  ;;  %v10202_v2 = vmax.f32 %v14482_v28, %v2448_v52  ;;  %v2377_v47 = vpop.f32.mrb[171].mxu0  ;;  %v2450_v53 = vpop.f32.mrb[171].mxu1  ;;  %v14498_v24 = vmax.f32 %v9876_v1, %v10041_v4  ;;  %v14499_v34 = vmax.f32 %v9881_v38, %v10047_v42  ;;  %v14500_v25 = vld [vmem:[#allocation16_spill] sm:$0xff]  ;;  %v14508_v1 = vld [vmem:[#allocation10_spill] sm:$0xff]  ;;  %v14512_v42 = vld [vmem:[#allocation11_spill] sm:$0xff] }
 0x241   : > { %v10207_v41 = vmax.f32 %v14485_v43, %v2377_v47  ;;  %v10212_v59 = vmax.f32 %v14489_v56, %v2450_v53  ;;  %v14502_v28 = vmax.f32 %v14500_v25, %v14501_v36  ;;  %v14504_v53 = vld [vmem:[#allocation2_spill] sm:$0xff]  ;;  %v14509_v43 = vld [vmem:[#allocation5_spill] sm:$0xff] }
 0x242   : > { %7615 = vmatmul.mubr.msk.bf16.gmra.mrb[20].mxu0 %vm260_vm2, %v14491_v49  ;;  %7619 = vmatmul.mubr.msk.bf16.gmra.mrb[20].mxu1 %vm260_vm2, %v14491_v49  ;;  %v14506_v21 = vmax.f32 %v14504_v53, %v14505_v0  ;;  %v14510_v18 = vmax.f32 %v14508_v1, %v14509_v43  ;;  %v7968_v36 = vld [vmem:[%s8116_s17 + $0x130] ss:$528 sps:$4 sm:$0x1f]   ;;  %v7979_v0 = vld [vmem:[%s8116_s17 + $0x14c] ss:$528 sps:$4 sm:$0x1f]  }
 0x243   : > { %14486 = vst [vmem:[#allocation8_spill] sm:$0xff] %v10207_v41  ;;  %14490 = vst [vmem:[#allocation7_spill] sm:$0xff] %v10212_v59  ;;  %3775 = vmatprep.mubr.bf16.mxu0 %v14203_v14  ;;  %3848 = vmatprep.mubr.bf16.mxu1 %v14203_v14 }
 0x245   : > { %v2381_v31 = vpop.f32.mrb[172].mxu0  ;;  %v2454_v45 = vpop.f32.mrb[172].mxu1 }
 0x246   : > { %v10223_v44 = vmax.f32 %v14492_v57, %v2381_v31  ;;  %v10228_v62 = vmax.f32 %v14495_v50, %v2454_v45  ;;  %v2383_v5 = vpop.f32.mrb[173].mxu0  ;;  %v2456_v10 = vpop.f32.mrb[173].mxu1  ;;  %v4038_v50 = vand.u32 %v7968_v36, %v8118_v3 }
 0x247   : > { %v10233_v17 = vmax.f32 %v14497_v32, %v2383_v5  ;;  %v10238_v58 = vmax.f32 %v14498_v24, %v2456_v10  ;;  %v2385_v55 = vpop.f32.mrb[174].mxu0  ;;  %v2458_v60 = vpop.f32.mrb[174].mxu1 }
 0x248   : > { %14496 = vst [vmem:[#allocation18_spill] sm:$0xff] %v10228_v62  ;;  %v10243_v52 = vmax.f32 %v14499_v34, %v2385_v55  ;;  %v10248_v47 = vmax.f32 %v14502_v28, %v2458_v60  ;;  %v2387_v11 = vpop.f32.mrb[175].mxu0  ;;  %v2460_v61 = vpop.f32.mrb[175].mxu1  ;;  %v7971_v28 = vld [vmem:[%s8116_s17 + $0x138] ss:$528 sps:$4 sm:$0x1f]  }
 0x249   : > { %v10253_v4 = vmax.f32 %v14506_v21, %v2387_v11  ;;  %v10258_v29 = vmax.f32 %v14510_v18, %v2460_v61  ;;  %v7976_v11 = vld [vmem:[%s8116_s17 + $0x144] ss:$528 sps:$4 sm:$0x1f]   ;;  %v4044_v21 = vand.u32 %v7971_v28, %v8118_v3  ;;  %v4059_v28 = vand.u32 %v7979_v0, %v8118_v3 }
 0x24a   : > { %14503 = vst [vmem:[#allocation6_spill] sm:$0xff] %v10248_v47  ;;  %7616 = vmatmul.mubr.msk.bf16.gmra.mrb[24].mxu0 %vm260_vm2, %v14512_v42  ;;  %7620 = vmatmul.mubr.msk.bf16.gmra.mrb[24].mxu1 %vm260_vm2, %v14512_v42  ;;  %v4053_v36 = vand.u32 %v7976_v11, %v8118_v3 }
 0x24b   : > { %14507 = vst [vmem:[#allocation12_spill] sm:$0xff] %v10253_v4  ;;  %14511 = vst [vmem:[#allocation17_spill] sm:$0xff] %v10258_v29  ;;  %3785 = vmatprep.mubr.bf16.mxu0 %v14203_v14  ;;  %3858 = vmatprep.mubr.bf16.mxu1 %v14203_v14 }
 0x24d   : > { %v10266_v38 = vpop.f32.mrb[176].mxu0  ;;  %v10268_v56 = vpop.f32.mrb[176].mxu1 }
 0x24e   : > { %v10274_v57 = vpop.f32.mrb[177].mxu0  ;;  %v10276_v37 = vpop.f32.mrb[177].mxu1 }
 0x24f   : > { %v10282_v5 = vpop.f32.mrb[178].mxu0  ;;  %v10284_v10 = vpop.f32.mrb[178].mxu1  ;;  %v14524_v4 = vmax.f32 %v10087_v54, %v10276_v37 }
 0x250   : > { %v10290_v55 = vpop.f32.mrb[179].mxu0  ;;  %v10292_v60 = vpop.f32.mrb[179].mxu1 }
 0x251   : > { %v14527_v54 = vmax.f32 %v10102_v8, %v10290_v55  ;;  %v7982_v8 = vld [vmem:[%s8116_s17 + $0x154] ss:$528 sps:$4 sm:$0x1f]   ;;  %v7985_v55 = vld [vmem:[%s8116_s17 + $0x15c] ss:$528 sps:$4 sm:$0x1f]  }
 0x252   : > { %7617 = vmatmul.mubr.msk.bf16.gmra.mrb[28].mxu0 %vm260_vm2, %v10112_v19  ;;  %7621 = vmatmul.mubr.msk.bf16.gmra.mrb[28].mxu1 %vm260_vm2, %v10112_v19 }
 0x253   : > { %4093 = vmatprep.mubr.bf16.mxu0 %v14203_v14  ;;  %4166 = vmatprep.mubr.bf16.mxu1 %v14203_v14 }
 0x255   : > { %v10307_v61 = vpop.f32.mrb[180].mxu0  ;;  %v10309_v53 = vpop.f32.mrb[180].mxu1 }
 0x256   : > { %v10316_v43 = vpop.f32.mrb[181].mxu0  ;;  %v10318_v18 = vpop.f32.mrb[181].mxu1 }
 0x257   : > { %v10324_v24 = vpop.f32.mrb[182].mxu0  ;;  %v10326_v32 = vpop.f32.mrb[182].mxu1 }
 0x258   : > { %v10334_v45 = vpop.f32.mrb[183].mxu0  ;;  %v10336_v25 = vpop.f32.mrb[183].mxu1 }
 0x25a   : > { %7634 = vmatmul.mubr.msk.bf16.vlgmr.msra.gmra.mrb[32].mxu0 %vm260_vm2, %v9799_v16  ;;  %7638 = vmatmul.mubr.msk.bf16.vlgmr.msra.gmra.mrb[32].mxu1 %vm260_vm2, %v9799_v16 }
 0x25b   : > { %4208 = vmatpush1.bf16.msra.mxu0 %v4038_v50  ;;  %4281 = vmatpush1.bf16.msra.mxu1 %v4044_v21 }
 0x25c   : > { %4103 = vmatprep.mubr.bf16.mxu0 %v14203_v14  ;;  %4176 = vmatprep.mubr.bf16.mxu1 %v14203_v14 }
 0x25d   : > { %v10350_v34 = vpop.f32.mrb[184].mxu0  ;;  %v10352_v13 = vpop.f32.mrb[184].mxu1  ;;  %4353 = vmatprep.subr.bf16.mxu0 %v4053_v36  ;;  %4426 = vmatprep.subr.bf16.mxu1 %v4059_v28 }
 0x25e   : > { %14513 = vst [vmem:[#allocation3_spill] sm:$0xff] %v10352_v13  ;;  %v10358_v31 = vpop.f32.mrb[185].mxu0  ;;  %v10360_v50 = vpop.f32.mrb[185].mxu1 }
 0x25f   : > { %v10366_v16 = vpop.f32.mrb[186].mxu0  ;;  %v10368_v36 = vpop.f32.mrb[186].mxu1 }
 0x260   : > { %14514 = vst [vmem:[#allocation4_spill] sm:$0xff] %v10368_v36  ;;  %v10374_v11 = vpop.f32.mrb[187].mxu0  ;;  %v10376_v13 = vpop.f32.mrb[187].mxu1 }
 0x261   : > { %14515 = vst [vmem:[#allocation16_spill] sm:$0xff] %v10374_v11  ;;  %14516 = vst [vmem:[#allocation9_spill] sm:$0xff] %v10376_v13  ;;  %v14522_v11 = vmax.f32 %v10077_v63, %v10268_v56  ;;  %v14525_v63 = vmax.f32 %v10092_v20, %v10282_v5  ;;  %v7974_v20 = vld [vmem:[%s8116_s17 + $0x140] ss:$528 sps:$4 sm:$0x1f]  }
 0x262   : > { %7635 = vmatmul.mubr.msk.bf16.gmra.mrb[36].mxu0 %vm260_vm2, %v14491_v49  ;;  %7639 = vmatmul.mubr.msk.bf16.gmra.mrb[36].mxu1 %vm260_vm2, %v14491_v49 }
 0x263   : > { %4113 = vmatprep.mubr.bf16.mxu0 %v14203_v14  ;;  %4186 = vmatprep.mubr.bf16.mxu1 %v14203_v14 }
 0x265   : > { %v10388_v0 = vpop.f32.mrb[188].mxu0  ;;  %v10390_v28 = vpop.f32.mrb[188].mxu1 }
 0x266   : > { %14517 = vst [vmem:[#allocation2_spill] sm:$0xff] %v10390_v28  ;;  %v10396_v13 = vpop.f32.mrb[189].mxu0  ;;  %v10398_v59 = vpop.f32.mrb[189].mxu1 }
 0x267   : > { %v10404_v41 = vpop.f32.mrb[190].mxu0  ;;  %v10406_v36 = vpop.f32.mrb[190].mxu1 }
 0x268   : > { %14518 = vst [vmem:[#allocation13_spill] sm:$0xff] %v10406_v36  ;;  %v10412_v28 = vpop.f32.mrb[191].mxu0  ;;  %v10414_v62 = vpop.f32.mrb[191].mxu1  ;;  %v14521_v36 = vmax.f32 %v10072_v9, %v10266_v38 }
 0x269   : > { %14519 = vst [vmem:[#allocation10_spill] sm:$0xff] %v10412_v28  ;;  %14520 = vst [vmem:[#allocation5_spill] sm:$0xff] %v10414_v62 }
 0x26a   : > { %7636 = vmatmul.mubr.msk.bf16.gmra.mrb[40].mxu0 %vm260_vm2, %v14512_v42  ;;  %7640 = vmatmul.mubr.msk.bf16.gmra.mrb[40].mxu1 %vm260_vm2, %v14512_v42  ;;  %v14523_v42 = vmax.f32 %v10082_v40, %v10274_v57  ;;  %v14526_v40 = vmax.f32 %v10097_v15, %v10284_v10  ;;  %v7977_v15 = vld [vmem:[%s8116_s17 + $0x148] ss:$528 sps:$4 sm:$0x1f]  }
 0x26b   : > { %4123 = vmatprep.mubr.bf16.mxu0 %v14203_v14  ;;  %4196 = vmatprep.mubr.bf16.mxu1 %v14203_v14 }
 0x26d   : > { %v2835_v1 = vpop.f32.mrb[192].mxu0  ;;  %v2908_v21 = vpop.f32.mrb[192].mxu1 }
 0x26e   : > { %v10429_v47 = vmax.f32 %v14521_v36, %v2835_v1  ;;  %v10434_v49 = vmax.f32 %v14522_v11, %v2908_v21  ;;  %v2837_v62 = vpop.f32.mrb[193].mxu0  ;;  %v2910_v29 = vpop.f32.mrb[193].mxu1  ;;  %v14530_v11 = vmax.f32 %v10132_v23, %v10309_v53  ;;  %v4056_v23 = vand.u32 %v7977_v15, %v8118_v3 }
 0x26f   : > { %v10439_v28 = vmax.f32 %v14523_v42, %v2837_v62  ;;  %v10444_v9 = vmax.f32 %v14524_v4, %v2910_v29  ;;  %v2839_v38 = vpop.f32.mrb[194].mxu0  ;;  %v2912_v1 = vpop.f32.mrb[194].mxu1  ;;  %v14528_v29 = vmax.f32 %v10107_v22, %v10292_v60  ;;  %v14529_v22 = vmax.f32 %v10127_v7, %v10307_v61 }
 0x270   : > { %v10449_v56 = vmax.f32 %v14525_v63, %v2839_v38  ;;  %v10454_v57 = vmax.f32 %v14526_v40, %v2912_v1  ;;  %v2841_v62 = vpop.f32.mrb[195].mxu0  ;;  %v2914_v42 = vpop.f32.mrb[195].mxu1  ;;  %v14531_v1 = vmax.f32 %v10137_v39, %v10316_v43  ;;  %v14532_v40 = vmax.f32 %v10142_v51, %v10318_v18 }
 0x271   : > { %v10459_v4 = vmax.f32 %v14527_v54, %v2841_v62  ;;  %v10464_v37 = vmax.f32 %v14528_v29, %v2914_v42  ;;  %v4050_v42 = vand.u32 %v7974_v20, %v8118_v3  ;;  %v14533_v53 = vmax.f32 %v10149_v12, %v10324_v24 }
 0x272   : > { %7637 = vmatmul.mubr.msk.bf16.gmra.mrb[44].mxu0 %vm260_vm2, %v10112_v19  ;;  %7641 = vmatmul.mubr.msk.bf16.gmra.mrb[44].mxu1 %vm260_vm2, %v10112_v19  ;;  %v14534_v39 = vmax.f32 %v10154_v46, %v10326_v32  ;;  %v14535_v18 = vmax.f32 %v10159_v33, %v10334_v45  ;;  %v14536_v20 = vmax.f32 %v10164_v27, %v10336_v25  ;;  %v14539_v32 = vld [vmem:[#allocation3_spill] sm:$0xff] }
 0x273   : > { %4239 = vmatprep.mubr.bf16.mxu0 %v14203_v14  ;;  %4312 = vmatprep.mubr.bf16.mxu1 %v14203_v14  ;;  %v4659_v12 = vand.u32 %v7982_v8, %v8118_v3  ;;  %v4665_v24 = vand.u32 %v7985_v55, %v8118_v3  ;;  %v14538_v27 = vmax.f32 %v10177_v26, %v10350_v34 }
 0x274   : > { %v14540_v25 = vmax.f32 %v10182_v30, %v14539_v32 }
 0x275   : > { %v2845_v5 = vpop.f32.mrb[196].mxu0  ;;  %v2918_v10 = vpop.f32.mrb[196].mxu1 }
 0x276   : > { %v10479_v60 = vmax.f32 %v14529_v22, %v2845_v5  ;;  %v10484_v21 = vmax.f32 %v14530_v11, %v2918_v10  ;;  %v2847_v36 = vpop.f32.mrb[197].mxu0  ;;  %v2920_v38 = vpop.f32.mrb[197].mxu1  ;;  %v14537_v10 = vld [vmem:[#allocation14_spill] sm:$0xff]  ;;  %v14541_v11 = vmax.f32 %v10187_v6, %v10358_v31 }
 0x277   : > { %v10489_v63 = vmax.f32 %v14531_v1, %v2847_v36  ;;  %v10494_v62 = vmax.f32 %v14532_v40, %v2920_v38  ;;  %v2849_v7 = vpop.f32.mrb[198].mxu0  ;;  %v2922_v61 = vpop.f32.mrb[198].mxu1  ;;  %v14542_v38 = vmax.f32 %v10192_v35, %v10360_v50  ;;  %v14543_v40 = vmax.f32 %v10197_v48, %v10366_v16  ;;  %v14550_v50 = vld [vmem:[#allocation7_spill] sm:$0xff] }
 0x278   : > { %v10501_v54 = vmax.f32 %v14533_v53, %v2849_v7  ;;  %v10506_v43 = vmax.f32 %v14534_v39, %v2922_v61  ;;  %v2851_v29 = vpop.f32.mrb[199].mxu0  ;;  %v2924_v51 = vpop.f32.mrb[199].mxu1  ;;  %v14544_v7 = vld [vmem:[#allocation4_spill] sm:$0xff]  ;;  %v14554_v16 = vld [vmem:[#allocation15_spill] sm:$0xff] }
 0x279   : > { %v10511_v5 = vmax.f32 %v14535_v18, %v2851_v29  ;;  %v10516_v15 = vmax.f32 %v14536_v20, %v2924_v51  ;;  %v14545_v61 = vmax.f32 %v10202_v2, %v14544_v7  ;;  %v14547_v53 = vld [vmem:[#allocation16_spill] sm:$0xff]  ;;  %v14551_v29 = vld [vmem:[#allocation9_spill] sm:$0xff]  ;;  %v14555_v20 = vmax.f32 %v10223_v44, %v10388_v0 }
 0x27a   : > { %7642 = vmatmul.mubr.msk.bf16.vlgmr.msra.gmra.mrb[48].mxu0 %vm260_vm2, %v14537_v10  ;;  %7646 = vmatmul.mubr.msk.bf16.vlgmr.msra.gmra.mrb[48].mxu1 %vm260_vm2, %v14537_v10  ;;  %v14552_v51 = vmax.f32 %v14550_v50, %v14551_v29  ;;  %v14564_v7 = vld [vmem:[#allocation13_spill] sm:$0xff] }
 0x27b   : > { %4354 = vmatpush1.bf16.msra.mxu0 %v4050_v42  ;;  %4427 = vmatpush1.bf16.msra.mxu1 %v4056_v23  ;;  %v14546_v23 = vld [vmem:[#allocation8_spill] sm:$0xff] }
 0x27c   : > { %4249 = vmatprep.mubr.bf16.mxu0 %v14203_v14  ;;  %4322 = vmatprep.mubr.bf16.mxu1 %v14203_v14  ;;  %v14548_v39 = vmax.f32 %v14546_v23, %v14547_v53  ;;  %v14568_v23 = vld [vmem:[#allocation10_spill] sm:$0xff] }
 0x27d   : > { %v2855_v46 = vpop.f32.mrb[200].mxu0  ;;  %v2928_v33 = vpop.f32.mrb[200].mxu1  ;;  %4691 = vmatprep.subr.bf16.mxu0 %v4659_v12  ;;  %4764 = vmatprep.subr.bf16.mxu1 %v4665_v24  ;;  %v14556_v24 = vld [vmem:[#allocation18_spill] sm:$0xff] }
 0x27e   : > { %v10529_v45 = vmax.f32 %v14538_v27, %v2855_v46  ;;  %v10534_v8 = vmax.f32 %v14540_v25, %v2928_v33  ;;  %v2857_v55 = vpop.f32.mrb[201].mxu0  ;;  %v2930_v22 = vpop.f32.mrb[201].mxu1  ;;  %v14557_v46 = vld [vmem:[#allocation2_spill] sm:$0xff] }
 0x27f   : > { %v10539_v36 = vmax.f32 %v14541_v11, %v2857_v55  ;;  %v10544_v1 = vmax.f32 %v14542_v38, %v2930_v22  ;;  %v2859_v26 = vpop.f32.mrb[202].mxu0  ;;  %v2932_v34 = vpop.f32.mrb[202].mxu1  ;;  %v14558_v33 = vmax.f32 %v14556_v24, %v14557_v46  ;;  %v14560_v55 = vmax.f32 %v10233_v17, %v10396_v13 }
 0x280   : > { %v10549_v30 = vmax.f32 %v14543_v40, %v2859_v26  ;;  %v10554_v42 = vmax.f32 %v14545_v61, %v2932_v34  ;;  %v2861_v6 = vpop.f32.mrb[203].mxu0  ;;  %v2934_v31 = vpop.f32.mrb[203].mxu1  ;;  %v14561_v11 = vmax.f32 %v10238_v58, %v10398_v59  ;;  %v14562_v26 = vmax.f32 %v10243_v52, %v10404_v41  ;;  %v14563_v40 = vld [vmem:[#allocation6_spill] sm:$0xff]  ;;  %v14571_v58 = vld [vmem:[#allocation17_spill] sm:$0xff]  ;;  %v14575_v41 = vld [vmem:[#allocation11_spill] sm:$0xff] }
 0x281   : > { %v10559_v35 = vmax.f32 %v14548_v39, %v2861_v6  ;;  %v10564_v18 = vmax.f32 %v14552_v51, %v2934_v31  ;;  %v14565_v61 = vmax.f32 %v14563_v40, %v14564_v7  ;;  %v14567_v31 = vld [vmem:[#allocation12_spill] sm:$0xff]  ;;  %v14572_v39 = vld [vmem:[#allocation5_spill] sm:$0xff] }
 0x282   : > { %7643 = vmatmul.mubr.msk.bf16.gmra.mrb[52].mxu0 %vm260_vm2, %v14554_v16  ;;  %7647 = vmatmul.mubr.msk.bf16.gmra.mrb[52].mxu1 %vm260_vm2, %v14554_v16  ;;  %v14569_v53 = vmax.f32 %v14567_v31, %v14568_v23  ;;  %v14573_v50 = vmax.f32 %v14571_v58, %v14572_v39  ;;  %v7980_v7 = vld [vmem:[%s8116_s17 + $0x150] ss:$528 sps:$4 sm:$0x1f]   ;;  %v7991_v23 = vld [vmem:[%s8116_s17 + $0x16c] ss:$528 sps:$4 sm:$0x1f]  }
 0x283   : > { %14549 = vst [vmem:[#allocation14_spill] sm:$0xff] %v10559_v35  ;;  %14553 = vst [vmem:[#allocation3_spill] sm:$0xff] %v10564_v18  ;;  %4259 = vmatprep.mubr.bf16.mxu0 %v14203_v14  ;;  %4332 = vmatprep.mubr.bf16.mxu1 %v14203_v14 }
 0x285   : > { %v2865_v48 = vpop.f32.mrb[204].mxu0  ;;  %v2938_v2 = vpop.f32.mrb[204].mxu1 }
 0x286   : > { %v10575_v12 = vmax.f32 %v14555_v20, %v2865_v48  ;;  %v10580_v27 = vmax.f32 %v14558_v33, %v2938_v2  ;;  %v2867_v32 = vpop.f32.mrb[205].mxu0  ;;  %v2940_v25 = vpop.f32.mrb[205].mxu1  ;;  %v4656_v33 = vand.u32 %v7980_v7, %v8118_v3 }
 0x287   : > { %v10585_v22 = vmax.f32 %v14560_v55, %v2867_v32  ;;  %v10590_v38 = vmax.f32 %v14561_v11, %v2940_v25  ;;  %v2869_v44 = vpop.f32.mrb[206].mxu0  ;;  %v2942_v0 = vpop.f32.mrb[206].mxu1 }
 0x288   : > { %14559 = vst [vmem:[#allocation4_spill] sm:$0xff] %v10580_v27  ;;  %v10595_v34 = vmax.f32 %v14562_v26, %v2869_v44  ;;  %v10600_v6 = vmax.f32 %v14565_v61, %v2942_v0  ;;  %v2871_v17 = vpop.f32.mrb[207].mxu0  ;;  %v2944_v13 = vpop.f32.mrb[207].mxu1  ;;  %v7983_v61 = vld [vmem:[%s8116_s17 + $0x158] ss:$528 sps:$4 sm:$0x1f]  }
 0x289   : > { %v10605_v59 = vmax.f32 %v14569_v53, %v2871_v17  ;;  %v10610_v29 = vmax.f32 %v14573_v50, %v2944_v13  ;;  %v7988_v17 = vld [vmem:[%s8116_s17 + $0x164] ss:$528 sps:$4 sm:$0x1f]   ;;  %v4662_v53 = vand.u32 %v7983_v61, %v8118_v3  ;;  %v4677_v61 = vand.u32 %v7991_v23, %v8118_v3 }
 0x28a   : > { %14566 = vst [vmem:[#allocation8_spill] sm:$0xff] %v10600_v6  ;;  %7644 = vmatmul.mubr.msk.bf16.gmra.mrb[56].mxu0 %vm260_vm2, %v14575_v41  ;;  %7648 = vmatmul.mubr.msk.bf16.gmra.mrb[56].mxu1 %vm260_vm2, %v14575_v41  ;;  %v4671_v7 = vand.u32 %v7988_v17, %v8118_v3 }
 0x28b   : > { %14570 = vst [vmem:[#allocation16_spill] sm:$0xff] %v10605_v59  ;;  %14574 = vst [vmem:[#allocation7_spill] sm:$0xff] %v10610_v29  ;;  %4269 = vmatprep.mubr.bf16.mxu0 %v14203_v14  ;;  %4342 = vmatprep.mubr.bf16.mxu1 %v14203_v14 }
 0x28d   : > { %v10618_v52 = vpop.f32.mrb[208].mxu0  ;;  %v10620_v51 = vpop.f32.mrb[208].mxu1 }
 0x28e   : > { %v10626_v20 = vpop.f32.mrb[209].mxu0  ;;  %v10628_v24 = vpop.f32.mrb[209].mxu1 }
 0x28f   : > { %v10634_v32 = vpop.f32.mrb[210].mxu0  ;;  %v10636_v25 = vpop.f32.mrb[210].mxu1  ;;  %v14587_v59 = vmax.f32 %v10444_v9, %v10628_v24 }
 0x290   : > { %v10642_v44 = vpop.f32.mrb[211].mxu0  ;;  %v10644_v0 = vpop.f32.mrb[211].mxu1 }
 0x291   : > { %v14590_v9 = vmax.f32 %v10459_v4, %v10642_v44  ;;  %v7994_v4 = vld [vmem:[%s8116_s17 + $0x174] ss:$528 sps:$4 sm:$0x1f]   ;;  %v7997_v44 = vld [vmem:[%s8116_s17 + $0x17c] ss:$528 sps:$4 sm:$0x1f]  }
 0x292   : > { %7645 = vmatmul.mubr.msk.bf16.gmra.mrb[60].mxu0 %vm260_vm2, %v10112_v19  ;;  %7649 = vmatmul.mubr.msk.bf16.gmra.mrb[60].mxu1 %vm260_vm2, %v10112_v19 }
 0x293   : > { %4385 = vmatprep.mubr.bf16.mxu0 %v14203_v14  ;;  %4458 = vmatprep.mubr.bf16.mxu1 %v14203_v14 }
 0x295   : > { %v10659_v13 = vpop.f32.mrb[212].mxu0  ;;  %v10661_v31 = vpop.f32.mrb[212].mxu1 }
 0x296   : > { %v10668_v39 = vpop.f32.mrb[213].mxu0  ;;  %v10670_v50 = vpop.f32.mrb[213].mxu1 }
 0x297   : > { %v10676_v11 = vpop.f32.mrb[214].mxu0  ;;  %v10678_v55 = vpop.f32.mrb[214].mxu1 }
 0x298   : > { %v10686_v2 = vpop.f32.mrb[215].mxu0  ;;  %v10688_v40 = vpop.f32.mrb[215].mxu1 }
 0x29a   : > { %7650 = vmatmul.mubr.msk.bf16.vlgmr.msra.gmra.mrb[64].mxu0 %vm260_vm2, %v14537_v10  ;;  %7654 = vmatmul.mubr.msk.bf16.vlgmr.msra.gmra.mrb[64].mxu1 %vm260_vm2, %v14537_v10 }
 0x29b   : > { %4692 = vmatpush1.bf16.msra.mxu0 %v4656_v33  ;;  %4765 = vmatpush1.bf16.msra.mxu1 %v4662_v53 }
 0x29c   : > { %4395 = vmatprep.mubr.bf16.mxu0 %v14203_v14  ;;  %4468 = vmatprep.mubr.bf16.mxu1 %v14203_v14 }
 0x29d   : > { %v10702_v26 = vpop.f32.mrb[216].mxu0  ;;  %v10704_v46 = vpop.f32.mrb[216].mxu1  ;;  %4837 = vmatprep.subr.bf16.mxu0 %v4671_v7  ;;  %4910 = vmatprep.subr.bf16.mxu1 %v4677_v61 }
 0x29e   : > { %14576 = vst [vmem:[#allocation9_spill] sm:$0xff] %v10704_v46  ;;  %v10710_v48 = vpop.f32.mrb[217].mxu0  ;;  %v10712_v10 = vpop.f32.mrb[217].mxu1 }
 0x29f   : > { %v10718_v58 = vpop.f32.mrb[218].mxu0  ;;  %v10720_v7 = vpop.f32.mrb[218].mxu1 }
 0x2a0   : > { %14577 = vst [vmem:[#allocation15_spill] sm:$0xff] %v10720_v7  ;;  %v10726_v17 = vpop.f32.mrb[219].mxu0  ;;  %v10728_v46 = vpop.f32.mrb[219].mxu1 }
 0x2a1   : > { %14578 = vst [vmem:[#allocation18_spill] sm:$0xff] %v10726_v17  ;;  %14579 = vst [vmem:[#allocation2_spill] sm:$0xff] %v10728_v46  ;;  %v14585_v17 = vmax.f32 %v10434_v49, %v10620_v51  ;;  %v14588_v49 = vmax.f32 %v10449_v56, %v10634_v32  ;;  %v7986_v56 = vld [vmem:[%s8116_s17 + $0x160] ss:$528 sps:$4 sm:$0x1f]  }
 0x2a2   : > { %7651 = vmatmul.mubr.msk.bf16.gmra.mrb[68].mxu0 %vm260_vm2, %v14554_v16  ;;  %7655 = vmatmul.mubr.msk.bf16.gmra.mrb[68].mxu1 %vm260_vm2, %v14554_v16 }
 0x2a3   : > { %4405 = vmatprep.mubr.bf16.mxu0 %v14203_v14  ;;  %4478 = vmatprep.mubr.bf16.mxu1 %v14203_v14 }
 0x2a5   : > { %v10740_v23 = vpop.f32.mrb[220].mxu0  ;;  %v10742_v61 = vpop.f32.mrb[220].mxu1 }
 0x2a6   : > { %14580 = vst [vmem:[#allocation6_spill] sm:$0xff] %v10742_v61  ;;  %v10748_v46 = vpop.f32.mrb[221].mxu0  ;;  %v10750_v18 = vpop.f32.mrb[221].mxu1 }
 0x2a7   : > { %v10756_v35 = vpop.f32.mrb[222].mxu0  ;;  %v10758_v7 = vpop.f32.mrb[222].mxu1 }
 0x2a8   : > { %14581 = vst [vmem:[#allocation13_spill] sm:$0xff] %v10758_v7  ;;  %v10764_v61 = vpop.f32.mrb[223].mxu0  ;;  %v10766_v27 = vpop.f32.mrb[223].mxu1  ;;  %v14584_v7 = vmax.f32 %v10429_v47, %v10618_v52 }
 0x2a9   : > { %14582 = vst [vmem:[#allocation12_spill] sm:$0xff] %v10764_v61  ;;  %14583 = vst [vmem:[#allocation10_spill] sm:$0xff] %v10766_v27 }
 0x2aa   : > { %7652 = vmatmul.mubr.msk.bf16.gmra.mrb[72].mxu0 %vm260_vm2, %v14575_v41  ;;  %7656 = vmatmul.mubr.msk.bf16.gmra.mrb[72].mxu1 %vm260_vm2, %v14575_v41  ;;  %v14586_v41 = vmax.f32 %v10439_v28, %v10626_v20  ;;  %v14589_v28 = vmax.f32 %v10454_v57, %v10636_v25  ;;  %v7989_v57 = vld [vmem:[%s8116_s17 + $0x168] ss:$528 sps:$4 sm:$0x1f]  }
 0x2ab   : > { %4415 = vmatprep.mubr.bf16.mxu0 %v14203_v14  ;;  %4488 = vmatprep.mubr.bf16.mxu1 %v14203_v14 }
 0x2ad   : > { %v3127_v53 = vpop.f32.mrb[224].mxu0  ;;  %v3200_v33 = vpop.f32.mrb[224].mxu1 }
 0x2ae   : > { %v10781_v6 = vmax.f32 %v14584_v7, %v3127_v53  ;;  %v10786_v16 = vmax.f32 %v14585_v17, %v3200_v33  ;;  %v3129_v27 = vpop.f32.mrb[225].mxu0  ;;  %v3202_v29 = vpop.f32.mrb[225].mxu1  ;;  %v14593_v33 = vmax.f32 %v10484_v21, %v10661_v31  ;;  %v4674_v21 = vand.u32 %v7989_v57, %v8118_v3 }
 0x2af   : > { %v10791_v61 = vmax.f32 %v14586_v41, %v3129_v27  ;;  %v10796_v47 = vmax.f32 %v14587_v59, %v3202_v29  ;;  %v3131_v52 = vpop.f32.mrb[226].mxu0  ;;  %v3204_v53 = vpop.f32.mrb[226].mxu1  ;;  %v14591_v29 = vmax.f32 %v10464_v37, %v10644_v0  ;;  %v14592_v37 = vmax.f32 %v10479_v60, %v10659_v13 }
 0x2b0   : > { %v10801_v51 = vmax.f32 %v14588_v49, %v3131_v52  ;;  %v10806_v20 = vmax.f32 %v14589_v28, %v3204_v53  ;;  %v3133_v27 = vpop.f32.mrb[227].mxu0  ;;  %v3206_v17 = vpop.f32.mrb[227].mxu1  ;;  %v14594_v53 = vmax.f32 %v10489_v63, %v10668_v39  ;;  %v14595_v28 = vmax.f32 %v10494_v62, %v10670_v50 }
 0x2b1   : > { %v10811_v59 = vmax.f32 %v14590_v9, %v3133_v27  ;;  %v10816_v24 = vmax.f32 %v14591_v29, %v3206_v17  ;;  %v4668_v17 = vand.u32 %v7986_v56, %v8118_v3  ;;  %v14596_v31 = vmax.f32 %v10501_v54, %v10676_v11 }
 0x2b2   : > { %7653 = vmatmul.mubr.msk.bf16.gmra.mrb[76].mxu0 %vm260_vm2, %v10112_v19  ;;  %7657 = vmatmul.mubr.msk.bf16.gmra.mrb[76].mxu1 %vm260_vm2, %v10112_v19  ;;  %v14597_v63 = vmax.f32 %v10506_v43, %v10678_v55  ;;  %v14598_v50 = vmax.f32 %v10511_v5, %v10686_v2  ;;  %v14599_v56 = vmax.f32 %v10516_v15, %v10688_v40  ;;  %v10875_v43 = vld [vmem:[%s13932_s1] sm:$0xff]   ;;  %v14602_v40 = vld [vmem:[#allocation9_spill] sm:$0xff] }
 0x2b3   : > { %4723 = vmatprep.mubr.bf16.mxu0 %v14203_v14  ;;  %4796 = vmatprep.mubr.bf16.mxu1 %v14203_v14  ;;  %v4683_v54 = vand.u32 %v7994_v4, %v8118_v3  ;;  %v4689_v11 = vand.u32 %v7997_v44, %v8118_v3  ;;  %14600 = vst [vmem:[#allocation17_spill] sm:$0xff] %v10875_v43 }
 0x2b4   : > { %v14601_v2 = vmax.f32 %v10529_v45, %v10702_v26  ;;  %v14603_v4 = vmax.f32 %v10534_v8, %v14602_v40 }
 0x2b5   : > { %v3137_v32 = vpop.f32.mrb[228].mxu0  ;;  %v3210_v25 = vpop.f32.mrb[228].mxu1 }
 0x2b6   : > { %v10831_v0 = vmax.f32 %v14592_v37, %v3137_v32  ;;  %v10836_v7 = vmax.f32 %v14593_v33, %v3210_v25  ;;  %v3139_v41 = vpop.f32.mrb[229].mxu0  ;;  %v3212_v52 = vpop.f32.mrb[229].mxu1  ;;  %v14604_v33 = vmax.f32 %v10539_v36, %v10710_v48 }
 0x2b7   : > { %v10841_v49 = vmax.f32 %v14594_v53, %v3139_v41  ;;  %v10846_v27 = vmax.f32 %v14595_v28, %v3212_v52  ;;  %v3141_v60 = vpop.f32.mrb[230].mxu0  ;;  %v3214_v13 = vpop.f32.mrb[230].mxu1  ;;  %v14605_v52 = vmax.f32 %v10544_v1, %v10712_v10  ;;  %v14606_v28 = vmax.f32 %v10549_v30, %v10718_v58  ;;  %v14613_v10 = vld [vmem:[#allocation3_spill] sm:$0xff] }
 0x2b8   : > { %v10853_v9 = vmax.f32 %v14596_v31, %v3141_v60  ;;  %v10858_v39 = vmax.f32 %v14597_v63, %v3214_v13  ;;  %v3143_v29 = vpop.f32.mrb[231].mxu0  ;;  %v3216_v62 = vpop.f32.mrb[231].mxu1  ;;  %v14607_v60 = vld [vmem:[#allocation15_spill] sm:$0xff]  ;;  %v14610_v31 = vld [vmem:[#allocation18_spill] sm:$0xff] }
 0x2b9   : > { %v10863_v32 = vmax.f32 %v14598_v50, %v3143_v29  ;;  %v10868_v57 = vmax.f32 %v14599_v56, %v3216_v62  ;;  %v14608_v13 = vmax.f32 %v10554_v42, %v14607_v60  ;;  %v14614_v29 = vld [vmem:[#allocation2_spill] sm:$0xff]  ;;  %v10926_v30 = vld [vmem:[%s13932_s1 + $0x8] sm:$0xff]   ;;  %v14618_v56 = vmax.f32 %v10575_v12, %v10740_v23  ;;  %v14627_v60 = vld [vmem:[#allocation13_spill] sm:$0xff] }
 0x2ba   : > { %7670 = vmatmul.mubr.msk.bf16.vlgmr.msra.gmra.mrb[80].mxu0 %vm260_vm2, %v10875_v43  ;;  %7674 = vmatmul.mubr.msk.bf16.vlgmr.msra.gmra.mrb[80].mxu1 %vm260_vm2, %v10875_v43  ;;  %v14615_v62 = vmax.f32 %v14613_v10, %v14614_v29  ;;  %14617 = vst [vmem:[#allocation9_spill] sm:$0xff] %v10926_v30 }
 0x2bb   : > { %4838 = vmatpush1.bf16.msra.mxu0 %v4668_v17  ;;  %4911 = vmatpush1.bf16.msra.mxu1 %v4674_v21  ;;  %v14609_v21 = vld [vmem:[#allocation14_spill] sm:$0xff] }
 0x2bc   : > { %4733 = vmatprep.mubr.bf16.mxu0 %v14203_v14  ;;  %4806 = vmatprep.mubr.bf16.mxu1 %v14203_v14  ;;  %v14611_v63 = vmax.f32 %v14609_v21, %v14610_v31  ;;  %v14631_v21 = vld [vmem:[#allocation12_spill] sm:$0xff] }
 0x2bd   : > { %v3147_v5 = vpop.f32.mrb[232].mxu0  ;;  %v3220_v15 = vpop.f32.mrb[232].mxu1  ;;  %4983 = vmatprep.subr.bf16.mxu0 %v4683_v54  ;;  %5056 = vmatprep.subr.bf16.mxu1 %v4689_v11  ;;  %v14619_v11 = vld [vmem:[#allocation4_spill] sm:$0xff] }
 0x2be   : > { %v10886_v55 = vmax.f32 %v14601_v2, %v3147_v5  ;;  %v10891_v25 = vmax.f32 %v14603_v4, %v3220_v15  ;;  %v3149_v44 = vpop.f32.mrb[233].mxu0  ;;  %v3222_v37 = vpop.f32.mrb[233].mxu1  ;;  %v14620_v5 = vld [vmem:[#allocation6_spill] sm:$0xff] }
 0x2bf   : > { %v10896_v41 = vmax.f32 %v14604_v33, %v3149_v44  ;;  %v10901_v53 = vmax.f32 %v14605_v52, %v3222_v37  ;;  %v3151_v45 = vpop.f32.mrb[234].mxu0  ;;  %v3224_v26 = vpop.f32.mrb[234].mxu1  ;;  %v14621_v15 = vmax.f32 %v14619_v11, %v14620_v5  ;;  %v14623_v44 = vmax.f32 %v10585_v22, %v10748_v46 }
 0x2c0   : > { %v10906_v8 = vmax.f32 %v14606_v28, %v3151_v45  ;;  %v10911_v17 = vmax.f32 %v14608_v13, %v3224_v26  ;;  %v3153_v36 = vpop.f32.mrb[235].mxu0  ;;  %v3226_v48 = vpop.f32.mrb[235].mxu1  ;;  %v14624_v33 = vmax.f32 %v10590_v38, %v10750_v18  ;;  %v14625_v45 = vmax.f32 %v10595_v34, %v10756_v35  ;;  %v14626_v28 = vld [vmem:[#allocation8_spill] sm:$0xff]  ;;  %v14634_v38 = vld [vmem:[#allocation7_spill] sm:$0xff] }
 0x2c1   : > { %v10916_v1 = vmax.f32 %v14611_v63, %v3153_v36  ;;  %v10921_v50 = vmax.f32 %v14615_v62, %v3226_v48  ;;  %v14628_v13 = vmax.f32 %v14626_v28, %v14627_v60  ;;  %v14630_v48 = vld [vmem:[#allocation16_spill] sm:$0xff]  ;;  %v14635_v63 = vld [vmem:[#allocation10_spill] sm:$0xff] }
 0x2c2   : > { %7671 = vmatmul.mubr.msk.bf16.gmra.mrb[84].mxu0 %vm260_vm2, %v10926_v30  ;;  %7675 = vmatmul.mubr.msk.bf16.gmra.mrb[84].mxu1 %vm260_vm2, %v10926_v30  ;;  %v14632_v31 = vmax.f32 %v14630_v48, %v14631_v21  ;;  %v14636_v10 = vmax.f32 %v14634_v38, %v14635_v63  ;;  %v10977_v35 = vld [vmem:[%s13932_s1 + $0x10] sm:$0xff]   ;;  %v8003_v21 = vld [vmem:[%s8116_s17 + $0x18c] ss:$528 sps:$4 sm:$0x1f]  }
 0x2c3   : > { %14612 = vst [vmem:[#allocation5_spill] sm:$0xff] %v10916_v1  ;;  %14616 = vst [vmem:[#allocation11_spill] sm:$0xff] %v10921_v50  ;;  %4743 = vmatprep.mubr.bf16.mxu0 %v14203_v14  ;;  %4816 = vmatprep.mubr.bf16.mxu1 %v14203_v14  ;;  %v7992_v60 = vld [vmem:[%s8116_s17 + $0x170] ss:$528 sps:$4 sm:$0x1f]  }
 0x2c4   : > { %14638 = vst [vmem:[#allocation2_spill] sm:$0xff] %v10977_v35 }
 0x2c5   : > { %v3157_v42 = vpop.f32.mrb[236].mxu0  ;;  %v3230_v58 = vpop.f32.mrb[236].mxu1 }
 0x2c6   : > { %v10937_v54 = vmax.f32 %v14618_v56, %v3157_v42  ;;  %v10942_v2 = vmax.f32 %v14621_v15, %v3230_v58  ;;  %v3159_v40 = vpop.f32.mrb[237].mxu0  ;;  %v3232_v4 = vpop.f32.mrb[237].mxu1 }
 0x2c7   : > { %v10947_v37 = vmax.f32 %v14623_v44, %v3159_v40  ;;  %v10952_v52 = vmax.f32 %v14624_v33, %v3232_v4  ;;  %v3161_v12 = vpop.f32.mrb[238].mxu0  ;;  %v3234_v23 = vpop.f32.mrb[238].mxu1  ;;  %v4680_v44 = vand.u32 %v7992_v60, %v8118_v3 }
 0x2c8   : > { %14622 = vst [vmem:[#allocation15_spill] sm:$0xff] %v10942_v2  ;;  %v10957_v26 = vmax.f32 %v14625_v45, %v3161_v12  ;;  %v10962_v36 = vmax.f32 %v14628_v13, %v3234_v23  ;;  %v3163_v22 = vpop.f32.mrb[239].mxu0  ;;  %v3236_v46 = vpop.f32.mrb[239].mxu1  ;;  %v7995_v13 = vld [vmem:[%s8116_s17 + $0x178] ss:$528 sps:$4 sm:$0x1f]  }
 0x2c9   : > { %v10967_v18 = vmax.f32 %v14632_v31, %v3163_v22  ;;  %v10972_v29 = vmax.f32 %v14636_v10, %v3236_v46  ;;  %v8000_v22 = vld [vmem:[%s8116_s17 + $0x184] ss:$528 sps:$4 sm:$0x1f]   ;;  %v4686_v31 = vand.u32 %v7995_v13, %v8118_v3  ;;  %v5295_v13 = vand.u32 %v8003_v21, %v8118_v3 }
 0x2ca   : > { %14629 = vst [vmem:[#allocation14_spill] sm:$0xff] %v10962_v36  ;;  %7672 = vmatmul.mubr.msk.bf16.gmra.mrb[88].mxu0 %vm260_vm2, %v10977_v35  ;;  %7676 = vmatmul.mubr.msk.bf16.gmra.mrb[88].mxu1 %vm260_vm2, %v10977_v35  ;;  %v5289_v60 = vand.u32 %v8000_v22, %v8118_v3 }
 0x2cb   : > { %14633 = vst [vmem:[#allocation18_spill] sm:$0xff] %v10967_v18  ;;  %14637 = vst [vmem:[#allocation3_spill] sm:$0xff] %v10972_v29  ;;  %4753 = vmatprep.mubr.bf16.mxu0 %v14203_v14  ;;  %4826 = vmatprep.mubr.bf16.mxu1 %v14203_v14 }
 0x2cd   : > { %v10985_v34 = vpop.f32.mrb[240].mxu0  ;;  %v10987_v62 = vpop.f32.mrb[240].mxu1 }
 0x2ce   : > { %v10993_v56 = vpop.f32.mrb[241].mxu0  ;;  %v10995_v11 = vpop.f32.mrb[241].mxu1 }
 0x2cf   : > { %v11001_v40 = vpop.f32.mrb[242].mxu0  ;;  %v11003_v4 = vpop.f32.mrb[242].mxu1  ;;  %v14650_v18 = vmax.f32 %v10796_v47, %v10995_v11 }
 0x2d0   : > { %v11009_v12 = vpop.f32.mrb[243].mxu0  ;;  %v11011_v23 = vpop.f32.mrb[243].mxu1 }
 0x2d1   : > { %v14653_v47 = vmax.f32 %v10811_v59, %v11009_v12  ;;  %v8001_v59 = vld [vmem:[%s8116_s17 + $0x188] ss:$528 sps:$4 sm:$0x1f]   ;;  %v8009_v12 = vld [vmem:[%s8116_s17 + $0x19c] ss:$528 sps:$4 sm:$0x1f]  }
 0x2d2   : > { %7673 = vmatmul.mubr.msk.bf16.gmra.mrb[92].mxu0 %vm260_vm2, %v10112_v19  ;;  %7677 = vmatmul.mubr.msk.bf16.gmra.mrb[92].mxu1 %vm260_vm2, %v10112_v19 }
 0x2d3   : > { %4869 = vmatprep.mubr.bf16.mxu0 %v14203_v14  ;;  %4942 = vmatprep.mubr.bf16.mxu1 %v14203_v14 }
 0x2d5   : > { %v11026_v46 = vpop.f32.mrb[244].mxu0  ;;  %v11028_v48 = vpop.f32.mrb[244].mxu1 }
 0x2d6   : > { %v11035_v63 = vpop.f32.mrb[245].mxu0  ;;  %v11037_v19 = vpop.f32.mrb[245].mxu1 }
 0x2d7   : > { %v11043_v45 = vpop.f32.mrb[246].mxu0  ;;  %v11045_v33 = vpop.f32.mrb[246].mxu1 }
 0x2d8   : > { %v11053_v5 = vpop.f32.mrb[247].mxu0  ;;  %v11055_v10 = vpop.f32.mrb[247].mxu1 }
 0x2da   : > { %7678 = vmatmul.mubr.msk.bf16.vlgmr.msra.gmra.mrb[96].mxu0 %vm260_vm2, %v10875_v43  ;;  %7682 = vmatmul.mubr.msk.bf16.vlgmr.msra.gmra.mrb[96].mxu1 %vm260_vm2, %v10875_v43 }
 0x2db   : > { %4984 = vmatpush1.bf16.msra.mxu0 %v4680_v44  ;;  %5057 = vmatpush1.bf16.msra.mxu1 %v4686_v31 }
 0x2dc   : > { %4879 = vmatprep.mubr.bf16.mxu0 %v14203_v14  ;;  %4952 = vmatprep.mubr.bf16.mxu1 %v14203_v14 }
 0x2dd   : > { %v11069_v28 = vpop.f32.mrb[248].mxu0  ;;  %v11071_v15 = vpop.f32.mrb[248].mxu1  ;;  %5321 = vmatprep.subr.bf16.mxu0 %v5289_v60  ;;  %5394 = vmatprep.subr.bf16.mxu1 %v5295_v13 }
 0x2de   : > { %14639 = vst [vmem:[#allocation4_spill] sm:$0xff] %v11071_v15  ;;  %v11077_v58 = vpop.f32.mrb[249].mxu0  ;;  %v11079_v44 = vpop.f32.mrb[249].mxu1 }
 0x2df   : > { %v11085_v42 = vpop.f32.mrb[250].mxu0  ;;  %v11087_v60 = vpop.f32.mrb[250].mxu1 }
 0x2e0   : > { %14640 = vst [vmem:[#allocation6_spill] sm:$0xff] %v11087_v60  ;;  %v11093_v22 = vpop.f32.mrb[251].mxu0  ;;  %v11095_v15 = vpop.f32.mrb[251].mxu1 }
 0x2e1   : > { %14641 = vst [vmem:[#allocation8_spill] sm:$0xff] %v11093_v22  ;;  %14642 = vst [vmem:[#allocation13_spill] sm:$0xff] %v11095_v15  ;;  %v14648_v22 = vmax.f32 %v10786_v16, %v10987_v62  ;;  %v14651_v16 = vmax.f32 %v10801_v51, %v11001_v40  ;;  %v11188_v51 = vld [vmem:[%s13932_s1 + $0x18] sm:$0xff]  }
 0x2e2   : > { %7679 = vmatmul.mubr.msk.bf16.gmra.mrb[100].mxu0 %vm260_vm2, %v10926_v30  ;;  %7683 = vmatmul.mubr.msk.bf16.gmra.mrb[100].mxu1 %vm260_vm2, %v10926_v30 }
 0x2e3   : > { %4889 = vmatprep.mubr.bf16.mxu0 %v14203_v14  ;;  %4962 = vmatprep.mubr.bf16.mxu1 %v14203_v14 }
 0x2e5   : > { %v11107_v21 = vpop.f32.mrb[252].mxu0  ;;  %v11109_v13 = vpop.f32.mrb[252].mxu1 }
 0x2e6   : > { %14643 = vst [vmem:[#allocation16_spill] sm:$0xff] %v11109_v13  ;;  %v11115_v15 = vpop.f32.mrb[253].mxu0  ;;  %v11117_v50 = vpop.f32.mrb[253].mxu1 }
 0x2e7   : > { %v11123_v1 = vpop.f32.mrb[254].mxu0  ;;  %v11125_v60 = vpop.f32.mrb[254].mxu1 }
 0x2e8   : > { %14644 = vst [vmem:[#allocation12_spill] sm:$0xff] %v11125_v60  ;;  %v11131_v13 = vpop.f32.mrb[255].mxu0  ;;  %v11133_v2 = vpop.f32.mrb[255].mxu1  ;;  %v14647_v60 = vmax.f32 %v10781_v6, %v10985_v34 }
 0x2e9   : > { %14645 = vst [vmem:[#allocation7_spill] sm:$0xff] %v11131_v13  ;;  %14646 = vst [vmem:[#allocation10_spill] sm:$0xff] %v11133_v2 }
 0x2ea   : > { %7680 = vmatmul.mubr.msk.bf16.gmra.mrb[104].mxu0 %vm260_vm2, %v10977_v35  ;;  %7684 = vmatmul.mubr.msk.bf16.gmra.mrb[104].mxu1 %vm260_vm2, %v10977_v35  ;;  %v14649_v35 = vmax.f32 %v10791_v61, %v10993_v56  ;;  %v14652_v61 = vmax.f32 %v10806_v20, %v11003_v4  ;;  %v7998_v20 = vld [vmem:[%s8116_s17 + $0x180] ss:$528 sps:$4 sm:$0x1f]  }
 0x2eb   : > { %4899 = vmatprep.mubr.bf16.mxu0 %v14203_v14  ;;  %4972 = vmatprep.mubr.bf16.mxu1 %v14203_v14 }
 0x2ed   : > { %v3611_v38 = vpop.f32.mrb[0].mxu0  ;;  %v3684_v31 = vpop.f32.mrb[0].mxu1 }
 0x2ee   : > { %v11148_v36 = vmax.f32 %v14647_v60, %v3611_v38  ;;  %v11153_v30 = vmax.f32 %v14648_v22, %v3684_v31  ;;  %v3613_v2 = vpop.f32.mrb[1].mxu0  ;;  %v3686_v29 = vpop.f32.mrb[1].mxu1  ;;  %v14656_v31 = vmax.f32 %v10836_v7, %v11028_v48  ;;  %v5292_v7 = vand.u32 %v8001_v59, %v8118_v3 }
 0x2ef   : > { %v11158_v13 = vmax.f32 %v14649_v35, %v3613_v2  ;;  %v11163_v6 = vmax.f32 %v14650_v18, %v3686_v29  ;;  %v3615_v34 = vpop.f32.mrb[2].mxu0  ;;  %v3688_v38 = vpop.f32.mrb[2].mxu1  ;;  %v14654_v29 = vmax.f32 %v10816_v24, %v11011_v23  ;;  %v8006_v24 = vld [vmem:[%s8116_s17 + $0x194] ss:$528 sps:$4 sm:$0x1f]   ;;  %v14655_v23 = vmax.f32 %v10831_v0, %v11026_v46 }
 0x2f0   : > { %v11168_v62 = vmax.f32 %v14651_v16, %v3615_v34  ;;  %v11173_v2 = vmax.f32 %v14652_v61, %v3688_v38  ;;  %v3617_v35 = vpop.f32.mrb[3].mxu0  ;;  %v3690_v56 = vpop.f32.mrb[3].mxu1  ;;  %v14657_v16 = vmax.f32 %v10841_v49, %v11035_v63  ;;  %v14659_v48 = vmax.f32 %v10853_v9, %v11043_v45 }
 0x2f1   : > { %v11178_v18 = vmax.f32 %v14653_v47, %v3617_v35  ;;  %v11183_v11 = vmax.f32 %v14654_v29, %v3690_v56  ;;  %v14658_v35 = vmax.f32 %v10846_v27, %v11037_v19  ;;  %v5286_v47 = vand.u32 %v7998_v20, %v8118_v3 }
 0x2f2   : > { %7681 = vmatmul.mubr.msk.bf16.gmra.mrb[108].mxu0 %vm260_vm2, %v11188_v51  ;;  %7685 = vmatmul.mubr.msk.bf16.gmra.mrb[108].mxu1 %vm260_vm2, %v11188_v51  ;;  %v14660_v49 = vmax.f32 %v10858_v39, %v11045_v33  ;;  %v14661_v19 = vmax.f32 %v10863_v32, %v11053_v5  ;;  %v14662_v20 = vmax.f32 %v10868_v57, %v11055_v10  ;;  %v14664_v33 = vld [vmem:[#allocation4_spill] sm:$0xff] }
 0x2f3   : > { %5015 = vmatprep.mubr.bf16.mxu0 %v14203_v14  ;;  %5088 = vmatprep.mubr.bf16.mxu1 %v14203_v14  ;;  %v5301_v9 = vand.u32 %v8006_v24, %v8118_v3  ;;  %v5307_v45 = vand.u32 %v8009_v12, %v8118_v3  ;;  %v14663_v57 = vmax.f32 %v10886_v55, %v11069_v28 }
 0x2f4   : > { %v14665_v10 = vmax.f32 %v10891_v25, %v14664_v33 }
 0x2f5   : > { %v3621_v40 = vpop.f32.mrb[4].mxu0  ;;  %v3694_v4 = vpop.f32.mrb[4].mxu1 }
 0x2f6   : > { %v11203_v22 = vmax.f32 %v14655_v23, %v3621_v40  ;;  %v11208_v60 = vmax.f32 %v14656_v31, %v3694_v4  ;;  %v3623_v34 = vpop.f32.mrb[5].mxu0  ;;  %v3696_v38 = vpop.f32.mrb[5].mxu1  ;;  %v14666_v31 = vmax.f32 %v10896_v41, %v11077_v58 }
 0x2f7   : > { %v11213_v61 = vmax.f32 %v14657_v16, %v3623_v34  ;;  %v11218_v56 = vmax.f32 %v14658_v35, %v3696_v38  ;;  %v3625_v0 = vpop.f32.mrb[6].mxu0  ;;  %v3698_v46 = vpop.f32.mrb[6].mxu1  ;;  %v14667_v38 = vmax.f32 %v10901_v53, %v11079_v44  ;;  %v14668_v35 = vmax.f32 %v10906_v8, %v11085_v42  ;;  %v14675_v44 = vld [vmem:[#allocation11_spill] sm:$0xff]  ;;  %v14679_v8 = vld [vmem:[#allocation9_spill] sm:$0xff] }
 0x2f8   : > { %v11225_v29 = vmax.f32 %v14659_v48, %v3625_v0  ;;  %v11230_v63 = vmax.f32 %v14660_v49, %v3698_v46  ;;  %v3627_v40 = vpop.f32.mrb[7].mxu0  ;;  %v3700_v27 = vpop.f32.mrb[7].mxu1  ;;  %v14669_v0 = vld [vmem:[#allocation6_spill] sm:$0xff]  ;;  %v14672_v48 = vld [vmem:[#allocation8_spill] sm:$0xff] }
 0x2f9   : > { %v11235_v4 = vmax.f32 %v14661_v19, %v3627_v40  ;;  %v11240_v59 = vmax.f32 %v14662_v20, %v3700_v27  ;;  %v14670_v46 = vmax.f32 %v10911_v17, %v14669_v0  ;;  %v14676_v40 = vld [vmem:[#allocation13_spill] sm:$0xff]  ;;  %v14680_v20 = vmax.f32 %v10937_v54, %v11107_v21  ;;  %v14689_v0 = vld [vmem:[#allocation12_spill] sm:$0xff] }
 0x2fa   : > { %7686 = vmatmul.mubr.msk.bf16.vlgmr.msra.gmra.mrb[112].mxu0 %vm260_vm2, %v10875_v43  ;;  %7690 = vmatmul.mubr.msk.bf16.vlgmr.msra.gmra.mrb[112].mxu1 %vm260_vm2, %v10875_v43  ;;  %v14677_v27 = vmax.f32 %v14675_v44, %v14676_v40 }
 0x2fb   : > { %5322 = vmatpush1.bf16.msra.mxu0 %v5286_v47  ;;  %5395 = vmatpush1.bf16.msra.mxu1 %v5292_v7  ;;  %v14671_v7 = vld [vmem:[#allocation5_spill] sm:$0xff] }
 0x2fc   : > { %5025 = vmatprep.mubr.bf16.mxu0 %v14203_v14  ;;  %5098 = vmatprep.mubr.bf16.mxu1 %v14203_v14  ;;  %v14673_v49 = vmax.f32 %v14671_v7, %v14672_v48  ;;  %v14693_v7 = vld [vmem:[#allocation7_spill] sm:$0xff] }
 0x2fd   : > { %v3631_v39 = vpop.f32.mrb[8].mxu0  ;;  %v3704_v32 = vpop.f32.mrb[8].mxu1  ;;  %5467 = vmatprep.subr.bf16.mxu0 %v5301_v9  ;;  %5540 = vmatprep.subr.bf16.mxu1 %v5307_v45  ;;  %v14681_v45 = vld [vmem:[#allocation15_spill] sm:$0xff] }
 0x2fe   : > { %v11253_v5 = vmax.f32 %v14663_v57, %v3631_v39  ;;  %v11258_v24 = vmax.f32 %v14665_v10, %v3704_v32  ;;  %v3633_v12 = vpop.f32.mrb[9].mxu0  ;;  %v3706_v23 = vpop.f32.mrb[9].mxu1  ;;  %v14682_v39 = vld [vmem:[#allocation16_spill] sm:$0xff] }
 0x2ff   : > { %v11263_v34 = vmax.f32 %v14666_v31, %v3633_v12  ;;  %v11268_v16 = vmax.f32 %v14667_v38, %v3706_v23  ;;  %v3635_v55 = vpop.f32.mrb[10].mxu0  ;;  %v3708_v28 = vpop.f32.mrb[10].mxu1  ;;  %v14683_v32 = vmax.f32 %v14681_v45, %v14682_v39  ;;  %v14685_v12 = vmax.f32 %v10947_v37, %v11115_v15 }
 0x300   : > { %v11273_v25 = vmax.f32 %v14668_v35, %v3635_v55  ;;  %v11278_v47 = vmax.f32 %v14670_v46, %v3708_v28  ;;  %v3637_v41 = vpop.f32.mrb[11].mxu0  ;;  %v3710_v58 = vpop.f32.mrb[11].mxu1  ;;  %v14686_v31 = vmax.f32 %v10952_v52, %v11117_v50  ;;  %v14687_v55 = vmax.f32 %v10957_v26, %v11123_v1  ;;  %v14688_v35 = vld [vmem:[#allocation14_spill] sm:$0xff]  ;;  %v14696_v52 = vld [vmem:[#allocation3_spill] sm:$0xff] }
 0x301   : > { %v11283_v53 = vmax.f32 %v14673_v49, %v3637_v41  ;;  %v11288_v19 = vmax.f32 %v14677_v27, %v3710_v58  ;;  %v14690_v46 = vmax.f32 %v14688_v35, %v14689_v0  ;;  %v14692_v58 = vld [vmem:[#allocation18_spill] sm:$0xff] }
 0x302   : > { %7687 = vmatmul.mubr.msk.bf16.gmra.mrb[116].mxu0 %vm260_vm2, %v14679_v8  ;;  %7691 = vmatmul.mubr.msk.bf16.gmra.mrb[116].mxu1 %vm260_vm2, %v14679_v8  ;;  %v14694_v48 = vmax.f32 %v14692_v58, %v14693_v7  ;;  %v14697_v49 = vld [vmem:[#allocation10_spill] sm:$0xff]  ;;  %v8015_v7 = vld [vmem:[%s8116_s17 + $0x1ac] ss:$528 sps:$4 sm:$0x1f]  }
 0x303   : > { %14674 = vst [vmem:[#allocation4_spill] sm:$0xff] %v11283_v53  ;;  %14678 = vst [vmem:[#allocation6_spill] sm:$0xff] %v11288_v19  ;;  %5035 = vmatprep.mubr.bf16.mxu0 %v14203_v14  ;;  %5108 = vmatprep.mubr.bf16.mxu1 %v14203_v14  ;;  %v14698_v44 = vmax.f32 %v14696_v52, %v14697_v49  ;;  %v14700_v1 = vld [vmem:[#allocation2_spill] sm:$0xff] }
 0x304   : > { %v8004_v0 = vld [vmem:[%s8116_s17 + $0x190] ss:$528 sps:$4 sm:$0x1f]  }
 0x305   : > { %v3641_v17 = vpop.f32.mrb[12].mxu0  ;;  %v3714_v42 = vpop.f32.mrb[12].mxu1 }
 0x306   : > { %v11299_v9 = vmax.f32 %v14680_v20, %v3641_v17  ;;  %v11304_v57 = vmax.f32 %v14683_v32, %v3714_v42  ;;  %v3643_v33 = vpop.f32.mrb[13].mxu0  ;;  %v3716_v10 = vpop.f32.mrb[13].mxu1  ;;  %v5298_v32 = vand.u32 %v8004_v0, %v8118_v3 }
 0x307   : > { %v11309_v23 = vmax.f32 %v14685_v12, %v3643_v33  ;;  %v11314_v38 = vmax.f32 %v14686_v31, %v3716_v10  ;;  %v3645_v54 = vpop.f32.mrb[14].mxu0  ;;  %v3718_v21 = vpop.f32.mrb[14].mxu1 }
 0x308   : > { %14684 = vst [vmem:[#allocation5_spill] sm:$0xff] %v11304_v57  ;;  %v11319_v28 = vmax.f32 %v14687_v55, %v3645_v54  ;;  %v11324_v41 = vmax.f32 %v14690_v46, %v3718_v21  ;;  %v3647_v37 = vpop.f32.mrb[15].mxu0  ;;  %v3720_v15 = vpop.f32.mrb[15].mxu1  ;;  %v8007_v46 = vld [vmem:[%s8116_s17 + $0x198] ss:$528 sps:$4 sm:$0x1f]  }
 0x309   : > { %v11329_v50 = vmax.f32 %v14694_v48, %v3647_v37  ;;  %v11334_v40 = vmax.f32 %v14698_v44, %v3720_v15  ;;  %v8012_v37 = vld [vmem:[%s8116_s17 + $0x1a4] ss:$528 sps:$4 sm:$0x1f]   ;;  %v5304_v48 = vand.u32 %v8007_v46, %v8118_v3  ;;  %v5319_v46 = vand.u32 %v8015_v7, %v8118_v3 }
 0x30a   : > { %14691 = vst [vmem:[#allocation8_spill] sm:$0xff] %v11324_v41  ;;  %7688 = vmatmul.mubr.msk.bf16.gmra.mrb[120].mxu0 %vm260_vm2, %v14700_v1  ;;  %7692 = vmatmul.mubr.msk.bf16.gmra.mrb[120].mxu1 %vm260_vm2, %v14700_v1  ;;  %v5313_v0 = vand.u32 %v8012_v37, %v8118_v3 }
 0x30b   : > { %14695 = vst [vmem:[#allocation11_spill] sm:$0xff] %v11329_v50  ;;  %14699 = vst [vmem:[#allocation13_spill] sm:$0xff] %v11334_v40  ;;  %5045 = vmatprep.mubr.bf16.mxu0 %v14203_v14  ;;  %5118 = vmatprep.mubr.bf16.mxu1 %v14203_v14 }
 0x30d   : > { %v11342_v26 = vpop.f32.mrb[16].mxu0  ;;  %v11344_v27 = vpop.f32.mrb[16].mxu1 }
 0x30e   : > { %v11350_v20 = vpop.f32.mrb[17].mxu0  ;;  %v11352_v45 = vpop.f32.mrb[17].mxu1 }
 0x30f   : > { %v11358_v33 = vpop.f32.mrb[18].mxu0  ;;  %v11360_v10 = vpop.f32.mrb[18].mxu1  ;;  %v14712_v50 = vmax.f32 %v11163_v6, %v11352_v45 }
 0x310   : > { %v11366_v54 = vpop.f32.mrb[19].mxu0  ;;  %v11368_v21 = vpop.f32.mrb[19].mxu1 }
 0x311   : > { %v14715_v6 = vmax.f32 %v11178_v18, %v11366_v54  ;;  %v8018_v18 = vld [vmem:[%s8116_s17 + $0x1b4] ss:$528 sps:$4 sm:$0x1f]   ;;  %v8021_v54 = vld [vmem:[%s8116_s17 + $0x1bc] ss:$528 sps:$4 sm:$0x1f]  }
 0x312   : > { %7689 = vmatmul.mubr.msk.bf16.gmra.mrb[124].mxu0 %vm260_vm2, %v11188_v51  ;;  %7693 = vmatmul.mubr.msk.bf16.gmra.mrb[124].mxu1 %vm260_vm2, %v11188_v51 }
 0x313   : > { %5353 = vmatprep.mubr.bf16.mxu0 %v14203_v14  ;;  %5426 = vmatprep.mubr.bf16.mxu1 %v14203_v14 }
 0x315   : > { %v11383_v15 = vpop.f32.mrb[20].mxu0  ;;  %v11385_v58 = vpop.f32.mrb[20].mxu1 }
 0x316   : > { %v11392_v49 = vpop.f32.mrb[21].mxu0  ;;  %v11394_v44 = vpop.f32.mrb[21].mxu1 }
 0x317   : > { %v11400_v31 = vpop.f32.mrb[22].mxu0  ;;  %v11402_v12 = vpop.f32.mrb[22].mxu1 }
 0x318   : > { %v11410_v42 = vpop.f32.mrb[23].mxu0  ;;  %v11412_v35 = vpop.f32.mrb[23].mxu1 }
 0x31a   : > { %7706 = vmatmul.mubr.msk.bf16.vlgmr.msra.gmra.mrb[128].mxu0 %vm260_vm2, %v10875_v43  ;;  %7710 = vmatmul.mubr.msk.bf16.vlgmr.msra.gmra.mrb[128].mxu1 %vm260_vm2, %v10875_v43 }
 0x31b   : > { %5468 = vmatpush1.bf16.msra.mxu0 %v5298_v32  ;;  %5541 = vmatpush1.bf16.msra.mxu1 %v5304_v48 }
 0x31c   : > { %5363 = vmatprep.mubr.bf16.mxu0 %v14203_v14  ;;  %5436 = vmatprep.mubr.bf16.mxu1 %v14203_v14 }
 0x31d   : > { %v11426_v55 = vpop.f32.mrb[24].mxu0  ;;  %v11428_v39 = vpop.f32.mrb[24].mxu1  ;;  %5613 = vmatprep.subr.bf16.mxu0 %v5313_v0  ;;  %5686 = vmatprep.subr.bf16.mxu1 %v5319_v46 }
 0x31e   : > { %14701 = vst [vmem:[#allocation15_spill] sm:$0xff] %v11428_v39  ;;  %v11434_v17 = vpop.f32.mrb[25].mxu0  ;;  %v11436_v32 = vpop.f32.mrb[25].mxu1 }
 0x31f   : > { %v11442_v43 = vpop.f32.mrb[26].mxu0  ;;  %v11444_v0 = vpop.f32.mrb[26].mxu1 }
 0x320   : > { %14702 = vst [vmem:[#allocation16_spill] sm:$0xff] %v11444_v0  ;;  %v11450_v37 = vpop.f32.mrb[27].mxu0  ;;  %v11452_v39 = vpop.f32.mrb[27].mxu1 }
 0x321   : > { %14703 = vst [vmem:[#allocation14_spill] sm:$0xff] %v11450_v37  ;;  %14704 = vst [vmem:[#allocation12_spill] sm:$0xff] %v11452_v39  ;;  %v14710_v37 = vmax.f32 %v11153_v30, %v11344_v27  ;;  %v14713_v30 = vmax.f32 %v11168_v62, %v11358_v33  ;;  %v8010_v62 = vld [vmem:[%s8116_s17 + $0x1a0] ss:$528 sps:$4 sm:$0x1f]  }
 0x322   : > { %7707 = vmatmul.mubr.msk.bf16.gmra.mrb[132].mxu0 %vm260_vm2, %v14679_v8  ;;  %7711 = vmatmul.mubr.msk.bf16.gmra.mrb[132].mxu1 %vm260_vm2, %v14679_v8 }
 0x323   : > { %5373 = vmatprep.mubr.bf16.mxu0 %v14203_v14  ;;  %5446 = vmatprep.mubr.bf16.mxu1 %v14203_v14 }
 0x325   : > { %v11464_v7 = vpop.f32.mrb[28].mxu0  ;;  %v11466_v46 = vpop.f32.mrb[28].mxu1 }
 0x326   : > { %14705 = vst [vmem:[#allocation18_spill] sm:$0xff] %v11466_v46  ;;  %v11472_v39 = vpop.f32.mrb[29].mxu0  ;;  %v11474_v19 = vpop.f32.mrb[29].mxu1 }
 0x327   : > { %v11480_v53 = vpop.f32.mrb[30].mxu0  ;;  %v11482_v0 = vpop.f32.mrb[30].mxu1 }
 0x328   : > { %14706 = vst [vmem:[#allocation7_spill] sm:$0xff] %v11482_v0  ;;  %v11488_v46 = vpop.f32.mrb[31].mxu0  ;;  %v11490_v57 = vpop.f32.mrb[31].mxu1  ;;  %v14709_v0 = vmax.f32 %v11148_v36, %v11342_v26 }
 0x329   : > { %14707 = vst [vmem:[#allocation3_spill] sm:$0xff] %v11488_v46  ;;  %14708 = vst [vmem:[#allocation10_spill] sm:$0xff] %v11490_v57 }
 0x32a   : > { %7708 = vmatmul.mubr.msk.bf16.gmra.mrb[136].mxu0 %vm260_vm2, %v14700_v1  ;;  %7712 = vmatmul.mubr.msk.bf16.gmra.mrb[136].mxu1 %vm260_vm2, %v14700_v1  ;;  %v14711_v1 = vmax.f32 %v11158_v13, %v11350_v20  ;;  %v14714_v13 = vmax.f32 %v11173_v2, %v11360_v10  ;;  %v8013_v2 = vld [vmem:[%s8116_s17 + $0x1a8] ss:$528 sps:$4 sm:$0x1f]  }
 0x32b   : > { %5383 = vmatprep.mubr.bf16.mxu0 %v14203_v14  ;;  %5456 = vmatprep.mubr.bf16.mxu1 %v14203_v14 }
 0x32d   : > { %v4095_v52 = vpop.f32.mrb[32].mxu0  ;;  %v4168_v48 = vpop.f32.mrb[32].mxu1 }
 0x32e   : > { %v11505_v41 = vmax.f32 %v14709_v0, %v4095_v52  ;;  %v11510_v8 = vmax.f32 %v14710_v37, %v4168_v48  ;;  %v4097_v57 = vpop.f32.mrb[33].mxu0  ;;  %v4170_v40 = vpop.f32.mrb[33].mxu1  ;;  %v14718_v37 = vmax.f32 %v11208_v60, %v11385_v58  ;;  %v5316_v60 = vand.u32 %v8013_v2, %v8118_v3 }
 0x32f   : > { %v11515_v46 = vmax.f32 %v14711_v1, %v4097_v57  ;;  %v11520_v36 = vmax.f32 %v14712_v50, %v4170_v40  ;;  %v4099_v26 = vpop.f32.mrb[34].mxu0  ;;  %v4172_v52 = vpop.f32.mrb[34].mxu1  ;;  %v14716_v40 = vmax.f32 %v11183_v11, %v11368_v21  ;;  %v14717_v11 = vmax.f32 %v11203_v22, %v11383_v15 }
 0x330   : > { %v11525_v27 = vmax.f32 %v14713_v30, %v4099_v26  ;;  %v11530_v20 = vmax.f32 %v14714_v13, %v4172_v52  ;;  %v4101_v57 = vpop.f32.mrb[35].mxu0  ;;  %v4174_v1 = vpop.f32.mrb[35].mxu1  ;;  %v14719_v52 = vmax.f32 %v11213_v61, %v11392_v49  ;;  %v14720_v13 = vmax.f32 %v11218_v56, %v11394_v44 }
 0x331   : > { %v11535_v50 = vmax.f32 %v14715_v6, %v4101_v57  ;;  %v11540_v45 = vmax.f32 %v14716_v40, %v4174_v1  ;;  %v5310_v1 = vand.u32 %v8010_v62, %v8118_v3  ;;  %v14721_v58 = vmax.f32 %v11225_v29, %v11400_v31 }
 0x332   : > { %7709 = vmatmul.mubr.msk.bf16.gmra.mrb[140].mxu0 %vm260_vm2, %v11188_v51  ;;  %7713 = vmatmul.mubr.msk.bf16.gmra.mrb[140].mxu1 %vm260_vm2, %v11188_v51  ;;  %v14722_v61 = vmax.f32 %v11230_v63, %v11402_v12  ;;  %v14723_v44 = vmax.f32 %v11235_v4, %v11410_v42  ;;  %v14724_v62 = vmax.f32 %v11240_v59, %v11412_v35  ;;  %v14727_v12 = vld [vmem:[#allocation15_spill] sm:$0xff] }
 0x333   : > { %5499 = vmatprep.mubr.bf16.mxu0 %v14203_v14  ;;  %5572 = vmatprep.mubr.bf16.mxu1 %v14203_v14  ;;  %v5919_v29 = vand.u32 %v8018_v18, %v8118_v3  ;;  %v5925_v31 = vand.u32 %v8021_v54, %v8118_v3  ;;  %v14726_v59 = vmax.f32 %v11253_v5, %v11426_v55 }
 0x334   : > { %v14728_v35 = vmax.f32 %v11258_v24, %v14727_v12 }
 0x335   : > { %v4105_v33 = vpop.f32.mrb[36].mxu0  ;;  %v4178_v10 = vpop.f32.mrb[36].mxu1 }
 0x336   : > { %v11555_v21 = vmax.f32 %v14717_v11, %v4105_v33  ;;  %v11560_v48 = vmax.f32 %v14718_v37, %v4178_v10  ;;  %v4107_v0 = vpop.f32.mrb[37].mxu0  ;;  %v4180_v26 = vpop.f32.mrb[37].mxu1  ;;  %v14725_v10 = vld [vmem:[#allocation17_spill] sm:$0xff]  ;;  %v14729_v37 = vmax.f32 %v11263_v34, %v11434_v17 }
 0x337   : > { %v11565_v30 = vmax.f32 %v14719_v52, %v4107_v0  ;;  %v11570_v57 = vmax.f32 %v14720_v13, %v4180_v26  ;;  %v4109_v22 = vpop.f32.mrb[38].mxu0  ;;  %v4182_v15 = vpop.f32.mrb[38].mxu1  ;;  %v14730_v26 = vmax.f32 %v11268_v16, %v11436_v32  ;;  %v14731_v13 = vmax.f32 %v11273_v25, %v11442_v43  ;;  %v14738_v32 = vld [vmem:[#allocation6_spill] sm:$0xff]  ;;  %v14742_v43 = vld [vmem:[#allocation9_spill] sm:$0xff] }
 0x338   : > { %v11577_v6 = vmax.f32 %v14721_v58, %v4109_v22  ;;  %v11582_v49 = vmax.f32 %v14722_v61, %v4182_v15  ;;  %v4111_v40 = vpop.f32.mrb[39].mxu0  ;;  %v4184_v56 = vpop.f32.mrb[39].mxu1  ;;  %v14732_v22 = vld [vmem:[#allocation16_spill] sm:$0xff]  ;;  %v14735_v58 = vld [vmem:[#allocation14_spill] sm:$0xff] }
 0x339   : > { %v11587_v33 = vmax.f32 %v14723_v44, %v4111_v40  ;;  %v11592_v2 = vmax.f32 %v14724_v62, %v4184_v56  ;;  %v14733_v15 = vmax.f32 %v11278_v47, %v14732_v22  ;;  %v14739_v40 = vld [vmem:[#allocation12_spill] sm:$0xff]  ;;  %v14743_v62 = vmax.f32 %v11299_v9, %v11464_v7  ;;  %v14752_v22 = vld [vmem:[#allocation7_spill] sm:$0xff] }
 0x33a   : > { %7714 = vmatmul.mubr.msk.bf16.vlgmr.msra.gmra.mrb[144].mxu0 %vm260_vm2, %v14725_v10  ;;  %7718 = vmatmul.mubr.msk.bf16.vlgmr.msra.gmra.mrb[144].mxu1 %vm260_vm2, %v14725_v10  ;;  %v14740_v56 = vmax.f32 %v14738_v32, %v14739_v40 }
 0x33b   : > { %5614 = vmatpush1.bf16.msra.mxu0 %v5310_v1  ;;  %5687 = vmatpush1.bf16.msra.mxu1 %v5316_v60  ;;  %v14734_v60 = vld [vmem:[#allocation4_spill] sm:$0xff] }
 0x33c   : > { %5509 = vmatprep.mubr.bf16.mxu0 %v14203_v14  ;;  %5582 = vmatprep.mubr.bf16.mxu1 %v14203_v14  ;;  %v14736_v61 = vmax.f32 %v14734_v60, %v14735_v58  ;;  %v14756_v60 = vld [vmem:[#allocation3_spill] sm:$0xff] }
 0x33d   : > { %v4115_v63 = vpop.f32.mrb[40].mxu0  ;;  %v4188_v4 = vpop.f32.mrb[40].mxu1  ;;  %5951 = vmatprep.subr.bf16.mxu0 %v5919_v29  ;;  %6024 = vmatprep.subr.bf16.mxu1 %v5925_v31  ;;  %v14744_v31 = vld [vmem:[#allocation5_spill] sm:$0xff] }
 0x33e   : > { %v11605_v42 = vmax.f32 %v14726_v59, %v4115_v63  ;;  %v11610_v18 = vmax.f32 %v14728_v35, %v4188_v4  ;;  %v4117_v54 = vpop.f32.mrb[41].mxu0  ;;  %v4190_v11 = vpop.f32.mrb[41].mxu1  ;;  %v14745_v63 = vld [vmem:[#allocation18_spill] sm:$0xff] }
 0x33f   : > { %v11615_v0 = vmax.f32 %v14729_v37, %v4117_v54  ;;  %v11620_v52 = vmax.f32 %v14730_v26, %v4190_v11  ;;  %v4119_v5 = vpop.f32.mrb[42].mxu0  ;;  %v4192_v55 = vpop.f32.mrb[42].mxu1  ;;  %v14746_v4 = vmax.f32 %v14744_v31, %v14745_v63  ;;  %v14748_v54 = vmax.f32 %v11309_v23, %v11472_v39 }
 0x340   : > { %v11625_v24 = vmax.f32 %v14731_v13, %v4119_v5  ;;  %v11630_v1 = vmax.f32 %v14733_v15, %v4192_v55  ;;  %v4121_v34 = vpop.f32.mrb[43].mxu0  ;;  %v4194_v17 = vpop.f32.mrb[43].mxu1  ;;  %v14749_v37 = vmax.f32 %v11314_v38, %v11474_v19  ;;  %v14750_v5 = vmax.f32 %v11319_v28, %v11480_v53  ;;  %v14751_v13 = vld [vmem:[#allocation8_spill] sm:$0xff]  ;;  %v14759_v38 = vld [vmem:[#allocation13_spill] sm:$0xff]  ;;  %v14763_v53 = vld [vmem:[#allocation2_spill] sm:$0xff] }
 0x341   : > { %v11635_v16 = vmax.f32 %v14736_v61, %v4121_v34  ;;  %v11640_v44 = vmax.f32 %v14740_v56, %v4194_v17  ;;  %v14753_v15 = vmax.f32 %v14751_v13, %v14752_v22  ;;  %v14755_v17 = vld [vmem:[#allocation11_spill] sm:$0xff]  ;;  %v14760_v61 = vld [vmem:[#allocation10_spill] sm:$0xff] }
 0x342   : > { %7715 = vmatmul.mubr.msk.bf16.gmra.mrb[148].mxu0 %vm260_vm2, %v14742_v43  ;;  %7719 = vmatmul.mubr.msk.bf16.gmra.mrb[148].mxu1 %vm260_vm2, %v14742_v43  ;;  %v14757_v58 = vmax.f32 %v14755_v17, %v14756_v60  ;;  %v14761_v32 = vmax.f32 %v14759_v38, %v14760_v61  ;;  %v8016_v22 = vld [vmem:[%s8116_s17 + $0x1b0] ss:$528 sps:$4 sm:$0x1f]   ;;  %v8027_v60 = vld [vmem:[%s8116_s17 + $0x1cc] ss:$528 sps:$4 sm:$0x1f]  }
 0x343   : > { %14737 = vst [vmem:[#allocation17_spill] sm:$0xff] %v11635_v16  ;;  %14741 = vst [vmem:[#allocation15_spill] sm:$0xff] %v11640_v44  ;;  %5519 = vmatprep.mubr.bf16.mxu0 %v14203_v14  ;;  %5592 = vmatprep.mubr.bf16.mxu1 %v14203_v14 }
 0x345   : > { %v4125_v25 = vpop.f32.mrb[44].mxu0  ;;  %v4198_v47 = vpop.f32.mrb[44].mxu1 }
 0x346   : > { %v11651_v29 = vmax.f32 %v14743_v62, %v4125_v25  ;;  %v11656_v59 = vmax.f32 %v14746_v4, %v4198_v47  ;;  %v4127_v12 = vpop.f32.mrb[45].mxu0  ;;  %v4200_v35 = vpop.f32.mrb[45].mxu1  ;;  %v5916_v4 = vand.u32 %v8016_v22, %v8118_v3 }
 0x347   : > { %v11661_v11 = vmax.f32 %v14748_v54, %v4127_v12  ;;  %v11666_v26 = vmax.f32 %v14749_v37, %v4200_v35  ;;  %v4129_v9 = vpop.f32.mrb[46].mxu0  ;;  %v4202_v7 = vpop.f32.mrb[46].mxu1 }
 0x348   : > { %14747 = vst [vmem:[#allocation16_spill] sm:$0xff] %v11656_v59  ;;  %v11671_v55 = vmax.f32 %v14750_v5, %v4129_v9  ;;  %v11676_v34 = vmax.f32 %v14753_v15, %v4202_v7  ;;  %v4131_v23 = vpop.f32.mrb[47].mxu0  ;;  %v4204_v39 = vpop.f32.mrb[47].mxu1  ;;  %v8019_v15 = vld [vmem:[%s8116_s17 + $0x1b8] ss:$528 sps:$4 sm:$0x1f]  }
 0x349   : > { %v11681_v19 = vmax.f32 %v14757_v58, %v4131_v23  ;;  %v11686_v40 = vmax.f32 %v14761_v32, %v4204_v39  ;;  %v8024_v23 = vld [vmem:[%s8116_s17 + $0x1c4] ss:$528 sps:$4 sm:$0x1f]   ;;  %v5922_v58 = vand.u32 %v8019_v15, %v8118_v3  ;;  %v5937_v15 = vand.u32 %v8027_v60, %v8118_v3 }
 0x34a   : > { %14754 = vst [vmem:[#allocation4_spill] sm:$0xff] %v11676_v34  ;;  %7716 = vmatmul.mubr.msk.bf16.gmra.mrb[152].mxu0 %vm260_vm2, %v14763_v53  ;;  %7720 = vmatmul.mubr.msk.bf16.gmra.mrb[152].mxu1 %vm260_vm2, %v14763_v53  ;;  %v5931_v22 = vand.u32 %v8024_v23, %v8118_v3 }
 0x34b   : > { %14758 = vst [vmem:[#allocation14_spill] sm:$0xff] %v11681_v19  ;;  %14762 = vst [vmem:[#allocation6_spill] sm:$0xff] %v11686_v40  ;;  %5529 = vmatprep.mubr.bf16.mxu0 %v14203_v14  ;;  %5602 = vmatprep.mubr.bf16.mxu1 %v14203_v14 }
 0x34d   : > { %v11694_v28 = vpop.f32.mrb[48].mxu0  ;;  %v11696_v56 = vpop.f32.mrb[48].mxu1 }
 0x34e   : > { %v11702_v62 = vpop.f32.mrb[49].mxu0  ;;  %v11704_v31 = vpop.f32.mrb[49].mxu1 }
 0x34f   : > { %v11710_v12 = vpop.f32.mrb[50].mxu0  ;;  %v11712_v35 = vpop.f32.mrb[50].mxu1  ;;  %v14775_v19 = vmax.f32 %v11520_v36, %v11704_v31 }
 0x350   : > { %v11718_v9 = vpop.f32.mrb[51].mxu0  ;;  %v11720_v7 = vpop.f32.mrb[51].mxu1 }
 0x351   : > { %v14778_v36 = vmax.f32 %v11535_v50, %v11718_v9  ;;  %v8030_v50 = vld [vmem:[%s8116_s17 + $0x1d4] ss:$528 sps:$4 sm:$0x1f]   ;;  %v8033_v9 = vld [vmem:[%s8116_s17 + $0x1dc] ss:$528 sps:$4 sm:$0x1f]  }
 0x352   : > { %7717 = vmatmul.mubr.msk.bf16.gmra.mrb[156].mxu0 %vm260_vm2, %v11188_v51  ;;  %7721 = vmatmul.mubr.msk.bf16.gmra.mrb[156].mxu1 %vm260_vm2, %v11188_v51 }
 0x353   : > { %5645 = vmatprep.mubr.bf16.mxu0 %v14203_v14  ;;  %5718 = vmatprep.mubr.bf16.mxu1 %v14203_v14 }
 0x355   : > { %v11735_v39 = vpop.f32.mrb[52].mxu0  ;;  %v11737_v17 = vpop.f32.mrb[52].mxu1 }
 0x356   : > { %v11744_v61 = vpop.f32.mrb[53].mxu0  ;;  %v11746_v32 = vpop.f32.mrb[53].mxu1 }
 0x357   : > { %v11752_v37 = vpop.f32.mrb[54].mxu0  ;;  %v11754_v54 = vpop.f32.mrb[54].mxu1 }
 0x358   : > { %v11762_v47 = vpop.f32.mrb[55].mxu0  ;;  %v11764_v13 = vpop.f32.mrb[55].mxu1 }
 0x35a   : > { %7722 = vmatmul.mubr.msk.bf16.vlgmr.msra.gmra.mrb[160].mxu0 %vm260_vm2, %v14725_v10  ;;  %7726 = vmatmul.mubr.msk.bf16.vlgmr.msra.gmra.mrb[160].mxu1 %vm260_vm2, %v14725_v10 }
 0x35b   : > { %5952 = vmatpush1.bf16.msra.mxu0 %v5916_v4  ;;  %6025 = vmatpush1.bf16.msra.mxu1 %v5922_v58 }
 0x35c   : > { %5655 = vmatprep.mubr.bf16.mxu0 %v14203_v14  ;;  %5728 = vmatprep.mubr.bf16.mxu1 %v14203_v14 }
 0x35d   : > { %v11778_v5 = vpop.f32.mrb[56].mxu0  ;;  %v11780_v63 = vpop.f32.mrb[56].mxu1  ;;  %6097 = vmatprep.subr.bf16.mxu0 %v5931_v22  ;;  %6170 = vmatprep.subr.bf16.mxu1 %v5937_v15 }
 0x35e   : > { %14764 = vst [vmem:[#allocation12_spill] sm:$0xff] %v11780_v63  ;;  %v11786_v25 = vpop.f32.mrb[57].mxu0  ;;  %v11788_v10 = vpop.f32.mrb[57].mxu1 }
 0x35f   : > { %v11794_v38 = vpop.f32.mrb[58].mxu0  ;;  %v11796_v22 = vpop.f32.mrb[58].mxu1 }
 0x360   : > { %14765 = vst [vmem:[#allocation9_spill] sm:$0xff] %v11796_v22  ;;  %v11802_v23 = vpop.f32.mrb[59].mxu0  ;;  %v11804_v63 = vpop.f32.mrb[59].mxu1 }
 0x361   : > { %14766 = vst [vmem:[#allocation5_spill] sm:$0xff] %v11802_v23  ;;  %14767 = vst [vmem:[#allocation18_spill] sm:$0xff] %v11804_v63  ;;  %v14773_v23 = vmax.f32 %v11510_v8, %v11696_v56  ;;  %v14776_v8 = vmax.f32 %v11525_v27, %v11710_v12  ;;  %v8022_v27 = vld [vmem:[%s8116_s17 + $0x1c0] ss:$528 sps:$4 sm:$0x1f]  }
 0x362   : > { %7723 = vmatmul.mubr.msk.bf16.gmra.mrb[164].mxu0 %vm260_vm2, %v14742_v43  ;;  %7727 = vmatmul.mubr.msk.bf16.gmra.mrb[164].mxu1 %vm260_vm2, %v14742_v43 }
 0x363   : > { %5665 = vmatprep.mubr.bf16.mxu0 %v14203_v14  ;;  %5738 = vmatprep.mubr.bf16.mxu1 %v14203_v14 }
 0x365   : > { %v11816_v60 = vpop.f32.mrb[60].mxu0  ;;  %v11818_v15 = vpop.f32.mrb[60].mxu1 }
 0x366   : > { %14768 = vst [vmem:[#allocation8_spill] sm:$0xff] %v11818_v15  ;;  %v11824_v63 = vpop.f32.mrb[61].mxu0  ;;  %v11826_v44 = vpop.f32.mrb[61].mxu1 }
 0x367   : > { %v11832_v16 = vpop.f32.mrb[62].mxu0  ;;  %v11834_v22 = vpop.f32.mrb[62].mxu1 }
 0x368   : > { %14769 = vst [vmem:[#allocation7_spill] sm:$0xff] %v11834_v22  ;;  %v11840_v15 = vpop.f32.mrb[63].mxu0  ;;  %v11842_v59 = vpop.f32.mrb[63].mxu1  ;;  %v14772_v22 = vmax.f32 %v11505_v41, %v11694_v28 }
 0x369   : > { %14770 = vst [vmem:[#allocation11_spill] sm:$0xff] %v11840_v15  ;;  %14771 = vst [vmem:[#allocation3_spill] sm:$0xff] %v11842_v59 }
 0x36a   : > { %7724 = vmatmul.mubr.msk.bf16.gmra.mrb[168].mxu0 %vm260_vm2, %v14763_v53  ;;  %7728 = vmatmul.mubr.msk.bf16.gmra.mrb[168].mxu1 %vm260_vm2, %v14763_v53  ;;  %v14774_v53 = vmax.f32 %v11515_v46, %v11702_v62  ;;  %v14777_v46 = vmax.f32 %v11530_v20, %v11712_v35  ;;  %v8025_v20 = vld [vmem:[%s8116_s17 + $0x1c8] ss:$528 sps:$4 sm:$0x1f]  }
 0x36b   : > { %5675 = vmatprep.mubr.bf16.mxu0 %v14203_v14  ;;  %5748 = vmatprep.mubr.bf16.mxu1 %v14203_v14 }
 0x36d   : > { %v4387_v58 = vpop.f32.mrb[64].mxu0  ;;  %v4460_v4 = vpop.f32.mrb[64].mxu1 }
 0x36e   : > { %v11857_v34 = vmax.f32 %v14772_v22, %v4387_v58  ;;  %v11862_v43 = vmax.f32 %v14773_v23, %v4460_v4  ;;  %v4389_v59 = vpop.f32.mrb[65].mxu0  ;;  %v4462_v40 = vpop.f32.mrb[65].mxu1  ;;  %v14781_v4 = vmax.f32 %v11560_v48, %v11737_v17  ;;  %v5934_v48 = vand.u32 %v8025_v20, %v8118_v3 }
 0x36f   : > { %v11867_v15 = vmax.f32 %v14774_v53, %v4389_v59  ;;  %v11872_v41 = vmax.f32 %v14775_v19, %v4462_v40  ;;  %v4391_v28 = vpop.f32.mrb[66].mxu0  ;;  %v4464_v58 = vpop.f32.mrb[66].mxu1  ;;  %v14779_v40 = vmax.f32 %v11540_v45, %v11720_v7  ;;  %v14780_v45 = vmax.f32 %v11555_v21, %v11735_v39 }
 0x370   : > { %v11877_v56 = vmax.f32 %v14776_v8, %v4391_v28  ;;  %v11882_v62 = vmax.f32 %v14777_v46, %v4464_v58  ;;  %v4393_v59 = vpop.f32.mrb[67].mxu0  ;;  %v4466_v23 = vpop.f32.mrb[67].mxu1  ;;  %v14782_v58 = vmax.f32 %v11565_v30, %v11744_v61  ;;  %v14783_v46 = vmax.f32 %v11570_v57, %v11746_v32 }
 0x371   : > { %v11887_v19 = vmax.f32 %v14778_v36, %v4393_v59  ;;  %v11892_v31 = vmax.f32 %v14779_v40, %v4466_v23  ;;  %v5928_v23 = vand.u32 %v8022_v27, %v8118_v3  ;;  %v14784_v17 = vmax.f32 %v11577_v6, %v11752_v37 }
 0x372   : > { %7725 = vmatmul.mubr.msk.bf16.gmra.mrb[172].mxu0 %vm260_vm2, %v11188_v51  ;;  %7729 = vmatmul.mubr.msk.bf16.gmra.mrb[172].mxu1 %vm260_vm2, %v11188_v51  ;;  %v14785_v30 = vmax.f32 %v11582_v49, %v11754_v54  ;;  %v14786_v32 = vmax.f32 %v11587_v33, %v11762_v47  ;;  %v14787_v27 = vmax.f32 %v11592_v2, %v11764_v13  ;;  %v11951_v49 = vld [vmem:[%s13932_s1] sm:$0xff]   ;;  %v14790_v13 = vld [vmem:[#allocation12_spill] sm:$0xff] }
 0x373   : > { %5983 = vmatprep.mubr.bf16.mxu0 %v14203_v14  ;;  %6056 = vmatprep.mubr.bf16.mxu1 %v14203_v14  ;;  %v5943_v6 = vand.u32 %v8030_v50, %v8118_v3  ;;  %v5949_v37 = vand.u32 %v8033_v9, %v8118_v3  ;;  %14788 = vst [vmem:[#allocation13_spill] sm:$0xff] %v11951_v49 }
 0x374   : > { %v14789_v47 = vmax.f32 %v11605_v42, %v11778_v5  ;;  %v14791_v50 = vmax.f32 %v11610_v18, %v14790_v13 }
 0x375   : > { %v4397_v12 = vpop.f32.mrb[68].mxu0  ;;  %v4470_v35 = vpop.f32.mrb[68].mxu1 }
 0x376   : > { %v11907_v7 = vmax.f32 %v14780_v45, %v4397_v12  ;;  %v11912_v22 = vmax.f32 %v14781_v4, %v4470_v35  ;;  %v4399_v53 = vpop.f32.mrb[69].mxu0  ;;  %v4472_v28 = vpop.f32.mrb[69].mxu1  ;;  %v14792_v4 = vmax.f32 %v11615_v0, %v11786_v25 }
 0x377   : > { %v11917_v8 = vmax.f32 %v14782_v58, %v4399_v53  ;;  %v11922_v59 = vmax.f32 %v14783_v46, %v4472_v28  ;;  %v4401_v21 = vpop.f32.mrb[70].mxu0  ;;  %v4474_v39 = vpop.f32.mrb[70].mxu1  ;;  %v14793_v28 = vmax.f32 %v11620_v52, %v11788_v10  ;;  %v14794_v46 = vmax.f32 %v11625_v24, %v11794_v38  ;;  %v14801_v10 = vld [vmem:[#allocation15_spill] sm:$0xff] }
 0x378   : > { %v11929_v36 = vmax.f32 %v14784_v17, %v4401_v21  ;;  %v11934_v61 = vmax.f32 %v14785_v30, %v4474_v39  ;;  %v4403_v40 = vpop.f32.mrb[71].mxu0  ;;  %v4476_v57 = vpop.f32.mrb[71].mxu1  ;;  %v14795_v21 = vld [vmem:[#allocation9_spill] sm:$0xff]  ;;  %v12002_v24 = vld [vmem:[%s13932_s1 + $0x8] sm:$0xff]  }
 0x379   : > { %v11939_v12 = vmax.f32 %v14786_v32, %v4403_v40  ;;  %v11944_v20 = vmax.f32 %v14787_v27, %v4476_v57  ;;  %v14796_v39 = vmax.f32 %v11630_v1, %v14795_v21  ;;  %v14798_v17 = vld [vmem:[#allocation5_spill] sm:$0xff]  ;;  %v14802_v40 = vld [vmem:[#allocation18_spill] sm:$0xff]  ;;  %14805 = vst [vmem:[#allocation12_spill] sm:$0xff] %v12002_v24  ;;  %v14806_v27 = vmax.f32 %v11651_v29, %v11816_v60  ;;  %v14815_v21 = vld [vmem:[#allocation7_spill] sm:$0xff] }
 0x37a   : > { %7742 = vmatmul.mubr.msk.bf16.vlgmr.msra.gmra.mrb[176].mxu0 %vm260_vm2, %v11951_v49  ;;  %7746 = vmatmul.mubr.msk.bf16.vlgmr.msra.gmra.mrb[176].mxu1 %vm260_vm2, %v11951_v49  ;;  %v14803_v57 = vmax.f32 %v14801_v10, %v14802_v40 }
 0x37b   : > { %6098 = vmatpush1.bf16.msra.mxu0 %v5928_v23  ;;  %6171 = vmatpush1.bf16.msra.mxu1 %v5934_v48  ;;  %v14797_v48 = vld [vmem:[#allocation17_spill] sm:$0xff] }
 0x37c   : > { %5993 = vmatprep.mubr.bf16.mxu0 %v14203_v14  ;;  %6066 = vmatprep.mubr.bf16.mxu1 %v14203_v14  ;;  %v14799_v30 = vmax.f32 %v14797_v48, %v14798_v17  ;;  %v14819_v48 = vld [vmem:[#allocation11_spill] sm:$0xff] }
 0x37d   : > { %v4407_v33 = vpop.f32.mrb[72].mxu0  ;;  %v4480_v2 = vpop.f32.mrb[72].mxu1  ;;  %6243 = vmatprep.subr.bf16.mxu0 %v5943_v6  ;;  %6316 = vmatprep.subr.bf16.mxu1 %v5949_v37  ;;  %v14807_v37 = vld [vmem:[#allocation16_spill] sm:$0xff] }
 0x37e   : > { %v11962_v54 = vmax.f32 %v14789_v47, %v4407_v33  ;;  %v11967_v35 = vmax.f32 %v14791_v50, %v4480_v2  ;;  %v4409_v9 = vpop.f32.mrb[73].mxu0  ;;  %v4482_v45 = vpop.f32.mrb[73].mxu1  ;;  %v14808_v33 = vld [vmem:[#allocation8_spill] sm:$0xff] }
 0x37f   : > { %v11972_v53 = vmax.f32 %v14792_v4, %v4409_v9  ;;  %v11977_v58 = vmax.f32 %v14793_v28, %v4482_v45  ;;  %v4411_v42 = vpop.f32.mrb[74].mxu0  ;;  %v4484_v5 = vpop.f32.mrb[74].mxu1  ;;  %v14809_v2 = vmax.f32 %v14807_v37, %v14808_v33  ;;  %v14811_v9 = vmax.f32 %v11661_v11, %v11824_v63 }
 0x380   : > { %v11982_v18 = vmax.f32 %v14794_v46, %v4411_v42  ;;  %v11987_v23 = vmax.f32 %v14796_v39, %v4484_v5  ;;  %v4413_v0 = vpop.f32.mrb[75].mxu0  ;;  %v4486_v25 = vpop.f32.mrb[75].mxu1  ;;  %v14812_v4 = vmax.f32 %v11666_v26, %v11826_v44  ;;  %v14813_v42 = vmax.f32 %v11671_v55, %v11832_v16  ;;  %v14814_v46 = vld [vmem:[#allocation4_spill] sm:$0xff]  ;;  %v14822_v26 = vld [vmem:[#allocation6_spill] sm:$0xff] }
 0x381   : > { %v11992_v52 = vmax.f32 %v14799_v30, %v4413_v0  ;;  %v11997_v32 = vmax.f32 %v14803_v57, %v4486_v25  ;;  %v14816_v39 = vmax.f32 %v14814_v46, %v14815_v21  ;;  %v14818_v25 = vld [vmem:[#allocation14_spill] sm:$0xff]  ;;  %v14823_v30 = vld [vmem:[#allocation3_spill] sm:$0xff]  ;;  %v12053_v16 = vld [vmem:[%s13932_s1 + $0x10] sm:$0xff]  }
 0x382   : > { %7743 = vmatmul.mubr.msk.bf16.gmra.mrb[180].mxu0 %vm260_vm2, %v12002_v24  ;;  %7747 = vmatmul.mubr.msk.bf16.gmra.mrb[180].mxu1 %vm260_vm2, %v12002_v24  ;;  %v14820_v17 = vmax.f32 %v14818_v25, %v14819_v48  ;;  %v14824_v10 = vmax.f32 %v14822_v26, %v14823_v30  ;;  %14826 = vst [vmem:[#allocation18_spill] sm:$0xff] %v12053_v16  ;;  %v8028_v21 = vld [vmem:[%s8116_s17 + $0x1d0] ss:$528 sps:$4 sm:$0x1f]  }
 0x383   : > { %14800 = vst [vmem:[#allocation10_spill] sm:$0xff] %v11992_v52  ;;  %14804 = vst [vmem:[#allocation2_spill] sm:$0xff] %v11997_v32  ;;  %6003 = vmatprep.mubr.bf16.mxu0 %v14203_v14  ;;  %6076 = vmatprep.mubr.bf16.mxu1 %v14203_v14  ;;  %v8039_v48 = vld [vmem:[%s8116_s17 + $0x1ec] ss:$528 sps:$4 sm:$0x1f]  }
 0x385   : > { %v4417_v1 = vpop.f32.mrb[76].mxu0  ;;  %v4490_v38 = vpop.f32.mrb[76].mxu1 }
 0x386   : > { %v12013_v6 = vmax.f32 %v14806_v27, %v4417_v1  ;;  %v12018_v47 = vmax.f32 %v14809_v2, %v4490_v38  ;;  %v4419_v13 = vpop.f32.mrb[77].mxu0  ;;  %v4492_v50 = vpop.f32.mrb[77].mxu1 }
 0x387   : > { %v12023_v45 = vmax.f32 %v14811_v9, %v4419_v13  ;;  %v12028_v28 = vmax.f32 %v14812_v4, %v4492_v50  ;;  %v4421_v29 = vpop.f32.mrb[78].mxu0  ;;  %v4494_v60 = vpop.f32.mrb[78].mxu1  ;;  %v5940_v9 = vand.u32 %v8028_v21, %v8118_v3 }
 0x388   : > { %14810 = vst [vmem:[#allocation9_spill] sm:$0xff] %v12018_v47  ;;  %v12033_v5 = vmax.f32 %v14813_v42, %v4421_v29  ;;  %v12038_v0 = vmax.f32 %v14816_v39, %v4494_v60  ;;  %v4423_v11 = vpop.f32.mrb[79].mxu0  ;;  %v4496_v63 = vpop.f32.mrb[79].mxu1  ;;  %v8031_v39 = vld [vmem:[%s8116_s17 + $0x1d8] ss:$528 sps:$4 sm:$0x1f]  }
 0x389   : > { %v12043_v44 = vmax.f32 %v14820_v17, %v4423_v11  ;;  %v12048_v40 = vmax.f32 %v14824_v10, %v4496_v63  ;;  %v8036_v11 = vld [vmem:[%s8116_s17 + $0x1e4] ss:$528 sps:$4 sm:$0x1f]   ;;  %v5946_v17 = vand.u32 %v8031_v39, %v8118_v3  ;;  %v6555_v39 = vand.u32 %v8039_v48, %v8118_v3 }
 0x38a   : > { %14817 = vst [vmem:[#allocation17_spill] sm:$0xff] %v12038_v0  ;;  %7744 = vmatmul.mubr.msk.bf16.gmra.mrb[184].mxu0 %vm260_vm2, %v12053_v16  ;;  %7748 = vmatmul.mubr.msk.bf16.gmra.mrb[184].mxu1 %vm260_vm2, %v12053_v16  ;;  %v6549_v21 = vand.u32 %v8036_v11, %v8118_v3 }
 0x38b   : > { %14821 = vst [vmem:[#allocation5_spill] sm:$0xff] %v12043_v44  ;;  %14825 = vst [vmem:[#allocation15_spill] sm:$0xff] %v12048_v40  ;;  %6013 = vmatprep.mubr.bf16.mxu0 %v14203_v14  ;;  %6086 = vmatprep.mubr.bf16.mxu1 %v14203_v14 }
 0x38d   : > { %v12061_v55 = vpop.f32.mrb[80].mxu0  ;;  %v12063_v57 = vpop.f32.mrb[80].mxu1 }
 0x38e   : > { %v12069_v27 = vpop.f32.mrb[81].mxu0  ;;  %v12071_v37 = vpop.f32.mrb[81].mxu1 }
 0x38f   : > { %v12077_v13 = vpop.f32.mrb[82].mxu0  ;;  %v12079_v50 = vpop.f32.mrb[82].mxu1  ;;  %v14838_v44 = vmax.f32 %v11872_v41, %v12071_v37 }
 0x390   : > { %v12085_v29 = vpop.f32.mrb[83].mxu0  ;;  %v12087_v60 = vpop.f32.mrb[83].mxu1 }
 0x391   : > { %v14841_v41 = vmax.f32 %v11887_v19, %v12085_v29  ;;  %v8037_v19 = vld [vmem:[%s8116_s17 + $0x1e8] ss:$528 sps:$4 sm:$0x1f]   ;;  %v8045_v29 = vld [vmem:[%s8116_s17 + $0x1fc] ss:$528 sps:$4 sm:$0x1f]  }
 0x392   : > { %7745 = vmatmul.mubr.msk.bf16.gmra.mrb[188].mxu0 %vm260_vm2, %v11188_v51  ;;  %7749 = vmatmul.mubr.msk.bf16.gmra.mrb[188].mxu1 %vm260_vm2, %v11188_v51 }
 0x393   : > { %6129 = vmatprep.mubr.bf16.mxu0 %v14203_v14  ;;  %6202 = vmatprep.mubr.bf16.mxu1 %v14203_v14 }
 0x395   : > { %v12102_v63 = vpop.f32.mrb[84].mxu0  ;;  %v12104_v25 = vpop.f32.mrb[84].mxu1 }
 0x396   : > { %v12111_v30 = vpop.f32.mrb[85].mxu0  ;;  %v12113_v51 = vpop.f32.mrb[85].mxu1 }
 0x397   : > { %v12119_v42 = vpop.f32.mrb[86].mxu0  ;;  %v12121_v4 = vpop.f32.mrb[86].mxu1 }
 0x398   : > { %v12129_v33 = vpop.f32.mrb[87].mxu0  ;;  %v12131_v10 = vpop.f32.mrb[87].mxu1 }
 0x39a   : > { %7750 = vmatmul.mubr.msk.bf16.vlgmr.msra.gmra.mrb[192].mxu0 %vm260_vm2, %v11951_v49  ;;  %7754 = vmatmul.mubr.msk.bf16.vlgmr.msra.gmra.mrb[192].mxu1 %vm260_vm2, %v11951_v49 }
 0x39b   : > { %6244 = vmatpush1.bf16.msra.mxu0 %v5940_v9  ;;  %6317 = vmatpush1.bf16.msra.mxu1 %v5946_v17 }
 0x39c   : > { %6139 = vmatprep.mubr.bf16.mxu0 %v14203_v14  ;;  %6212 = vmatprep.mubr.bf16.mxu1 %v14203_v14 }
 0x39d   : > { %v12145_v46 = vpop.f32.mrb[88].mxu0  ;;  %v12147_v2 = vpop.f32.mrb[88].mxu1  ;;  %6581 = vmatprep.subr.bf16.mxu0 %v6549_v21  ;;  %6654 = vmatprep.subr.bf16.mxu1 %v6555_v39 }
 0x39e   : > { %14827 = vst [vmem:[#allocation16_spill] sm:$0xff] %v12147_v2  ;;  %v12153_v38 = vpop.f32.mrb[89].mxu0  ;;  %v12155_v9 = vpop.f32.mrb[89].mxu1 }
 0x39f   : > { %v12161_v1 = vpop.f32.mrb[90].mxu0  ;;  %v12163_v21 = vpop.f32.mrb[90].mxu1 }
 0x3a0   : > { %14828 = vst [vmem:[#allocation8_spill] sm:$0xff] %v12163_v21  ;;  %v12169_v11 = vpop.f32.mrb[91].mxu0  ;;  %v12171_v2 = vpop.f32.mrb[91].mxu1 }
 0x3a1   : > { %14829 = vst [vmem:[#allocation4_spill] sm:$0xff] %v12169_v11  ;;  %14830 = vst [vmem:[#allocation7_spill] sm:$0xff] %v12171_v2  ;;  %v14836_v11 = vmax.f32 %v11862_v43, %v12063_v57  ;;  %v14839_v43 = vmax.f32 %v11877_v56, %v12077_v13  ;;  %v12264_v56 = vld [vmem:[%s13932_s1 + $0x18] sm:$0xff]  }
 0x3a2   : > { %7751 = vmatmul.mubr.msk.bf16.gmra.mrb[196].mxu0 %vm260_vm2, %v12002_v24  ;;  %7755 = vmatmul.mubr.msk.bf16.gmra.mrb[196].mxu1 %vm260_vm2, %v12002_v24 }
 0x3a3   : > { %6149 = vmatprep.mubr.bf16.mxu0 %v14203_v14  ;;  %6222 = vmatprep.mubr.bf16.mxu1 %v14203_v14 }
 0x3a5   : > { %v12183_v48 = vpop.f32.mrb[92].mxu0  ;;  %v12185_v39 = vpop.f32.mrb[92].mxu1 }
 0x3a6   : > { %14831 = vst [vmem:[#allocation14_spill] sm:$0xff] %v12185_v39  ;;  %v12191_v2 = vpop.f32.mrb[93].mxu0  ;;  %v12193_v32 = vpop.f32.mrb[93].mxu1 }
 0x3a7   : > { %v12199_v52 = vpop.f32.mrb[94].mxu0  ;;  %v12201_v21 = vpop.f32.mrb[94].mxu1 }
 0x3a8   : > { %14832 = vst [vmem:[#allocation11_spill] sm:$0xff] %v12201_v21  ;;  %v12207_v39 = vpop.f32.mrb[95].mxu0  ;;  %v12209_v47 = vpop.f32.mrb[95].mxu1  ;;  %v14835_v21 = vmax.f32 %v11857_v34, %v12061_v55 }
 0x3a9   : > { %14833 = vst [vmem:[#allocation6_spill] sm:$0xff] %v12207_v39  ;;  %14834 = vst [vmem:[#allocation3_spill] sm:$0xff] %v12209_v47 }
 0x3aa   : > { %7752 = vmatmul.mubr.msk.bf16.gmra.mrb[200].mxu0 %vm260_vm2, %v12053_v16  ;;  %7756 = vmatmul.mubr.msk.bf16.gmra.mrb[200].mxu1 %vm260_vm2, %v12053_v16  ;;  %v14837_v16 = vmax.f32 %v11867_v15, %v12069_v27  ;;  %v14840_v15 = vmax.f32 %v11882_v62, %v12079_v50  ;;  %v8034_v62 = vld [vmem:[%s8116_s17 + $0x1e0] ss:$528 sps:$4 sm:$0x1f]  }
 0x3ab   : > { %6159 = vmatprep.mubr.bf16.mxu0 %v14203_v14  ;;  %6232 = vmatprep.mubr.bf16.mxu1 %v14203_v14 }
 0x3ad   : > { %v4871_v26 = vpop.f32.mrb[96].mxu0  ;;  %v4944_v17 = vpop.f32.mrb[96].mxu1 }
 0x3ae   : > { %v12224_v0 = vmax.f32 %v14835_v21, %v4871_v26  ;;  %v12229_v24 = vmax.f32 %v14836_v11, %v4944_v17  ;;  %v4873_v47 = vpop.f32.mrb[97].mxu0  ;;  %v4946_v40 = vpop.f32.mrb[97].mxu1  ;;  %v14844_v17 = vmax.f32 %v11912_v22, %v12104_v25  ;;  %v6552_v22 = vand.u32 %v8037_v19, %v8118_v3 }
 0x3af   : > { %v12234_v39 = vmax.f32 %v14837_v16, %v4873_v47  ;;  %v12239_v34 = vmax.f32 %v14838_v44, %v4946_v40  ;;  %v4875_v55 = vpop.f32.mrb[98].mxu0  ;;  %v4948_v26 = vpop.f32.mrb[98].mxu1  ;;  %v14842_v40 = vmax.f32 %v11892_v31, %v12087_v60  ;;  %v8042_v31 = vld [vmem:[%s8116_s17 + $0x1f4] ss:$528 sps:$4 sm:$0x1f]   ;;  %v14843_v60 = vmax.f32 %v11907_v7, %v12102_v63 }
 0x3b0   : > { %v12244_v57 = vmax.f32 %v14839_v43, %v4875_v55  ;;  %v12249_v47 = vmax.f32 %v14840_v15, %v4948_v26  ;;  %v4877_v16 = vpop.f32.mrb[99].mxu0  ;;  %v4950_v27 = vpop.f32.mrb[99].mxu1  ;;  %v14845_v43 = vmax.f32 %v11917_v8, %v12111_v30  ;;  %v14847_v25 = vmax.f32 %v11929_v36, %v12119_v42 }
 0x3b1   : > { %v12254_v44 = vmax.f32 %v14841_v41, %v4877_v16  ;;  %v12259_v37 = vmax.f32 %v14842_v40, %v4950_v27  ;;  %v14846_v16 = vmax.f32 %v11922_v59, %v12113_v51  ;;  %v6546_v41 = vand.u32 %v8034_v62, %v8118_v3 }
 0x3b2   : > { %7753 = vmatmul.mubr.msk.bf16.gmra.mrb[204].mxu0 %vm260_vm2, %v12264_v56  ;;  %7757 = vmatmul.mubr.msk.bf16.gmra.mrb[204].mxu1 %vm260_vm2, %v12264_v56  ;;  %v14848_v8 = vmax.f32 %v11934_v61, %v12121_v4  ;;  %v14849_v51 = vmax.f32 %v11939_v12, %v12129_v33  ;;  %v14850_v62 = vmax.f32 %v11944_v20, %v12131_v10  ;;  %v14852_v4 = vld [vmem:[#allocation16_spill] sm:$0xff] }
 0x3b3   : > { %6275 = vmatprep.mubr.bf16.mxu0 %v14203_v14  ;;  %6348 = vmatprep.mubr.bf16.mxu1 %v14203_v14  ;;  %v6561_v36 = vand.u32 %v8042_v31, %v8118_v3  ;;  %v6567_v42 = vand.u32 %v8045_v29, %v8118_v3  ;;  %v14851_v20 = vmax.f32 %v11962_v54, %v12145_v46 }
 0x3b4   : > { %v14853_v10 = vmax.f32 %v11967_v35, %v14852_v4 }
 0x3b5   : > { %v4881_v13 = vpop.f32.mrb[100].mxu0  ;;  %v4954_v50 = vpop.f32.mrb[100].mxu1 }
 0x3b6   : > { %v12279_v11 = vmax.f32 %v14843_v60, %v4881_v13  ;;  %v12284_v21 = vmax.f32 %v14844_v17, %v4954_v50  ;;  %v4883_v55 = vpop.f32.mrb[101].mxu0  ;;  %v4956_v26 = vpop.f32.mrb[101].mxu1  ;;  %v14854_v17 = vmax.f32 %v11972_v53, %v12153_v38 }
 0x3b7   : > { %v12289_v15 = vmax.f32 %v14845_v43, %v4883_v55  ;;  %v12294_v27 = vmax.f32 %v14846_v16, %v4956_v26  ;;  %v4885_v7 = vpop.f32.mrb[102].mxu0  ;;  %v4958_v63 = vpop.f32.mrb[102].mxu1  ;;  %v14855_v26 = vmax.f32 %v11977_v58, %v12155_v9  ;;  %v14856_v16 = vmax.f32 %v11982_v18, %v12161_v1  ;;  %v14863_v9 = vld [vmem:[#allocation2_spill] sm:$0xff]  ;;  %v14867_v18 = vld [vmem:[#allocation12_spill] sm:$0xff] }
 0x3b8   : > { %v12301_v40 = vmax.f32 %v14847_v25, %v4885_v7  ;;  %v12306_v30 = vmax.f32 %v14848_v8, %v4958_v63  ;;  %v4887_v13 = vpop.f32.mrb[103].mxu0  ;;  %v4960_v59 = vpop.f32.mrb[103].mxu1  ;;  %v14857_v7 = vld [vmem:[#allocation8_spill] sm:$0xff] }
 0x3b9   : > { %v12311_v50 = vmax.f32 %v14849_v51, %v4887_v13  ;;  %v12316_v19 = vmax.f32 %v14850_v62, %v4960_v59  ;;  %v14858_v63 = vmax.f32 %v11987_v23, %v14857_v7  ;;  %v14860_v25 = vld [vmem:[#allocation4_spill] sm:$0xff]  ;;  %v14864_v13 = vld [vmem:[#allocation7_spill] sm:$0xff]  ;;  %v14868_v62 = vmax.f32 %v12013_v6, %v12183_v48 }
 0x3ba   : > { %7758 = vmatmul.mubr.msk.bf16.vlgmr.msra.gmra.mrb[208].mxu0 %vm260_vm2, %v11951_v49  ;;  %7762 = vmatmul.mubr.msk.bf16.vlgmr.msra.gmra.mrb[208].mxu1 %vm260_vm2, %v11951_v49  ;;  %v14865_v59 = vmax.f32 %v14863_v9, %v14864_v13  ;;  %v14877_v7 = vld [vmem:[#allocation11_spill] sm:$0xff] }
 0x3bb   : > { %6582 = vmatpush1.bf16.msra.mxu0 %v6546_v41  ;;  %6655 = vmatpush1.bf16.msra.mxu1 %v6552_v22  ;;  %v14859_v22 = vld [vmem:[#allocation10_spill] sm:$0xff] }
 0x3bc   : > { %6285 = vmatprep.mubr.bf16.mxu0 %v14203_v14  ;;  %6358 = vmatprep.mubr.bf16.mxu1 %v14203_v14  ;;  %v14861_v8 = vmax.f32 %v14859_v22, %v14860_v25  ;;  %v14881_v22 = vld [vmem:[#allocation6_spill] sm:$0xff] }
 0x3bd   : > { %v4891_v61 = vpop.f32.mrb[104].mxu0  ;;  %v4964_v12 = vpop.f32.mrb[104].mxu1  ;;  %6727 = vmatprep.subr.bf16.mxu0 %v6561_v36  ;;  %6800 = vmatprep.subr.bf16.mxu1 %v6567_v42  ;;  %v14869_v42 = vld [vmem:[#allocation9_spill] sm:$0xff] }
 0x3be   : > { %v12329_v33 = vmax.f32 %v14851_v20, %v4891_v61  ;;  %v12334_v31 = vmax.f32 %v14853_v10, %v4964_v12  ;;  %v4893_v29 = vpop.f32.mrb[105].mxu0  ;;  %v4966_v60 = vpop.f32.mrb[105].mxu1  ;;  %v14870_v61 = vld [vmem:[#allocation14_spill] sm:$0xff] }
 0x3bf   : > { %v12339_v55 = vmax.f32 %v14854_v17, %v4893_v29  ;;  %v12344_v43 = vmax.f32 %v14855_v26, %v4966_v60  ;;  %v4895_v54 = vpop.f32.mrb[106].mxu0  ;;  %v4968_v46 = vpop.f32.mrb[106].mxu1  ;;  %v14871_v12 = vmax.f32 %v14869_v42, %v14870_v61  ;;  %v14873_v29 = vmax.f32 %v12023_v45, %v12191_v2 }
 0x3c0   : > { %v12349_v35 = vmax.f32 %v14856_v16, %v4895_v54  ;;  %v12354_v41 = vmax.f32 %v14858_v63, %v4968_v46  ;;  %v4897_v53 = vpop.f32.mrb[107].mxu0  ;;  %v4970_v38 = vpop.f32.mrb[107].mxu1  ;;  %v14874_v17 = vmax.f32 %v12028_v28, %v12193_v32  ;;  %v14875_v54 = vmax.f32 %v12033_v5, %v12199_v52  ;;  %v14876_v16 = vld [vmem:[#allocation17_spill] sm:$0xff]  ;;  %v14884_v28 = vld [vmem:[#allocation15_spill] sm:$0xff]  ;;  %v14888_v52 = vld [vmem:[#allocation18_spill] sm:$0xff] }
 0x3c1   : > { %v12359_v58 = vmax.f32 %v14861_v8, %v4897_v53  ;;  %v12364_v51 = vmax.f32 %v14865_v59, %v4970_v38  ;;  %v14878_v63 = vmax.f32 %v14876_v16, %v14877_v7  ;;  %v14880_v38 = vld [vmem:[#allocation5_spill] sm:$0xff]  ;;  %v14885_v8 = vld [vmem:[#allocation3_spill] sm:$0xff]  ;;  %v8040_v7 = vld [vmem:[%s8116_s17 + $0x1f0] ss:$528 sps:$4 sm:$0x1f]  }
 0x3c2   : > { %7759 = vmatmul.mubr.msk.bf16.gmra.mrb[212].mxu0 %vm260_vm2, %v14867_v18  ;;  %7763 = vmatmul.mubr.msk.bf16.gmra.mrb[212].mxu1 %vm260_vm2, %v14867_v18  ;;  %v14882_v25 = vmax.f32 %v14880_v38, %v14881_v22  ;;  %v14886_v9 = vmax.f32 %v14884_v28, %v14885_v8  ;;  %v8051_v22 = vld [vmem:[%s8116_s17 + $0x20c] ss:$528 sps:$4 sm:$0x1f]  }
 0x3c3   : > { %14862 = vst [vmem:[#allocation16_spill] sm:$0xff] %v12359_v58  ;;  %14866 = vst [vmem:[#allocation8_spill] sm:$0xff] %v12364_v51  ;;  %6295 = vmatprep.mubr.bf16.mxu0 %v14203_v14  ;;  %6368 = vmatprep.mubr.bf16.mxu1 %v14203_v14 }
 0x3c5   : > { %v4901_v23 = vpop.f32.mrb[108].mxu0  ;;  %v4974_v1 = vpop.f32.mrb[108].mxu1 }
 0x3c6   : > { %v12375_v36 = vmax.f32 %v14868_v62, %v4901_v23  ;;  %v12380_v20 = vmax.f32 %v14871_v12, %v4974_v1  ;;  %v4903_v4 = vpop.f32.mrb[109].mxu0  ;;  %v4976_v10 = vpop.f32.mrb[109].mxu1  ;;  %v6558_v12 = vand.u32 %v8040_v7, %v8118_v3 }
 0x3c7   : > { %v12385_v60 = vmax.f32 %v14873_v29, %v4903_v4  ;;  %v12390_v26 = vmax.f32 %v14874_v17, %v4976_v10  ;;  %v4905_v6 = vpop.f32.mrb[110].mxu0  ;;  %v4978_v48 = vpop.f32.mrb[110].mxu1 }
 0x3c8   : > { %14872 = vst [vmem:[#allocation10_spill] sm:$0xff] %v12380_v20  ;;  %v12395_v46 = vmax.f32 %v14875_v54, %v4905_v6  ;;  %v12400_v53 = vmax.f32 %v14878_v63, %v4978_v48  ;;  %v4907_v45 = vpop.f32.mrb[111].mxu0  ;;  %v4980_v2 = vpop.f32.mrb[111].mxu1  ;;  %v8043_v63 = vld [vmem:[%s8116_s17 + $0x1f8] ss:$528 sps:$4 sm:$0x1f]  }
 0x3c9   : > { %v12405_v32 = vmax.f32 %v14882_v25, %v4907_v45  ;;  %v12410_v13 = vmax.f32 %v14886_v9, %v4980_v2  ;;  %v8048_v45 = vld [vmem:[%s8116_s17 + $0x204] ss:$528 sps:$4 sm:$0x1f]   ;;  %v6564_v25 = vand.u32 %v8043_v63, %v8118_v3  ;;  %v6579_v63 = vand.u32 %v8051_v22, %v8118_v3 }
 0x3ca   : > { %14879 = vst [vmem:[#allocation4_spill] sm:$0xff] %v12400_v53  ;;  %7760 = vmatmul.mubr.msk.bf16.gmra.mrb[216].mxu0 %vm260_vm2, %v14888_v52  ;;  %7764 = vmatmul.mubr.msk.bf16.gmra.mrb[216].mxu1 %vm260_vm2, %v14888_v52  ;;  %v6573_v7 = vand.u32 %v8048_v45, %v8118_v3 }
 0x3cb   : > { %14883 = vst [vmem:[#allocation2_spill] sm:$0xff] %v12405_v32  ;;  %14887 = vst [vmem:[#allocation7_spill] sm:$0xff] %v12410_v13  ;;  %6305 = vmatprep.mubr.bf16.mxu0 %v14203_v14  ;;  %6378 = vmatprep.mubr.bf16.mxu1 %v14203_v14 }
 0x3cd   : > { %v12418_v5 = vpop.f32.mrb[112].mxu0  ;;  %v12420_v59 = vpop.f32.mrb[112].mxu1 }
 0x3ce   : > { %v12426_v62 = vpop.f32.mrb[113].mxu0  ;;  %v12428_v42 = vpop.f32.mrb[113].mxu1 }
 0x3cf   : > { %v12434_v4 = vpop.f32.mrb[114].mxu0  ;;  %v12436_v10 = vpop.f32.mrb[114].mxu1  ;;  %v14900_v32 = vmax.f32 %v12234_v39, %v12426_v62 }
 0x3d0   : > { %v12442_v6 = vpop.f32.mrb[115].mxu0  ;;  %v12444_v48 = vpop.f32.mrb[115].mxu1 }
 0x3d1   : > { %v14905_v62 = vmax.f32 %v12259_v37, %v12444_v48  ;;  %v8049_v37 = vld [vmem:[%s8116_s17 + $0x208] ss:$528 sps:$4 sm:$0x1f]  }
 0x3d2   : > { %7761 = vmatmul.mubr.msk.bf16.gmra.mrb[220].mxu0 %vm260_vm2, %v12264_v56  ;;  %7765 = vmatmul.mubr.msk.bf16.gmra.mrb[220].mxu1 %vm260_vm2, %v12264_v56 }
 0x3d3   : > { %6613 = vmatprep.mubr.bf16.mxu0 %v14203_v14  ;;  %6686 = vmatprep.mubr.bf16.mxu1 %v14203_v14 }
 0x3d5   : > { %v12459_v2 = vpop.f32.mrb[116].mxu0  ;;  %v12461_v38 = vpop.f32.mrb[116].mxu1 }
 0x3d6   : > { %v12468_v8 = vpop.f32.mrb[117].mxu0  ;;  %v12470_v9 = vpop.f32.mrb[117].mxu1 }
 0x3d7   : > { %v12476_v17 = vpop.f32.mrb[118].mxu0  ;;  %v12478_v29 = vpop.f32.mrb[118].mxu1 }
 0x3d8   : > { %v12486_v1 = vpop.f32.mrb[119].mxu0  ;;  %v12488_v16 = vpop.f32.mrb[119].mxu1 }
 0x3da   : > { %7778 = vmatmul.mubr.msk.bf16.vlgmr.msra.gmra.mrb[224].mxu0 %vm260_vm2, %v11951_v49  ;;  %7782 = vmatmul.mubr.msk.bf16.vlgmr.msra.gmra.mrb[224].mxu1 %vm260_vm2, %v11951_v49 }
 0x3db   : > { %6728 = vmatpush1.bf16.msra.mxu0 %v6558_v12  ;;  %6801 = vmatpush1.bf16.msra.mxu1 %v6564_v25 }
 0x3dc   : > { %6623 = vmatprep.mubr.bf16.mxu0 %v14203_v14  ;;  %6696 = vmatprep.mubr.bf16.mxu1 %v14203_v14 }
 0x3dd   : > { %v12502_v54 = vpop.f32.mrb[120].mxu0  ;;  %v12504_v61 = vpop.f32.mrb[120].mxu1  ;;  %6873 = vmatprep.subr.bf16.mxu0 %v6573_v7  ;;  %6946 = vmatprep.subr.bf16.mxu1 %v6579_v63 }
 0x3de   : > { %14889 = vst [vmem:[#allocation9_spill] sm:$0xff] %v12504_v61  ;;  %v12510_v23 = vpop.f32.mrb[121].mxu0  ;;  %v12512_v12 = vpop.f32.mrb[121].mxu1 }
 0x3df   : > { %v12518_v49 = vpop.f32.mrb[122].mxu0  ;;  %v12520_v7 = vpop.f32.mrb[122].mxu1 }
 0x3e0   : > { %14890 = vst [vmem:[#allocation14_spill] sm:$0xff] %v12520_v7  ;;  %v12526_v45 = vpop.f32.mrb[123].mxu0  ;;  %v12528_v61 = vpop.f32.mrb[123].mxu1 }
 0x3e1   : > { %14891 = vst [vmem:[#allocation17_spill] sm:$0xff] %v12526_v45  ;;  %14892 = vst [vmem:[#allocation11_spill] sm:$0xff] %v12528_v61 }
 0x3e2   : > { %7779 = vmatmul.mubr.msk.bf16.gmra.mrb[228].mxu0 %vm260_vm2, %v14867_v18  ;;  %7783 = vmatmul.mubr.msk.bf16.gmra.mrb[228].mxu1 %vm260_vm2, %v14867_v18  ;;  %v14898_v18 = vmax.f32 %v12224_v0, %v12418_v5 }
 0x3e3   : > { %6633 = vmatprep.mubr.bf16.mxu0 %v14203_v14  ;;  %6706 = vmatprep.mubr.bf16.mxu1 %v14203_v14 }
 0x3e5   : > { %v12540_v22 = vpop.f32.mrb[124].mxu0  ;;  %v12542_v63 = vpop.f32.mrb[124].mxu1 }
 0x3e6   : > { %14893 = vst [vmem:[#allocation5_spill] sm:$0xff] %v12542_v63  ;;  %v12548_v61 = vpop.f32.mrb[125].mxu0  ;;  %v12550_v51 = vpop.f32.mrb[125].mxu1 }
 0x3e7   : > { %v12556_v58 = vpop.f32.mrb[126].mxu0  ;;  %v12558_v7 = vpop.f32.mrb[126].mxu1 }
 0x3e8   : > { %14894 = vst [vmem:[#allocation6_spill] sm:$0xff] %v12556_v58  ;;  %14895 = vst [vmem:[#allocation15_spill] sm:$0xff] %v12558_v7  ;;  %v12564_v63 = vpop.f32.mrb[127].mxu0  ;;  %v12566_v20 = vpop.f32.mrb[127].mxu1  ;;  %v7115_v7 = vld [vmem:[%s13933_s2] sm:$0xff]  ;;  %v14901_v58 = vmax.f32 %v12239_v34, %v12428_v42  ;;  %v14904_v34 = vmax.f32 %v12254_v44, %v12442_v6  ;;  %v14906_v6 = vmax.f32 %v12279_v11, %v12459_v2 }
 0x3e9   : > { %14896 = vst [vmem:[#allocation3_spill] sm:$0xff] %v12564_v63  ;;  %14897 = vst [vmem:[#allocation19_spill] sm:$0xff] %v12566_v20  ;;  %v14899_v20 = vmax.f32 %v12229_v24, %v12420_v59  ;;  %7125 = vperm.xlu0 %7848, %v7115_v7   ;;  %v14902_v24 = vmax.f32 %v12244_v57, %v12434_v4  ;;  %v14903_v59 = vmax.f32 %v12249_v47, %v12436_v10  ;;  %v7116_v57 = vld [vmem:[%s13933_s2 + $0x8] sm:$0xff]  ;;  %v7117_v47 = vld [vmem:[%s13933_s2 + $0x10] sm:$0xff] }
 0x3ea   : > { %7780 = vmatmul.mubr.msk.bf16.gmra.mrb[232].mxu0 %vm260_vm2, %v14888_v52  ;;  %7784 = vmatmul.mubr.msk.bf16.gmra.mrb[232].mxu1 %vm260_vm2, %v14888_v52  ;;  %v8046_v44 = vld [vmem:[%s8116_s17 + $0x200] ss:$528 sps:$4 sm:$0x1f]   ;;  %v14909_v11 = vmax.f32 %v12294_v27, %v12470_v9  ;;  %v14912_v9 = vmax.f32 %v12311_v50, %v12486_v1 }
 0x3eb   : > { %6643 = vmatprep.mubr.bf16.mxu0 %v14203_v14  ;;  %6716 = vmatprep.mubr.bf16.mxu1 %v14203_v14  ;;  %v7119_v50 = vld [vmem:[%s13933_s2 + $0x20] sm:$0xff] }
 0x3ec   : > { %7135 = vperm.xlu1 %7849, %v7117_v47  }
 0x3ed   : > { %v5355_v28 = vpop.f32.mrb[128].mxu0  ;;  %v5428_v25 = vpop.f32.mrb[128].mxu1  ;;  %7130 = vperm.xlu0 %7848, %v7116_v57  }
 0x3ee   : > { %v12584_v45 = vmax.f32 %v14898_v18, %v5355_v28  ;;  %v12589_v13 = vmax.f32 %v14899_v20, %v5428_v25  ;;  %v5357_v52 = vpop.f32.mrb[129].mxu0  ;;  %v5430_v63 = vpop.f32.mrb[129].mxu1  ;;  %v14907_v28 = vmax.f32 %v12284_v21, %v12461_v38  ;;  %v6570_v38 = vand.u32 %v8046_v44, %v8118_v3 }
 0x3ef   : > { %v12594_v53 = vmax.f32 %v14900_v32, %v5357_v52  ;;  %v12599_v0 = vmax.f32 %v14901_v58, %v5430_v63  ;;  %v5359_v18 = vpop.f32.mrb[130].mxu0  ;;  %v5432_v5 = vpop.f32.mrb[130].mxu1 }
 0x3f0   : > { %v12604_v20 = vmax.f32 %v14902_v24, %v5359_v18  ;;  %v12609_v39 = vmax.f32 %v14903_v59, %v5432_v5  ;;  %v5361_v32 = vpop.f32.mrb[131].mxu0  ;;  %v5434_v52 = vpop.f32.mrb[131].mxu1  ;;  %v7118_v18 = vld [vmem:[%s13933_s2 + $0x18] sm:$0xff]  ;;  %v14908_v5 = vmax.f32 %v12289_v15, %v12468_v8  ;;  %v14911_v15 = vmax.f32 %v12306_v30, %v12478_v29  ;;  %v7120_v30 = vld [vmem:[%s13933_s2 + $0x28] sm:$0xff] }
 0x3f1   : > { %v12614_v58 = vmax.f32 %v14904_v34, %v5361_v32  ;;  %v12619_v42 = vmax.f32 %v14905_v62, %v5434_v52  ;;  %v6576_v32 = vand.u32 %v8049_v37, %v8118_v3  ;;  %v14910_v52 = vmax.f32 %v12301_v40, %v12476_v17  ;;  %7140 = vperm.xlu1 %7849, %v7118_v18   ;;  %v14914_v40 = vld [vmem:[#allocation13_spill] sm:$0xff] }
 0x3f2   : > { %7781 = vmatmul.mubr.msk.bf16.gmra.mrb[236].mxu0 %vm260_vm2, %v12264_v56  ;;  %7785 = vmatmul.mubr.msk.bf16.gmra.mrb[236].mxu1 %vm260_vm2, %v12264_v56  ;;  %v14913_v3 = vmax.f32 %v12316_v19, %v12488_v16  ;;  %v14915_v29 = vmax.f32 %v12329_v33, %v12502_v54  ;;  %v14916_v16 = vld [vmem:[#allocation9_spill] sm:$0xff]  ;;  %v14918_v33 = vmax.f32 %v12339_v55, %v12510_v23 }
 0x3f3   : > { %6759 = vmatprep.mubr.bf16.mxu0 %v14203_v14  ;;  %6832 = vmatprep.mubr.bf16.mxu1 %v14203_v14  ;;  %v14917_v44 = vmax.f32 %v12334_v31, %v14916_v16  ;;  %v14919_v31 = vmax.f32 %v12344_v43, %v12512_v12  ;;  %v14927_v12 = vld [vmem:[#allocation8_spill] sm:$0xff] }
 0x3f4   : > { %7145 = vperm.xlu0 %7848, %v7119_v50   ;;  %v14933_v50 = vld [vmem:[#allocation10_spill] sm:$0xff] }
 0x3f5   : > { %v5365_v4 = vpop.f32.mrb[132].mxu0  ;;  %v5438_v10 = vpop.f32.mrb[132].mxu1  ;;  %7150 = vperm.xlu1 %7849, %v7120_v30  }
 0x3f6   : > { %v12638_v48 = vmax.f32 %v14906_v6, %v5365_v4  ;;  %v12643_v25 = vmax.f32 %v14907_v28, %v5438_v10  ;;  %v5367_v7 = vpop.f32.mrb[133].mxu0  ;;  %v5440_v63 = vpop.f32.mrb[133].mxu1  ;;  %v7122_v6 = vld [vmem:[%s13933_s2 + $0x38] sm:$0xff]  ;;  %v7121_v28 = vld [vmem:[%s13933_s2 + $0x30] sm:$0xff] }
 0x3f7   : > { %v12651_v24 = vmax.f32 %v14908_v5, %v5367_v7  ;;  %v12656_v2 = vmax.f32 %v14909_v11, %v5440_v63  ;;  %v5369_v59 = vpop.f32.mrb[134].mxu0  ;;  %v5442_v21 = vpop.f32.mrb[134].mxu1  ;;  %v14920_v5 = vmax.f32 %v12349_v35, %v12518_v49  ;;  %v14931_v49 = vld [vmem:[#allocation12_spill] sm:$0xff] }
 0x3f8   : > { %v12663_v34 = vmax.f32 %v14910_v52, %v5369_v59  ;;  %v12668_v8 = vmax.f32 %v14911_v15, %v5442_v21  ;;  %v5371_v62 = vpop.f32.mrb[135].mxu0  ;;  %v5444_v27 = vpop.f32.mrb[135].mxu1  ;;  %v14921_v59 = vld [vmem:[#allocation14_spill] sm:$0xff]  ;;  %v14924_v52 = vld [vmem:[#allocation17_spill] sm:$0xff]  ;;  %7155 = vperm.xlu0 %7848, %v7121_v28  }
 0x3f9   : > { %v12673_v57 = vmax.f32 %v14912_v9, %v5371_v62  ;;  %v12678_v47 = vmax.f32 %v14913_v3, %v5444_v27  ;;  %v14922_v21 = vmax.f32 %v12354_v41, %v14921_v59  ;;  %v14928_v62 = vld [vmem:[#allocation11_spill] sm:$0xff]  ;;  %7160 = vperm.xlu1 %7849, %v7122_v6   ;;  %v14932_v3 = vmax.f32 %v12375_v36, %v12540_v22 }
 0x3fa   : > { %7786 = vmatmul.mubr.msk.bf16.vlgmr.msra.gmra.mrb[240].mxu0 %vm260_vm2, %v14914_v40  ;;  %7790 = vmatmul.mubr.msk.bf16.vlgmr.msra.gmra.mrb[240].mxu1 %vm260_vm2, %v14914_v40  ;;  %v14929_v27 = vmax.f32 %v14927_v12, %v14928_v62  ;;  %v14938_v6 = vmax.f32 %v12390_v26, %v12550_v51  ;;  %v14949_v26 = vld [vmem:[#allocation7_spill] sm:$0xff] }
 0x3fb   : > { %6874 = vmatpush1.bf16.msra.mxu0 %v6570_v38  ;;  %6947 = vmatpush1.bf16.msra.mxu1 %v6576_v32  ;;  %v14923_v32 = vld [vmem:[#allocation16_spill] sm:$0xff] }
 0x3fc   : > { %6769 = vmatprep.mubr.bf16.mxu0 %v14203_v14  ;;  %6842 = vmatprep.mubr.bf16.mxu1 %v14203_v14  ;;  %v14925_v15 = vmax.f32 %v14923_v32, %v14924_v52  ;;  %v14950_v52 = vld [vmem:[#allocation19_spill] sm:$0xff] }
 0x3fd   : > { %v5375_v19 = vpop.f32.mrb[136].mxu0  ;;  %v5448_v1 = vpop.f32.mrb[136].mxu1 }
 0x3fe   : > { %v12695_v17 = vmax.f32 %v14915_v29, %v5375_v19  ;;  %v12700_v37 = vmax.f32 %v14917_v44, %v5448_v1  ;;  %v5377_v4 = vpop.f32.mrb[137].mxu0  ;;  %v5450_v10 = vpop.f32.mrb[137].mxu1  ;;  %v14934_v19 = vld [vmem:[#allocation5_spill] sm:$0xff] }
 0x3ff   : > { %v12711_v54 = vmax.f32 %v14918_v33, %v5377_v4  ;;  %v12716_v7 = vmax.f32 %v14919_v31, %v5450_v10  ;;  %v5379_v63 = vpop.f32.mrb[138].mxu0  ;;  %v5452_v18 = vpop.f32.mrb[138].mxu1  ;;  %v14935_v1 = vmax.f32 %v14933_v50, %v14934_v19  ;;  %v14937_v4 = vmax.f32 %v12385_v60, %v12548_v61  ;;  %v14939_v33 = vld [vmem:[#allocation6_spill] sm:$0xff] }
 0x400   : > { %v12721_v11 = vmax.f32 %v14920_v5, %v5379_v63  ;;  %v12726_v38 = vmax.f32 %v14922_v21, %v5452_v18  ;;  %v5381_v55 = vpop.f32.mrb[139].mxu0  ;;  %v5454_v23 = vpop.f32.mrb[139].mxu1  ;;  %v14940_v31 = vmax.f32 %v12395_v46, %v14939_v33  ;;  %v14941_v18 = vld [vmem:[#allocation4_spill] sm:$0xff]  ;;  %v14942_v5 = vld [vmem:[#allocation15_spill] sm:$0xff]  ;;  %v14953_v46 = vld [vmem:[#allocation18_spill] sm:$0xff] }
 0x401   : > { %v12731_v43 = vmax.f32 %v14925_v15, %v5381_v55  ;;  %v12736_v9 = vmax.f32 %v14929_v27, %v5454_v23  ;;  %v14943_v59 = vmax.f32 %v14941_v18, %v14942_v5  ;;  %v14945_v55 = vld [vmem:[#allocation2_spill] sm:$0xff]  ;;  %v14946_v23 = vld [vmem:[#allocation3_spill] sm:$0xff]  ;;  %v14951_v15 = vmax.f32 %v14949_v26, %v14950_v52 }
 0x402   : > { %7787 = vmatmul.mubr.msk.bf16.gmra.mrb[244].mxu0 %vm260_vm2, %v14931_v49  ;;  %7791 = vmatmul.mubr.msk.bf16.gmra.mrb[244].mxu1 %vm260_vm2, %v14931_v49  ;;  %v14947_v32 = vmax.f32 %v14945_v55, %v14946_v23 }
 0x403   : > { %14926 = vst [vmem:[#allocation13_spill] sm:$0xff] %v12731_v43  ;;  %14930 = vst [vmem:[#allocation9_spill] sm:$0xff] %v12736_v9  ;;  %6779 = vmatprep.mubr.bf16.mxu0 %v14203_v14  ;;  %6852 = vmatprep.mubr.bf16.mxu1 %v14203_v14 }
 0x405   : > { %v5385_v35 = vpop.f32.mrb[140].mxu0  ;;  %v5458_v41 = vpop.f32.mrb[140].mxu1 }
 0x406   : > { %v12747_v30 = vmax.f32 %v14932_v3, %v5385_v35  ;;  %v12752_v29 = vmax.f32 %v14935_v1, %v5458_v41  ;;  %v5387_v16 = vpop.f32.mrb[141].mxu0  ;;  %v5460_v44 = vpop.f32.mrb[141].mxu1 }
 0x407   : > { %v12757_v10 = vmax.f32 %v14937_v4, %v5387_v16  ;;  %v12762_v28 = vmax.f32 %v14938_v6, %v5460_v44  ;;  %v5389_v36 = vpop.f32.mrb[142].mxu0  ;;  %v5462_v22 = vpop.f32.mrb[142].mxu1 }
 0x408   : > { %14936 = vst [vmem:[#allocation14_spill] sm:$0xff] %v12752_v29  ;;  %v12767_v63 = vmax.f32 %v14940_v31, %v5389_v36  ;;  %v12772_v21 = vmax.f32 %v14943_v59, %v5462_v22  ;;  %v5391_v60 = vpop.f32.mrb[143].mxu0  ;;  %v5464_v61 = vpop.f32.mrb[143].mxu1 }
 0x409   : > { %v12777_v51 = vmax.f32 %v14947_v32, %v5391_v60  ;;  %v12782_v12 = vmax.f32 %v14951_v15, %v5464_v61 }
 0x40a   : > { %14944 = vst [vmem:[#allocation16_spill] sm:$0xff] %v12772_v21  ;;  %7788 = vmatmul.mubr.msk.bf16.gmra.mrb[248].mxu0 %vm260_vm2, %v14953_v46  ;;  %7792 = vmatmul.mubr.msk.bf16.gmra.mrb[248].mxu1 %vm260_vm2, %v14953_v46 }
 0x40b   : > { %14948 = vst [vmem:[#allocation17_spill] sm:$0xff] %v12777_v51  ;;  %14952 = vst [vmem:[#allocation8_spill] sm:$0xff] %v12782_v12  ;;  %6789 = vmatprep.mubr.bf16.mxu0 %v14203_v14  ;;  %6862 = vmatprep.mubr.bf16.mxu1 %v14203_v14 }
 0x40d   : > { %v12790_v62 = vpop.f32.mrb[144].mxu0  ;;  %v12792_v27 = vpop.f32.mrb[144].mxu1 }
 0x40e   : > { %v12798_v3 = vpop.f32.mrb[145].mxu0  ;;  %v12800_v50 = vpop.f32.mrb[145].mxu1 }
 0x40f   : > { %v12806_v16 = vpop.f32.mrb[146].mxu0  ;;  %v12808_v44 = vpop.f32.mrb[146].mxu1 }
 0x410   : > { %v12814_v36 = vpop.f32.mrb[147].mxu0  ;;  %v12816_v22 = vpop.f32.mrb[147].mxu1 }
 0x412   : > { %7789 = vmatmul.mubr.msk.bf16.gmra.mrb[252].mxu0 %vm260_vm2, %v12264_v56  ;;  %7793 = vmatmul.mubr.msk.bf16.gmra.mrb[252].mxu1 %vm260_vm2, %v12264_v56 }
 0x413   : > { %6905 = vmatprep.mubr.bf16.mxu0 %v14203_v14  ;;  %6978 = vmatprep.mubr.bf16.mxu1 %v14203_v14 }
 0x415   : > { %v12828_v18 = vpop.f32.mrb[148].mxu0  ;;  %v12830_v5 = vpop.f32.mrb[148].mxu1 }
 0x416   : > { %v12836_v61 = vpop.f32.mrb[149].mxu0  ;;  %v12838_v55 = vpop.f32.mrb[149].mxu1 }
 0x417   : > { %v12844_v26 = vpop.f32.mrb[150].mxu0  ;;  %v12846_v52 = vpop.f32.mrb[150].mxu1 }
 0x418   : > { %v12852_v59 = vpop.f32.mrb[151].mxu0  ;;  %v12854_v31 = vpop.f32.mrb[151].mxu1 }
 0x41a   : > { %7794 = vmatmul.mubr.msk.bf16.vlgmr.msra.gmra.mrb[0].mxu0 %vm260_vm2, %v14914_v40  ;;  %7798 = vmatmul.mubr.msk.bf16.vlgmr.msra.gmra.mrb[0].mxu1 %vm260_vm2, %v14914_v40 }
 0x41b   : > { %6915 = vmatprep.mubr.bf16.mxu0 %v14203_v14  ;;  %6988 = vmatprep.mubr.bf16.mxu1 %v14203_v14 }
 0x41d   : > { %v12866_v60 = vpop.f32.mrb[152].mxu0  ;;  %v12868_v15 = vpop.f32.mrb[152].mxu1 }
 0x41e   : > { %v12874_v33 = vpop.f32.mrb[153].mxu0  ;;  %v12876_v6 = vpop.f32.mrb[153].mxu1 }
 0x41f   : > { %v12882_v1 = vpop.f32.mrb[154].mxu0  ;;  %v12884_v19 = vpop.f32.mrb[154].mxu1 }
 0x420   : > { %14954 = vst [vmem:[#allocation11_spill] sm:$0xff] %v12884_v19  ;;  %v12890_v41 = vpop.f32.mrb[155].mxu0  ;;  %v12892_v35 = vpop.f32.mrb[155].mxu1 }
 0x421   : > { %14955 = vst [vmem:[#allocation12_spill] sm:$0xff] %v12890_v41  ;;  %14956 = vst [vmem:[#allocation10_spill] sm:$0xff] %v12892_v35  ;;  %v14962_v41 = vmax.f32 %v12589_v13, %v12792_v27  ;;  %v14966_v27 = vmax.f32 %v12609_v39, %v12808_v44 }
 0x422   : > { %7795 = vmatmul.mubr.msk.bf16.gmra.mrb[4].mxu0 %vm260_vm2, %v14931_v49  ;;  %7799 = vmatmul.mubr.msk.bf16.gmra.mrb[4].mxu1 %vm260_vm2, %v14931_v49 }
 0x423   : > { %6925 = vmatprep.mubr.bf16.mxu0 %v14203_v14  ;;  %6998 = vmatprep.mubr.bf16.mxu1 %v14203_v14 }
 0x425   : > { %v12904_v32 = vpop.f32.mrb[156].mxu0  ;;  %v12906_v23 = vpop.f32.mrb[156].mxu1 }
 0x426   : > { %14957 = vst [vmem:[#allocation5_spill] sm:$0xff] %v12906_v23  ;;  %v12912_v35 = vpop.f32.mrb[157].mxu0  ;;  %v12914_v9 = vpop.f32.mrb[157].mxu1 }
 0x427   : > { %v12920_v43 = vpop.f32.mrb[158].mxu0  ;;  %v12922_v19 = vpop.f32.mrb[158].mxu1 }
 0x428   : > { %14958 = vst [vmem:[#allocation6_spill] sm:$0xff] %v12922_v19  ;;  %v12928_v23 = vpop.f32.mrb[159].mxu0  ;;  %v12930_v29 = vpop.f32.mrb[159].mxu1  ;;  %v14961_v19 = vmax.f32 %v12584_v45, %v12790_v62 }
 0x429   : > { %14959 = vst [vmem:[#allocation4_spill] sm:$0xff] %v12928_v23  ;;  %14960 = vst [vmem:[#allocation15_spill] sm:$0xff] %v12930_v29 }
 0x42a   : > { %7796 = vmatmul.mubr.msk.bf16.gmra.mrb[8].mxu0 %vm260_vm2, %v14953_v46  ;;  %7800 = vmatmul.mubr.msk.bf16.gmra.mrb[8].mxu1 %vm260_vm2, %v14953_v46  ;;  %v14963_v46 = vmax.f32 %v12594_v53, %v12798_v3  ;;  %v14967_v3 = vmax.f32 %v12614_v58, %v12814_v36  ;;  %v14970_v58 = vmax.f32 %v12643_v25, %v12830_v5 }
 0x42b   : > { %6935 = vmatprep.mubr.bf16.mxu0 %v14203_v14  ;;  %7008 = vmatprep.mubr.bf16.mxu1 %v14203_v14  ;;  %v14964_v14 = vmax.f32 %v12599_v0, %v12800_v50  ;;  %v14974_v5 = vmax.f32 %v12668_v8, %v12846_v52  ;;  %v14978_v52 = vmax.f32 %v12700_v37, %v12868_v15  ;;  %v14982_v15 = vld [vmem:[#allocation11_spill] sm:$0xff] }
 0x42d   : > { %v5647_v4 = vpop.f32.mrb[160].mxu0  ;;  %v5720_v40 = vpop.f32.mrb[160].mxu1 }
 0x42e   : > { %v12945_v21 = vmax.f32 %v14961_v19, %v5647_v4  ;;  %v12950_v49 = vmax.f32 %v14962_v41, %v5720_v40  ;;  %v5649_v29 = vpop.f32.mrb[161].mxu0  ;;  %v5722_v12 = vpop.f32.mrb[161].mxu1  ;;  %v14965_v19 = vmax.f32 %v12604_v20, %v12806_v16  ;;  %v14969_v16 = vmax.f32 %v12638_v48, %v12828_v18 }
 0x42f   : > { %v12955_v23 = vmax.f32 %v14963_v46, %v5649_v29  ;;  %v12960_v51 = vmax.f32 %v14964_v14, %v5722_v12  ;;  %v5651_v45 = vpop.f32.mrb[162].mxu0  ;;  %v5724_v62 = vpop.f32.mrb[162].mxu1  ;;  %v14968_v12 = vmax.f32 %v12619_v42, %v12816_v22  ;;  %v14971_v22 = vmax.f32 %v12651_v24, %v12836_v61 }
 0x430   : > { %v12965_v13 = vmax.f32 %v14965_v19, %v5651_v45  ;;  %v12970_v41 = vmax.f32 %v14966_v27, %v5724_v62  ;;  %v5653_v53 = vpop.f32.mrb[163].mxu0  ;;  %v5726_v29 = vpop.f32.mrb[163].mxu1  ;;  %v14973_v14 = vmax.f32 %v12663_v34, %v12844_v26  ;;  %v14975_v62 = vmax.f32 %v12673_v57, %v12852_v59 }
 0x431   : > { %v12975_v0 = vmax.f32 %v14967_v3, %v5653_v53  ;;  %v12980_v50 = vmax.f32 %v14968_v12, %v5726_v29  ;;  %v14977_v27 = vmax.f32 %v12695_v17, %v12866_v60  ;;  %v14979_v29 = vmax.f32 %v12711_v54, %v12874_v33 }
 0x432   : > { %7797 = vmatmul.mubr.msk.bf16.gmra.mrb[12].mxu0 %vm260_vm2, %v12264_v56  ;;  %7801 = vmatmul.mubr.msk.bf16.gmra.mrb[12].mxu1 %vm260_vm2, %v12264_v56  ;;  %v14972_v56 = vmax.f32 %v12656_v2, %v12838_v55  ;;  %v14976_v55 = vmax.f32 %v12678_v47, %v12854_v31  ;;  %v14980_v31 = vmax.f32 %v12716_v7, %v12876_v6  ;;  %v14987_v6 = vld [vmem:[#allocation9_spill] sm:$0xff] }
 0x433   : > { %v14981_v12 = vmax.f32 %v12721_v11, %v12882_v1 }
 0x435   : > { %v5657_v20 = vpop.f32.mrb[164].mxu0  ;;  %v5730_v39 = vpop.f32.mrb[164].mxu1 }
 0x436   : > { %v12989_v44 = vmax.f32 %v14969_v16, %v5657_v20  ;;  %v12994_v4 = vmax.f32 %v14970_v58, %v5730_v39  ;;  %v5659_v42 = vpop.f32.mrb[165].mxu0  ;;  %v5732_v36 = vpop.f32.mrb[165].mxu1  ;;  %v14983_v20 = vmax.f32 %v12726_v38, %v14982_v15  ;;  %v14984_v16 = vld [vmem:[#allocation13_spill] sm:$0xff]  ;;  %v14985_v58 = vld [vmem:[#allocation12_spill] sm:$0xff] }
 0x437   : > { %v12999_v40 = vmax.f32 %v14971_v22, %v5659_v42  ;;  %v13004_v46 = vmax.f32 %v14972_v56, %v5732_v36  ;;  %v5661_v48 = vpop.f32.mrb[166].mxu0  ;;  %v5734_v18 = vpop.f32.mrb[166].mxu1  ;;  %v14986_v42 = vmax.f32 %v14984_v16, %v14985_v58  ;;  %v14988_v36 = vld [vmem:[#allocation10_spill] sm:$0xff] }
 0x438   : > { %v13009_v25 = vmax.f32 %v14973_v14, %v5661_v48  ;;  %v13014_v45 = vmax.f32 %v14974_v5, %v5734_v18  ;;  %v5663_v24 = vpop.f32.mrb[167].mxu0  ;;  %v5736_v61 = vpop.f32.mrb[167].mxu1  ;;  %v14989_v22 = vmax.f32 %v14987_v6, %v14988_v36  ;;  %v14991_v48 = vmax.f32 %v12747_v30, %v12904_v32  ;;  %v14992_v18 = vld [vmem:[#allocation14_spill] sm:$0xff]  ;;  %v14993_v14 = vld [vmem:[#allocation5_spill] sm:$0xff] }
 0x439   : > { %v13019_v2 = vmax.f32 %v14975_v62, %v5663_v24  ;;  %v13024_v19 = vmax.f32 %v14976_v55, %v5736_v61  ;;  %v14994_v5 = vmax.f32 %v14992_v18, %v14993_v14  ;;  %v14996_v55 = vmax.f32 %v12757_v10, %v12912_v35 }
 0x43d   : > { %v5667_v34 = vpop.f32.mrb[168].mxu0  ;;  %v5740_v26 = vpop.f32.mrb[168].mxu1 }
 0x43e   : > { %v13029_v8 = vmax.f32 %v14977_v27, %v5667_v34  ;;  %v13034_v53 = vmax.f32 %v14978_v52, %v5740_v26  ;;  %v5669_v57 = vpop.f32.mrb[169].mxu0  ;;  %v5742_v59 = vpop.f32.mrb[169].mxu1  ;;  %v14998_v26 = vmax.f32 %v12762_v28, %v12914_v9  ;;  %v15000_v52 = vmax.f32 %v12767_v63, %v12920_v43  ;;  %v15008_v28 = vld [vmem:[#allocation8_spill] sm:$0xff] }
 0x43f   : > { %v13039_v47 = vmax.f32 %v14979_v29, %v5669_v57  ;;  %v13044_v3 = vmax.f32 %v14980_v31, %v5742_v59  ;;  %v5671_v17 = vpop.f32.mrb[170].mxu0  ;;  %v5744_v60 = vpop.f32.mrb[170].mxu1  ;;  %v15001_v59 = vld [vmem:[#allocation16_spill] sm:$0xff]  ;;  %v15002_v29 = vld [vmem:[#allocation6_spill] sm:$0xff] }
 0x440   : > { %v13049_v37 = vmax.f32 %v14981_v12, %v5671_v17  ;;  %v13054_v39 = vmax.f32 %v14983_v20, %v5744_v60  ;;  %v5673_v54 = vpop.f32.mrb[171].mxu0  ;;  %v5746_v33 = vpop.f32.mrb[171].mxu1  ;;  %v15003_v31 = vmax.f32 %v15001_v59, %v15002_v29  ;;  %v15005_v60 = vld [vmem:[#allocation17_spill] sm:$0xff]  ;;  %v15006_v12 = vld [vmem:[#allocation4_spill] sm:$0xff]  ;;  %v15009_v20 = vld [vmem:[#allocation15_spill] sm:$0xff] }
 0x441   : > { %v13059_v7 = vmax.f32 %v14986_v42, %v5673_v54  ;;  %v13064_v56 = vmax.f32 %v14989_v22, %v5746_v33  ;;  %v15007_v15 = vmax.f32 %v15005_v60, %v15006_v12  ;;  %v15010_v54 = vmax.f32 %v15008_v28, %v15009_v20 }
 0x443   : > { %14990 = vst [vmem:[#allocation2_spill] sm:$0xff] %v13064_v56 }
 0x445   : > { %v5677_v11 = vpop.f32.mrb[172].mxu0  ;;  %v5750_v1 = vpop.f32.mrb[172].mxu1 }
 0x446   : > { %v13069_v38 = vmax.f32 %v14991_v48, %v5677_v11  ;;  %v13074_v24 = vmax.f32 %v14994_v5, %v5750_v1  ;;  %v5679_v61 = vpop.f32.mrb[173].mxu0  ;;  %v5752_v62 = vpop.f32.mrb[173].mxu1 }
 0x447   : > { %v13079_v34 = vmax.f32 %v14996_v55, %v5679_v61  ;;  %v13084_v27 = vmax.f32 %v14998_v26, %v5752_v62  ;;  %v5681_v30 = vpop.f32.mrb[174].mxu0  ;;  %v5754_v32 = vpop.f32.mrb[174].mxu1 }
 0x448   : > { %14995 = vst [vmem:[#allocation3_spill] sm:$0xff] %v13074_v24  ;;  %v13089_v57 = vmax.f32 %v15000_v52, %v5681_v30  ;;  %v13094_v17 = vmax.f32 %v15003_v31, %v5754_v32  ;;  %v5683_v10 = vpop.f32.mrb[175].mxu0  ;;  %v5756_v35 = vpop.f32.mrb[175].mxu1 }
 0x449   : > { %14997 = vst [vmem:[#allocation7_spill] sm:$0xff] %v13079_v34  ;;  %14999 = vst [vmem:[#allocation19_spill] sm:$0xff] %v13084_v27  ;;  %v13099_v9 = vmax.f32 %v15007_v15, %v5683_v10  ;;  %v13104_v33 = vmax.f32 %v15010_v54, %v5756_v35 }
 0x44a   : > { %15004 = vst [vmem:[#allocation18_spill] sm:$0xff] %v13094_v17 }
 0x44d   : > { %v13106_v43 = vpop.f32.mrb[176].mxu0  ;;  %v13108_v63 = vpop.f32.mrb[176].mxu1 }
 0x44e   : > { %v13114_v42 = vpop.f32.mrb[177].mxu0  ;;  %v13116_v6 = vpop.f32.mrb[177].mxu1  ;;  %v15019_v12 = vmax.f32 %v12950_v49, %v13108_v63 }
 0x44f   : > { %v13122_v11 = vpop.f32.mrb[178].mxu0  ;;  %v13124_v1 = vpop.f32.mrb[178].mxu1  ;;  %v15020_v20 = vmax.f32 %v12955_v23, %v13114_v42  ;;  %v15021_v54 = vmax.f32 %v12960_v51, %v13116_v6 }
 0x450   : > { %v13130_v14 = vpop.f32.mrb[179].mxu0  ;;  %v13132_v5 = vpop.f32.mrb[179].mxu1 }
 0x455   : > { %v13138_v55 = vpop.f32.mrb[180].mxu0  ;;  %v13140_v26 = vpop.f32.mrb[180].mxu1 }
 0x456   : > { %v13146_v52 = vpop.f32.mrb[181].mxu0  ;;  %v13148_v59 = vpop.f32.mrb[181].mxu1 }
 0x457   : > { %v13154_v10 = vpop.f32.mrb[182].mxu0  ;;  %v13156_v35 = vpop.f32.mrb[182].mxu1 }
 0x458   : > { %v13162_v15 = vpop.f32.mrb[183].mxu0  ;;  %v13164_v28 = vpop.f32.mrb[183].mxu1 }
 0x45d   : > { %v13170_v31 = vpop.f32.mrb[184].mxu0  ;;  %v13172_v29 = vpop.f32.mrb[184].mxu1 }
 0x45e   : > { %v13178_v32 = vpop.f32.mrb[185].mxu0  ;;  %v13180_v30 = vpop.f32.mrb[185].mxu1 }
 0x45f   : > { %v13186_v62 = vpop.f32.mrb[186].mxu0  ;;  %v13188_v61 = vpop.f32.mrb[186].mxu1 }
 0x460   : > { %v13194_v18 = vpop.f32.mrb[187].mxu0  ;;  %v13196_v48 = vpop.f32.mrb[187].mxu1 }
 0x461   : > { %15011 = vst [vmem:[#allocation11_spill] sm:$0xff] %v13196_v48 }
 0x465   : > { %v13202_v22 = vpop.f32.mrb[188].mxu0  ;;  %v13204_v36 = vpop.f32.mrb[188].mxu1 }
 0x466   : > { %15012 = vst [vmem:[#allocation13_spill] sm:$0xff] %v13204_v36  ;;  %v13210_v58 = vpop.f32.mrb[189].mxu0  ;;  %v13212_v16 = vpop.f32.mrb[189].mxu1 }
 0x467   : > { %15013 = vst [vmem:[#allocation12_spill] sm:$0xff] %v13210_v58  ;;  %15014 = vst [vmem:[#allocation9_spill] sm:$0xff] %v13212_v16  ;;  %v13218_v48 = vpop.f32.mrb[190].mxu0  ;;  %v13220_v56 = vpop.f32.mrb[190].mxu1  ;;  %v15018_v58 = vmax.f32 %v12945_v21, %v13106_v43 }
 0x468   : > { %15015 = vst [vmem:[#allocation10_spill] sm:$0xff] %v13220_v56  ;;  %v13226_v36 = vpop.f32.mrb[191].mxu0  ;;  %v13228_v24 = vpop.f32.mrb[191].mxu1 }
 0x469   : > { %15016 = vst [vmem:[#allocation14_spill] sm:$0xff] %v13226_v36  ;;  %15017 = vst [vmem:[#allocation5_spill] sm:$0xff] %v13228_v24 }
 0x46d   : > { %v6131_v16 = vpop.f32.mrb[192].mxu0  ;;  %v6204_v27 = vpop.f32.mrb[192].mxu1 }
 0x46e   : > { %v13237_v34 = vmax.f32 %v15018_v58, %v6131_v16  ;;  %v13242_v60 = vmax.f32 %v15019_v12, %v6204_v27  ;;  %v6133_v56 = vpop.f32.mrb[193].mxu0  ;;  %v6206_v17 = vpop.f32.mrb[193].mxu1  ;;  %v15022_v16 = vmax.f32 %v12965_v13, %v13122_v11  ;;  %v15023_v27 = vmax.f32 %v12970_v41, %v13124_v1 }
 0x46f   : > { %v13247_v36 = vmax.f32 %v15020_v20, %v6133_v56  ;;  %v13252_v24 = vmax.f32 %v15021_v54, %v6206_v17  ;;  %v6135_v21 = vpop.f32.mrb[194].mxu0  ;;  %v6208_v43 = vpop.f32.mrb[194].mxu1  ;;  %v15024_v58 = vmax.f32 %v12975_v0, %v13130_v14  ;;  %v15025_v17 = vmax.f32 %v12980_v50, %v13132_v5 }
 0x470   : > { %v13257_v49 = vmax.f32 %v15022_v16, %v6135_v21  ;;  %v13262_v63 = vmax.f32 %v15023_v27, %v6208_v43  ;;  %v6137_v23 = vpop.f32.mrb[195].mxu0  ;;  %v6210_v56 = vpop.f32.mrb[195].mxu1  ;;  %v15026_v11 = vmax.f32 %v12989_v44, %v13138_v55  ;;  %v15027_v1 = vmax.f32 %v12994_v4, %v13140_v26 }
 0x471   : > { %v13267_v51 = vmax.f32 %v15024_v58, %v6137_v23  ;;  %v13272_v42 = vmax.f32 %v15025_v17, %v6210_v56  ;;  %v15028_v20 = vmax.f32 %v12999_v40, %v13146_v52  ;;  %v15029_v5 = vmax.f32 %v13004_v46, %v13148_v59 }
 0x472   : > { %v15030_v21 = vmax.f32 %v13009_v25, %v13154_v10  ;;  %v15031_v26 = vmax.f32 %v13014_v45, %v13156_v35  ;;  %v15032_v16 = vmax.f32 %v13019_v2, %v13162_v15  ;;  %v15033_v59 = vmax.f32 %v13024_v19, %v13164_v28 }
 0x473   : > { %v15034_v23 = vmax.f32 %v13029_v8, %v13170_v31  ;;  %v15035_v35 = vmax.f32 %v13034_v53, %v13172_v29  ;;  %v15036_v58 = vmax.f32 %v13039_v47, %v13178_v32  ;;  %v15037_v28 = vmax.f32 %v13044_v3, %v13180_v30  ;;  %v15041_v30 = vld [vmem:[#allocation2_spill] sm:$0xff] }
 0x474   : > { %v15039_v29 = vmax.f32 %v13054_v39, %v13188_v61  ;;  %v15046_v61 = vld [vmem:[#allocation3_spill] sm:$0xff] }
 0x475   : > { %v6141_v13 = vpop.f32.mrb[196].mxu0  ;;  %v6214_v6 = vpop.f32.mrb[196].mxu1 }
 0x476   : > { %v13277_v41 = vmax.f32 %v15026_v11, %v6141_v13  ;;  %v13282_v12 = vmax.f32 %v15027_v1, %v6214_v6  ;;  %v6143_v0 = vpop.f32.mrb[197].mxu0  ;;  %v6216_v14 = vpop.f32.mrb[197].mxu1  ;;  %v15038_v13 = vmax.f32 %v13049_v37, %v13186_v62  ;;  %v15040_v11 = vmax.f32 %v13059_v7, %v13194_v18  ;;  %v15042_v1 = vld [vmem:[#allocation11_spill] sm:$0xff] }
 0x477   : > { %v13287_v50 = vmax.f32 %v15028_v20, %v6143_v0  ;;  %v13292_v54 = vmax.f32 %v15029_v5, %v6216_v14  ;;  %v6145_v44 = vpop.f32.mrb[198].mxu0  ;;  %v6218_v55 = vpop.f32.mrb[198].mxu1  ;;  %v15043_v0 = vmax.f32 %v15041_v30, %v15042_v1  ;;  %v15045_v20 = vmax.f32 %v13069_v38, %v13202_v22  ;;  %v15047_v5 = vld [vmem:[#allocation13_spill] sm:$0xff] }
 0x478   : > { %v13297_v4 = vmax.f32 %v15030_v21, %v6145_v44  ;;  %v13302_v43 = vmax.f32 %v15031_v26, %v6218_v55  ;;  %v6147_v40 = vpop.f32.mrb[199].mxu0  ;;  %v6220_v52 = vpop.f32.mrb[199].mxu1  ;;  %v15048_v44 = vmax.f32 %v15046_v61, %v15047_v5  ;;  %v15050_v21 = vld [vmem:[#allocation7_spill] sm:$0xff]  ;;  %v15051_v26 = vld [vmem:[#allocation12_spill] sm:$0xff] }
 0x479   : > { %v13307_v46 = vmax.f32 %v15032_v16, %v6147_v40  ;;  %v13312_v27 = vmax.f32 %v15033_v59, %v6220_v52  ;;  %v15052_v40 = vmax.f32 %v15050_v21, %v15051_v26  ;;  %v15054_v16 = vld [vmem:[#allocation19_spill] sm:$0xff]  ;;  %v15055_v59 = vld [vmem:[#allocation9_spill] sm:$0xff] }
 0x47d   : > { %v6151_v25 = vpop.f32.mrb[200].mxu0  ;;  %v6224_v10 = vpop.f32.mrb[200].mxu1 }
 0x47e   : > { %v13317_v45 = vmax.f32 %v15034_v23, %v6151_v25  ;;  %v13322_v56 = vmax.f32 %v15035_v35, %v6224_v10  ;;  %v6153_v2 = vpop.f32.mrb[201].mxu0  ;;  %v6226_v15 = vpop.f32.mrb[201].mxu1  ;;  %v15056_v25 = vmax.f32 %v15054_v16, %v15055_v59  ;;  %v15058_v23 = vmax.f32 %v13089_v57, %v13218_v48 }
 0x47f   : > { %v13327_v19 = vmax.f32 %v15036_v58, %v6153_v2  ;;  %v13332_v17 = vmax.f32 %v15037_v28, %v6226_v15  ;;  %v6155_v8 = vpop.f32.mrb[202].mxu0  ;;  %v6228_v31 = vpop.f32.mrb[202].mxu1  ;;  %v15059_v2 = vld [vmem:[#allocation18_spill] sm:$0xff] }
 0x480   : > { %v13337_v53 = vmax.f32 %v15038_v13, %v6155_v8  ;;  %v13342_v6 = vmax.f32 %v15039_v29, %v6228_v31  ;;  %v6157_v47 = vpop.f32.mrb[203].mxu0  ;;  %v6230_v32 = vpop.f32.mrb[203].mxu1  ;;  %v15060_v15 = vld [vmem:[#allocation10_spill] sm:$0xff] }
 0x481   : > { %v13347_v3 = vmax.f32 %v15040_v11, %v6157_v47  ;;  %v13352_v14 = vmax.f32 %v15043_v0, %v6230_v32  ;;  %v15061_v58 = vmax.f32 %v15059_v2, %v15060_v15  ;;  %v15063_v13 = vld [vmem:[#allocation14_spill] sm:$0xff]  ;;  %v15065_v32 = vld [vmem:[#allocation5_spill] sm:$0xff] }
 0x482   : > { %v15064_v29 = vmax.f32 %v13099_v9, %v15063_v13  ;;  %v15066_v11 = vmax.f32 %v13104_v33, %v15065_v32 }
 0x483   : > { %15044 = vst [vmem:[#allocation16_spill] sm:$0xff] %v13352_v14 }
 0x485   : > { %v6161_v37 = vpop.f32.mrb[204].mxu0  ;;  %v6234_v62 = vpop.f32.mrb[204].mxu1 }
 0x486   : > { %v13357_v39 = vmax.f32 %v15045_v20, %v6161_v37  ;;  %v13362_v55 = vmax.f32 %v15048_v44, %v6234_v62  ;;  %v6163_v7 = vpop.f32.mrb[205].mxu0  ;;  %v6236_v18 = vpop.f32.mrb[205].mxu1 }
 0x487   : > { %v13367_v52 = vmax.f32 %v15052_v40, %v6163_v7  ;;  %v13372_v10 = vmax.f32 %v15056_v25, %v6236_v18  ;;  %v6165_v38 = vpop.f32.mrb[206].mxu0  ;;  %v6238_v22 = vpop.f32.mrb[206].mxu1 }
 0x488   : > { %15049 = vst [vmem:[#allocation6_spill] sm:$0xff] %v13362_v55  ;;  %v13377_v35 = vmax.f32 %v15058_v23, %v6165_v38  ;;  %v13382_v28 = vmax.f32 %v15061_v58, %v6238_v22  ;;  %v6167_v8 = vpop.f32.mrb[207].mxu0  ;;  %v6240_v31 = vpop.f32.mrb[207].mxu1 }
 0x489   : > { %15053 = vst [vmem:[#allocation17_spill] sm:$0xff] %v13367_v52  ;;  %15057 = vst [vmem:[#allocation4_spill] sm:$0xff] %v13372_v10  ;;  %v13387_v47 = vmax.f32 %v15064_v29, %v6167_v8  ;;  %v13392_v30 = vmax.f32 %v15066_v11, %v6240_v31 }
 0x48a   : > { %15062 = vst [vmem:[#allocation8_spill] sm:$0xff] %v13382_v28 }
 0x48d   : > { %v13394_v57 = vpop.f32.mrb[208].mxu0  ;;  %v13396_v48 = vpop.f32.mrb[208].mxu1 }
 0x48e   : > { %v13402_v37 = vpop.f32.mrb[209].mxu0  ;;  %v13404_v9 = vpop.f32.mrb[209].mxu1  ;;  %v15075_v31 = vmax.f32 %v13242_v60, %v13396_v48 }
 0x48f   : > { %v13410_v20 = vpop.f32.mrb[210].mxu0  ;;  %v13412_v61 = vpop.f32.mrb[210].mxu1  ;;  %v15076_v32 = vmax.f32 %v13247_v36, %v13402_v37  ;;  %v15077_v11 = vmax.f32 %v13252_v24, %v13404_v9 }
 0x490   : > { %v13418_v7 = vpop.f32.mrb[211].mxu0  ;;  %v13420_v18 = vpop.f32.mrb[211].mxu1 }
 0x495   : > { %v13426_v40 = vpop.f32.mrb[212].mxu0  ;;  %v13428_v16 = vpop.f32.mrb[212].mxu1 }
 0x496   : > { %v13434_v38 = vpop.f32.mrb[213].mxu0  ;;  %v13436_v22 = vpop.f32.mrb[213].mxu1 }
 0x497   : > { %v13442_v15 = vpop.f32.mrb[214].mxu0  ;;  %v13444_v58 = vpop.f32.mrb[214].mxu1 }
 0x498   : > { %v13450_v13 = vpop.f32.mrb[215].mxu0  ;;  %v13452_v29 = vpop.f32.mrb[215].mxu1 }
 0x49d   : > { %v13458_v2 = vpop.f32.mrb[216].mxu0  ;;  %v13460_v23 = vpop.f32.mrb[216].mxu1 }
 0x49e   : > { %v13466_v25 = vpop.f32.mrb[217].mxu0  ;;  %v13468_v59 = vpop.f32.mrb[217].mxu1 }
 0x49f   : > { %v13474_v26 = vpop.f32.mrb[218].mxu0  ;;  %v13476_v21 = vpop.f32.mrb[218].mxu1 }
 0x4a0   : > { %v13482_v44 = vpop.f32.mrb[219].mxu0  ;;  %v13484_v5 = vpop.f32.mrb[219].mxu1 }
 0x4a1   : > { %15067 = vst [vmem:[#allocation15_spill] sm:$0xff] %v13484_v5 }
 0x4a5   : > { %v13490_v33 = vpop.f32.mrb[220].mxu0  ;;  %v13492_v62 = vpop.f32.mrb[220].mxu1 }
 0x4a6   : > { %15068 = vst [vmem:[#allocation2_spill] sm:$0xff] %v13492_v62  ;;  %v13498_v0 = vpop.f32.mrb[221].mxu0  ;;  %v13500_v1 = vpop.f32.mrb[221].mxu1 }
 0x4a7   : > { %15069 = vst [vmem:[#allocation11_spill] sm:$0xff] %v13498_v0  ;;  %15070 = vst [vmem:[#allocation3_spill] sm:$0xff] %v13500_v1  ;;  %v13506_v5 = vpop.f32.mrb[222].mxu0  ;;  %v13508_v14 = vpop.f32.mrb[222].mxu1  ;;  %v15074_v0 = vmax.f32 %v13237_v34, %v13394_v57 }
 0x4a8   : > { %15071 = vst [vmem:[#allocation13_spill] sm:$0xff] %v13508_v14  ;;  %v13514_v62 = vpop.f32.mrb[223].mxu0  ;;  %v13516_v55 = vpop.f32.mrb[223].mxu1 }
 0x4a9   : > { %15072 = vst [vmem:[#allocation7_spill] sm:$0xff] %v13514_v62  ;;  %15073 = vst [vmem:[#allocation12_spill] sm:$0xff] %v13516_v55 }
 0x4ad   : > { %v6615_v1 = vpop.f32.mrb[224].mxu0  ;;  %v6688_v10 = vpop.f32.mrb[224].mxu1 }
 0x4ae   : > { %v13525_v52 = vmax.f32 %v15074_v0, %v6615_v1  ;;  %v13530_v8 = vmax.f32 %v15075_v31, %v6688_v10  ;;  %v6617_v14 = vpop.f32.mrb[225].mxu0  ;;  %v6690_v28 = vpop.f32.mrb[225].mxu1  ;;  %v15078_v1 = vmax.f32 %v13257_v49, %v13410_v20  ;;  %v15079_v10 = vmax.f32 %v13262_v63, %v13412_v61 }
 0x4af   : > { %v13535_v62 = vmax.f32 %v15076_v32, %v6617_v14  ;;  %v13540_v55 = vmax.f32 %v15077_v11, %v6690_v28  ;;  %v6619_v34 = vpop.f32.mrb[226].mxu0  ;;  %v6692_v57 = vpop.f32.mrb[226].mxu1  ;;  %v15080_v0 = vmax.f32 %v13267_v51, %v13418_v7  ;;  %v15081_v28 = vmax.f32 %v13272_v42, %v13420_v18 }
 0x4b0   : > { %v13545_v60 = vmax.f32 %v15078_v1, %v6619_v34  ;;  %v13550_v48 = vmax.f32 %v15079_v10, %v6692_v57  ;;  %v6621_v36 = vpop.f32.mrb[227].mxu0  ;;  %v6694_v14 = vpop.f32.mrb[227].mxu1  ;;  %v15082_v20 = vmax.f32 %v13277_v41, %v13426_v40  ;;  %v15083_v61 = vmax.f32 %v13282_v12, %v13428_v16 }
 0x4b1   : > { %v13555_v24 = vmax.f32 %v15080_v0, %v6621_v36  ;;  %v13560_v37 = vmax.f32 %v15081_v28, %v6694_v14  ;;  %v15084_v32 = vmax.f32 %v13287_v50, %v13434_v38  ;;  %v15085_v18 = vmax.f32 %v13292_v54, %v13436_v22 }
 0x4b2   : > { %v15086_v34 = vmax.f32 %v13297_v4, %v13442_v15  ;;  %v15087_v16 = vmax.f32 %v13302_v43, %v13444_v58  ;;  %v15088_v1 = vmax.f32 %v13307_v46, %v13450_v13  ;;  %v15089_v22 = vmax.f32 %v13312_v27, %v13452_v29 }
 0x4b3   : > { %v15090_v36 = vmax.f32 %v13317_v45, %v13458_v2  ;;  %v15091_v58 = vmax.f32 %v13322_v56, %v13460_v23  ;;  %v15092_v0 = vmax.f32 %v13327_v19, %v13466_v25  ;;  %v15093_v29 = vmax.f32 %v13332_v17, %v13468_v59  ;;  %v15097_v59 = vld [vmem:[#allocation16_spill] sm:$0xff] }
 0x4b4   : > { %v15095_v23 = vmax.f32 %v13342_v6, %v13476_v21  ;;  %v15102_v21 = vld [vmem:[#allocation6_spill] sm:$0xff] }
 0x4b5   : > { %v6625_v49 = vpop.f32.mrb[228].mxu0  ;;  %v6698_v9 = vpop.f32.mrb[228].mxu1 }
 0x4b6   : > { %v13565_v63 = vmax.f32 %v15082_v20, %v6625_v49  ;;  %v13570_v31 = vmax.f32 %v15083_v61, %v6698_v9  ;;  %v6627_v51 = vpop.f32.mrb[229].mxu0  ;;  %v6700_v7 = vpop.f32.mrb[229].mxu1  ;;  %v15094_v49 = vmax.f32 %v13337_v53, %v13474_v26  ;;  %v15096_v20 = vmax.f32 %v13347_v3, %v13482_v44  ;;  %v15098_v61 = vld [vmem:[#allocation15_spill] sm:$0xff] }
 0x4b7   : > { %v13575_v42 = vmax.f32 %v15084_v32, %v6627_v51  ;;  %v13580_v11 = vmax.f32 %v15085_v18, %v6700_v7  ;;  %v6629_v41 = vpop.f32.mrb[230].mxu0  ;;  %v6702_v40 = vpop.f32.mrb[230].mxu1  ;;  %v15099_v51 = vmax.f32 %v15097_v59, %v15098_v61  ;;  %v15101_v32 = vmax.f32 %v13357_v39, %v13490_v33  ;;  %v15103_v18 = vld [vmem:[#allocation2_spill] sm:$0xff] }
 0x4b8   : > { %v13585_v12 = vmax.f32 %v15086_v34, %v6629_v41  ;;  %v13590_v57 = vmax.f32 %v15087_v16, %v6702_v40  ;;  %v6631_v50 = vpop.f32.mrb[231].mxu0  ;;  %v6704_v38 = vpop.f32.mrb[231].mxu1  ;;  %v15104_v41 = vmax.f32 %v15102_v21, %v15103_v18  ;;  %v15106_v34 = vld [vmem:[#allocation17_spill] sm:$0xff]  ;;  %v15107_v16 = vld [vmem:[#allocation11_spill] sm:$0xff] }
 0x4b9   : > { %v13595_v54 = vmax.f32 %v15088_v1, %v6631_v50  ;;  %v13600_v10 = vmax.f32 %v15089_v22, %v6704_v38  ;;  %v15108_v50 = vmax.f32 %v15106_v34, %v15107_v16  ;;  %v15110_v1 = vld [vmem:[#allocation4_spill] sm:$0xff]  ;;  %v15111_v22 = vld [vmem:[#allocation3_spill] sm:$0xff] }
 0x4bd   : > { %v6635_v4 = vpop.f32.mrb[232].mxu0  ;;  %v6708_v15 = vpop.f32.mrb[232].mxu1 }
 0x4be   : > { %v13605_v43 = vmax.f32 %v15090_v36, %v6635_v4  ;;  %v13610_v14 = vmax.f32 %v15091_v58, %v6708_v15  ;;  %v6637_v46 = vpop.f32.mrb[233].mxu0  ;;  %v6710_v13 = vpop.f32.mrb[233].mxu1  ;;  %v15112_v4 = vmax.f32 %v15110_v1, %v15111_v22  ;;  %v15114_v36 = vmax.f32 %v13377_v35, %v13506_v5 }
 0x4bf   : > { %v13615_v27 = vmax.f32 %v15092_v0, %v6637_v46  ;;  %v13620_v28 = vmax.f32 %v15093_v29, %v6710_v13  ;;  %v6639_v45 = vpop.f32.mrb[234].mxu0  ;;  %v6712_v2 = vpop.f32.mrb[234].mxu1  ;;  %v15116_v46 = vld [vmem:[#allocation8_spill] sm:$0xff]  ;;  %v15117_v13 = vld [vmem:[#allocation13_spill] sm:$0xff] }
 0x4c0   : > { %v13625_v56 = vmax.f32 %v15094_v49, %v6639_v45  ;;  %v13630_v9 = vmax.f32 %v15095_v23, %v6712_v2  ;;  %v6641_v19 = vpop.f32.mrb[235].mxu0  ;;  %v6714_v25 = vpop.f32.mrb[235].mxu1  ;;  %v15118_v0 = vmax.f32 %v15116_v46, %v15117_v13  ;;  %v15120_v49 = vld [vmem:[#allocation7_spill] sm:$0xff] }
 0x4c1   : > { %v13635_v17 = vmax.f32 %v15096_v20, %v6641_v19  ;;  %v13640_v7 = vmax.f32 %v15099_v51, %v6714_v25  ;;  %v15121_v23 = vmax.f32 %v13387_v47, %v15120_v49  ;;  %v15123_v25 = vld [vmem:[#allocation12_spill] sm:$0xff] }
 0x4c2   : > { %v15124_v20 = vmax.f32 %v13392_v30, %v15123_v25  ;;  %v7126_v30 = vpop.permute.xlu0 %7125 }
 0x4c3   : > { %15100 = vst [vmem:[#allocation19_spill] sm:$0xff] %v13640_v7 }
 0x4c5   : > { %v6645_v53 = vpop.f32.mrb[236].mxu0  ;;  %v6718_v26 = vpop.f32.mrb[236].mxu1 }
 0x4c6   : > { %v13645_v6 = vmax.f32 %v15101_v32, %v6645_v53  ;;  %v13650_v40 = vmax.f32 %v15104_v41, %v6718_v26  ;;  %v6647_v3 = vpop.f32.mrb[237].mxu0  ;;  %v6720_v44 = vpop.f32.mrb[237].mxu1 }
 0x4c7   : > { %v13655_v38 = vmax.f32 %v15108_v50, %v6647_v3  ;;  %v13660_v15 = vmax.f32 %v15112_v4, %v6720_v44  ;;  %v6649_v39 = vpop.f32.mrb[238].mxu0  ;;  %v6722_v33 = vpop.f32.mrb[238].mxu1 }
 0x4c8   : > { %15105 = vst [vmem:[#allocation9_spill] sm:$0xff] %v13650_v40  ;;  %v13665_v58 = vmax.f32 %v15114_v36, %v6649_v39  ;;  %v13670_v29 = vmax.f32 %v15118_v0, %v6722_v33  ;;  %v6651_v45 = vpop.f32.mrb[239].mxu0  ;;  %v6724_v2 = vpop.f32.mrb[239].mxu1 }
 0x4c9   : > { %15109 = vst [vmem:[#allocation18_spill] sm:$0xff] %v13655_v38  ;;  %15113 = vst [vmem:[#allocation10_spill] sm:$0xff] %v13660_v15  ;;  %v13675_v19 = vmax.f32 %v15121_v23, %v6651_v45  ;;  %v13680_v59 = vmax.f32 %v15124_v20, %v6724_v2 }
 0x4ca   : > { %15115 = vst [vmem:[#allocation14_spill] sm:$0xff] %v13665_v58  ;;  %15119 = vst [vmem:[#allocation5_spill] sm:$0xff] %v13670_v29 }
 0x4cb   : > { %15122 = vst [vmem:[#allocation16_spill] sm:$0xff] %v13675_v19  ;;  %15125 = vst [vmem:[#allocation15_spill] sm:$0xff] %v13680_v59 }
 0x4cd   : > { %v13682_v35 = vpop.f32.mrb[240].mxu0  ;;  %v13684_v5 = vpop.f32.mrb[240].mxu1 }
 0x4ce   : > { %v13690_v53 = vpop.f32.mrb[241].mxu0  ;;  %v13692_v47 = vpop.f32.mrb[241].mxu1  ;;  %v15136_v45 = vmax.f32 %v13525_v52, %v13682_v35  ;;  %v15137_v2 = vmax.f32 %v13530_v8, %v13684_v5 }
 0x4cf   : > { %v13698_v32 = vpop.f32.mrb[242].mxu0  ;;  %v13700_v21 = vpop.f32.mrb[242].mxu1  ;;  %v15138_v25 = vmax.f32 %v13535_v62, %v13690_v53  ;;  %v15139_v20 = vmax.f32 %v13540_v55, %v13692_v47 }
 0x4d0   : > { %v13706_v3 = vpop.f32.mrb[243].mxu0  ;;  %v13708_v44 = vpop.f32.mrb[243].mxu1  ;;  %v15140_v52 = vmax.f32 %v13545_v60, %v13698_v32  ;;  %v15141_v8 = vmax.f32 %v13550_v48, %v13700_v21 }
 0x4d1   : > { %v15142_v55 = vmax.f32 %v13555_v24, %v13706_v3 }
 0x4d5   : > { %v13714_v50 = vpop.f32.mrb[244].mxu0  ;;  %v13716_v1 = vpop.f32.mrb[244].mxu1 }
 0x4d6   : > { %v13722_v39 = vpop.f32.mrb[245].mxu0  ;;  %v13724_v33 = vpop.f32.mrb[245].mxu1 }
 0x4d7   : > { %v13730_v13 = vpop.f32.mrb[246].mxu0  ;;  %v13732_v0 = vpop.f32.mrb[246].mxu1 }
 0x4d8   : > { %v13738_v49 = vpop.f32.mrb[247].mxu0  ;;  %v13740_v23 = vpop.f32.mrb[247].mxu1 }
 0x4dd   : > { %v13746_v46 = vpop.f32.mrb[248].mxu0  ;;  %v13748_v36 = vpop.f32.mrb[248].mxu1 }
 0x4de   : > { %v13754_v4 = vpop.f32.mrb[249].mxu0  ;;  %v13756_v22 = vpop.f32.mrb[249].mxu1 }
 0x4df   : > { %v13762_v16 = vpop.f32.mrb[250].mxu0  ;;  %v13764_v34 = vpop.f32.mrb[250].mxu1 }
 0x4e0   : > { %15126 = vst [vmem:[#allocation6_spill] sm:$0xff] %v13764_v34  ;;  %v13770_v41 = vpop.f32.mrb[251].mxu0  ;;  %v13772_v18 = vpop.f32.mrb[251].mxu1 }
 0x4e1   : > { %15127 = vst [vmem:[#allocation2_spill] sm:$0xff] %v13772_v18 }
 0x4e5   : > { %v13778_v26 = vpop.f32.mrb[252].mxu0  ;;  %v13780_v51 = vpop.f32.mrb[252].mxu1 }
 0x4e6   : > { %15128 = vst [vmem:[#allocation17_spill] sm:$0xff] %v13778_v26  ;;  %15129 = vst [vmem:[#allocation11_spill] sm:$0xff] %v13780_v51  ;;  %v13786_v61 = vpop.f32.mrb[253].mxu0  ;;  %v13788_v34 = vpop.f32.mrb[253].mxu1 }
 0x4e7   : > { %15130 = vst [vmem:[#allocation4_spill] sm:$0xff] %v13786_v61  ;;  %15131 = vst [vmem:[#allocation3_spill] sm:$0xff] %v13788_v34  ;;  %v13794_v18 = vpop.f32.mrb[254].mxu0  ;;  %v13796_v7 = vpop.f32.mrb[254].mxu1 }
 0x4e8   : > { %15132 = vst [vmem:[#allocation8_spill] sm:$0xff] %v13794_v18  ;;  %15133 = vst [vmem:[#allocation13_spill] sm:$0xff] %v13796_v7  ;;  %v13802_v51 = vpop.f32.mrb[255].mxu0  ;;  %v13804_v40 = vpop.f32.mrb[255].mxu1 }
 0x4e9   : > { %15134 = vst [vmem:[#allocation7_spill] sm:$0xff] %v13802_v51  ;;  %15135 = vst [vmem:[#allocation12_spill] sm:$0xff] %v13804_v40  ;;  %v7131_v34 = vpop.permute.xlu0 %7130 }
 0x4ed   : > { %v6907_v15 = vpop.f32.mrb[0].mxu0  ;;  %v6980_v61 = vpop.f32.mrb[0].mxu1 }
 0x4ee   : > { %v7083_v18 = vmax.f32 %v15136_v45, %v6907_v15  ;;  %v7085_v7 = vmax.f32 %v15137_v2, %v6980_v61  ;;  %v6909_v29 = vpop.f32.mrb[1].mxu0  ;;  %v6982_v58 = vpop.f32.mrb[1].mxu1  ;;  %v15145_v2 = vmax.f32 %v13570_v31, %v13716_v1 }
 0x4ef   : > { %v7084_v51 = vmax.f32 %v15138_v25, %v6909_v29  ;;  %v7086_v40 = vmax.f32 %v15139_v20, %v6982_v58  ;;  %v6911_v59 = vpop.f32.mrb[2].mxu0  ;;  %v6984_v19 = vpop.f32.mrb[2].mxu1 }
 0x4f0   : > { %v7163_v38 = vadd.f32 %v7126_v30, %v7083_v18  ;;  %v7165_v26 = vadd.f32 %v7126_v30, %v7085_v7  ;;  %v7087_v15 = vmax.f32 %v15140_v52, %v6911_v59  ;;  %v7089_v35 = vmax.f32 %v15141_v8, %v6984_v19  ;;  %v6913_v5 = vpop.f32.mrb[3].mxu0  ;;  %v6986_v61 = vpop.f32.mrb[3].mxu1 }
 0x4f1   : > { %v7164_v62 = vadd.f32 %v7126_v30, %v7084_v51  ;;  %v7166_v29 = vadd.f32 %v7126_v30, %v7086_v40  ;;  %v7088_v58 = vmax.f32 %v15142_v55, %v6913_v5  ;;  %v15143_v7 = vmax.f32 %v13560_v37, %v13708_v44  ;;  %v7136_v45 = vpop.permute.xlu1 %7135 }
 0x4f2   : > { %v7195_v47 = vmax.f32 %v7163_v38, 0.0  ;;  %v7197_v60 = vmax.f32 %v7165_v26, 0.0  ;;  %v7167_v59 = vadd.f32 %v7131_v34, %v7087_v15  ;;  %v7169_v32 = vadd.f32 %v7131_v34, %v7089_v35 }
 0x4f3   : > { %v7090_v53 = vmax.f32 %v15143_v7, %v6986_v61  ;;  %v7196_v18 = vmax.f32 %v7164_v62, 0.0  ;;  %v7198_v48 = vmax.f32 %v7166_v29, 0.0  ;;  %v7168_v19 = vadd.f32 %v7131_v34, %v7088_v58 }
 0x4f4   : > { %v7199_v24 = vmax.f32 %v7167_v59, 0.0  ;;  %v7201_v40 = vmax.f32 %v7169_v32, 0.0  ;;  %v15144_v44 = vmax.f32 %v13565_v63, %v13714_v50  ;;  %v15146_v35 = vmax.f32 %v13575_v42, %v13722_v39 }
 0x4f5   : > { %v7170_v21 = vadd.f32 %v7131_v34, %v7090_v53  ;;  %v7821_v37 = vpack.c.bf16 %v7196_v18, %v7195_v47  ;;  %v7822_v51 = vpack.c.bf16 %v7198_v48, %v7197_v60  ;;  %v7200_v38 = vmax.f32 %v7168_v19, 0.0  ;;  %v6917_v30 = vpop.f32.mrb[4].mxu0  ;;  %v6990_v3 = vpop.f32.mrb[4].mxu1 }
 0x4f6   : > { %v7091_v34 = vmax.f32 %v15144_v44, %v6917_v30  ;;  %v7093_v25 = vmax.f32 %v15145_v2, %v6990_v3  ;;  %v6919_v20 = vpop.f32.mrb[5].mxu0  ;;  %v6992_v52 = vpop.f32.mrb[5].mxu1  ;;  %v15147_v63 = vmax.f32 %v13580_v11, %v13724_v33  ;;  %v15148_v29 = vmax.f32 %v13585_v12, %v13730_v13 }
 0x4f7   : > { %v7202_v26 = vmax.f32 %v7170_v21, 0.0  ;;  %7323 = vst [vmem:[%s13838_s27] sm:$0xff] %v7821_v37  ;;  %7324 = vst [vmem:[%s13838_s27 + $0x8] sm:$0xff] %v7822_v51  ;;  %v7823_v15 = vpack.c.bf16 %v7200_v38, %v7199_v24  ;;  %v7092_v5 = vmax.f32 %v15146_v35, %v6919_v20  ;;  %v6921_v61 = vpop.f32.mrb[6].mxu0  ;;  %v6994_v62 = vpop.f32.mrb[6].mxu1  ;;  %v15149_v58 = vmax.f32 %v13590_v57, %v13732_v0 }
 0x4f8   : > { %v7094_v50 = vmax.f32 %v15147_v63, %v6992_v52  ;;  %v7171_v31 = vadd.f32 %v7136_v45, %v7091_v34  ;;  %v7173_v1 = vadd.f32 %v7136_v45, %v7093_v25  ;;  %v7095_v55 = vmax.f32 %v15148_v29, %v6921_v61  ;;  %v6923_v53 = vpop.f32.mrb[7].mxu0  ;;  %v6996_v47 = vpop.f32.mrb[7].mxu1  ;;  %v15157_v63 = vld [vmem:[#allocation6_spill] sm:$0xff]  ;;  %v15160_v29 = vld [vmem:[#allocation19_spill] sm:$0xff] }
 0x4f9   : > { %v7824_v8 = vpack.c.bf16 %v7202_v26, %v7201_v40  ;;  %v7097_v7 = vmax.f32 %v15149_v58, %v6994_v62  ;;  %7325 = vst [vmem:[%s13838_s27 + $0x10] sm:$0xff] %v7823_v15  ;;  %v7172_v42 = vadd.f32 %v7136_v45, %v7092_v5  ;;  %v7141_v11 = vpop.permute.xlu1 %7140  ;;  %v15150_v33 = vmax.f32 %v13595_v54, %v13738_v49  ;;  %v7146_v40 = vpop.permute.xlu0 %7145 }
 0x4fa   : > { %v7174_v39 = vadd.f32 %v7136_v45, %v7094_v50  ;;  %v15151_v59 = vmax.f32 %v13600_v10, %v13740_v23  ;;  %v7203_v13 = vmax.f32 %v7171_v31, 0.0  ;;  %v7205_v32 = vmax.f32 %v7173_v1, 0.0 }
 0x4fb   : > { %7326 = vst [vmem:[%s13838_s27 + $0x18] sm:$0xff] %v7824_v8  ;;  %v7096_v60 = vmax.f32 %v15150_v33, %v6923_v53  ;;  %v7175_v18 = vadd.f32 %v7141_v11, %v7095_v55  ;;  %v7177_v57 = vadd.f32 %v7141_v11, %v7097_v7  ;;  %v7204_v0 = vmax.f32 %v7172_v42, 0.0  ;;  %v15161_v55 = vld [vmem:[#allocation2_spill] sm:$0xff] }
 0x4fc   : > { %v7098_v12 = vmax.f32 %v15151_v59, %v6996_v47  ;;  %v7206_v48 = vmax.f32 %v7174_v39, 0.0  ;;  %v15152_v23 = vmax.f32 %v13605_v43, %v13746_v46  ;;  %v15153_v30 = vmax.f32 %v13610_v14, %v13748_v36 }
 0x4fd   : > { %v7176_v19 = vadd.f32 %v7141_v11, %v7096_v60  ;;  %v7207_v45 = vmax.f32 %v7175_v18, 0.0  ;;  %v7209_v24 = vmax.f32 %v7177_v57, 0.0  ;;  %v7825_v37 = vpack.c.bf16 %v7204_v0, %v7203_v13  ;;  %v6927_v38 = vpop.f32.mrb[8].mxu0  ;;  %v7000_v10 = vpop.f32.mrb[8].mxu1  ;;  %v15163_v57 = vld [vmem:[#allocation17_spill] sm:$0xff] }
 0x4fe   : > { %v7178_v21 = vadd.f32 %v7141_v11, %v7098_v12  ;;  %v7826_v54 = vpack.c.bf16 %v7206_v48, %v7205_v32  ;;  %v7099_v26 = vmax.f32 %v15152_v23, %v6927_v38  ;;  %v7101_v3 = vmax.f32 %v15153_v30, %v7000_v10  ;;  %v6929_v44 = vpop.f32.mrb[9].mxu0  ;;  %v7002_v34 = vpop.f32.mrb[9].mxu1  ;;  %v15169_v38 = vld [vmem:[#allocation4_spill] sm:$0xff]  ;;  %v15172_v30 = vld [vmem:[#allocation3_spill] sm:$0xff] }
 0x4ff   : > { %v7208_v49 = vmax.f32 %v7176_v19, 0.0  ;;  %7327 = vst [vmem:[%s13838_s27 + $0x20] sm:$0xff] %v7825_v37  ;;  %v15154_v20 = vmax.f32 %v13615_v27, %v13754_v4  ;;  %v15155_v43 = vmax.f32 %v13620_v28, %v13756_v22  ;;  %v6931_v15 = vpop.f32.mrb[10].mxu0  ;;  %v7004_v8 = vpop.f32.mrb[10].mxu1  ;;  %v15156_v35 = vmax.f32 %v13625_v56, %v13762_v16  ;;  %v15165_v19 = vld [vmem:[#allocation9_spill] sm:$0xff] }
 0x500   : > { %v7210_v51 = vmax.f32 %v7178_v21, 0.0  ;;  %7328 = vst [vmem:[%s13838_s27 + $0x28] sm:$0xff] %v7826_v54  ;;  %v7179_v14 = vadd.f32 %v7146_v40, %v7099_v26  ;;  %v7181_v36 = vadd.f32 %v7146_v40, %v7101_v3  ;;  %v15158_v50 = vmax.f32 %v13630_v9, %v15157_v63  ;;  %v6933_v62 = vpop.f32.mrb[11].mxu0  ;;  %v7006_v31 = vpop.f32.mrb[11].mxu1  ;;  %v15166_v21 = vld [vmem:[#allocation11_spill] sm:$0xff]  ;;  %v15171_v26 = vld [vmem:[#allocation10_spill] sm:$0xff] }
 0x501   : > { %v7827_v2 = vpack.c.bf16 %v7208_v49, %v7207_v45  ;;  %v7100_v52 = vmax.f32 %v15154_v20, %v6929_v44  ;;  %v7102_v46 = vmax.f32 %v15155_v43, %v7002_v34  ;;  %v7103_v5 = vmax.f32 %v15156_v35, %v6931_v15  ;;  %v7151_v27 = vpop.permute.xlu1 %7150  ;;  %v7156_v33 = vpop.permute.xlu0 %7155  ;;  %v15174_v20 = vld [vmem:[#allocation14_spill] sm:$0xff]  ;;  %v15177_v15 = vld [vmem:[#allocation5_spill] sm:$0xff] }
 0x502   : > { %v7828_v25 = vpack.c.bf16 %v7210_v51, %v7209_v24  ;;  %v7105_v61 = vmax.f32 %v15158_v50, %v7004_v8  ;;  %v15159_v22 = vmax.f32 %v13635_v17, %v13770_v41  ;;  %v15162_v58 = vmax.f32 %v15160_v29, %v15161_v55  ;;  %v15168_v51 = vld [vmem:[#allocation18_spill] sm:$0xff]  ;;  %v15178_v8 = vld [vmem:[#allocation13_spill] sm:$0xff] }
 0x503   : > { %7329 = vst [vmem:[%s13838_s27 + $0x30] sm:$0xff] %v7827_v2  ;;  %v7180_v4 = vadd.f32 %v7146_v40, %v7100_v52  ;;  %v7182_v28 = vadd.f32 %v7146_v40, %v7102_v46  ;;  %v7211_v16 = vmax.f32 %v7179_v14, 0.0  ;;  %v7213_v7 = vmax.f32 %v7181_v36, 0.0  ;;  %v15175_v52 = vld [vmem:[#allocation8_spill] sm:$0xff] }
 0x504   : > { %7330 = vst [vmem:[%s13838_s27 + $0x38] sm:$0xff] %v7828_v25  ;;  %v7104_v1 = vmax.f32 %v15159_v22, %v6933_v62  ;;  %v7106_v56 = vmax.f32 %v15162_v58, %v7006_v31  ;;  %v7183_v53 = vadd.f32 %v7151_v27, %v7103_v5  ;;  %v7185_v9 = vadd.f32 %v7151_v27, %v7105_v61  ;;  %v15180_v62 = vld [vmem:[#allocation16_spill] sm:$0xff]  ;;  %v15181_v31 = vld [vmem:[#allocation7_spill] sm:$0xff] }
 0x505   : > { %v7212_v47 = vmax.f32 %v7180_v4, 0.0  ;;  %v7214_v42 = vmax.f32 %v7182_v28, 0.0  ;;  %v6937_v32 = vpop.f32.mrb[12].mxu0  ;;  %v7010_v18 = vpop.f32.mrb[12].mxu1  ;;  %v15164_v0 = vmax.f32 %v13645_v6, %v15163_v57  ;;  %v15167_v45 = vmax.f32 %v15165_v19, %v15166_v21  ;;  %v15183_v28 = vld [vmem:[#allocation15_spill] sm:$0xff]  ;;  %v15184_v22 = vld [vmem:[#allocation12_spill] sm:$0xff] }
 0x506   : > { %v7184_v39 = vadd.f32 %v7151_v27, %v7104_v1  ;;  %v7186_v11 = vadd.f32 %v7151_v27, %v7106_v56  ;;  %v7215_v60 = vmax.f32 %v7183_v53, 0.0  ;;  %v7217_v59 = vmax.f32 %v7185_v9, 0.0  ;;  %v6939_v40 = vpop.f32.mrb[13].mxu0  ;;  %v7012_v37 = vpop.f32.mrb[13].mxu1 }
 0x507   : > { %v7829_v12 = vpack.c.bf16 %v7212_v47, %v7211_v16  ;;  %v7830_v17 = vpack.c.bf16 %v7214_v42, %v7213_v7  ;;  %v7107_v48 = vmax.f32 %v15164_v0, %v6937_v32  ;;  %v7109_v24 = vmax.f32 %v15167_v45, %v7010_v18  ;;  %v6941_v44 = vpop.f32.mrb[14].mxu0  ;;  %v7014_v34 = vpop.f32.mrb[14].mxu1 }
 0x508   : > { %v7216_v41 = vmax.f32 %v7184_v39, 0.0  ;;  %v7218_v13 = vmax.f32 %v7186_v11, 0.0  ;;  %v15170_v10 = vmax.f32 %v15168_v51, %v15169_v38  ;;  %v15173_v6 = vmax.f32 %v15171_v26, %v15172_v30  ;;  %v6943_v35 = vpop.f32.mrb[15].mxu0  ;;  %v7016_v5 = vpop.f32.mrb[15].mxu1 }
 0x509   : > { %7331 = vst [vmem:[%s13838_s27 + $0x40] sm:$0xff] %v7829_v12  ;;  %7332 = vst [vmem:[%s13838_s27 + $0x48] sm:$0xff] %v7830_v17  ;;  %v7187_v2 = vadd.f32 %v7156_v33, %v7107_v48  ;;  %v7189_v25 = vadd.f32 %v7156_v33, %v7109_v24  ;;  %v15176_v43 = vmax.f32 %v15174_v20, %v15175_v52  ;;  %v7161_v63 = vpop.permute.xlu1 %7160 }
 0x50a   : > { %v7831_v54 = vpack.c.bf16 %v7216_v41, %v7215_v60  ;;  %v7832_v49 = vpack.c.bf16 %v7218_v13, %v7217_v59  ;;  %v7108_v23 = vmax.f32 %v15170_v10, %v6939_v40  ;;  %v7110_v3 = vmax.f32 %v15173_v6, %v7012_v37 }
 0x50b   : > { %v7111_v46 = vmax.f32 %v15176_v43, %v6941_v44  ;;  %v15179_v14 = vmax.f32 %v15177_v15, %v15178_v8  ;;  %v15182_v27 = vmax.f32 %v15180_v62, %v15181_v31  ;;  %v15185_v1 = vmax.f32 %v15183_v28, %v15184_v22 }
 0x50c   : > { %7333 = vst [vmem:[%s13838_s27 + $0x50] sm:$0xff] %v7831_v54  ;;  %7334 = vst [vmem:[%s13838_s27 + $0x58] sm:$0xff] %v7832_v49  ;;  %v7188_v50 = vadd.f32 %v7156_v33, %v7108_v23  ;;  %v7190_v61 = vadd.f32 %v7156_v33, %v7110_v3  ;;  %v7219_v55 = vmax.f32 %v7187_v2, 0.0  ;;  %v7221_v58 = vmax.f32 %v7189_v25, 0.0 }
 0x50d   : > { %v7113_v36 = vmax.f32 %v15179_v14, %v7014_v34  ;;  %v7112_v4 = vmax.f32 %v15182_v27, %v6943_v35  ;;  %v7114_v29 = vmax.f32 %v15185_v1, %v7016_v5  ;;  %v7191_v56 = vadd.f32 %v7161_v63, %v7111_v46 }
 0x50e   : > { %v7220_v7 = vmax.f32 %v7188_v50, 0.0  ;;  %v7222_v53 = vmax.f32 %v7190_v61, 0.0 }
 0x50f   : > { %v7193_v16 = vadd.f32 %v7161_v63, %v7113_v36  ;;  %v7192_v9 = vadd.f32 %v7161_v63, %v7112_v4  ;;  %v7194_v47 = vadd.f32 %v7161_v63, %v7114_v29  ;;  %v7223_v42 = vmax.f32 %v7191_v56, 0.0 }
 0x510   : > { %v7833_v11 = vpack.c.bf16 %v7220_v7, %v7219_v55  ;;  %v7834_v33 = vpack.c.bf16 %v7222_v53, %v7221_v58 }
 0x511   : > { %v7225_v39 = vmax.f32 %v7193_v16, 0.0  ;;  %v7224_v60 = vmax.f32 %v7192_v9, 0.0  ;;  %v7226_v59 = vmax.f32 %v7194_v47, 0.0 }
 0x512   : > { %7335 = vst [vmem:[%s13838_s27 + $0x60] sm:$0xff] %v7833_v11  ;;  %7336 = vst [vmem:[%s13838_s27 + $0x68] sm:$0xff] %v7834_v33 }
 0x513   : > { %v7835_v12 = vpack.c.bf16 %v7224_v60, %v7223_v42  ;;  %v7836_v17 = vpack.c.bf16 %v7226_v59, %v7225_v39 }
 0x515   : > { %7337 = vst [vmem:[%s13838_s27 + $0x70] sm:$0xff] %v7835_v12  ;;  %7338 = vst [vmem:[%s13838_s27 + $0x78] sm:$0xff] %v7836_v17 }
 0x516 PF: > { %s13_s12 = sadd.s32 1, %s8074_s12  }
 0x517   : > { %p10_p4 = scmp.ge.s32.totalorder %s13_s12, 4  }
 0x519   :  { %12 = sbr.rel (!%p10_p4) target bundleno = 1 (0x1), region = 62 }

// kernel: feature_block.5
= control target key start
LH: loop header
LB: loop body
LE: loop exit
PB: predicated region body
PF: predicated region fallthrough
CT: control target
= control target key end

     0   :  { %s2970_s12 = smov 0   ;;  %s3727_s0 = inlined_call_operand.vmem [shape: bf16[2,416,576], index: 0, kind: input, shape index: {}]   ;;  %s3728_s1 = inlined_call_operand.vmem [shape: bf16[576,128], index: 1, kind: input, shape index: {}]   ;;  %s3729_s2 = inlined_call_operand.vmem [shape: f32[1,128], index: 2, kind: input, shape index: {}]   ;;  %s3730_s3 = inlined_call_operand.vmem [shape: bf16[2,104,128], index: 3, kind: output, shape index: {}]  }
   0x1 LB: > { %s2261_s13 = sadd.s32 4294967295, %s2947_s12   ;;  %p2265_p0 = scmp.ge.s32.totalorder %s2947_s12, 1  ;;  %s2947_s12 = sphi %s2970_s12, %s13_s12  }
   0x2   : > { %p137_p1 = scmp.lt.s32.totalorder %s2947_s12, 3 }
   0x4   : > { %p138_p2 = pnand %p2265_p0, %p137_p1 }
   0x6   : > { %141 = sbr.rel (%p138_p2) target bundleno = 563 (0x233), region = 32 }
   0xd   : > { %v2723_v0 = vld [vmem:[%s3728_s1] sm:$0xff]   ;;  %v2949_v1 = vmov 0   ;;  %v2725_v3 = vld [vmem:[%s3728_s1 + $0x8] sm:$0xff]   ;;  %v2727_v5 = vld [vmem:[%s3728_s1 + $0x10] sm:$0xff]   ;;  %p161_p3 = scmp.lt.s32.totalorder %s2261_s13, 1  ;;  %vm1266_vm0 = vcmask 523264  }
   0xe   : > { %1345 = vmatprep.subr.bf16.mxu0 %v2949_v1  ;;  %2614 = vmatprep.subr.bf16.mxu1 %v2949_v1  ;;  %v2986_v2 = vld [vmem:[%s3728_s1 + $0x80] sm:$0xff]   ;;  %v2996_v4 = vld [vmem:[%s3728_s1 + $0x88] sm:$0xff]   ;;  %v3007_v6 = vld [vmem:[%s3728_s1 + $0x90] sm:$0xff]  }
   0xf   : > { %1346 = vmatpush1.bf16.msra.mxu0 %v2723_v0  ;;  %2630 = vmatpush1.bf16.msra.mxu1 %v2986_v2  ;;  %v2729_v7 = vld [vmem:[%s3728_s1 + $0x18] sm:$0xff]   ;;  %v2731_v9 = vld [vmem:[%s3728_s1 + $0x20] sm:$0xff]   ;;  %v2733_v11 = vld [vmem:[%s3728_s1 + $0x28] sm:$0xff]   ;;  %s3738_s13 = smov (!%p161_p3, %s2261_s13), 1 }
  0x10   : > { %1347 = vmatprep.subr.bf16.mxu0 %v2949_v1  ;;  %2615 = vmatprep.subr.bf16.mxu1 %v2949_v1  ;;  %v3018_v8 = vld [vmem:[%s3728_s1 + $0x98] sm:$0xff]   ;;  %v3029_v10 = vld [vmem:[%s3728_s1 + $0xa0] sm:$0xff]   ;;  %v3042_v12 = vld [vmem:[%s3728_s1 + $0xa8] sm:$0xff]   ;;  %s2712_s19 = smul.u32 1040, %s3738_s13 }
  0x11   : > { %v2735_v13 = vld [vmem:[%s3728_s1 + $0x30] sm:$0xff]   ;;  %v2737_v15 = vld [vmem:[%s3728_s1 + $0x38] sm:$0xff]   ;;  %v2739_v17 = vld [vmem:[%s3728_s1 + $0x40] sm:$0xff]   ;;  %s2713_s17 = smul.u32 52, %s3738_s13 }
  0x12   : > { %v3057_v14 = vld [vmem:[%s3728_s1 + $0xb0] sm:$0xff]   ;;  %v3069_v16 = vld [vmem:[%s3728_s1 + $0xb8] sm:$0xff]   ;;  %s3078_s26 = scalar_lea.vmem %s3727_s0, %s2712_s19  ;;  %v3085_v18 = vld [vmem:[%s3728_s1 + $0xc0] sm:$0xff]  }
  0x13   : > { %1348 = vmatpush1.bf16.msra.mxu0 %v2725_v3  ;;  %2631 = vmatpush1.bf16.msra.mxu1 %v2996_v4  ;;  %v2757_v19 = vld [vmem:[%s3078_s26 + $0x4] ss:$20 sps:$4 sm:$0xff]   ;;  %v2741_v20 = vld [vmem:[%s3728_s1 + $0x48] sm:$0xff]   ;;  %v2743_v23 = vld [vmem:[%s3728_s1 + $0x50] sm:$0xff]   ;;  %s3680_s19 = scalar_lea.vmem %s3730_s3, %s2713_s17 }
  0x14   : > { %1349 = vmatprep.subr.bf16.mxu0 %v2949_v1  ;;  %2616 = vmatprep.subr.bf16.mxu1 %v2949_v1  ;;  %v2760_v21 = vld [vmem:[%s3078_s26 + $0x124] ss:$20 sps:$4 sm:$0xff]   ;;  %v3098_v22 = vld [vmem:[%s3728_s1 + $0xc8] sm:$0xff]   ;;  %v3109_v24 = vld [vmem:[%s3728_s1 + $0xd0] sm:$0xff]  }
  0x15   : > { %1377 = vmatprep.mubr.bf16.mxu0 %v2757_v19  ;;  %1674 = vmatprep.mubr.bf16.mxu1 %v2760_v21  ;;  %v2745_v25 = vld [vmem:[%s3728_s1 + $0x58] sm:$0xff]   ;;  %v2747_v27 = vld [vmem:[%s3728_s1 + $0x60] sm:$0xff]   ;;  %v2749_v29 = vld [vmem:[%s3728_s1 + $0x68] sm:$0xff]  }
  0x16   : > { %v3120_v26 = vld [vmem:[%s3728_s1 + $0xd8] sm:$0xff]   ;;  %v3131_v28 = vld [vmem:[%s3728_s1 + $0xe0] sm:$0xff]   ;;  %v3142_v30 = vld [vmem:[%s3728_s1 + $0xe8] sm:$0xff]  }
  0x17   : > { %1350 = vmatpush1.bf16.msra.mxu0 %v2727_v5  ;;  %2632 = vmatpush1.bf16.msra.mxu1 %v3007_v6  ;;  %v2751_v31 = vld [vmem:[%s3728_s1 + $0x70] sm:$0xff]   ;;  %v2753_v33 = vld [vmem:[%s3728_s1 + $0x78] sm:$0xff]   ;;  %v2767_v35 = vld [vmem:[%s3728_s1 + $0x100] sm:$0xff]  }
  0x18   : > { %1351 = vmatprep.subr.bf16.mxu0 %v2949_v1  ;;  %2617 = vmatprep.subr.bf16.mxu1 %v2949_v1  ;;  %v3153_v32 = vld [vmem:[%s3728_s1 + $0xf0] sm:$0xff]   ;;  %v3164_v34 = vld [vmem:[%s3728_s1 + $0xf8] sm:$0xff]   ;;  %v2761_v38 = vld [vmem:[%s3078_s26 + $0x2c] ss:$20 sps:$4 sm:$0xff]  }
  0x19   : > { %v2755_v36 = vld [vmem:[%s3078_s26] ss:$20 sps:$4 sm:$0xff]   ;;  %v2798_v40 = vld [vmem:[%s3728_s1 + $0x108] sm:$0xff]   ;;  %v2772_v46 = vld [vmem:[%s3078_s26 + $0x50] ss:$20 sps:$4 sm:$0xff]  }
  0x1a   : > { %v2758_v37 = vld [vmem:[%s3078_s26 + $0x120] ss:$20 sps:$4 sm:$0xff]   ;;  %v2765_v41 = vld [vmem:[%s3078_s26 + $0x28] ss:$20 sps:$4 sm:$0xff]   ;;  %v2773_v47 = vld [vmem:[%s3078_s26 + $0x170] ss:$20 sps:$4 sm:$0xff]  }
  0x1b   : > { %1352 = vmatpush1.bf16.msra.mxu0 %v2729_v7  ;;  %2633 = vmatpush1.bf16.msra.mxu1 %v3018_v8  ;;  %v2763_v39 = vld [vmem:[%s3078_s26 + $0x14c] ss:$20 sps:$4 sm:$0xff]   ;;  %v2766_v42 = vld [vmem:[%s3078_s26 + $0x148] ss:$20 sps:$4 sm:$0xff]   ;;  %v2827_v43 = vld [vmem:[%s3728_s1 + $0x110] sm:$0xff]  }
  0x1c   : > { %1353 = vmatprep.subr.bf16.mxu0 %v2949_v1  ;;  %2618 = vmatprep.subr.bf16.mxu1 %v2949_v1  ;;  %v2768_v44 = vld [vmem:[%s3078_s26 + $0x54] ss:$20 sps:$4 sm:$0xff]   ;;  %v2774_v48 = vld [vmem:[%s3078_s26 + $0x7c] ss:$20 sps:$4 sm:$0xff]   ;;  %v2778_v51 = vld [vmem:[%s3078_s26 + $0x78] ss:$20 sps:$4 sm:$0xff]  }
  0x1d   : > { %v2770_v45 = vld [vmem:[%s3078_s26 + $0x174] ss:$20 sps:$4 sm:$0xff]   ;;  %v2854_v49 = vld [vmem:[%s3728_s1 + $0x118] sm:$0xff]   ;;  %v2786_v57 = vld [vmem:[%s3078_s26 + $0xcc] ss:$20 sps:$4 sm:$0xff]  }
  0x1e   : > { %v2776_v50 = vld [vmem:[%s3078_s26 + $0x19c] ss:$20 sps:$4 sm:$0xff]   ;;  %v2779_v52 = vld [vmem:[%s3078_s26 + $0x198] ss:$20 sps:$4 sm:$0xff]   ;;  %v2784_v55 = vld [vmem:[%s3078_s26 + $0xa0] ss:$20 sps:$4 sm:$0xff]  }
  0x1f   : > { %1354 = vmatpush1.bf16.msra.mxu0 %v2731_v9  ;;  %2634 = vmatpush1.bf16.msra.mxu1 %v3029_v10  ;;  %v2780_v53 = vld [vmem:[%s3078_s26 + $0xa4] ss:$20 sps:$4 sm:$0xff]   ;;  %v2785_v56 = vld [vmem:[%s3078_s26 + $0x1c0] ss:$20 sps:$4 sm:$0xff]   ;;  %v2790_v59 = vld [vmem:[%s3078_s26 + $0xc8] ss:$20 sps:$4 sm:$0xff]  }
  0x20   : > { %1355 = vmatprep.subr.bf16.mxu0 %v2949_v1  ;;  %2619 = vmatprep.subr.bf16.mxu1 %v2949_v1  ;;  %v2782_v54 = vld [vmem:[%s3078_s26 + $0x1c4] ss:$20 sps:$4 sm:$0xff]   ;;  %v2788_v58 = vld [vmem:[%s3078_s26 + $0x1ec] ss:$20 sps:$4 sm:$0xff]   ;;  %v2791_v60 = vld [vmem:[%s3078_s26 + $0x1e8] ss:$20 sps:$4 sm:$0xff]  }
  0x21   : > { %v2792_v61 = vld [vmem:[%s3078_s26 + $0xf4] ss:$20 sps:$4 sm:$0xff]   ;;  %v2796_v63 = vld [vmem:[%s3078_s26 + $0xf0] ss:$20 sps:$4 sm:$0xff]   ;;  %v2804_v5 = vld [vmem:[%s3078_s26 + $0x238] ss:$20 sps:$4 sm:$0xff]  }
  0x22   : > { %v2794_v62 = vld [vmem:[%s3078_s26 + $0x214] ss:$20 sps:$4 sm:$0xff]   ;;  %v2797_v0 = vld [vmem:[%s3078_s26 + $0x210] ss:$20 sps:$4 sm:$0xff]   ;;  %v2828_v19 = vld [vmem:[%s3078_s26 + $0x1b8] ss:$20 sps:$4 sm:$0xff]  }
  0x23   : > { %1356 = vmatpush1.bf16.msra.mxu0 %v2733_v11  ;;  %2635 = vmatpush1.bf16.msra.mxu1 %v3042_v12  ;;  %v2801_v3 = vld [vmem:[%s3078_s26 + $0x23c] ss:$20 sps:$4 sm:$0xff]   ;;  %v2807_v7 = vld [vmem:[%s3078_s26 + $0x264] ss:$20 sps:$4 sm:$0xff]   ;;  %v2810_v9 = vld [vmem:[%s3078_s26 + $0x260] ss:$20 sps:$4 sm:$0xff]  }
  0x24   : > { %1357 = vmatprep.subr.bf16.mxu0 %v2949_v1  ;;  %2620 = vmatprep.subr.bf16.mxu1 %v2949_v1  ;;  %v2813_v11 = vld [vmem:[%s3078_s26 + $0x28c] ss:$20 sps:$4 sm:$0xff]   ;;  %v2830_v21 = vld [vmem:[%s3078_s26 + $0x1e4] ss:$20 sps:$4 sm:$0xff]  }
  0x27   : > { %1358 = vmatpush1.bf16.msra.mxu0 %v2735_v13  ;;  %2636 = vmatpush1.bf16.msra.mxu1 %v3057_v14  ;;  %v2816_v13 = vld [vmem:[%s3078_s26 + $0x288] ss:$20 sps:$4 sm:$0xff]  }
  0x28   : > { %1359 = vmatprep.subr.bf16.mxu0 %v2949_v1  ;;  %2621 = vmatprep.subr.bf16.mxu1 %v2949_v1 }
  0x2b   : > { %1360 = vmatpush1.bf16.msra.mxu0 %v2737_v15  ;;  %2637 = vmatpush1.bf16.msra.mxu1 %v3069_v16  ;;  %v2821_v15 = vld [vmem:[%s3078_s26 + $0x190] ss:$20 sps:$4 sm:$0xff]  }
  0x2c   : > { %1361 = vmatprep.subr.bf16.mxu0 %v2949_v1  ;;  %2622 = vmatprep.subr.bf16.mxu1 %v2949_v1 }
  0x2f   : > { %1362 = vmatpush1.bf16.msra.mxu0 %v2739_v17  ;;  %2638 = vmatpush1.bf16.msra.mxu1 %v3085_v18  ;;  %v2823_v17 = vld [vmem:[%s3078_s26 + $0x1bc] ss:$20 sps:$4 sm:$0xff]  }
  0x30   : > { %1363 = vmatprep.subr.bf16.mxu0 %v2949_v1  ;;  %2623 = vmatprep.subr.bf16.mxu1 %v2949_v1 }
  0x33   : > { %1364 = vmatpush1.bf16.msra.mxu0 %v2741_v20  ;;  %2639 = vmatpush1.bf16.msra.mxu1 %v3098_v22  ;;  %v2829_v20 = vld [vmem:[%s3078_s26 + $0x2d8] ss:$20 sps:$4 sm:$0xff]  }
  0x34   : > { %1365 = vmatprep.subr.bf16.mxu0 %v2949_v1  ;;  %2624 = vmatprep.subr.bf16.mxu1 %v2949_v1 }
  0x37   : > { %1366 = vmatpush1.bf16.msra.mxu0 %v2743_v23  ;;  %2640 = vmatpush1.bf16.msra.mxu1 %v3109_v24  ;;  %v2834_v23 = vld [vmem:[%s3078_s26 + $0x1e0] ss:$20 sps:$4 sm:$0xff]  }
  0x38   : > { %1367 = vmatprep.subr.bf16.mxu0 %v2949_v1  ;;  %2625 = vmatprep.subr.bf16.mxu1 %v2949_v1 }
  0x3b   : > { %1368 = vmatpush1.bf16.msra.mxu0 %v2745_v25  ;;  %2641 = vmatpush1.bf16.msra.mxu1 %v3120_v26  ;;  %v2836_v25 = vld [vmem:[%s3078_s26 + $0x20c] ss:$20 sps:$4 sm:$0xff]  }
  0x3c   : > { %1369 = vmatprep.subr.bf16.mxu0 %v2949_v1  ;;  %2626 = vmatprep.subr.bf16.mxu1 %v2949_v1 }
  0x3f   : > { %1370 = vmatpush1.bf16.msra.mxu0 %v2747_v27  ;;  %2642 = vmatpush1.bf16.msra.mxu1 %v3131_v28  ;;  %v2840_v27 = vld [vmem:[%s3078_s26 + $0x208] ss:$20 sps:$4 sm:$0xff]  }
  0x40   : > { %1371 = vmatprep.subr.bf16.mxu0 %v2949_v1  ;;  %2627 = vmatprep.subr.bf16.mxu1 %v2949_v1 }
  0x43   : > { %1372 = vmatpush1.bf16.msra.mxu0 %v2749_v29  ;;  %2643 = vmatpush1.bf16.msra.mxu1 %v3142_v30  ;;  %v2842_v29 = vld [vmem:[%s3078_s26 + $0x234] ss:$20 sps:$4 sm:$0xff]  }
  0x44   : > { %1373 = vmatprep.subr.bf16.mxu0 %v2949_v1  ;;  %2628 = vmatprep.subr.bf16.mxu1 %v2949_v1 }
  0x47   : > { %1374 = vmatpush1.bf16.msra.mxu0 %v2751_v31  ;;  %2644 = vmatpush1.bf16.msra.mxu1 %v3153_v32  ;;  %v2846_v31 = vld [vmem:[%s3078_s26 + $0x230] ss:$20 sps:$4 sm:$0xff]  }
  0x48   : > { %1375 = vmatprep.subr.bf16.mxu0 %v2949_v1  ;;  %2629 = vmatprep.subr.bf16.mxu1 %v2949_v1 }
  0x4b   : > { %1376 = vmatpush1.bf16.msra.mxu0 %v2753_v33  ;;  %2645 = vmatpush1.bf16.msra.mxu1 %v3164_v34  ;;  %v2848_v33 = vld [vmem:[%s3078_s26 + $0x25c] ss:$20 sps:$4 sm:$0xff]  }
  0x4c   : > { %1586 = vmatprep.subr.bf16.mxu0 %v2949_v1  ;;  %2554 = vmatprep.subr.bf16.mxu1 %v2767_v35 }
  0x4e   : > { %1378 = vmatmul.mubr.bf16.vlgmr.msra.gmra.mrb[0].mxu0 %v2755_v36  ;;  %1675 = vmatmul.mubr.bf16.vlgmr.msra.gmra.mrb[0].mxu1 %v2758_v37  ;;  %v2853_v36 = vld [vmem:[%s3078_s26 + $0x378] ss:$20 sps:$4 sm:$0xff]  }
  0x4f   : > { %1587 = vmatpush1.bf16.msra.mxu0 %v2986_v2  ;;  %1385 = vmatprep.mubr.bf16.mxu0 %v2761_v38  ;;  %v2799_v2 = vld [vmem:[%s3078_s26 + $0x11c] ss:$20 sps:$4 sm:$0xff]   ;;  %v2855_v37 = vld [vmem:[%s3078_s26 + $0x284] ss:$20 sps:$4 sm:$0xff]  }
  0x50   : > { %1682 = vmatprep.mubr.bf16.mxu1 %v2763_v39  ;;  %2555 = vmatpush3.bf16.msra.mxu1 %v2767_v35  ;;  %v2852_v35 = vld [vmem:[%s3078_s26 + $0x258] ss:$20 sps:$4 sm:$0xff]   ;;  %v2859_v39 = vld [vmem:[%s3078_s26 + $0x280] ss:$20 sps:$4 sm:$0xff]  }
  0x51   : > { %1588 = vmatprep.subr.bf16.mxu0 %v2949_v1  ;;  %2556 = vmatprep.subr.bf16.mxu1 %v2798_v40  ;;  %v2857_v38 = vld [vmem:[%s3078_s26 + $0x3a4] ss:$20 sps:$4 sm:$0xff]  }
  0x53   : > { %1589 = vmatpush1.bf16.msra.mxu0 %v2996_v4  ;;  %v2803_v4 = vld [vmem:[%s3078_s26 + $0x118] ss:$20 sps:$4 sm:$0xff]  }
  0x54   : > { %1590 = vmatprep.subr.bf16.mxu0 %v2949_v1  ;;  %2557 = vmatpush3.bf16.msra.mxu1 %v2798_v40  ;;  %v2860_v40 = vld [vmem:[%s3078_s26 + $0x3a0] ss:$20 sps:$4 sm:$0xff]  }
  0x55   : > { %2558 = vmatprep.subr.bf16.mxu1 %v2827_v43 }
  0x56   : > { %1386 = vmatmul.mubr.bf16.gmra.mrb[4].mxu0 %v2765_v41  ;;  %1683 = vmatmul.mubr.bf16.gmra.mrb[4].mxu1 %v2766_v42  ;;  %v2861_v41 = vld [vmem:[%s3078_s26 + $0x2ac] ss:$20 sps:$4 sm:$0xff]  }
  0x57   : > { %1393 = vmatprep.mubr.bf16.mxu0 %v2768_v44  ;;  %1690 = vmatprep.mubr.bf16.mxu1 %v2770_v45  ;;  %v2863_v42 = vld [vmem:[%s3078_s26 + $0x3cc] ss:$20 sps:$4 sm:$0xff]   ;;  %v2866_v44 = vld [vmem:[%s3078_s26 + $0x3c8] ss:$20 sps:$4 sm:$0xff]  }
  0x58   : > { %1591 = vmatpush1.bf16.msra.mxu0 %v3007_v6  ;;  %2559 = vmatpush3.bf16.msra.mxu1 %v2827_v43  ;;  %v2805_v6 = vld [vmem:[%s3078_s26 + $0x144] ss:$20 sps:$4 sm:$0xff]   ;;  %v2865_v43 = vld [vmem:[%s3078_s26 + $0x2a8] ss:$20 sps:$4 sm:$0xff]  }
  0x59   : > { %1592 = vmatprep.subr.bf16.mxu0 %v2949_v1  ;;  %2560 = vmatprep.subr.bf16.mxu1 %v2854_v49  ;;  %v2867_v45 = vld [vmem:[%s3078_s26 + $0x2d4] ss:$20 sps:$4 sm:$0xff]  }
  0x5c   : > { %1593 = vmatpush1.bf16.msra.mxu0 %v3018_v8  ;;  %2561 = vmatpush3.bf16.msra.mxu1 %v2854_v49  ;;  %v2809_v8 = vld [vmem:[%s3078_s26 + $0x140] ss:$20 sps:$4 sm:$0xff]   ;;  %v2873_v49 = vld [vmem:[%s3078_s26 + $0x2fc] ss:$20 sps:$4 sm:$0xff]  }
  0x5d   : > { %1594 = vmatprep.subr.bf16.mxu0 %v2949_v1 }
  0x5e   : > { %1394 = vmatmul.mubr.bf16.gmra.mrb[8].mxu0 %v2772_v46  ;;  %1691 = vmatmul.mubr.bf16.gmra.mrb[8].mxu1 %v2773_v47  ;;  %v2869_v46 = vld [vmem:[%s3078_s26 + $0x3f4] ss:$20 sps:$4 sm:$0xff]   ;;  %v2871_v47 = vld [vmem:[%s3078_s26 + $0x2d0] ss:$20 sps:$4 sm:$0xff]  }
  0x5f   : > { %1401 = vmatprep.mubr.bf16.mxu0 %v2774_v48  ;;  %1698 = vmatprep.mubr.bf16.mxu1 %v2776_v50  ;;  %v2872_v48 = vld [vmem:[%s3078_s26 + $0x3f0] ss:$20 sps:$4 sm:$0xff]  }
  0x60   : > { %1595 = vmatpush1.bf16.msra.mxu0 %v3029_v10  ;;  %v2811_v10 = vld [vmem:[%s3078_s26 + $0x16c] ss:$20 sps:$4 sm:$0xff]   ;;  %v2875_v50 = vld [vmem:[%s3078_s26 + $0x10] ss:$20 sps:$4 sm:$0xff]  }
  0x61   : > { %1596 = vmatprep.subr.bf16.mxu0 %v2949_v1 }
  0x64   : > { %1597 = vmatpush1.bf16.msra.mxu0 %v3042_v12  ;;  %v2815_v12 = vld [vmem:[%s3078_s26 + $0x168] ss:$20 sps:$4 sm:$0xff]  }
  0x65   : > { %1598 = vmatprep.subr.bf16.mxu0 %v2949_v1 }
  0x66   : > { %1402 = vmatmul.mubr.bf16.gmra.mrb[12].mxu0 %v2778_v51  ;;  %1699 = vmatmul.mubr.bf16.gmra.mrb[12].mxu1 %v2779_v52  ;;  %v2876_v51 = vld [vmem:[%s3078_s26 + $0x2f8] ss:$20 sps:$4 sm:$0xff]  }
  0x67   : > { %1409 = vmatprep.mubr.bf16.mxu0 %v2780_v53  ;;  %1706 = vmatprep.mubr.bf16.mxu1 %v2782_v54  ;;  %v2877_v52 = vld [vmem:[%s3078_s26 + $0x38] ss:$20 sps:$4 sm:$0xff]   ;;  %v2880_v54 = vld [vmem:[%s3078_s26 + $0x60] ss:$20 sps:$4 sm:$0xff]  }
  0x68   : > { %1599 = vmatpush1.bf16.msra.mxu0 %v3057_v14  ;;  %v2817_v14 = vld [vmem:[%s3078_s26 + $0x194] ss:$20 sps:$4 sm:$0xff]   ;;  %v2878_v53 = vld [vmem:[%s3078_s26 + $0x324] ss:$20 sps:$4 sm:$0xff]  }
  0x69   : > { %1600 = vmatprep.subr.bf16.mxu0 %v2949_v1 }
  0x6c   : > { %1601 = vmatpush1.bf16.msra.mxu0 %v3069_v16  ;;  %v2822_v16 = vld [vmem:[%s3078_s26 + $0x2b0] ss:$20 sps:$4 sm:$0xff]  }
  0x6d   : > { %1602 = vmatprep.subr.bf16.mxu0 %v2949_v1 }
  0x6e   : > { %1410 = vmatmul.mubr.bf16.gmra.mrb[16].mxu0 %v2784_v55  ;;  %1707 = vmatmul.mubr.bf16.gmra.mrb[16].mxu1 %v2785_v56  ;;  %v2881_v55 = vld [vmem:[%s3078_s26 + $0x320] ss:$20 sps:$4 sm:$0xff]   ;;  %v2882_v56 = vld [vmem:[%s3078_s26 + $0x88] ss:$20 sps:$4 sm:$0xff]  }
  0x6f   : > { %1417 = vmatprep.mubr.bf16.mxu0 %v2786_v57  ;;  %1714 = vmatprep.mubr.bf16.mxu1 %v2788_v58  ;;  %v2883_v57 = vld [vmem:[%s3078_s26 + $0x34c] ss:$20 sps:$4 sm:$0xff]   ;;  %v2885_v58 = vld [vmem:[%s3078_s26 + $0xb0] ss:$20 sps:$4 sm:$0xff]  }
  0x70   : > { %1603 = vmatpush1.bf16.msra.mxu0 %v3085_v18  ;;  %v2825_v18 = vld [vmem:[%s3078_s26 + $0x2dc] ss:$20 sps:$4 sm:$0xff]  }
  0x71   : > { %1604 = vmatprep.subr.bf16.mxu0 %v2949_v1 }
  0x74   : > { %1605 = vmatpush1.bf16.msra.mxu0 %v3098_v22  ;;  %v2832_v22 = vld [vmem:[%s3078_s26 + $0x304] ss:$20 sps:$4 sm:$0xff]  }
  0x75   : > { %1606 = vmatprep.subr.bf16.mxu0 %v2949_v1 }
  0x76   : > { %1418 = vmatmul.mubr.bf16.gmra.mrb[20].mxu0 %v2790_v59  ;;  %1715 = vmatmul.mubr.bf16.gmra.mrb[20].mxu1 %v2791_v60  ;;  %v2886_v59 = vld [vmem:[%s3078_s26 + $0x348] ss:$20 sps:$4 sm:$0xff]   ;;  %v2887_v60 = vld [vmem:[%s3078_s26 + $0xd8] ss:$20 sps:$4 sm:$0xff]  }
  0x77   : > { %1425 = vmatprep.mubr.bf16.mxu0 %v2792_v61  ;;  %1722 = vmatprep.mubr.bf16.mxu1 %v2794_v62  ;;  %v2888_v61 = vld [vmem:[%s3078_s26 + $0x374] ss:$20 sps:$4 sm:$0xff]  }
  0x78   : > { %1607 = vmatpush1.bf16.msra.mxu0 %v3109_v24  ;;  %v2835_v24 = vld [vmem:[%s3078_s26 + $0x300] ss:$20 sps:$4 sm:$0xff]  }
  0x79   : > { %1608 = vmatprep.subr.bf16.mxu0 %v2949_v1  ;;  %v2890_v62 = vld [vmem:[%s3078_s26 + $0x100] ss:$20 sps:$4 sm:$0xff]  }
  0x7c   : > { %1609 = vmatpush1.bf16.msra.mxu0 %v3120_v26  ;;  %v2838_v26 = vld [vmem:[%s3078_s26 + $0x32c] ss:$20 sps:$4 sm:$0xff]  }
  0x7d   : > { %1610 = vmatprep.subr.bf16.mxu0 %v2949_v1 }
  0x7e   : > { %1426 = vmatmul.mubr.bf16.gmra.mrb[24].mxu0 %v2796_v63  ;;  %1723 = vmatmul.mubr.bf16.gmra.mrb[24].mxu1 %v2797_v0  ;;  %v2891_v63 = vld [vmem:[%s3078_s26 + $0x370] ss:$20 sps:$4 sm:$0xff]   ;;  %v2892_v0 = vld [vmem:[%s3078_s26 + $0x128] ss:$20 sps:$4 sm:$0xff]  }
  0x7f   : > { %1433 = vmatprep.mubr.bf16.mxu0 %v2799_v2  ;;  %1730 = vmatprep.mubr.bf16.mxu1 %v2801_v3  ;;  %v2893_v2 = vld [vmem:[%s3078_s26 + $0x39c] ss:$20 sps:$4 sm:$0xff]  }
  0x80   : > { %1611 = vmatpush1.bf16.msra.mxu0 %v3131_v28  ;;  %v2841_v28 = vld [vmem:[%s3078_s26 + $0x328] ss:$20 sps:$4 sm:$0xff]   ;;  %v2895_v3 = vld [vmem:[%s3078_s26 + $0x150] ss:$20 sps:$4 sm:$0xff]  }
  0x81   : > { %1612 = vmatprep.subr.bf16.mxu0 %v2949_v1 }
  0x84   : > { %1613 = vmatpush1.bf16.msra.mxu0 %v3142_v30  ;;  %v2844_v30 = vld [vmem:[%s3078_s26 + $0x354] ss:$20 sps:$4 sm:$0xff]  }
  0x85   : > { %1614 = vmatprep.subr.bf16.mxu0 %v2949_v1 }
  0x86   : > { %1434 = vmatmul.mubr.bf16.gmra.mrb[28].mxu0 %v2803_v4  ;;  %1731 = vmatmul.mubr.bf16.gmra.mrb[28].mxu1 %v2804_v5  ;;  %v2896_v4 = vld [vmem:[%s3078_s26 + $0x398] ss:$20 sps:$4 sm:$0xff]  }
  0x87   : > { %1441 = vmatprep.mubr.bf16.mxu0 %v2805_v6  ;;  %1738 = vmatprep.mubr.bf16.mxu1 %v2807_v7  ;;  %v2897_v5 = vld [vmem:[%s3078_s26 + $0x178] ss:$20 sps:$4 sm:$0xff]   ;;  %v2900_v7 = vld [vmem:[%s3078_s26 + $0x1a0] ss:$20 sps:$4 sm:$0xff]  }
  0x88   : > { %1615 = vmatpush1.bf16.msra.mxu0 %v3153_v32  ;;  %v2847_v32 = vld [vmem:[%s3078_s26 + $0x350] ss:$20 sps:$4 sm:$0xff]  }
  0x89   : > { %1616 = vmatprep.subr.bf16.mxu0 %v2949_v1  ;;  %v2819_v1 = vld [vmem:[%s3078_s26 + $0x2b4] ss:$20 sps:$4 sm:$0xff]   ;;  %v2898_v6 = vld [vmem:[%s3078_s26 + $0x3c4] ss:$20 sps:$4 sm:$0xff]  }
  0x8c   : > { %1617 = vmatpush1.bf16.msra.mxu0 %v3164_v34  ;;  %v2850_v34 = vld [vmem:[%s3078_s26 + $0x37c] ss:$20 sps:$4 sm:$0xff]  }
  0x8e   : > { %1442 = vmatmul.mubr.bf16.gmra.mrb[32].mxu0 %v2809_v8  ;;  %1739 = vmatmul.mubr.bf16.gmra.mrb[32].mxu1 %v2810_v9  ;;  %v2901_v8 = vld [vmem:[%s3078_s26 + $0x3c0] ss:$20 sps:$4 sm:$0xff]   ;;  %v2902_v9 = vld [vmem:[%s3078_s26 + $0x1c8] ss:$20 sps:$4 sm:$0xff]  }
  0x8f   : > { %1449 = vmatprep.mubr.bf16.mxu0 %v2811_v10  ;;  %1746 = vmatprep.mubr.bf16.mxu1 %v2813_v11  ;;  %v2903_v10 = vld [vmem:[%s3078_s26 + $0x3ec] ss:$20 sps:$4 sm:$0xff]   ;;  %v2905_v11 = vld [vmem:[%s3078_s26 + $0x1f0] ss:$20 sps:$4 sm:$0xff]  }
  0x96   : > { %1450 = vmatmul.mubr.bf16.gmra.mrb[36].mxu0 %v2815_v12  ;;  %1747 = vmatmul.mubr.bf16.gmra.mrb[36].mxu1 %v2816_v13  ;;  %v2906_v12 = vld [vmem:[%s3078_s26 + $0x3e8] ss:$20 sps:$4 sm:$0xff]   ;;  %v2907_v13 = vld [vmem:[%s3078_s26 + $0x218] ss:$20 sps:$4 sm:$0xff]  }
  0x97   : > { %1457 = vmatprep.mubr.bf16.mxu0 %v2817_v14  ;;  %1754 = vmatprep.mubr.bf16.mxu1 %v2819_v1  ;;  %v2910_v14 = vld [vmem:[%s3078_s26 + $0xc] ss:$20 sps:$4 sm:$0xff]  }
  0x98   : > { %v2911_v1 = vld [vmem:[%s3078_s26 + $0x240] ss:$20 sps:$4 sm:$0xff]  }
  0x9e   : > { %1458 = vmatmul.mubr.bf16.gmra.mrb[40].mxu0 %v2821_v15  ;;  %1755 = vmatmul.mubr.bf16.gmra.mrb[40].mxu1 %v2822_v16  ;;  %v2908_v15 = vld [vmem:[%s3078_s26 + $0x8] ss:$20 sps:$4 sm:$0xff]  }
  0x9f   : > { %1465 = vmatprep.mubr.bf16.mxu0 %v2823_v17  ;;  %1762 = vmatprep.mubr.bf16.mxu1 %v2825_v18  ;;  %v2912_v16 = vld [vmem:[%s3078_s26 + $0x268] ss:$20 sps:$4 sm:$0xff]   ;;  %v2915_v18 = vld [vmem:[%s3078_s26 + $0x290] ss:$20 sps:$4 sm:$0xff]  }
  0xa0   : > { %v2913_v17 = vld [vmem:[%s3078_s26 + $0x34] ss:$20 sps:$4 sm:$0xff]  }
  0xa6   : > { %1466 = vmatmul.mubr.bf16.gmra.mrb[44].mxu0 %v2828_v19  ;;  %1763 = vmatmul.mubr.bf16.gmra.mrb[44].mxu1 %v2829_v20  ;;  %v2916_v19 = vld [vmem:[%s3078_s26 + $0x30] ss:$20 sps:$4 sm:$0xff]  }
  0xa7   : > { %1473 = vmatprep.mubr.bf16.mxu0 %v2830_v21  ;;  %1770 = vmatprep.mubr.bf16.mxu1 %v2832_v22  ;;  %v2917_v21 = vld [vmem:[%s3078_s26 + $0x2b8] ss:$20 sps:$4 sm:$0xff]  }
  0xae   : > { %1474 = vmatmul.mubr.bf16.gmra.mrb[48].mxu0 %v2834_v23  ;;  %1771 = vmatmul.mubr.bf16.gmra.mrb[48].mxu1 %v2835_v24  ;;  %v2918_v23 = vld [vmem:[%s3078_s26 + $0x5c] ss:$20 sps:$4 sm:$0xff]  }
  0xaf   : > { %1481 = vmatprep.mubr.bf16.mxu0 %v2836_v25  ;;  %1778 = vmatprep.mubr.bf16.mxu1 %v2838_v26  ;;  %v2920_v25 = vld [vmem:[%s3078_s26 + $0x2e0] ss:$20 sps:$4 sm:$0xff]  }
  0xb6   : > { %1482 = vmatmul.mubr.bf16.gmra.mrb[52].mxu0 %v2840_v27  ;;  %1779 = vmatmul.mubr.bf16.gmra.mrb[52].mxu1 %v2841_v28  ;;  %v2921_v27 = vld [vmem:[%s3078_s26 + $0x58] ss:$20 sps:$4 sm:$0xff]  }
  0xb7   : > { %1489 = vmatprep.mubr.bf16.mxu0 %v2842_v29  ;;  %1786 = vmatprep.mubr.bf16.mxu1 %v2844_v30  ;;  %v2922_v29 = vld [vmem:[%s3078_s26 + $0x308] ss:$20 sps:$4 sm:$0xff]  }
  0xbe   : > { %1490 = vmatmul.mubr.bf16.gmra.mrb[56].mxu0 %v2846_v31  ;;  %1787 = vmatmul.mubr.bf16.gmra.mrb[56].mxu1 %v2847_v32  ;;  %v2923_v31 = vld [vmem:[%s3078_s26 + $0x84] ss:$20 sps:$4 sm:$0xff]  }
  0xbf   : > { %1497 = vmatprep.mubr.bf16.mxu0 %v2848_v33  ;;  %1794 = vmatprep.mubr.bf16.mxu1 %v2850_v34  ;;  %v2925_v33 = vld [vmem:[%s3078_s26 + $0x330] ss:$20 sps:$4 sm:$0xff]  }
  0xc6   : > { %1498 = vmatmul.mubr.bf16.gmra.mrb[60].mxu0 %v2852_v35  ;;  %1795 = vmatmul.mubr.bf16.gmra.mrb[60].mxu1 %v2853_v36  ;;  %v2926_v35 = vld [vmem:[%s3078_s26 + $0x80] ss:$20 sps:$4 sm:$0xff]  }
  0xc7   : > { %1505 = vmatprep.mubr.bf16.mxu0 %v2855_v37  ;;  %1802 = vmatprep.mubr.bf16.mxu1 %v2857_v38  ;;  %v2927_v37 = vld [vmem:[%s3078_s26 + $0x358] ss:$20 sps:$4 sm:$0xff]  }
  0xce   : > { %1506 = vmatmul.mubr.bf16.gmra.mrb[64].mxu0 %v2859_v39  ;;  %1803 = vmatmul.mubr.bf16.gmra.mrb[64].mxu1 %v2860_v40  ;;  %v2928_v39 = vld [vmem:[%s3078_s26 + $0xac] ss:$20 sps:$4 sm:$0xff]  }
  0xcf   : > { %1513 = vmatprep.mubr.bf16.mxu0 %v2861_v41  ;;  %1810 = vmatprep.mubr.bf16.mxu1 %v2863_v42  ;;  %v2930_v41 = vld [vmem:[%s3078_s26 + $0x380] ss:$20 sps:$4 sm:$0xff]  }
  0xd6   : > { %1514 = vmatmul.mubr.bf16.gmra.mrb[68].mxu0 %v2865_v43  ;;  %1811 = vmatmul.mubr.bf16.gmra.mrb[68].mxu1 %v2866_v44  ;;  %v2931_v43 = vld [vmem:[%s3078_s26 + $0xa8] ss:$20 sps:$4 sm:$0xff]  }
  0xd7   : > { %1521 = vmatprep.mubr.bf16.mxu0 %v2867_v45  ;;  %1818 = vmatprep.mubr.bf16.mxu1 %v2869_v46  ;;  %v2932_v45 = vld [vmem:[%s3078_s26 + $0x3a8] ss:$20 sps:$4 sm:$0xff]  }
  0xde   : > { %1522 = vmatmul.mubr.bf16.gmra.mrb[72].mxu0 %v2871_v47  ;;  %1819 = vmatmul.mubr.bf16.gmra.mrb[72].mxu1 %v2872_v48  ;;  %v2933_v47 = vld [vmem:[%s3078_s26 + $0xd4] ss:$20 sps:$4 sm:$0xff]  }
  0xdf   : > { %1529 = vmatprep.mubr.bf16.mxu0 %v2873_v49  ;;  %2562 = vmatprep.mubr.msk.bf16.mxu1 %vm1266_vm0, %v2875_v50  ;;  %v2935_v49 = vld [vmem:[%s3078_s26 + $0x3d0] ss:$20 sps:$4 sm:$0xff]  }
  0xe6   : > { %1530 = vmatmul.mubr.bf16.gmra.mrb[76].mxu0 %v2876_v51  ;;  %2563 = vmatmul.mubr.msk.bf16.vlgmr.msra.gmra.mrb[76].mxu1 %vm1266_vm0, %v2877_v52  ;;  %v2936_v51 = vld [vmem:[%s3078_s26 + $0xd0] ss:$20 sps:$4 sm:$0xff]  }
  0xe7   : > { %1537 = vmatprep.mubr.bf16.mxu0 %v2878_v53  ;;  %2566 = vmatprep.mubr.msk.bf16.mxu1 %vm1266_vm0, %v2880_v54  ;;  %v2937_v53 = vld [vmem:[%s3078_s26 + $0x3f8] ss:$20 sps:$4 sm:$0xff]  }
  0xee   : > { %1538 = vmatmul.mubr.bf16.gmra.mrb[80].mxu0 %v2881_v55  ;;  %2567 = vmatmul.mubr.msk.bf16.gmra.mrb[80].mxu1 %vm1266_vm0, %v2882_v56  ;;  %v2938_v55 = vld [vmem:[%s3078_s26 + $0xfc] ss:$20 sps:$4 sm:$0xff]  }
  0xef   : > { %1545 = vmatprep.mubr.bf16.mxu0 %v2883_v57  ;;  %2570 = vmatprep.mubr.msk.bf16.mxu1 %vm1266_vm0, %v2885_v58  ;;  %v2940_v58 = vld [vmem:[%s3078_s26 + $0xf8] ss:$20 sps:$4 sm:$0xff]  }
  0xf6   : > { %1546 = vmatmul.mubr.bf16.gmra.mrb[84].mxu0 %v2886_v59  ;;  %2571 = vmatmul.mubr.msk.bf16.gmra.mrb[84].mxu1 %vm1266_vm0, %v2887_v60 }
  0xf7   : > { %1553 = vmatprep.mubr.bf16.mxu0 %v2888_v61  ;;  %2574 = vmatprep.mubr.msk.bf16.mxu1 %vm1266_vm0, %v2890_v62 }
  0xfe   : > { %1554 = vmatmul.mubr.bf16.gmra.mrb[88].mxu0 %v2891_v63  ;;  %2575 = vmatmul.mubr.msk.bf16.gmra.mrb[88].mxu1 %vm1266_vm0, %v2892_v0 }
  0xff   : > { %1561 = vmatprep.mubr.bf16.mxu0 %v2893_v2  ;;  %2578 = vmatprep.mubr.msk.bf16.mxu1 %vm1266_vm0, %v2895_v3 }
 0x106   : > { %1562 = vmatmul.mubr.bf16.gmra.mrb[92].mxu0 %v2896_v4  ;;  %2579 = vmatmul.mubr.msk.bf16.gmra.mrb[92].mxu1 %vm1266_vm0, %v2897_v5 }
 0x107   : > { %1569 = vmatprep.mubr.bf16.mxu0 %v2898_v6  ;;  %2582 = vmatprep.mubr.msk.bf16.mxu1 %vm1266_vm0, %v2900_v7 }
 0x10e   : > { %1570 = vmatmul.mubr.bf16.gmra.mrb[96].mxu0 %v2901_v8  ;;  %2583 = vmatmul.mubr.msk.bf16.gmra.mrb[96].mxu1 %vm1266_vm0, %v2902_v9 }
 0x10f   : > { %1577 = vmatprep.mubr.bf16.mxu0 %v2903_v10  ;;  %2586 = vmatprep.mubr.msk.bf16.mxu1 %vm1266_vm0, %v2905_v11 }
 0x116   : > { %1578 = vmatmul.mubr.bf16.gmra.mrb[100].mxu0 %v2906_v12  ;;  %2587 = vmatmul.mubr.msk.bf16.gmra.mrb[100].mxu1 %vm1266_vm0, %v2907_v13 }
 0x117   : > { %1618 = vmatprep.mubr.bf16.mxu0 %v2910_v14  ;;  %2590 = vmatprep.mubr.msk.bf16.mxu1 %vm1266_vm0, %v2911_v1 }
 0x11e   : > { %1619 = vmatmul.mubr.bf16.vlgmr.msra.gmra.mrb[0].mxu0 %v2908_v15  ;;  %2591 = vmatmul.mubr.msk.bf16.gmra.mrb[104].mxu1 %vm1266_vm0, %v2912_v16 }
 0x11f   : > { %1626 = vmatprep.mubr.bf16.mxu0 %v2913_v17  ;;  %2594 = vmatprep.mubr.msk.bf16.mxu1 %vm1266_vm0, %v2915_v18 }
 0x121   : > { %v3338_v20 = vpop.f32.mrb[0].mxu1 }
 0x122   : > { %v1678_v22 = vpop.f32.mrb[1].mxu1 }
 0x123   : > { %v3342_v24 = vpop.f32.mrb[2].mxu1 }
 0x124   : > { %v1681_v26 = vpop.f32.mrb[3].mxu1 }
 0x126   : > { %1627 = vmatmul.mubr.bf16.gmra.mrb[4].mxu0 %v2916_v19  ;;  %2595 = vmatmul.mubr.msk.bf16.gmra.mrb[108].mxu1 %vm1266_vm0, %v2917_v21 }
 0x127   : > { %1634 = vmatprep.mubr.bf16.mxu0 %v2918_v23  ;;  %2598 = vmatprep.mubr.msk.bf16.mxu1 %vm1266_vm0, %v2920_v25 }
 0x129   : > { %v3348_v28 = vpop.f32.mrb[4].mxu1 }
 0x12a   : > { %v1686_v30 = vpop.f32.mrb[5].mxu1 }
 0x12b   : > { %v3352_v32 = vpop.f32.mrb[6].mxu1 }
 0x12c   : > { %v1689_v34 = vpop.f32.mrb[7].mxu1 }
 0x12e   : > { %1635 = vmatmul.mubr.bf16.gmra.mrb[8].mxu0 %v2921_v27  ;;  %2599 = vmatmul.mubr.msk.bf16.gmra.mrb[112].mxu1 %vm1266_vm0, %v2922_v29 }
 0x12f   : > { %1642 = vmatprep.mubr.bf16.mxu0 %v2923_v31  ;;  %2602 = vmatprep.mubr.msk.bf16.mxu1 %vm1266_vm0, %v2925_v33 }
 0x131   : > { %v3358_v36 = vpop.f32.mrb[8].mxu1 }
 0x132   : > { %v1694_v38 = vpop.f32.mrb[9].mxu1 }
 0x133   : > { %v3362_v40 = vpop.f32.mrb[10].mxu1 }
 0x134   : > { %v1697_v42 = vpop.f32.mrb[11].mxu1 }
 0x136   : > { %1643 = vmatmul.mubr.bf16.gmra.mrb[12].mxu0 %v2926_v35  ;;  %2603 = vmatmul.mubr.msk.bf16.gmra.mrb[116].mxu1 %vm1266_vm0, %v2927_v37 }
 0x137   : > { %1650 = vmatprep.mubr.bf16.mxu0 %v2928_v39  ;;  %2606 = vmatprep.mubr.msk.bf16.mxu1 %vm1266_vm0, %v2930_v41 }
 0x139   : > { %v1700_v44 = vpop.f32.mrb[12].mxu1 }
 0x13a   : > { %v1702_v46 = vpop.f32.mrb[13].mxu1 }
 0x13b   : > { %v3370_v48 = vpop.f32.mrb[14].mxu1 }
 0x13c   : > { %v1705_v50 = vpop.f32.mrb[15].mxu1 }
 0x13e   : > { %1651 = vmatmul.mubr.bf16.gmra.mrb[16].mxu0 %v2931_v43  ;;  %2607 = vmatmul.mubr.msk.bf16.gmra.mrb[120].mxu1 %vm1266_vm0, %v2932_v45 }
 0x13f   : > { %1658 = vmatprep.mubr.bf16.mxu0 %v2933_v47  ;;  %2610 = vmatprep.mubr.msk.bf16.mxu1 %vm1266_vm0, %v2935_v49 }
 0x141   : > { %v1708_v52 = vpop.f32.mrb[16].mxu1 }
 0x142   : > { %v1710_v54 = vpop.f32.mrb[17].mxu1 }
 0x143   : > { %v1711_v56 = vpop.f32.mrb[18].mxu1 }
 0x144   : > { %v1713_v57 = vpop.f32.mrb[19].mxu1 }
 0x146   : > { %1659 = vmatmul.mubr.bf16.gmra.mrb[20].mxu0 %v2936_v51  ;;  %2611 = vmatmul.mubr.msk.bf16.gmra.mrb[124].mxu1 %vm1266_vm0, %v2937_v53 }
 0x147   : > { %1666 = vmatprep.mubr.bf16.mxu0 %v2938_v55 }
 0x149   : > { %v1716_v59 = vpop.f32.mrb[20].mxu1 }
 0x14a   : > { %v1718_v60 = vpop.f32.mrb[21].mxu1 }
 0x14b   : > { %v3380_v61 = vpop.f32.mrb[22].mxu1 }
 0x14c   : > { %v1721_v62 = vpop.f32.mrb[23].mxu1 }
 0x14e   : > { %1667 = vmatmul.mubr.bf16.gmra.mrb[24].mxu0 %v2940_v58 }
 0x151   : > { %v3382_v63 = vpop.f32.mrb[24].mxu1 }
 0x152   : > { %v1726_v0 = vpop.f32.mrb[25].mxu1 }
 0x153   : > { %v3384_v2 = vpop.f32.mrb[26].mxu1 }
 0x154   : > { %v1729_v3 = vpop.f32.mrb[27].mxu1 }
 0x159   : > { %v1435_v4 = vpop.f32.mrb[28].mxu0  ;;  %v3389_v7 = vpop.f32.mrb[28].mxu1 }
 0x15a   : > { %v3387_v5 = vadd.f32 %v3338_v20, %v1435_v4  ;;  %v1437_v6 = vpop.f32.mrb[29].mxu0  ;;  %v1734_v9 = vpop.f32.mrb[29].mxu1 }
 0x15b   : > { %v1438_v8 = vpop.f32.mrb[30].mxu0  ;;  %v3394_v12 = vpop.f32.mrb[30].mxu1 }
 0x15c   : > { %v3392_v10 = vadd.f32 %v3342_v24, %v1438_v8  ;;  %v1440_v11 = vpop.f32.mrb[31].mxu0  ;;  %v1737_v13 = vpop.f32.mrb[31].mxu1 }
 0x161   : > { %v1443_v14 = vpop.f32.mrb[32].mxu0  ;;  %v3399_v16 = vpop.f32.mrb[32].mxu1 }
 0x162   : > { %v3397_v1 = vadd.f32 %v3348_v28, %v1443_v14  ;;  %v1445_v15 = vpop.f32.mrb[33].mxu0  ;;  %v1742_v18 = vpop.f32.mrb[33].mxu1 }
 0x163   : > { %v1446_v17 = vpop.f32.mrb[34].mxu0  ;;  %v3404_v21 = vpop.f32.mrb[34].mxu1 }
 0x164   : > { %v3402_v19 = vadd.f32 %v3352_v32, %v1446_v17  ;;  %v1448_v20 = vpop.f32.mrb[35].mxu0  ;;  %v1745_v22 = vpop.f32.mrb[35].mxu1 }
 0x169   : > { %v1451_v23 = vpop.f32.mrb[36].mxu0  ;;  %v3409_v26 = vpop.f32.mrb[36].mxu1 }
 0x16a   : > { %v3407_v24 = vadd.f32 %v3358_v36, %v1451_v23  ;;  %v1453_v25 = vpop.f32.mrb[37].mxu0  ;;  %v1750_v28 = vpop.f32.mrb[37].mxu1 }
 0x16b   : > { %v1454_v27 = vpop.f32.mrb[38].mxu0  ;;  %v3414_v31 = vpop.f32.mrb[38].mxu1 }
 0x16c   : > { %v3412_v29 = vadd.f32 %v3362_v40, %v1454_v27  ;;  %v1456_v30 = vpop.f32.mrb[39].mxu0  ;;  %v1753_v32 = vpop.f32.mrb[39].mxu1 }
 0x171   : > { %v1459_v33 = vpop.f32.mrb[40].mxu0  ;;  %v3418_v37 = vpop.f32.mrb[40].mxu1 }
 0x172   : > { %v3416_v34 = vadd.f32 %v1700_v44, %v1459_v33  ;;  %v1461_v35 = vpop.f32.mrb[41].mxu0  ;;  %v1758_v38 = vpop.f32.mrb[41].mxu1 }
 0x173   : > { %v1462_v36 = vpop.f32.mrb[42].mxu0  ;;  %v3423_v42 = vpop.f32.mrb[42].mxu1 }
 0x174   : > { %v3421_v39 = vadd.f32 %v3370_v48, %v1462_v36  ;;  %v1464_v41 = vpop.f32.mrb[43].mxu0  ;;  %v1761_v40 = vpop.f32.mrb[43].mxu1 }
 0x179   : > { %v1467_v43 = vpop.f32.mrb[44].mxu0  ;;  %v3427_v47 = vpop.f32.mrb[44].mxu1 }
 0x17a   : > { %v3425_v45 = vadd.f32 %v1708_v52, %v1467_v43  ;;  %v1469_v46 = vpop.f32.mrb[45].mxu0  ;;  %v1766_v49 = vpop.f32.mrb[45].mxu1 }
 0x17b   : > { %v1470_v44 = vpop.f32.mrb[46].mxu0  ;;  %v3431_v53 = vpop.f32.mrb[46].mxu1 }
 0x17c   : > { %v3429_v50 = vadd.f32 %v1711_v56, %v1470_v44  ;;  %v1472_v51 = vpop.f32.mrb[47].mxu0  ;;  %v1769_v54 = vpop.f32.mrb[47].mxu1 }
 0x181   : > { %v1475_v48 = vpop.f32.mrb[48].mxu0  ;;  %v3435_v58 = vpop.f32.mrb[48].mxu1 }
 0x182   : > { %v3433_v55 = vadd.f32 %v1716_v59, %v1475_v48  ;;  %v1477_v57 = vpop.f32.mrb[49].mxu0  ;;  %v1774_v52 = vpop.f32.mrb[49].mxu1 }
 0x183   : > { %v1478_v60 = vpop.f32.mrb[50].mxu0  ;;  %v3440_v3 = vpop.f32.mrb[50].mxu1 }
 0x184   : > { %v3438_v62 = vadd.f32 %v3380_v61, %v1478_v60  ;;  %v1480_v0 = vpop.f32.mrb[51].mxu0  ;;  %v1777_v56 = vpop.f32.mrb[51].mxu1 }
 0x189   : > { %v1483_v4 = vpop.f32.mrb[52].mxu0  ;;  %v3445_v9 = vpop.f32.mrb[52].mxu1 }
 0x18a   : > { %v3443_v6 = vadd.f32 %v3382_v63, %v1483_v4  ;;  %v1485_v8 = vpop.f32.mrb[53].mxu0  ;;  %v1782_v11 = vpop.f32.mrb[53].mxu1 }
 0x18b   : > { %v1486_v59 = vpop.f32.mrb[54].mxu0  ;;  %v3450_v15 = vpop.f32.mrb[54].mxu1 }
 0x18c   : > { %v3448_v13 = vadd.f32 %v3384_v2, %v1486_v59  ;;  %v1488_v14 = vpop.f32.mrb[55].mxu0  ;;  %v1785_v61 = vpop.f32.mrb[55].mxu1 }
 0x191   : > { %v1491_v17 = vpop.f32.mrb[56].mxu0  ;;  %v3455_v22 = vpop.f32.mrb[56].mxu1 }
 0x192   : > { %v3453_v18 = vadd.f32 %v3389_v7, %v1491_v17  ;;  %v1493_v20 = vpop.f32.mrb[57].mxu0  ;;  %v1790_v23 = vpop.f32.mrb[57].mxu1 }
 0x193   : > { %v1494_v63 = vpop.f32.mrb[58].mxu0  ;;  %v3460_v28 = vpop.f32.mrb[58].mxu1 }
 0x194   : > { %v3458_v25 = vadd.f32 %v3394_v12, %v1494_v63  ;;  %v1496_v27 = vpop.f32.mrb[59].mxu0  ;;  %v1793_v2 = vpop.f32.mrb[59].mxu1 }
 0x199   : > { %v1499_v30 = vpop.f32.mrb[60].mxu0  ;;  %v3465_v35 = vpop.f32.mrb[60].mxu1 }
 0x19a   : > { %v3463_v32 = vadd.f32 %v3399_v16, %v1499_v30  ;;  %v1501_v33 = vpop.f32.mrb[61].mxu0  ;;  %v1798_v36 = vpop.f32.mrb[61].mxu1 }
 0x19b   : > { %v1502_v7 = vpop.f32.mrb[62].mxu0  ;;  %v3470_v40 = vpop.f32.mrb[62].mxu1 }
 0x19c   : > { %v3468_v38 = vadd.f32 %v3404_v21, %v1502_v7  ;;  %v1504_v41 = vpop.f32.mrb[63].mxu0  ;;  %v1801_v12 = vpop.f32.mrb[63].mxu1 }
 0x1a1   : > { %v1507_v43 = vpop.f32.mrb[64].mxu0  ;;  %v3475_v49 = vpop.f32.mrb[64].mxu1 }
 0x1a2   : > { %v3473_v46 = vadd.f32 %v3409_v26, %v1507_v43  ;;  %v1509_v44 = vpop.f32.mrb[65].mxu0  ;;  %v1806_v51 = vpop.f32.mrb[65].mxu1 }
 0x1a3   : > { %v1510_v16 = vpop.f32.mrb[66].mxu0  ;;  %v3480_v57 = vpop.f32.mrb[66].mxu1 }
 0x1a4   : > { %v3478_v54 = vadd.f32 %v3414_v31, %v1510_v16  ;;  %v1512_v48 = vpop.f32.mrb[67].mxu0  ;;  %v1809_v21 = vpop.f32.mrb[67].mxu1 }
 0x1a9   : > { %v1515_v60 = vpop.f32.mrb[68].mxu0  ;;  %v3485_v56 = vpop.f32.mrb[68].mxu1 }
 0x1aa   : > { %v3483_v52 = vadd.f32 %v3418_v37, %v1515_v60  ;;  %v1517_v0 = vpop.f32.mrb[69].mxu0  ;;  %v1814_v4 = vpop.f32.mrb[69].mxu1 }
 0x1ab   : > { %v1518_v26 = vpop.f32.mrb[70].mxu0  ;;  %v3490_v11 = vpop.f32.mrb[70].mxu1 }
 0x1ac   : > { %v3488_v8 = vadd.f32 %v3423_v42, %v1518_v26  ;;  %v1520_v59 = vpop.f32.mrb[71].mxu0  ;;  %v1817_v31 = vpop.f32.mrb[71].mxu1 }
 0x1b1   : > { %v1523_v14 = vpop.f32.mrb[72].mxu0  ;;  %v3495_v20 = vpop.f32.mrb[72].mxu1 }
 0x1b2   : > { %v3493_v61 = vadd.f32 %v3427_v47, %v1523_v14  ;;  %v1525_v17 = vpop.f32.mrb[73].mxu0  ;;  %v1822_v63 = vpop.f32.mrb[73].mxu1 }
 0x1b3   : > { %v1526_v37 = vpop.f32.mrb[74].mxu0  ;;  %v3500_v2 = vpop.f32.mrb[74].mxu1 }
 0x1b4   : > { %v3498_v23 = vadd.f32 %v3431_v53, %v1526_v37  ;;  %v1528_v27 = vpop.f32.mrb[75].mxu0  ;;  %v1825_v42 = vpop.f32.mrb[75].mxu1 }
 0x1b9   : > { %v1531_v30 = vpop.f32.mrb[76].mxu0  ;;  %v3505_v36 = vpop.f32.mrb[76].mxu1 }
 0x1ba   : > { %v3503_v33 = vadd.f32 %v3435_v58, %v1531_v30  ;;  %v1533_v7 = vpop.f32.mrb[77].mxu0  ;;  %v3507_v41 = vpop.f32.mrb[77].mxu1 }
 0x1bb   : > { %v1534_v47 = vpop.f32.mrb[78].mxu0  ;;  %v3512_v53 = vpop.f32.mrb[78].mxu1 }
 0x1bc   : > { %v3510_v12 = vadd.f32 %v3440_v3, %v1534_v47  ;;  %v1536_v43 = vpop.f32.mrb[79].mxu0  ;;  %v3514_v44 = vpop.f32.mrb[79].mxu1 }
 0x1c1   : > { %v1539_v16 = vpop.f32.mrb[80].mxu0  ;;  %v3519_v48 = vpop.f32.mrb[80].mxu1 }
 0x1c2   : > { %v3517_v51 = vadd.f32 %v3445_v9, %v1539_v16  ;;  %v1541_v58 = vpop.f32.mrb[81].mxu0  ;;  %v3521_v60 = vpop.f32.mrb[81].mxu1 }
 0x1c3   : > { %v1542_v21 = vpop.f32.mrb[82].mxu0  ;;  %v3526_v26 = vpop.f32.mrb[82].mxu1 }
 0x1c4   : > { %v3524_v0 = vadd.f32 %v3450_v15, %v1542_v21  ;;  %v1544_v3 = vpop.f32.mrb[83].mxu0  ;;  %v3528_v4 = vpop.f32.mrb[83].mxu1 }
 0x1c9   : > { %v1547_v59 = vpop.f32.mrb[84].mxu0  ;;  %v3533_v14 = vpop.f32.mrb[84].mxu1 }
 0x1ca   : > { %v3531_v31 = vadd.f32 %v3455_v22, %v1547_v59  ;;  %v1549_v9 = vpop.f32.mrb[85].mxu0  ;;  %v3535_v37 = vpop.f32.mrb[85].mxu1 }
 0x1cb   : > { %v1550_v17 = vpop.f32.mrb[86].mxu0  ;;  %v3540_v27 = vpop.f32.mrb[86].mxu1 }
 0x1cc   : > { %v3538_v63 = vadd.f32 %v3460_v28, %v1550_v17  ;;  %v1552_v15 = vpop.f32.mrb[87].mxu0  ;;  %v3542_v42 = vpop.f32.mrb[87].mxu1 }
 0x1d1   : > { %v1555_v30 = vpop.f32.mrb[88].mxu0  ;;  %v2576_v22 = vpop.f32.mrb[88].mxu1 }
 0x1d2   : > { %v3545_v7 = vadd.f32 %v3465_v35, %v1555_v30  ;;  %v1557_v47 = vpop.f32.mrb[89].mxu0  ;;  %v3548_v43 = vadd.f32 %v2576_v22, %v3387_v5  ;;  %v3550_v16 = vpop.f32.mrb[89].mxu1 }
 0x1d3   : > { %v1558_v58 = vpop.f32.mrb[90].mxu0  ;;  %v2577_v21 = vpop.f32.mrb[90].mxu1 }
 0x1d4   : > { %v3553_v28 = vadd.f32 %v3470_v40, %v1558_v58  ;;  %v1560_v3 = vpop.f32.mrb[91].mxu0  ;;  %v3556_v59 = vadd.f32 %v2577_v21, %v3392_v10  ;;  %v3558_v9 = vpop.f32.mrb[91].mxu1 }
 0x1d5   : > { %3731 = vst [vmem:[#allocation2_spill] sm:$0xff] %v3558_v9 }
 0x1d9   : > { %v1563_v35 = vpop.f32.mrb[92].mxu0  ;;  %v2580_v15 = vpop.f32.mrb[92].mxu1 }
 0x1da   : > { %v3561_v17 = vadd.f32 %v3475_v49, %v1563_v35  ;;  %v1565_v5 = vpop.f32.mrb[93].mxu0  ;;  %v3564_v30 = vadd.f32 %v2580_v15, %v3407_v24  ;;  %v1925_v22 = vpop.f32.mrb[93].mxu1 }
 0x1db   : > { %v1566_v47 = vpop.f32.mrb[94].mxu0  ;;  %v3567_v40 = vadd.f32 %v1925_v22, %v3397_v1  ;;  %v2581_v10 = vpop.f32.mrb[94].mxu1 }
 0x1dc   : > { %v3570_v58 = vadd.f32 %v3480_v57, %v1566_v47  ;;  %v1568_v21 = vpop.f32.mrb[95].mxu0  ;;  %v3573_v3 = vadd.f32 %v2581_v10, %v3412_v29  ;;  %v1928_v49 = vpop.f32.mrb[95].mxu1 }
 0x1dd   : > { %v3576_v35 = vadd.f32 %v1928_v49, %v3402_v19 }
 0x1e1   : > { %v1571_v5 = vpop.f32.mrb[96].mxu0  ;;  %v2584_v15 = vpop.f32.mrb[96].mxu1 }
 0x1e2   : > { %v3579_v24 = vadd.f32 %v3485_v56, %v1571_v5  ;;  %v1573_v9 = vpop.f32.mrb[97].mxu0  ;;  %v3582_v1 = vadd.f32 %v2584_v15, %v3425_v45  ;;  %v1941_v57 = vpop.f32.mrb[97].mxu1 }
 0x1e3   : > { %v1574_v22 = vpop.f32.mrb[98].mxu0  ;;  %v3585_v47 = vadd.f32 %v1941_v57, %v3416_v34  ;;  %v2585_v10 = vpop.f32.mrb[98].mxu1 }
 0x1e4   : > { %v3588_v29 = vadd.f32 %v3490_v11, %v1574_v22  ;;  %v1576_v19 = vpop.f32.mrb[99].mxu0  ;;  %v3591_v21 = vadd.f32 %v2585_v10, %v3429_v50  ;;  %v1944_v56 = vpop.f32.mrb[99].mxu1 }
 0x1e5   : > { %v3594_v49 = vadd.f32 %v1944_v56, %v3421_v39 }
 0x1e9   : > { %v1579_v9 = vpop.f32.mrb[100].mxu0  ;;  %v2588_v5 = vpop.f32.mrb[100].mxu1 }
 0x1ea   : > { %v3597_v45 = vadd.f32 %v3495_v20, %v1579_v9  ;;  %v1581_v15 = vpop.f32.mrb[101].mxu0  ;;  %v3600_v34 = vadd.f32 %v2588_v5, %v3443_v6  ;;  %v1957_v11 = vpop.f32.mrb[101].mxu1 }
 0x1eb   : > { %v1582_v57 = vpop.f32.mrb[102].mxu0  ;;  %v3603_v22 = vadd.f32 %v1957_v11, %v3433_v55  ;;  %v2589_v10 = vpop.f32.mrb[102].mxu1 }
 0x1ec   : > { %3732 = vst [vmem:[#allocation3_spill] sm:$0xff] %v3600_v34  ;;  %v3606_v50 = vadd.f32 %v3500_v2, %v1582_v57  ;;  %v1584_v39 = vpop.f32.mrb[103].mxu0  ;;  %v1969_v19 = vadd.f32 %v2589_v10, %v3448_v13  ;;  %v1960_v56 = vpop.f32.mrb[103].mxu1 }
 0x1ed   : > { %v3610_v20 = vadd.f32 %v1960_v56, %v3438_v62 }
 0x1f1   : > { %v1620_v9 = vpop.f32.mrb[0].mxu0  ;;  %v2592_v5 = vpop.f32.mrb[104].mxu1 }
 0x1f2   : > { %v3613_v6 = vadd.f32 %v3507_v41, %v1620_v9  ;;  %v1622_v15 = vpop.f32.mrb[1].mxu0  ;;  %v1982_v55 = vadd.f32 %v2592_v5, %v3463_v32  ;;  %v1973_v11 = vpop.f32.mrb[105].mxu1 }
 0x1f3   : > { %v1623_v34 = vpop.f32.mrb[2].mxu0  ;;  %v1974_v2 = vadd.f32 %v1973_v11, %v3453_v18  ;;  %v2593_v39 = vpop.f32.mrb[106].mxu1 }
 0x1f4   : > { %3733 = vst [vmem:[#allocation4_spill] sm:$0xff] %v3613_v6  ;;  %v1865_v57 = vadd.f32 %v3514_v44, %v1623_v34  ;;  %v1625_v13 = vpop.f32.mrb[3].mxu0  ;;  %v1985_v10 = vadd.f32 %v2593_v39, %v3468_v38  ;;  %v1976_v62 = vpop.f32.mrb[107].mxu1 }
 0x1f5   : > { %v1977_v41 = vadd.f32 %v1976_v62, %v3458_v25 }
 0x1f6   : > { %v2069_v56 = vmax.f32 %v1865_v57, %v3548_v43 }
 0x1f8   : > { %v3621_v9 = vmax.f32 %v2069_v56, %v1969_v19 }
 0x1f9   : > { %v1628_v15 = vpop.f32.mrb[4].mxu0  ;;  %v2596_v5 = vpop.f32.mrb[108].mxu1 }
 0x1fa   : > { %v1870_v32 = vadd.f32 %v3505_v36, %v1628_v15  ;;  %v1630_v6 = vpop.f32.mrb[5].mxu0  ;;  %v3625_v18 = vadd.f32 %v2596_v5, %v3483_v52  ;;  %v1989_v44 = vpop.f32.mrb[109].mxu1 }
 0x1fb   : > { %v1631_v34 = vpop.f32.mrb[6].mxu0  ;;  %v1990_v38 = vadd.f32 %v1989_v44, %v3473_v46  ;;  %v2597_v57 = vpop.f32.mrb[110].mxu1 }
 0x1fc   : > { %v2070_v11 = vmax.f32 %v1870_v32, %v3556_v59  ;;  %v1873_v43 = vadd.f32 %v3512_v53, %v1631_v34  ;;  %v1633_v25 = vpop.f32.mrb[7].mxu0  ;;  %v3631_v19 = vadd.f32 %v2597_v57, %v3488_v8  ;;  %v1992_v39 = vpop.f32.mrb[111].mxu1 }
 0x1fd   : > { %v1993_v6 = vadd.f32 %v1992_v39, %v3478_v54 }
 0x1fe   : > { %v2071_v36 = vmax.f32 %v1873_v43, %v3567_v40  ;;  %v2083_v52 = vmax.f32 %v2070_v11, %v1974_v2 }
 0x200   : > { %v2084_v13 = vmax.f32 %v2071_v36, %v1977_v41 }
 0x201   : > { %v1636_v62 = vpop.f32.mrb[8].mxu0  ;;  %v2600_v59 = vpop.f32.mrb[112].mxu1 }
 0x202   : > { %v1878_v56 = vadd.f32 %v3521_v60, %v1636_v62  ;;  %v1638_v15 = vpop.f32.mrb[9].mxu0  ;;  %v3637_v46 = vadd.f32 %v2600_v59, %v3503_v33  ;;  %v2005_v53 = vpop.f32.mrb[113].mxu1 }
 0x203   : > { %v1639_v32 = vpop.f32.mrb[10].mxu0  ;;  %v3641_v5 = vadd.f32 %v2005_v53, %v3493_v61  ;;  %v2601_v54 = vpop.f32.mrb[114].mxu1 }
 0x204   : > { %v2072_v8 = vmax.f32 %v1878_v56, %v3576_v35  ;;  %v1881_v40 = vadd.f32 %v3528_v4, %v1639_v32  ;;  %v1641_v2 = vpop.f32.mrb[11].mxu0  ;;  %v3645_v41 = vadd.f32 %v2601_v54, %v3510_v12  ;;  %v2008_v60 = vpop.f32.mrb[115].mxu1 }
 0x205   : > { %v3649_v33 = vadd.f32 %v2008_v60, %v3498_v23 }
 0x206   : > { %v2073_v44 = vmax.f32 %v1881_v40, %v3564_v30  ;;  %v2085_v34 = vmax.f32 %v2072_v8, %v1982_v55  ;;  %v3657_v30 = vld [vmem:[%s3729_s2] ss:$0 sm:$0xff] }
 0x208   : > { %v2086_v11 = vmax.f32 %v2073_v44, %v1985_v10 }
 0x209   : > { %v1644_v43 = vpop.f32.mrb[12].mxu0  ;;  %v2604_v61 = vpop.f32.mrb[116].mxu1 }
 0x20a   : > { %v1886_v35 = vadd.f32 %v3519_v48, %v1644_v43  ;;  %v1646_v57 = vpop.f32.mrb[13].mxu0  ;;  %v2030_v4 = vadd.f32 %v2604_v61, %v3531_v31  ;;  %v2021_v25 = vpop.f32.mrb[117].mxu1 }
 0x20b   : > { %v1647_v39 = vpop.f32.mrb[14].mxu0  ;;  %v3660_v23 = vadd.f32 %v2021_v25, %v3517_v51  ;;  %v2605_v48 = vpop.f32.mrb[118].mxu1 }
 0x20c   : > { %v2074_v12 = vmax.f32 %v1886_v35, %v3573_v3  ;;  %v1889_v55 = vadd.f32 %v3526_v26, %v1647_v39  ;;  %v1649_v10 = vpop.f32.mrb[15].mxu0  ;;  %v2097_v36 = vmax.f32 %v2084_v13, %v2030_v4  ;;  %v2033_v31 = vadd.f32 %v2605_v48, %v3538_v63  ;;  %v2024_v62 = vpop.f32.mrb[119].mxu1 }
 0x20d   : > { %v2095_v3 = vmax.f32 %v3621_v9, %v3660_v23  ;;  %v2025_v59 = vadd.f32 %v2024_v62, %v3524_v0 }
 0x20e   : > { %v2075_v56 = vmax.f32 %v1889_v55, %v3585_v47  ;;  %v2087_v15 = vmax.f32 %v2074_v12, %v1990_v38  ;;  %v2117_v53 = vadd.f32 %v3657_v30, %v2097_v36  ;;  %v2098_v51 = vmax.f32 %v2085_v34, %v2033_v31 }
 0x20f   : > { %v2096_v32 = vmax.f32 %v2083_v52, %v2025_v59 }
 0x210   : > { %v2088_v8 = vmax.f32 %v2075_v56, %v1993_v6  ;;  %v2130_v2 = vmax.f32 %v2117_v53, 0.0  ;;  %v2118_v35 = vadd.f32 %v3657_v30, %v2098_v51 }
 0x211   : > { %v1652_v26 = vpop.f32.mrb[16].mxu0  ;;  %v2116_v13 = vadd.f32 %v3657_v30, %v2096_v32  ;;  %v2608_v40 = vpop.f32.mrb[120].mxu1 }
 0x212   : > { %v1894_v63 = vadd.f32 %v3535_v37, %v1652_v26  ;;  %v1654_v54 = vpop.f32.mrb[17].mxu0  ;;  %v2046_v60 = vadd.f32 %v2608_v40, %v3561_v17  ;;  %v2037_v47 = vpop.f32.mrb[121].mxu1 }
 0x213   : > { %v1655_v44 = vpop.f32.mrb[18].mxu0  ;;  %v2129_v0 = vmax.f32 %v2116_v13, 0.0  ;;  %v2038_v34 = vadd.f32 %v2037_v47, %v3545_v7  ;;  %v2609_v52 = vpop.f32.mrb[122].mxu1 }
 0x214   : > { %v2076_v38 = vmax.f32 %v1894_v63, %v3594_v49  ;;  %v1897_v6 = vadd.f32 %v3542_v42, %v1655_v44  ;;  %v1657_v43 = vpop.f32.mrb[19].mxu0  ;;  %v2101_v37 = vmax.f32 %v2088_v8, %v2046_v60  ;;  %v2049_v17 = vadd.f32 %v2609_v52, %v3570_v58  ;;  %v2040_v61 = vpop.f32.mrb[123].mxu1  ;;  %v3734_v52 = vld [vmem:[#allocation2_spill] sm:$0xff] }
 0x215   : > { %v2497_v57 = vpack.c.bf16 %v2130_v2, %v2129_v0  ;;  %v2099_v49 = vmax.f32 %v2086_v11, %v2038_v34  ;;  %v2041_v4 = vadd.f32 %v2040_v61, %v3553_v28  ;;  %v2131_v58 = vmax.f32 %v2118_v35, 0.0 }
 0x216   : > { %v2077_v7 = vmax.f32 %v1897_v6, %v3582_v1  ;;  %v2089_v42 = vmax.f32 %v2076_v38, %v3625_v18  ;;  %v2121_v55 = vadd.f32 %v3657_v30, %v2101_v37 }
 0x217   : > { %2519 = vst [vmem:[%s3680_s19 + $0x8] sm:$0xff] %v2497_v57   ;;  %v2119_v25 = vadd.f32 %v3657_v30, %v2099_v49  ;;  %v2100_v48 = vmax.f32 %v2087_v15, %v2041_v4 }
 0x218   : > { %v2102_v39 = vmax.f32 %v2089_v42, %v2049_v17  ;;  %v2090_v12 = vmax.f32 %v2077_v7, %v3631_v19  ;;  %v2134_v32 = vmax.f32 %v2121_v55, 0.0  ;;  %v3735_v17 = vld [vmem:[#allocation4_spill] sm:$0xff]  ;;  %v3736_v7 = vld [vmem:[#allocation3_spill] sm:$0xff] }
 0x219   : > { %v1660_v10 = vpop.f32.mrb[20].mxu0  ;;  %v2132_v36 = vmax.f32 %v2119_v25, 0.0  ;;  %v2612_v31 = vpop.f32.mrb[124].mxu1  ;;  %v2120_v18 = vadd.f32 %v3657_v30, %v2100_v48 }
 0x21a   : > { %v1902_v11 = vadd.f32 %v3533_v14, %v1660_v10  ;;  %v1662_v1 = vpop.f32.mrb[21].mxu0  ;;  %v2062_v28 = vadd.f32 %v2612_v31, %v3597_v45  ;;  %v2053_v62 = vpop.f32.mrb[125].mxu1  ;;  %v2122_v45 = vadd.f32 %v3657_v30, %v2102_v39 }
 0x21b   : > { %v1663_v56 = vpop.f32.mrb[22].mxu0  ;;  %v2502_v59 = vpack.c.bf16 %v2132_v36, %v2131_v58  ;;  %v2054_v53 = vadd.f32 %v2053_v62, %v3579_v24  ;;  %v2613_v15 = vpop.f32.mrb[126].mxu1  ;;  %v2133_v8 = vmax.f32 %v2120_v18, 0.0 }
 0x21c   : > { %v2078_v19 = vmax.f32 %v1902_v11, %v3591_v21  ;;  %v1665_v51 = vpop.f32.mrb[23].mxu0  ;;  %v1905_v14 = vadd.f32 %v3540_v27, %v1663_v56  ;;  %v2065_v26 = vadd.f32 %v2613_v15, %v3606_v50  ;;  %v2056_v13 = vpop.f32.mrb[127].mxu1  ;;  %v2135_v47 = vmax.f32 %v2122_v45, 0.0 }
 0x21d   : > { %2520 = vst [vmem:[%s3680_s19 + $0x10] sm:$0xff] %v2502_v59   ;;  %v2103_v63 = vmax.f32 %v2090_v12, %v2054_v53  ;;  %v2057_v40 = vadd.f32 %v2056_v13, %v3588_v29  ;;  %v2507_v54 = vpack.c.bf16 %v2134_v32, %v2133_v8 }
 0x21e   : > { %v2091_v21 = vmax.f32 %v2078_v19, %v3641_v5  ;;  %v2079_v24 = vmax.f32 %v1905_v14, %v3603_v22 }
 0x21f   : > { %v2123_v2 = vadd.f32 %v3657_v30, %v2103_v63  ;;  %2521 = vst [vmem:[%s3680_s19 + $0x18] sm:$0xff] %v2507_v54  }
 0x220   : > { %v2104_v60 = vmax.f32 %v2091_v21, %v2057_v40  ;;  %v2092_v27 = vmax.f32 %v2079_v24, %v3649_v33 }
 0x221   : > { %v1668_v50 = vpop.f32.mrb[24].mxu0  ;;  %v2136_v44 = vmax.f32 %v2123_v2, 0.0 }
 0x222   : > { %v1910_v0 = vadd.f32 %v3550_v16, %v1668_v50  ;;  %v1670_v38 = vpop.f32.mrb[25].mxu0  ;;  %v2105_v34 = vmax.f32 %v2092_v27, %v2062_v28  ;;  %v2124_v29 = vadd.f32 %v3657_v30, %v2104_v60 }
 0x223   : > { %v1671_v5 = vpop.f32.mrb[26].mxu0  ;;  %v2512_v6 = vpack.c.bf16 %v2136_v44, %v2135_v47 }
 0x224   : > { %v2080_v22 = vmax.f32 %v1910_v0, %v3610_v20  ;;  %v1913_v43 = vadd.f32 %v3734_v52, %v1671_v5  ;;  %v1673_v35 = vpop.f32.mrb[27].mxu0  ;;  %v2125_v37 = vadd.f32 %v3657_v30, %v2105_v34  ;;  %v2137_v61 = vmax.f32 %v2124_v29, 0.0 }
 0x225   : > { %2522 = vst [vmem:[%s3680_s19 + $0x20] sm:$0xff] %v2512_v6   ;;  %v2115_v20 = vadd.f32 %v3657_v30, %v2095_v3 }
 0x226   : > { %v2093_v33 = vmax.f32 %v2080_v22, %v3637_v46  ;;  %v2068_v16 = vmax.f32 %v3735_v17, %v1913_v43  ;;  %v2138_v57 = vmax.f32 %v2125_v37, 0.0 }
 0x227   : > { %v2128_v55 = vmax.f32 %v2115_v20, 0.0 }
 0x228   : > { %v2106_v49 = vmax.f32 %v2093_v33, %v2065_v26  ;;  %v2081_v42 = vmax.f32 %v2068_v16, %v3736_v7  ;;  %v2517_v4 = vpack.c.bf16 %v2138_v57, %v2137_v61 }
 0x22a   : > { %v2126_v25 = vadd.f32 %v3657_v30, %v2106_v49  ;;  %v2094_v39 = vmax.f32 %v2081_v42, %v3645_v41  ;;  %2523 = vst [vmem:[%s3680_s19 + $0x28] sm:$0xff] %v2517_v4  }
 0x22c   : > { %v2139_v46 = vmax.f32 %v2126_v25, 0.0  ;;  %v2114_v12 = vadd.f32 %v3657_v30, %v2094_v39 }
 0x22e   : > { %v2488_v48 = vpack.c.bf16 %v2139_v46, %v2139_v46  ;;  %v2127_v10 = vmax.f32 %v2114_v12, 0.0 }
 0x230   : > { %2205 = vst [vmem:[%s3680_s19 + $0x30] sm:$0xf] %v2488_v48  ;;  %v2492_v58 = vpack.c.bf16 %v2128_v55, %v2127_v10 }
 0x232   : > { %2493 = vst [vmem:[%s3680_s19] sm:$0xff] %v2492_v58  }
 0x233 PF: > { %s13_s12 = sadd.s32 1, %s2947_s12  }
 0x234   : > { %p10_p4 = scmp.ge.s32.totalorder %s13_s12, 4  }
 0x236   :  { %12 = sbr.rel (!%p10_p4) target bundleno = 1 (0x1), region = 62 }

// kernel: feature_block.6
= control target key start
LH: loop header
LB: loop body
LE: loop exit
PB: predicated region body
PF: predicated region fallthrough
CT: control target
= control target key end

     0   :  { %s2308_s12 = smov 0   ;;  %s2806_s0 = inlined_call_operand.vmem [shape: bf16[2,64,1152], index: 0, kind: input, shape index: {}]   ;;  %s2807_s1 = inlined_call_operand.vmem [shape: bf16[1152,256], index: 1, kind: input, shape index: {}]   ;;  %s2808_s2 = inlined_call_operand.vmem [shape: f32[1,256], index: 2, kind: input, shape index: {}]   ;;  %s2809_s3 = inlined_call_operand.vmem [shape: bf16[2,16,256], index: 3, kind: output, shape index: {}]  }
   0x1 LB: > { %s1726_s13 = sadd.s32 4294967295, %s2285_s12   ;;  %p1730_p0 = scmp.ge.s32.totalorder %s2285_s12, 1  ;;  %s2285_s12 = sphi %s2308_s12, %s13_s12  }
   0x2   : > { %p137_p1 = scmp.lt.s32.totalorder %s2285_s12, 3 }
   0x4   : > { %p138_p2 = pnand %p1730_p0, %p137_p1 }
   0x5   : > { %v2011_v0 = vld [vmem:[%s2807_s1 + $0x4] ss:$8 sps:$4 sm:$0xff] (!%p138_p2)   ;;  %v2015_v2 = vld [vmem:[%s2807_s1] ss:$8 sps:$4 sm:$0xff] (!%p138_p2)   ;;  %v2017_v4 = vld [vmem:[%s2807_s1 + $0x14] ss:$8 sps:$4 sm:$0xff] (!%p138_p2)  }
   0x6   : > { %141 = sbr.rel (%p138_p2) target bundleno = 405 (0x195), region = 32  ;;  %v2013_v1 = vld [vmem:[%s2807_s1 + $0x204] ss:$8 sps:$4 sm:$0xff] (!%p138_p2)   ;;  %1260 = vmatprep.subr.bf16.mxu1 (!%p138_p2), %v2011_v0  ;;  %v2016_v3 = vld [vmem:[%s2807_s1 + $0x200] ss:$8 sps:$4 sm:$0xff] (!%p138_p2)   ;;  %p161_p3 = scmp.lt.s32.totalorder (!%p138_p2), %s1726_s13, 1 }
   0x7   : > { %1406 = vmatprep.subr.bf16.mxu0 (!%p138_p2), %v2013_v1  ;;  %1261 = vmatpush1.bf16.msra.mxu1 (!%p138_p2), %v2015_v2  ;;  %v2019_v5 = vld [vmem:[%s2807_s1 + $0x214] ss:$8 sps:$4 sm:$0xff] (!%p138_p2)   ;;  %v2021_v6 = vld [vmem:[%s2807_s1 + $0x10] ss:$8 sps:$4 sm:$0xff] (!%p138_p2)   ;;  %v2023_v8 = vld [vmem:[%s2807_s1 + $0x24] ss:$8 sps:$4 sm:$0xff] (!%p138_p2)  }
   0x8   : > { %1407 = vmatpush1.bf16.msra.mxu0 (!%p138_p2), %v2016_v3  ;;  %1262 = vmatprep.subr.bf16.mxu1 (!%p138_p2), %v2017_v4  ;;  %v2022_v7 = vld [vmem:[%s2807_s1 + $0x210] ss:$8 sps:$4 sm:$0xff] (!%p138_p2)   ;;  %v2025_v9 = vld [vmem:[%s2807_s1 + $0x224] ss:$8 sps:$4 sm:$0xff] (!%p138_p2)   ;;  %v2027_v10 = vld [vmem:[%s2807_s1 + $0x20] ss:$8 sps:$4 sm:$0xff] (!%p138_p2)  }
   0x9   : > { %1408 = vmatprep.subr.bf16.mxu0 (!%p138_p2), %v2019_v5  ;;  %v2028_v11 = vld [vmem:[%s2807_s1 + $0x220] ss:$8 sps:$4 sm:$0xff] (!%p138_p2)   ;;  %v2029_v12 = vld [vmem:[%s2807_s1 + $0x34] ss:$8 sps:$4 sm:$0xff] (!%p138_p2)   ;;  %v2033_v14 = vld [vmem:[%s2807_s1 + $0x30] ss:$8 sps:$4 sm:$0xff] (!%p138_p2)  }
   0xa   : > { %v2031_v13 = vld [vmem:[%s2807_s1 + $0x234] ss:$8 sps:$4 sm:$0xff] (!%p138_p2)   ;;  %v2034_v15 = vld [vmem:[%s2807_s1 + $0x230] ss:$8 sps:$4 sm:$0xff] (!%p138_p2)   ;;  %v2035_v16 = vld [vmem:[%s2807_s1 + $0x44] ss:$8 sps:$4 sm:$0xff] (!%p138_p2)  }
   0xb   : > { %1263 = vmatpush1.bf16.msra.mxu1 (!%p138_p2), %v2021_v6  ;;  %v2037_v17 = vld [vmem:[%s2807_s1 + $0x244] ss:$8 sps:$4 sm:$0xff] (!%p138_p2)   ;;  %v2039_v18 = vld [vmem:[%s2807_s1 + $0x40] ss:$8 sps:$4 sm:$0xff] (!%p138_p2)   ;;  %v2041_v20 = vld [vmem:[%s2807_s1 + $0x54] ss:$8 sps:$4 sm:$0xff] (!%p138_p2)  }
   0xc   : > { %1409 = vmatpush1.bf16.msra.mxu0 (!%p138_p2), %v2022_v7  ;;  %1264 = vmatprep.subr.bf16.mxu1 (!%p138_p2), %v2023_v8  ;;  %v2040_v19 = vld [vmem:[%s2807_s1 + $0x240] ss:$8 sps:$4 sm:$0xff] (!%p138_p2)   ;;  %v2043_v21 = vld [vmem:[%s2807_s1 + $0x254] ss:$8 sps:$4 sm:$0xff] (!%p138_p2)   ;;  %v2045_v22 = vld [vmem:[%s2807_s1 + $0x50] ss:$8 sps:$4 sm:$0xff] (!%p138_p2)  }
   0xd   : > { %1410 = vmatprep.subr.bf16.mxu0 %v2025_v9  ;;  %v2046_v23 = vld [vmem:[%s2807_s1 + $0x250] ss:$8 sps:$4 sm:$0xff]   ;;  %v2047_v24 = vld [vmem:[%s2807_s1 + $0x64] ss:$8 sps:$4 sm:$0xff]   ;;  %v2051_v26 = vld [vmem:[%s2807_s1 + $0x60] ss:$8 sps:$4 sm:$0xff]  }
   0xe   : > { %v2049_v25 = vld [vmem:[%s2807_s1 + $0x264] ss:$8 sps:$4 sm:$0xff]   ;;  %v2052_v27 = vld [vmem:[%s2807_s1 + $0x260] ss:$8 sps:$4 sm:$0xff]   ;;  %v2053_v28 = vld [vmem:[%s2807_s1 + $0x74] ss:$8 sps:$4 sm:$0xff]  }
   0xf   : > { %1265 = vmatpush1.bf16.msra.mxu1 %v2027_v10  ;;  %v2055_v29 = vld [vmem:[%s2807_s1 + $0x274] ss:$8 sps:$4 sm:$0xff]   ;;  %v2057_v30 = vld [vmem:[%s2807_s1 + $0x70] ss:$8 sps:$4 sm:$0xff]   ;;  %v2059_v32 = vld [vmem:[%s2807_s1 + $0x84] ss:$8 sps:$4 sm:$0xff]  }
  0x10   : > { %1411 = vmatpush1.bf16.msra.mxu0 %v2028_v11  ;;  %1266 = vmatprep.subr.bf16.mxu1 %v2029_v12  ;;  %v2058_v31 = vld [vmem:[%s2807_s1 + $0x270] ss:$8 sps:$4 sm:$0xff]   ;;  %v2061_v33 = vld [vmem:[%s2807_s1 + $0x284] ss:$8 sps:$4 sm:$0xff]   ;;  %v2063_v34 = vld [vmem:[%s2807_s1 + $0x80] ss:$8 sps:$4 sm:$0xff]  }
  0x11   : > { %1412 = vmatprep.subr.bf16.mxu0 %v2031_v13  ;;  %v2064_v35 = vld [vmem:[%s2807_s1 + $0x280] ss:$8 sps:$4 sm:$0xff]   ;;  %v2065_v36 = vld [vmem:[%s2807_s1 + $0x94] ss:$8 sps:$4 sm:$0xff]   ;;  %s2811_s13 = smov (!%p161_p3, %s1726_s13), 1 }
  0x12   : > { %v2067_v37 = vld [vmem:[%s2807_s1 + $0x294] ss:$8 sps:$4 sm:$0xff]   ;;  %v2069_v38 = vld [vmem:[%s2807_s1 + $0x90] ss:$8 sps:$4 sm:$0xff]   ;;  %v2071_v40 = vld [vmem:[%s2807_s1 + $0xa4] ss:$8 sps:$4 sm:$0xff]  }
  0x13   : > { %1267 = vmatpush1.bf16.msra.mxu1 %v2033_v14  ;;  %v2070_v39 = vld [vmem:[%s2807_s1 + $0x290] ss:$8 sps:$4 sm:$0xff]   ;;  %s2001_s21 = smul.u32 288, %s2811_s13  ;;  %v2073_v41 = vld [vmem:[%s2807_s1 + $0x2a4] ss:$8 sps:$4 sm:$0xff]   ;;  %s1918_s15 = sshll.u32 %s2811_s13, 4 }
  0x14   : > { %1413 = vmatpush1.bf16.msra.mxu0 %v2034_v15  ;;  %1268 = vmatprep.subr.bf16.mxu1 %v2035_v16  ;;  %v2075_v42 = vld [vmem:[%s2807_s1 + $0xa0] ss:$8 sps:$4 sm:$0xff]   ;;  %v2077_v44 = vld [vmem:[%s2807_s1 + $0xb4] ss:$8 sps:$4 sm:$0xff]   ;;  %v2081_v46 = vld [vmem:[%s2807_s1 + $0xb0] ss:$8 sps:$4 sm:$0xff]   ;;  %s170_s18 = scalar_lea.vmem %s2809_s3, %s1918_s15 }
  0x15   : > { %1414 = vmatprep.subr.bf16.mxu0 %v2037_v17  ;;  %v2076_v43 = vld [vmem:[%s2807_s1 + $0x2a0] ss:$8 sps:$4 sm:$0xff]   ;;  %s2461_s5 = scalar_lea.vmem %s2806_s0, %s2001_s21  ;;  %v2079_v45 = vld [vmem:[%s2807_s1 + $0x2b4] ss:$8 sps:$4 sm:$0xff]   ;;  %v2082_v47 = vld [vmem:[%s2807_s1 + $0x2b0] ss:$8 sps:$4 sm:$0xff]  }
  0x16   : > { %v2109_v48 = vld [vmem:[%s2461_s5 + $0x4] ss:$36 sps:$4 sm:$0xff]   ;;  %v2115_v51 = vld [vmem:[%s2461_s5 + $0x14] ss:$36 sps:$4 sm:$0xff]  }
  0x17   : > { %1269 = vmatpush1.bf16.msra.mxu1 %v2039_v18  ;;  %v2083_v49 = vld [vmem:[%s2807_s1 + $0xc4] ss:$8 sps:$4 sm:$0xff]   ;;  %1292 = vmatprep.mubr.bf16.mxu1 %v2109_v48  ;;  %v2087_v52 = vld [vmem:[%s2807_s1 + $0xc0] ss:$8 sps:$4 sm:$0xff]   ;;  %v2089_v54 = vld [vmem:[%s2807_s1 + $0xd4] ss:$8 sps:$4 sm:$0xff]  }
  0x18   : > { %1415 = vmatpush1.bf16.msra.mxu0 %v2040_v19  ;;  %1270 = vmatprep.subr.bf16.mxu1 %v2041_v20  ;;  %v2085_v50 = vld [vmem:[%s2807_s1 + $0x2c4] ss:$8 sps:$4 sm:$0xff]   ;;  %v2088_v53 = vld [vmem:[%s2807_s1 + $0x2c0] ss:$8 sps:$4 sm:$0xff]   ;;  %v2091_v55 = vld [vmem:[%s2807_s1 + $0x2d4] ss:$8 sps:$4 sm:$0xff]  }
  0x19   : > { %1416 = vmatprep.subr.bf16.mxu0 %v2043_v21  ;;  %1438 = vmatprep.mubr.bf16.mxu0 %v2115_v51  ;;  %v2093_v56 = vld [vmem:[%s2807_s1 + $0xd0] ss:$8 sps:$4 sm:$0xff]   ;;  %v2095_v58 = vld [vmem:[%s2807_s1 + $0xe4] ss:$8 sps:$4 sm:$0xff]   ;;  %v2099_v60 = vld [vmem:[%s2807_s1 + $0xe0] ss:$8 sps:$4 sm:$0xff]  }
  0x1a   : > { %v2094_v57 = vld [vmem:[%s2807_s1 + $0x2d0] ss:$8 sps:$4 sm:$0xff]   ;;  %v2097_v59 = vld [vmem:[%s2807_s1 + $0x2e4] ss:$8 sps:$4 sm:$0xff]   ;;  %v2100_v61 = vld [vmem:[%s2807_s1 + $0x2e0] ss:$8 sps:$4 sm:$0xff]  }
  0x1b   : > { %1271 = vmatpush1.bf16.msra.mxu1 %v2045_v22  ;;  %v2101_v62 = vld [vmem:[%s2807_s1 + $0xf4] ss:$8 sps:$4 sm:$0xff]   ;;  %v2105_v0 = vld [vmem:[%s2807_s1 + $0xf0] ss:$8 sps:$4 sm:$0xff]   ;;  %v2112_v2 = vld [vmem:[%s2807_s1 + $0x104] ss:$8 sps:$4 sm:$0xff]  }
  0x1c   : > { %1417 = vmatpush1.bf16.msra.mxu0 %v2046_v23  ;;  %1272 = vmatprep.subr.bf16.mxu1 %v2047_v24  ;;  %v2103_v63 = vld [vmem:[%s2807_s1 + $0x2f4] ss:$8 sps:$4 sm:$0xff]   ;;  %v2106_v1 = vld [vmem:[%s2807_s1 + $0x2f0] ss:$8 sps:$4 sm:$0xff]   ;;  %v2118_v3 = vld [vmem:[%s2807_s1 + $0x304] ss:$8 sps:$4 sm:$0xff]  }
  0x1d   : > { %1418 = vmatprep.subr.bf16.mxu0 %v2049_v25  ;;  %v2107_v4 = vld [vmem:[%s2461_s5] ss:$36 sps:$4 sm:$0xff]   ;;  %v2113_v6 = vld [vmem:[%s2461_s5 + $0x10] ss:$36 sps:$4 sm:$0xff]   ;;  %v2177_v20 = vld [vmem:[%s2461_s5 + $0x48] ss:$36 sps:$4 sm:$0xff]  }
  0x1e   : > { %v2110_v5 = vld [vmem:[%s2807_s1 + $0x100] ss:$8 sps:$4 sm:$0xff]   ;;  %v2121_v8 = vld [vmem:[%s2807_s1 + $0x114] ss:$8 sps:$4 sm:$0xff]   ;;  %v2119_v10 = vld [vmem:[%s2807_s1 + $0x110] ss:$8 sps:$4 sm:$0xff]  }
  0x1f   : > { %1273 = vmatpush1.bf16.msra.mxu1 %v2051_v26  ;;  %v2116_v7 = vld [vmem:[%s2807_s1 + $0x300] ss:$8 sps:$4 sm:$0xff]   ;;  %v2124_v9 = vld [vmem:[%s2807_s1 + $0x314] ss:$8 sps:$4 sm:$0xff]   ;;  %v2122_v11 = vld [vmem:[%s2807_s1 + $0x310] ss:$8 sps:$4 sm:$0xff]  }
  0x20   : > { %1419 = vmatpush1.bf16.msra.mxu0 %v2052_v27  ;;  %1274 = vmatprep.subr.bf16.mxu1 %v2053_v28  ;;  %v2127_v12 = vld [vmem:[%s2807_s1 + $0x124] ss:$8 sps:$4 sm:$0xff]   ;;  %v2125_v14 = vld [vmem:[%s2807_s1 + $0x120] ss:$8 sps:$4 sm:$0xff]   ;;  %v2133_v16 = vld [vmem:[%s2807_s1 + $0x134] ss:$8 sps:$4 sm:$0xff]  }
  0x21   : > { %1420 = vmatprep.subr.bf16.mxu0 %v2055_v29  ;;  %v2130_v13 = vld [vmem:[%s2807_s1 + $0x324] ss:$8 sps:$4 sm:$0xff]   ;;  %v2128_v15 = vld [vmem:[%s2807_s1 + $0x320] ss:$8 sps:$4 sm:$0xff]   ;;  %v2136_v17 = vld [vmem:[%s2807_s1 + $0x334] ss:$8 sps:$4 sm:$0xff]  }
  0x22   : > { %v2173_v18 = vld [vmem:[%s2461_s5 + $0x4c] ss:$36 sps:$4 sm:$0xff]   ;;  %v2175_v19 = vld [vmem:[%s2461_s5 + $0x5c] ss:$36 sps:$4 sm:$0xff]  }
  0x23   : > { %1275 = vmatpush1.bf16.msra.mxu1 %v2057_v30  ;;  %v2131_v21 = vld [vmem:[%s2807_s1 + $0x130] ss:$8 sps:$4 sm:$0xff]   ;;  %v2139_v24 = vld [vmem:[%s2807_s1 + $0x144] ss:$8 sps:$4 sm:$0xff]   ;;  %v2137_v26 = vld [vmem:[%s2807_s1 + $0x140] ss:$8 sps:$4 sm:$0xff]  }
  0x24   : > { %1421 = vmatpush1.bf16.msra.mxu0 %v2058_v31  ;;  %1276 = vmatprep.subr.bf16.mxu1 %v2059_v32  ;;  %v2134_v22 = vld [vmem:[%s2807_s1 + $0x330] ss:$8 sps:$4 sm:$0xff]   ;;  %v2142_v25 = vld [vmem:[%s2807_s1 + $0x344] ss:$8 sps:$4 sm:$0xff]   ;;  %v2140_v27 = vld [vmem:[%s2807_s1 + $0x340] ss:$8 sps:$4 sm:$0xff]  }
  0x25   : > { %1422 = vmatprep.subr.bf16.mxu0 %v2061_v33  ;;  %v2181_v23 = vld [vmem:[%s2461_s5 + $0x58] ss:$36 sps:$4 sm:$0xff]   ;;  %v2193_v31 = vld [vmem:[%s2461_s5 + $0xa4] ss:$36 sps:$4 sm:$0xff]   ;;  %v2195_v32 = vld [vmem:[%s2461_s5 + $0x90] ss:$36 sps:$4 sm:$0xff]  }
  0x26   : > { %v2145_v28 = vld [vmem:[%s2807_s1 + $0x154] ss:$8 sps:$4 sm:$0xff]   ;;  %v2143_v33 = vld [vmem:[%s2807_s1 + $0x150] ss:$8 sps:$4 sm:$0xff]   ;;  %v2163_v48 = vld [vmem:[%s2807_s1 + $0x184] ss:$8 sps:$4 sm:$0xff]  }
  0x27   : > { %1277 = vmatpush1.bf16.msra.mxu1 %v2063_v34  ;;  %v2148_v29 = vld [vmem:[%s2807_s1 + $0x354] ss:$8 sps:$4 sm:$0xff]   ;;  %v2146_v34 = vld [vmem:[%s2807_s1 + $0x350] ss:$8 sps:$4 sm:$0xff]   ;;  %v2164_v51 = vld [vmem:[%s2807_s1 + $0x380] ss:$8 sps:$4 sm:$0xff]  }
  0x28   : > { %1423 = vmatpush1.bf16.msra.mxu0 %v2064_v35  ;;  %1278 = vmatprep.subr.bf16.mxu1 %v2065_v36  ;;  %v2191_v30 = vld [vmem:[%s2461_s5 + $0x94] ss:$36 sps:$4 sm:$0xff]   ;;  %v2199_v35 = vld [vmem:[%s2461_s5 + $0xa0] ss:$36 sps:$4 sm:$0xff]  }
  0x29   : > { %1424 = vmatprep.subr.bf16.mxu0 %v2067_v37  ;;  %v2151_v36 = vld [vmem:[%s2807_s1 + $0x164] ss:$8 sps:$4 sm:$0xff]  }
  0x2a   : > { %v2154_v37 = vld [vmem:[%s2807_s1 + $0x364] ss:$8 sps:$4 sm:$0xff]  }
  0x2b   : > { %1279 = vmatpush1.bf16.msra.mxu1 %v2069_v38  ;;  %v2149_v38 = vld [vmem:[%s2807_s1 + $0x160] ss:$8 sps:$4 sm:$0xff]  }
  0x2c   : > { %1425 = vmatpush1.bf16.msra.mxu0 %v2070_v39  ;;  %1280 = vmatprep.subr.bf16.mxu1 %v2071_v40  ;;  %v2152_v39 = vld [vmem:[%s2807_s1 + $0x360] ss:$8 sps:$4 sm:$0xff]   ;;  %v2157_v40 = vld [vmem:[%s2807_s1 + $0x174] ss:$8 sps:$4 sm:$0xff]  }
  0x2d   : > { %1426 = vmatprep.subr.bf16.mxu0 %v2073_v41  ;;  %v2160_v41 = vld [vmem:[%s2807_s1 + $0x374] ss:$8 sps:$4 sm:$0xff]  }
  0x2f   : > { %1281 = vmatpush1.bf16.msra.mxu1 %v2075_v42  ;;  %v2209_v42 = vld [vmem:[%s2461_s5 + $0xdc] ss:$36 sps:$4 sm:$0xff]  }
  0x30   : > { %1427 = vmatpush1.bf16.msra.mxu0 %v2076_v43  ;;  %1282 = vmatprep.subr.bf16.mxu1 %v2077_v44  ;;  %v2211_v43 = vld [vmem:[%s2461_s5 + $0xec] ss:$36 sps:$4 sm:$0xff]   ;;  %v2213_v44 = vld [vmem:[%s2461_s5 + $0xd8] ss:$36 sps:$4 sm:$0xff]  }
  0x31   : > { %1428 = vmatprep.subr.bf16.mxu0 %v2079_v45  ;;  %v2155_v45 = vld [vmem:[%s2807_s1 + $0x170] ss:$8 sps:$4 sm:$0xff]  }
  0x33   : > { %1283 = vmatpush1.bf16.msra.mxu1 %v2081_v46  ;;  %v2158_v46 = vld [vmem:[%s2807_s1 + $0x370] ss:$8 sps:$4 sm:$0xff]  }
  0x34   : > { %1429 = vmatpush1.bf16.msra.mxu0 %v2082_v47  ;;  %1284 = vmatprep.subr.bf16.mxu1 %v2083_v49  ;;  %v2217_v47 = vld [vmem:[%s2461_s5 + $0xe8] ss:$36 sps:$4 sm:$0xff]  }
  0x35   : > { %1430 = vmatprep.subr.bf16.mxu0 %v2085_v50  ;;  %v2166_v49 = vld [vmem:[%s2807_s1 + $0x384] ss:$8 sps:$4 sm:$0xff]   ;;  %v2161_v50 = vld [vmem:[%s2807_s1 + $0x180] ss:$8 sps:$4 sm:$0xff]  }
  0x37   : > { %1285 = vmatpush1.bf16.msra.mxu1 %v2087_v52  ;;  %v2169_v52 = vld [vmem:[%s2807_s1 + $0x194] ss:$8 sps:$4 sm:$0xff]  }
  0x38   : > { %1431 = vmatpush1.bf16.msra.mxu0 %v2088_v53  ;;  %1286 = vmatprep.subr.bf16.mxu1 %v2089_v54  ;;  %v2172_v53 = vld [vmem:[%s2807_s1 + $0x394] ss:$8 sps:$4 sm:$0xff]   ;;  %v2229_v54 = vld [vmem:[%s2461_s5 + $0xc] ss:$36 sps:$4 sm:$0xff]  }
  0x39   : > { %1432 = vmatprep.subr.bf16.mxu0 %v2091_v55  ;;  %v2232_v55 = vld [vmem:[%s2461_s5 + $0x1c] ss:$36 sps:$4 sm:$0xff]  }
  0x3b   : > { %1287 = vmatpush1.bf16.msra.mxu1 %v2093_v56  ;;  %v2167_v56 = vld [vmem:[%s2807_s1 + $0x190] ss:$8 sps:$4 sm:$0xff]  }
  0x3c   : > { %1433 = vmatpush1.bf16.msra.mxu0 %v2094_v57  ;;  %1288 = vmatprep.subr.bf16.mxu1 %v2095_v58  ;;  %v2170_v57 = vld [vmem:[%s2807_s1 + $0x390] ss:$8 sps:$4 sm:$0xff]   ;;  %v2180_v58 = vld [vmem:[%s2807_s1 + $0x1a4] ss:$8 sps:$4 sm:$0xff]  }
  0x3d   : > { %1434 = vmatprep.subr.bf16.mxu0 %v2097_v59  ;;  %v2184_v59 = vld [vmem:[%s2807_s1 + $0x3a4] ss:$8 sps:$4 sm:$0xff]  }
  0x3f   : > { %1289 = vmatpush1.bf16.msra.mxu1 %v2099_v60  ;;  %v2178_v60 = vld [vmem:[%s2807_s1 + $0x1a0] ss:$8 sps:$4 sm:$0xff]  }
  0x40   : > { %1435 = vmatpush1.bf16.msra.mxu0 %v2100_v61  ;;  %1290 = vmatprep.subr.bf16.mxu1 %v2101_v62  ;;  %v2182_v61 = vld [vmem:[%s2807_s1 + $0x3a0] ss:$8 sps:$4 sm:$0xff]   ;;  %v2187_v62 = vld [vmem:[%s2807_s1 + $0x1b4] ss:$8 sps:$4 sm:$0xff]  }
  0x41   : > { %1436 = vmatprep.subr.bf16.mxu0 %v2103_v63  ;;  %v2190_v63 = vld [vmem:[%s2807_s1 + $0x3b4] ss:$8 sps:$4 sm:$0xff]  }
  0x43   : > { %1291 = vmatpush1.bf16.msra.mxu1 %v2105_v0  ;;  %v2185_v0 = vld [vmem:[%s2807_s1 + $0x1b0] ss:$8 sps:$4 sm:$0xff]  }
  0x44   : > { %1437 = vmatpush1.bf16.msra.mxu0 %v2106_v1  ;;  %1333 = vmatprep.subr.bf16.mxu1 %v2112_v2  ;;  %v2188_v1 = vld [vmem:[%s2807_s1 + $0x3b0] ss:$8 sps:$4 sm:$0xff]   ;;  %v2198_v2 = vld [vmem:[%s2807_s1 + $0x1c4] ss:$8 sps:$4 sm:$0xff]  }
  0x45   : > { %1479 = vmatprep.subr.bf16.mxu0 %v2118_v3  ;;  %v2202_v3 = vld [vmem:[%s2807_s1 + $0x3c4] ss:$8 sps:$4 sm:$0xff]  }
  0x46   : > { %1293 = vmatmul.mubr.bf16.vlgmr.msra.gmra.mrb[0].mxu1 %v2107_v4  ;;  %v2196_v4 = vld [vmem:[%s2807_s1 + $0x1c0] ss:$8 sps:$4 sm:$0xff]  }
  0x47   : > { %1439 = vmatmul.mubr.bf16.vlgmr.msra.gmra.mrb[0].mxu0 %v2113_v6  ;;  %1334 = vmatpush1.bf16.msra.mxu1 %v2110_v5  ;;  %v2200_v5 = vld [vmem:[%s2807_s1 + $0x3c0] ss:$8 sps:$4 sm:$0xff]   ;;  %v2205_v6 = vld [vmem:[%s2807_s1 + $0x1d4] ss:$8 sps:$4 sm:$0xff]  }
  0x48   : > { %1480 = vmatpush1.bf16.msra.mxu0 %v2116_v7  ;;  %1335 = vmatprep.subr.bf16.mxu1 %v2121_v8  ;;  %v2208_v7 = vld [vmem:[%s2807_s1 + $0x3d4] ss:$8 sps:$4 sm:$0xff]   ;;  %v2203_v8 = vld [vmem:[%s2807_s1 + $0x1d0] ss:$8 sps:$4 sm:$0xff]  }
  0x49   : > { %1481 = vmatprep.subr.bf16.mxu0 %v2124_v9  ;;  %1302 = vmatprep.mubr.bf16.mxu1 %v2173_v18  ;;  %v2206_v9 = vld [vmem:[%s2807_s1 + $0x3d0] ss:$8 sps:$4 sm:$0xff]   ;;  %v2235_v18 = vld [vmem:[%s2807_s1 + $0x404] ss:$8 sps:$4 sm:$0xff]  }
  0x4a   : > { %1448 = vmatprep.mubr.bf16.mxu0 %v2175_v19  ;;  %v2227_v19 = vld [vmem:[%s2461_s5 + $0x8] ss:$36 sps:$4 sm:$0xff]  }
  0x4b   : > { %1336 = vmatpush1.bf16.msra.mxu1 %v2119_v10  ;;  %v2216_v10 = vld [vmem:[%s2807_s1 + $0x1e4] ss:$8 sps:$4 sm:$0xff]  }
  0x4c   : > { %1482 = vmatpush1.bf16.msra.mxu0 %v2122_v11  ;;  %1337 = vmatprep.subr.bf16.mxu1 %v2127_v12  ;;  %v2220_v11 = vld [vmem:[%s2807_s1 + $0x3e4] ss:$8 sps:$4 sm:$0xff]   ;;  %v2214_v12 = vld [vmem:[%s2807_s1 + $0x1e0] ss:$8 sps:$4 sm:$0xff]  }
  0x4d   : > { %1483 = vmatprep.subr.bf16.mxu0 %v2130_v13  ;;  %v2218_v13 = vld [vmem:[%s2807_s1 + $0x3e0] ss:$8 sps:$4 sm:$0xff]  }
  0x4e   : > { %1303 = vmatmul.mubr.bf16.gmra.mrb[4].mxu1 %v2177_v20  ;;  %v2230_v20 = vld [vmem:[%s2461_s5 + $0x18] ss:$36 sps:$4 sm:$0xff]  }
  0x4f   : > { %1338 = vmatpush1.bf16.msra.mxu1 %v2125_v14  ;;  %1449 = vmatmul.mubr.bf16.gmra.mrb[4].mxu0 %v2181_v23  ;;  %v2223_v14 = vld [vmem:[%s2807_s1 + $0x1f4] ss:$8 sps:$4 sm:$0xff]  }
  0x50   : > { %1484 = vmatpush1.bf16.msra.mxu0 %v2128_v15  ;;  %1339 = vmatprep.subr.bf16.mxu1 %v2133_v16  ;;  %v2226_v15 = vld [vmem:[%s2807_s1 + $0x3f4] ss:$8 sps:$4 sm:$0xff]   ;;  %v2221_v16 = vld [vmem:[%s2807_s1 + $0x1f0] ss:$8 sps:$4 sm:$0xff]  }
  0x51   : > { %1485 = vmatprep.subr.bf16.mxu0 %v2136_v17  ;;  %1312 = vmatprep.mubr.bf16.mxu1 %v2191_v30  ;;  %v2224_v17 = vld [vmem:[%s2807_s1 + $0x3f0] ss:$8 sps:$4 sm:$0xff]   ;;  %v2250_v30 = vld [vmem:[%s2807_s1 + $0x434] ss:$8 sps:$4 sm:$0xff]  }
  0x52   : > { %1458 = vmatprep.mubr.bf16.mxu0 %v2193_v31  ;;  %v2239_v23 = vld [vmem:[%s2461_s5 + $0x54] ss:$36 sps:$4 sm:$0xff]   ;;  %v2251_v31 = vld [vmem:[%s2461_s5 + $0x9c] ss:$36 sps:$4 sm:$0xff]  }
  0x53   : > { %1340 = vmatpush1.bf16.msra.mxu1 %v2131_v21  ;;  %v2233_v21 = vld [vmem:[%s2807_s1 + $0x400] ss:$8 sps:$4 sm:$0xff]  }
  0x54   : > { %1486 = vmatpush1.bf16.msra.mxu0 %v2134_v22  ;;  %1341 = vmatprep.subr.bf16.mxu1 %v2139_v24  ;;  %v2238_v22 = vld [vmem:[%s2807_s1 + $0x414] ss:$8 sps:$4 sm:$0xff]   ;;  %v2241_v24 = vld [vmem:[%s2461_s5 + $0x64] ss:$36 sps:$4 sm:$0xff]  }
  0x55   : > { %1487 = vmatprep.subr.bf16.mxu0 %v2142_v25  ;;  %v2236_v25 = vld [vmem:[%s2807_s1 + $0x410] ss:$8 sps:$4 sm:$0xff]  }
  0x56   : > { %1313 = vmatmul.mubr.bf16.gmra.mrb[8].mxu1 %v2195_v32  ;;  %v2253_v32 = vld [vmem:[%s2461_s5 + $0xac] ss:$36 sps:$4 sm:$0xff]  }
  0x57   : > { %1342 = vmatpush1.bf16.msra.mxu1 %v2137_v26  ;;  %1459 = vmatmul.mubr.bf16.gmra.mrb[8].mxu0 %v2199_v35  ;;  %v2247_v26 = vld [vmem:[%s2807_s1 + $0x424] ss:$8 sps:$4 sm:$0xff]   ;;  %v2255_v35 = vld [vmem:[%s2461_s5 + $0x98] ss:$36 sps:$4 sm:$0xff]  }
  0x58   : > { %1488 = vmatpush1.bf16.msra.mxu0 %v2140_v27  ;;  %1343 = vmatprep.subr.bf16.mxu1 %v2145_v28  ;;  %v2243_v27 = vld [vmem:[%s2461_s5 + $0x50] ss:$36 sps:$4 sm:$0xff]   ;;  %v2244_v28 = vld [vmem:[%s2461_s5 + $0x60] ss:$36 sps:$4 sm:$0xff]  }
  0x59   : > { %1489 = vmatprep.subr.bf16.mxu0 %v2148_v29  ;;  %1322 = vmatprep.mubr.bf16.mxu1 %v2209_v42  ;;  %v2245_v29 = vld [vmem:[%s2807_s1 + $0x420] ss:$8 sps:$4 sm:$0xff]   ;;  %v2271_v42 = vld [vmem:[%s2807_s1 + $0x464] ss:$8 sps:$4 sm:$0xff]  }
  0x5a   : > { %1468 = vmatprep.mubr.bf16.mxu0 %v2211_v43  ;;  %v2267_v43 = vld [vmem:[%s2461_s5 + $0xe0] ss:$36 sps:$4 sm:$0xff]  }
  0x5b   : > { %1344 = vmatpush1.bf16.msra.mxu1 %v2143_v33  ;;  %v2248_v33 = vld [vmem:[%s2807_s1 + $0x430] ss:$8 sps:$4 sm:$0xff]  }
  0x5c   : > { %1490 = vmatpush1.bf16.msra.mxu0 %v2146_v34  ;;  %1345 = vmatprep.subr.bf16.mxu1 %v2151_v36  ;;  %v2259_v34 = vld [vmem:[%s2807_s1 + $0x444] ss:$8 sps:$4 sm:$0xff]  }
  0x5d   : > { %1491 = vmatprep.subr.bf16.mxu0 %v2154_v37  ;;  %v2256_v36 = vld [vmem:[%s2461_s5 + $0xa8] ss:$36 sps:$4 sm:$0xff]  }
  0x5e   : > { %1323 = vmatmul.mubr.bf16.gmra.mrb[12].mxu1 %v2213_v44  ;;  %v2257_v37 = vld [vmem:[%s2807_s1 + $0x440] ss:$8 sps:$4 sm:$0xff]   ;;  %v2268_v44 = vld [vmem:[%s2461_s5 + $0xf0] ss:$36 sps:$4 sm:$0xff]  }
  0x5f   : > { %1346 = vmatpush1.bf16.msra.mxu1 %v2149_v38  ;;  %1469 = vmatmul.mubr.bf16.gmra.mrb[12].mxu0 %v2217_v47  ;;  %v2262_v38 = vld [vmem:[%s2807_s1 + $0x454] ss:$8 sps:$4 sm:$0xff]   ;;  %v2272_v47 = vld [vmem:[%s2807_s1 + $0x470] ss:$8 sps:$4 sm:$0xff]  }
  0x60   : > { %1492 = vmatpush1.bf16.msra.mxu0 %v2152_v39  ;;  %1347 = vmatprep.subr.bf16.mxu1 %v2157_v40  ;;  %v2263_v39 = vld [vmem:[%s2461_s5 + $0xe4] ss:$36 sps:$4 sm:$0xff]   ;;  %v2265_v40 = vld [vmem:[%s2461_s5 + $0xf4] ss:$36 sps:$4 sm:$0xff]  }
  0x61   : > { %1493 = vmatprep.subr.bf16.mxu0 %v2160_v41  ;;  %1365 = vmatprep.mubr.bf16.mxu1 %v2229_v54  ;;  %v2260_v41 = vld [vmem:[%s2807_s1 + $0x450] ss:$8 sps:$4 sm:$0xff]  }
  0x62   : > { %1511 = vmatprep.mubr.bf16.mxu0 %v2232_v55 }
  0x63   : > { %1348 = vmatpush1.bf16.msra.mxu1 %v2155_v45  ;;  %v2269_v45 = vld [vmem:[%s2807_s1 + $0x460] ss:$8 sps:$4 sm:$0xff]  }
  0x64   : > { %1494 = vmatpush1.bf16.msra.mxu0 %v2158_v46  ;;  %1349 = vmatprep.subr.bf16.mxu1 %v2163_v48  ;;  %v2274_v46 = vld [vmem:[%s2807_s1 + $0x474] ss:$8 sps:$4 sm:$0xff]   ;;  %v2287_v48 = vmov 0  }
  0x65   : > { %1495 = vmatprep.subr.bf16.mxu0 %v2166_v49  ;;  %v2275_v49 = vld [vmem:[%s2461_s5 + $0x20] ss:$36 sps:$4 sm:$0xff]  }
  0x67   : > { %1350 = vmatpush1.bf16.msra.mxu1 %v2161_v50  ;;  %v2276_v50 = vld [vmem:[%s2461_s5 + $0xb0] ss:$36 sps:$4 sm:$0xff]  }
  0x68   : > { %1496 = vmatpush1.bf16.msra.mxu0 %v2164_v51  ;;  %1351 = vmatprep.subr.bf16.mxu1 %v2169_v52  ;;  %v2277_v51 = vld [vmem:[%s2461_s5 + $0x68] ss:$36 sps:$4 sm:$0xff]   ;;  %v2278_v52 = vld [vmem:[%s2461_s5 + $0xf8] ss:$36 sps:$4 sm:$0xff]  }
  0x69   : > { %1497 = vmatprep.subr.bf16.mxu0 %v2172_v53 }
  0x6b   : > { %1352 = vmatpush1.bf16.msra.mxu1 %v2167_v56 }
  0x6c   : > { %1498 = vmatpush1.bf16.msra.mxu0 %v2170_v57  ;;  %1353 = vmatprep.subr.bf16.mxu1 %v2180_v58 }
  0x6d   : > { %1499 = vmatprep.subr.bf16.mxu0 %v2184_v59 }
  0x6f   : > { %1354 = vmatpush1.bf16.msra.mxu1 %v2178_v60 }
  0x70   : > { %1500 = vmatpush1.bf16.msra.mxu0 %v2182_v61  ;;  %1355 = vmatprep.subr.bf16.mxu1 %v2187_v62 }
  0x71   : > { %1501 = vmatprep.subr.bf16.mxu0 %v2190_v63 }
  0x73   : > { %1356 = vmatpush1.bf16.msra.mxu1 %v2185_v0 }
  0x74   : > { %1502 = vmatpush1.bf16.msra.mxu0 %v2188_v1  ;;  %1357 = vmatprep.subr.bf16.mxu1 %v2198_v2 }
  0x75   : > { %1503 = vmatprep.subr.bf16.mxu0 %v2202_v3 }
  0x77   : > { %1358 = vmatpush1.bf16.msra.mxu1 %v2196_v4 }
  0x78   : > { %1504 = vmatpush1.bf16.msra.mxu0 %v2200_v5  ;;  %1359 = vmatprep.subr.bf16.mxu1 %v2205_v6 }
  0x79   : > { %1505 = vmatprep.subr.bf16.mxu0 %v2208_v7 }
  0x7b   : > { %1360 = vmatpush1.bf16.msra.mxu1 %v2203_v8 }
  0x7c   : > { %1506 = vmatpush1.bf16.msra.mxu0 %v2206_v9  ;;  %1361 = vmatprep.subr.bf16.mxu1 %v2216_v10 }
  0x7d   : > { %1507 = vmatprep.subr.bf16.mxu0 %v2220_v11 }
  0x7f   : > { %1362 = vmatpush1.bf16.msra.mxu1 %v2214_v12 }
  0x80   : > { %1508 = vmatpush1.bf16.msra.mxu0 %v2218_v13  ;;  %1363 = vmatprep.subr.bf16.mxu1 %v2223_v14 }
  0x81   : > { %1509 = vmatprep.subr.bf16.mxu0 %v2226_v15 }
  0x83   : > { %1364 = vmatpush1.bf16.msra.mxu1 %v2221_v16 }
  0x84   : > { %1510 = vmatpush1.bf16.msra.mxu0 %v2224_v17  ;;  %1921 = vmatprep.subr.bf16.mxu1 %v2235_v18 }
  0x85   : > { %1552 = vmatprep.subr.bf16.mxu0 %v2235_v18 }
  0x86   : > { %1366 = vmatmul.mubr.bf16.vlgmr.msra.gmra.mrb[0].mxu1 %v2227_v19 }
  0x87   : > { %1512 = vmatmul.mubr.bf16.vlgmr.msra.gmra.mrb[0].mxu0 %v2230_v20  ;;  %1929 = vmatpush1.bf16.msra.mxu1 %v2233_v21 }
  0x88   : > { %1553 = vmatpush1.bf16.msra.mxu0 %v2233_v21  ;;  %1922 = vmatprep.subr.bf16.mxu1 %v2238_v22 }
  0x89   : > { %1554 = vmatprep.subr.bf16.mxu0 %v2238_v22  ;;  %1375 = vmatprep.mubr.bf16.mxu1 %v2239_v23 }
  0x8a   : > { %1521 = vmatprep.mubr.bf16.mxu0 %v2241_v24 }
  0x8b   : > { %1930 = vmatpush1.bf16.msra.mxu1 %v2236_v25 }
  0x8c   : > { %1555 = vmatpush1.bf16.msra.mxu0 %v2236_v25  ;;  %1923 = vmatprep.subr.bf16.mxu1 %v2247_v26 }
  0x8d   : > { %1556 = vmatprep.subr.bf16.mxu0 %v2247_v26 }
  0x8e   : > { %1376 = vmatmul.mubr.bf16.gmra.mrb[4].mxu1 %v2243_v27  ;;  %v1639_v27 = vlaneseq }
  0x8f   : > { %1522 = vmatmul.mubr.bf16.gmra.mrb[4].mxu0 %v2244_v28  ;;  %1931 = vmatpush1.bf16.msra.mxu1 %v2245_v29 }
  0x90   : > { %1557 = vmatpush1.bf16.msra.mxu0 %v2245_v29  ;;  %1924 = vmatprep.subr.bf16.mxu1 %v2250_v30 }
  0x91   : > { %1558 = vmatprep.subr.bf16.mxu0 %v2250_v30  ;;  %1385 = vmatprep.mubr.bf16.mxu1 %v2251_v31 }
  0x92   : > { %1531 = vmatprep.mubr.bf16.mxu0 %v2253_v32 }
  0x93   : > { %1932 = vmatpush1.bf16.msra.mxu1 %v2248_v33 }
  0x94   : > { %1559 = vmatpush1.bf16.msra.mxu0 %v2248_v33  ;;  %1925 = vmatprep.subr.bf16.mxu1 %v2259_v34 }
  0x95   : > { %1560 = vmatprep.subr.bf16.mxu0 %v2259_v34 }
  0x96   : > { %1386 = vmatmul.mubr.bf16.gmra.mrb[8].mxu1 %v2255_v35 }
  0x97   : > { %1532 = vmatmul.mubr.bf16.gmra.mrb[8].mxu0 %v2256_v36  ;;  %1933 = vmatpush1.bf16.msra.mxu1 %v2257_v37 }
  0x98   : > { %1561 = vmatpush1.bf16.msra.mxu0 %v2257_v37  ;;  %1926 = vmatprep.subr.bf16.mxu1 %v2262_v38 }
  0x99   : > { %1562 = vmatprep.subr.bf16.mxu0 %v2262_v38  ;;  %1395 = vmatprep.mubr.bf16.mxu1 %v2263_v39  ;;  %v1640_v38 = vshrl.u32 %v1639_v27, 7 }
  0x9a   : > { %1541 = vmatprep.mubr.bf16.mxu0 %v2265_v40 }
  0x9b   : > { %1934 = vmatpush1.bf16.msra.mxu1 %v2260_v41 }
  0x9c   : > { %1563 = vmatpush1.bf16.msra.mxu0 %v2260_v41  ;;  %1927 = vmatprep.subr.bf16.mxu1 %v2271_v42 }
  0x9d   : > { %1564 = vmatprep.subr.bf16.mxu0 %v2271_v42 }
  0x9e   : > { %1396 = vmatmul.mubr.bf16.gmra.mrb[12].mxu1 %v2267_v43  ;;  %v1641_v43 = vsub.s32 0, %v1640_v38 }
  0x9f   : > { %1542 = vmatmul.mubr.bf16.gmra.mrb[12].mxu0 %v2268_v44  ;;  %1935 = vmatpush1.bf16.msra.mxu1 %v2269_v45 }
  0xa0   : > { %1565 = vmatpush1.bf16.msra.mxu0 %v2269_v45  ;;  %1928 = vmatprep.subr.bf16.mxu1 %v2274_v46 }
  0xa1   : > { %1566 = vmatprep.subr.bf16.mxu0 %v2274_v46  ;;  %1584 = vmatprep.mubr.bf16.mxu0 %v2287_v48  ;;  %v1637_v46 = vld [vmem:[%s2808_s2] sm:$0x3] }
  0xa2   : > { %1604 = vmatprep.mubr.bf16.mxu1 %v2287_v48 }
  0xa3   : > { %1936 = vmatpush1.bf16.msra.mxu1 %v2272_v47 }
  0xa4   : > { %1567 = vmatpush1.bf16.msra.mxu0 %v2272_v47 }
  0xa6   : > { %1605 = vmatmul.mubr.bf16.vlgmr.msra.gmra.mrb[16].mxu1 %v2276_v50 }
  0xa7   : > { %1585 = vmatmul.mubr.bf16.vlgmr.msra.gmra.mrb[0].mxu0 %v2275_v49  ;;  %1614 = vmatprep.mubr.bf16.mxu1 %v2287_v48  ;;  %v1645_v49 = vsub.s32 1, %v1640_v38 }
  0xa8   : > { %1594 = vmatprep.mubr.bf16.mxu0 %v2287_v48 }
  0xae   : > { %1615 = vmatmul.mubr.bf16.gmra.mrb[20].mxu1 %v2278_v52 }
  0xaf   : > { %1595 = vmatmul.mubr.bf16.gmra.mrb[4].mxu0 %v2277_v51 }
 0x159   : > { %v1367_v53 = vpop.f32.mrb[0].mxu1 }
 0x15a   : > { %v1369_v54 = vpop.f32.mrb[1].mxu1 }
 0x15b   : > { %v1371_v55 = vpop.f32.mrb[2].mxu1 }
 0x15c   : > { %v1373_v56 = vpop.f32.mrb[3].mxu1 }
 0x161   : > { %v1377_v57 = vpop.f32.mrb[4].mxu1 }
 0x162   : > { %v1379_v58 = vpop.f32.mrb[5].mxu1 }
 0x163   : > { %v1381_v59 = vpop.f32.mrb[6].mxu1 }
 0x164   : > { %v1383_v60 = vpop.f32.mrb[7].mxu1 }
 0x169   : > { %v1387_v61 = vpop.f32.mrb[8].mxu1 }
 0x16a   : > { %v1533_v62 = vpop.f32.mrb[8].mxu0  ;;  %v1389_v0 = vpop.f32.mrb[9].mxu1 }
 0x16b   : > { %v1945_v63 = vadd.f32 %v1533_v62, %v1387_v61  ;;  %v1535_v1 = vpop.f32.mrb[9].mxu0  ;;  %v1391_v3 = vpop.f32.mrb[10].mxu1 }
 0x16c   : > { %v1947_v2 = vadd.f32 %v1535_v1, %v1389_v0  ;;  %v1537_v4 = vpop.f32.mrb[10].mxu0  ;;  %v1393_v6 = vpop.f32.mrb[11].mxu1  ;;  %v1642_v0 = vrot.slane %v1637_v46, %v1641_v43 }
 0x16d   : > { %v1949_v5 = vadd.f32 %v1537_v4, %v1391_v3  ;;  %v1539_v7 = vpop.f32.mrb[11].mxu0  ;;  %v1646_v3 = vrot.slane %v1637_v46, %v1645_v49 }
 0x16e   : > { %v1951_v8 = vadd.f32 %v1539_v7, %v1393_v6 }
 0x171   : > { %v1397_v9 = vpop.f32.mrb[12].mxu1 }
 0x172   : > { %v1543_v10 = vpop.f32.mrb[12].mxu0  ;;  %v1399_v12 = vpop.f32.mrb[13].mxu1 }
 0x173   : > { %v1953_v11 = vadd.f32 %v1543_v10, %v1397_v9  ;;  %v1545_v13 = vpop.f32.mrb[13].mxu0  ;;  %v1401_v15 = vpop.f32.mrb[14].mxu1 }
 0x174   : > { %v1955_v14 = vadd.f32 %v1545_v13, %v1399_v12  ;;  %v1547_v16 = vpop.f32.mrb[14].mxu0  ;;  %v1403_v18 = vpop.f32.mrb[15].mxu1 }
 0x175   : > { %v1957_v17 = vadd.f32 %v1547_v16, %v1401_v15  ;;  %v1549_v19 = vpop.f32.mrb[15].mxu0 }
 0x176   : > { %v1959_v20 = vadd.f32 %v1549_v19, %v1403_v18 }
 0x179   : > { %v1606_v22 = vpop.f32.mrb[16].mxu1 }
 0x17a   : > { %v1586_v21 = vpop.f32.mrb[0].mxu0  ;;  %v1946_v24 = vadd.f32 %v1945_v63, %v1606_v22  ;;  %v1608_v26 = vpop.f32.mrb[17].mxu1 }
 0x17b   : > { %v1937_v23 = vadd.f32 %v1586_v21, %v1367_v53  ;;  %v1588_v25 = vpop.f32.mrb[1].mxu0  ;;  %v1948_v29 = vadd.f32 %v1947_v2, %v1608_v26  ;;  %v1610_v31 = vpop.f32.mrb[18].mxu1 }
 0x17c   : > { %v1938_v28 = vadd.f32 %v1588_v25, %v1369_v54  ;;  %v1590_v30 = vpop.f32.mrb[2].mxu0  ;;  %v1950_v33 = vadd.f32 %v1949_v5, %v1610_v31  ;;  %v1612_v35 = vpop.f32.mrb[19].mxu1 }
 0x17d   : > { %v1939_v32 = vadd.f32 %v1590_v30, %v1371_v55  ;;  %v1592_v34 = vpop.f32.mrb[3].mxu0  ;;  %v1952_v37 = vadd.f32 %v1951_v8, %v1612_v35 }
 0x17e   : > { %v1940_v36 = vadd.f32 %v1592_v34, %v1373_v56 }
 0x181   : > { %v1616_v40 = vpop.f32.mrb[20].mxu1 }
 0x182   : > { %v1596_v39 = vpop.f32.mrb[4].mxu0  ;;  %v1954_v42 = vadd.f32 %v1953_v11, %v1616_v40  ;;  %v1618_v45 = vpop.f32.mrb[21].mxu1 }
 0x183   : > { %v1941_v41 = vadd.f32 %v1596_v39, %v1377_v57  ;;  %v1598_v44 = vpop.f32.mrb[5].mxu0  ;;  %v1956_v48 = vadd.f32 %v1955_v14, %v1618_v45  ;;  %v1620_v51 = vpop.f32.mrb[22].mxu1 }
 0x184   : > { %v1942_v47 = vadd.f32 %v1598_v44, %v1379_v58  ;;  %v1600_v50 = vpop.f32.mrb[6].mxu0  ;;  %v1958_v54 = vadd.f32 %v1957_v17, %v1620_v51  ;;  %v1622_v56 = vpop.f32.mrb[23].mxu1 }
 0x185   : > { %v1625_v52 = vmax.f32 %v1937_v23, %v1941_v41  ;;  %v1943_v53 = vadd.f32 %v1600_v50, %v1381_v59  ;;  %v1602_v55 = vpop.f32.mrb[7].mxu0  ;;  %v1960_v62 = vadd.f32 %v1959_v20, %v1622_v56 }
 0x186   : > { %v1626_v57 = vmax.f32 %v1938_v28, %v1942_v47  ;;  %v1944_v61 = vadd.f32 %v1602_v55, %v1383_v60 }
 0x187   : > { %v1629_v63 = vmax.f32 %v1625_v52, %v1946_v24  ;;  %v1627_v1 = vmax.f32 %v1939_v32, %v1943_v53 }
 0x188   : > { %v1630_v2 = vmax.f32 %v1626_v57, %v1948_v29  ;;  %v1628_v4 = vmax.f32 %v1940_v36, %v1944_v61 }
 0x189   : > { %v1633_v58 = vmax.f32 %v1629_v63, %v1954_v42  ;;  %v1631_v5 = vmax.f32 %v1627_v1, %v1950_v33 }
 0x18a   : > { %v1634_v6 = vmax.f32 %v1630_v2, %v1956_v48  ;;  %v1632_v7 = vmax.f32 %v1628_v4, %v1952_v37 }
 0x18b   : > { %v1649_v8 = vadd.f32 %v1642_v0, %v1633_v58  ;;  %v1635_v9 = vmax.f32 %v1631_v5, %v1958_v54 }
 0x18c   : > { %v1650_v59 = vadd.f32 %v1646_v3, %v1634_v6  ;;  %v1636_v10 = vmax.f32 %v1632_v7, %v1960_v62 }
 0x18d   : > { %v1653_v11 = vmax.f32 %v1649_v8, 0.0  ;;  %v1651_v12 = vadd.f32 %v1642_v0, %v1635_v9 }
 0x18e   : > { %v1654_v13 = vmax.f32 %v1650_v59, 0.0  ;;  %v1652_v60 = vadd.f32 %v1646_v3, %v1636_v10 }
 0x18f   : > { %v1655_v14 = vmax.f32 %v1651_v12, 0.0 }
 0x190   : > { %v1919_v15 = vpack.c.bf16 %v1654_v13, %v1653_v11  ;;  %v1656_v16 = vmax.f32 %v1652_v60, 0.0 }
 0x192   : > { %1669 = vst [vmem:[%s170_s18] sm:$0xff] %v1919_v15  ;;  %v1920_v17 = vpack.c.bf16 %v1656_v16, %v1655_v14 }
 0x194   : > { %1670 = vst [vmem:[%s170_s18 + $0x8] sm:$0xff] %v1920_v17 }
 0x195 PF: > { %s13_s12 = sadd.s32 1, %s2285_s12  }
 0x196   : > { %p10_p4 = scmp.ge.s32.totalorder %s13_s12, 4  }
 0x198   :  { %12 = sbr.rel (!%p10_p4) target bundleno = 1 (0x1), region = 62 }

// kernel: feature_block.7
= control target key start
LH: loop header
LB: loop body
LE: loop exit
PB: predicated region body
PF: predicated region fallthrough
CT: control target
= control target key end

     0   :  { %s3625_s12 = smov 0   ;;  %s4555_s0 = inlined_call_operand.vmem [shape: bf16[2,32,2304], index: 0, kind: input, shape index: {}]   ;;  %s4556_s1 = inlined_call_operand.vmem [shape: bf16[2304,256], index: 1, kind: input, shape index: {}]   ;;  %s4557_s2 = inlined_call_operand.vmem [shape: f32[1,256], index: 2, kind: input, shape index: {}]   ;;  %s4558_s3 = inlined_call_operand.vmem [shape: f32[2,8,256], index: 3, kind: output, shape index: {}]  }
   0x1 LB: > { %s2671_s13 = sadd.s32 4294967295, %s3603_s12   ;;  %p2675_p0 = scmp.ge.s32.totalorder %s3603_s12, 1  ;;  %s3603_s12 = sphi %s3625_s12, %s13_s12  }
   0x2   : > { %p137_p1 = scmp.lt.s32.totalorder %s3603_s12, 3 }
   0x4   : > { %p138_p2 = pnand %p2675_p0, %p137_p1 }
   0x5   : > { %v3111_v0 = vld [vmem:[%s4556_s1 + $0x4] ss:$8 sps:$4 sm:$0xff] (!%p138_p2)   ;;  %v3115_v2 = vld [vmem:[%s4556_s1] ss:$8 sps:$4 sm:$0xff] (!%p138_p2)   ;;  %v3117_v4 = vld [vmem:[%s4556_s1 + $0x14] ss:$8 sps:$4 sm:$0xff] (!%p138_p2)  }
   0x6   : > { %141 = sbr.rel (%p138_p2) target bundleno = 555 (0x22b), region = 32  ;;  %v3113_v1 = vld [vmem:[%s4556_s1 + $0x404] ss:$8 sps:$4 sm:$0xff] (!%p138_p2)   ;;  %2115 = vmatprep.subr.bf16.mxu1 (!%p138_p2), %v3111_v0  ;;  %v3116_v3 = vld [vmem:[%s4556_s1 + $0x400] ss:$8 sps:$4 sm:$0xff] (!%p138_p2)   ;;  %p161_p3 = scmp.lt.s32.totalorder (!%p138_p2), %s2671_s13, 1 }
   0x7   : > { %2327 = vmatprep.subr.bf16.mxu0 (!%p138_p2), %v3113_v1  ;;  %2116 = vmatpush1.bf16.msra.mxu1 (!%p138_p2), %v3115_v2  ;;  %v3119_v5 = vld [vmem:[%s4556_s1 + $0x414] ss:$8 sps:$4 sm:$0xff] (!%p138_p2)   ;;  %v3121_v6 = vld [vmem:[%s4556_s1 + $0x10] ss:$8 sps:$4 sm:$0xff] (!%p138_p2)   ;;  %v3123_v8 = vld [vmem:[%s4556_s1 + $0x24] ss:$8 sps:$4 sm:$0xff] (!%p138_p2)  }
   0x8   : > { %2328 = vmatpush1.bf16.msra.mxu0 (!%p138_p2), %v3116_v3  ;;  %2117 = vmatprep.subr.bf16.mxu1 (!%p138_p2), %v3117_v4  ;;  %v3122_v7 = vld [vmem:[%s4556_s1 + $0x410] ss:$8 sps:$4 sm:$0xff] (!%p138_p2)   ;;  %v3125_v9 = vld [vmem:[%s4556_s1 + $0x424] ss:$8 sps:$4 sm:$0xff] (!%p138_p2)   ;;  %v3127_v10 = vld [vmem:[%s4556_s1 + $0x20] ss:$8 sps:$4 sm:$0xff] (!%p138_p2)  }
   0x9   : > { %2329 = vmatprep.subr.bf16.mxu0 (!%p138_p2), %v3119_v5  ;;  %v3128_v11 = vld [vmem:[%s4556_s1 + $0x420] ss:$8 sps:$4 sm:$0xff] (!%p138_p2)   ;;  %v3129_v12 = vld [vmem:[%s4556_s1 + $0x34] ss:$8 sps:$4 sm:$0xff] (!%p138_p2)   ;;  %v3133_v14 = vld [vmem:[%s4556_s1 + $0x30] ss:$8 sps:$4 sm:$0xff] (!%p138_p2)  }
   0xa   : > { %v3131_v13 = vld [vmem:[%s4556_s1 + $0x434] ss:$8 sps:$4 sm:$0xff] (!%p138_p2)   ;;  %v3134_v15 = vld [vmem:[%s4556_s1 + $0x430] ss:$8 sps:$4 sm:$0xff] (!%p138_p2)   ;;  %v3135_v16 = vld [vmem:[%s4556_s1 + $0x44] ss:$8 sps:$4 sm:$0xff] (!%p138_p2)  }
   0xb   : > { %2118 = vmatpush1.bf16.msra.mxu1 (!%p138_p2), %v3121_v6  ;;  %v3137_v17 = vld [vmem:[%s4556_s1 + $0x444] ss:$8 sps:$4 sm:$0xff] (!%p138_p2)   ;;  %v3139_v18 = vld [vmem:[%s4556_s1 + $0x40] ss:$8 sps:$4 sm:$0xff] (!%p138_p2)   ;;  %v3141_v20 = vld [vmem:[%s4556_s1 + $0x54] ss:$8 sps:$4 sm:$0xff] (!%p138_p2)  }
   0xc   : > { %2330 = vmatpush1.bf16.msra.mxu0 (!%p138_p2), %v3122_v7  ;;  %2119 = vmatprep.subr.bf16.mxu1 (!%p138_p2), %v3123_v8  ;;  %v3140_v19 = vld [vmem:[%s4556_s1 + $0x440] ss:$8 sps:$4 sm:$0xff] (!%p138_p2)   ;;  %v3143_v21 = vld [vmem:[%s4556_s1 + $0x454] ss:$8 sps:$4 sm:$0xff] (!%p138_p2)   ;;  %v3145_v22 = vld [vmem:[%s4556_s1 + $0x50] ss:$8 sps:$4 sm:$0xff] (!%p138_p2)  }
   0xd   : > { %2331 = vmatprep.subr.bf16.mxu0 %v3125_v9  ;;  %v3146_v23 = vld [vmem:[%s4556_s1 + $0x450] ss:$8 sps:$4 sm:$0xff]   ;;  %v3147_v24 = vld [vmem:[%s4556_s1 + $0x64] ss:$8 sps:$4 sm:$0xff]   ;;  %v3151_v26 = vld [vmem:[%s4556_s1 + $0x60] ss:$8 sps:$4 sm:$0xff]  }
   0xe   : > { %v3149_v25 = vld [vmem:[%s4556_s1 + $0x464] ss:$8 sps:$4 sm:$0xff]   ;;  %v3152_v27 = vld [vmem:[%s4556_s1 + $0x460] ss:$8 sps:$4 sm:$0xff]   ;;  %v3153_v28 = vld [vmem:[%s4556_s1 + $0x74] ss:$8 sps:$4 sm:$0xff]  }
   0xf   : > { %2120 = vmatpush1.bf16.msra.mxu1 %v3127_v10  ;;  %v3155_v29 = vld [vmem:[%s4556_s1 + $0x474] ss:$8 sps:$4 sm:$0xff]   ;;  %v3157_v30 = vld [vmem:[%s4556_s1 + $0x70] ss:$8 sps:$4 sm:$0xff]   ;;  %v3159_v32 = vld [vmem:[%s4556_s1 + $0x84] ss:$8 sps:$4 sm:$0xff]  }
  0x10   : > { %2332 = vmatpush1.bf16.msra.mxu0 %v3128_v11  ;;  %2121 = vmatprep.subr.bf16.mxu1 %v3129_v12  ;;  %v3158_v31 = vld [vmem:[%s4556_s1 + $0x470] ss:$8 sps:$4 sm:$0xff]   ;;  %v3161_v33 = vld [vmem:[%s4556_s1 + $0x484] ss:$8 sps:$4 sm:$0xff]   ;;  %v3163_v34 = vld [vmem:[%s4556_s1 + $0x80] ss:$8 sps:$4 sm:$0xff]  }
  0x11   : > { %2333 = vmatprep.subr.bf16.mxu0 %v3131_v13  ;;  %v3164_v35 = vld [vmem:[%s4556_s1 + $0x480] ss:$8 sps:$4 sm:$0xff]   ;;  %v3165_v36 = vld [vmem:[%s4556_s1 + $0x94] ss:$8 sps:$4 sm:$0xff]   ;;  %s4560_s13 = smov (!%p161_p3, %s2671_s13), 1 }
  0x12   : > { %v3167_v37 = vld [vmem:[%s4556_s1 + $0x494] ss:$8 sps:$4 sm:$0xff]   ;;  %v3169_v38 = vld [vmem:[%s4556_s1 + $0x90] ss:$8 sps:$4 sm:$0xff]   ;;  %v3171_v40 = vld [vmem:[%s4556_s1 + $0xa4] ss:$8 sps:$4 sm:$0xff]  }
  0x13   : > { %2122 = vmatpush1.bf16.msra.mxu1 %v3133_v14  ;;  %v3170_v39 = vld [vmem:[%s4556_s1 + $0x490] ss:$8 sps:$4 sm:$0xff]   ;;  %s3102_s21 = smul.u32 288, %s4560_s13  ;;  %v3173_v41 = vld [vmem:[%s4556_s1 + $0x4a4] ss:$8 sps:$4 sm:$0xff]   ;;  %s3005_s15 = sshll.u32 %s4560_s13, 4 }
  0x14   : > { %2334 = vmatpush1.bf16.msra.mxu0 %v3134_v15  ;;  %2123 = vmatprep.subr.bf16.mxu1 %v3135_v16  ;;  %v3175_v42 = vld [vmem:[%s4556_s1 + $0xa0] ss:$8 sps:$4 sm:$0xff]   ;;  %v3177_v44 = vld [vmem:[%s4556_s1 + $0xb4] ss:$8 sps:$4 sm:$0xff]   ;;  %v3181_v46 = vld [vmem:[%s4556_s1 + $0xb0] ss:$8 sps:$4 sm:$0xff]   ;;  %s170_s18 = scalar_lea.vmem %s4558_s3, %s3005_s15 }
  0x15   : > { %2335 = vmatprep.subr.bf16.mxu0 %v3137_v17  ;;  %v3176_v43 = vld [vmem:[%s4556_s1 + $0x4a0] ss:$8 sps:$4 sm:$0xff]   ;;  %s3778_s5 = scalar_lea.vmem %s4555_s0, %s3102_s21  ;;  %v3179_v45 = vld [vmem:[%s4556_s1 + $0x4b4] ss:$8 sps:$4 sm:$0xff]   ;;  %v3182_v47 = vld [vmem:[%s4556_s1 + $0x4b0] ss:$8 sps:$4 sm:$0xff]  }
  0x16   : > { %v3209_v48 = vld [vmem:[%s3778_s5 + $0x4] ss:$72 sps:$4 sm:$0xff]   ;;  %v3187_v52 = vld [vmem:[%s4556_s1 + $0xc0] ss:$8 sps:$4 sm:$0xff]   ;;  %v3189_v54 = vld [vmem:[%s4556_s1 + $0xd4] ss:$8 sps:$4 sm:$0xff]  }
  0x17   : > { %2124 = vmatpush1.bf16.msra.mxu1 %v3139_v18  ;;  %v3183_v49 = vld [vmem:[%s4556_s1 + $0xc4] ss:$8 sps:$4 sm:$0xff]   ;;  %2147 = vmatprep.mubr.bf16.mxu1 %v3209_v48  ;;  %v3188_v53 = vld [vmem:[%s4556_s1 + $0x4c0] ss:$8 sps:$4 sm:$0xff]   ;;  %v3191_v55 = vld [vmem:[%s4556_s1 + $0x4d4] ss:$8 sps:$4 sm:$0xff]  }
  0x18   : > { %2336 = vmatpush1.bf16.msra.mxu0 %v3140_v19  ;;  %2125 = vmatprep.subr.bf16.mxu1 %v3141_v20  ;;  %v3185_v50 = vld [vmem:[%s4556_s1 + $0x4c4] ss:$8 sps:$4 sm:$0xff]   ;;  %v3193_v56 = vld [vmem:[%s4556_s1 + $0xd0] ss:$8 sps:$4 sm:$0xff]   ;;  %v3199_v60 = vld [vmem:[%s4556_s1 + $0xe0] ss:$8 sps:$4 sm:$0xff]  }
  0x19   : > { %2337 = vmatprep.subr.bf16.mxu0 %v3143_v21  ;;  %v3215_v51 = vld [vmem:[%s3778_s5 + $0x24] ss:$72 sps:$4 sm:$0xff]   ;;  %v3194_v57 = vld [vmem:[%s4556_s1 + $0x4d0] ss:$8 sps:$4 sm:$0xff]   ;;  %v3200_v61 = vld [vmem:[%s4556_s1 + $0x4e0] ss:$8 sps:$4 sm:$0xff]  }
  0x1a   : > { %2359 = vmatprep.mubr.bf16.mxu0 %v3215_v51  ;;  %v3195_v58 = vld [vmem:[%s4556_s1 + $0xe4] ss:$8 sps:$4 sm:$0xff]   ;;  %v3201_v62 = vld [vmem:[%s4556_s1 + $0xf4] ss:$8 sps:$4 sm:$0xff]   ;;  %v3205_v0 = vld [vmem:[%s4556_s1 + $0xf0] ss:$8 sps:$4 sm:$0xff]  }
  0x1b   : > { %2126 = vmatpush1.bf16.msra.mxu1 %v3145_v22  ;;  %v3197_v59 = vld [vmem:[%s4556_s1 + $0x4e4] ss:$8 sps:$4 sm:$0xff]   ;;  %v3203_v63 = vld [vmem:[%s4556_s1 + $0x4f4] ss:$8 sps:$4 sm:$0xff]   ;;  %v3206_v1 = vld [vmem:[%s4556_s1 + $0x4f0] ss:$8 sps:$4 sm:$0xff]  }
  0x1c   : > { %2338 = vmatpush1.bf16.msra.mxu0 %v3146_v23  ;;  %2127 = vmatprep.subr.bf16.mxu1 %v3147_v24  ;;  %v3212_v2 = vld [vmem:[%s4556_s1 + $0x104] ss:$8 sps:$4 sm:$0xff]   ;;  %v3207_v4 = vld [vmem:[%s3778_s5] ss:$72 sps:$4 sm:$0xff]   ;;  %v3221_v8 = vld [vmem:[%s4556_s1 + $0x114] ss:$8 sps:$4 sm:$0xff]  }
  0x1d   : > { %2339 = vmatprep.subr.bf16.mxu0 %v3149_v25  ;;  %v3218_v3 = vld [vmem:[%s4556_s1 + $0x504] ss:$8 sps:$4 sm:$0xff]   ;;  %v3210_v5 = vld [vmem:[%s4556_s1 + $0x100] ss:$8 sps:$4 sm:$0xff]   ;;  %v3224_v9 = vld [vmem:[%s4556_s1 + $0x514] ss:$8 sps:$4 sm:$0xff]  }
  0x1e   : > { %v3213_v6 = vld [vmem:[%s3778_s5 + $0x20] ss:$72 sps:$4 sm:$0xff]   ;;  %v3219_v10 = vld [vmem:[%s4556_s1 + $0x110] ss:$8 sps:$4 sm:$0xff]   ;;  %v3227_v12 = vld [vmem:[%s4556_s1 + $0x124] ss:$8 sps:$4 sm:$0xff]  }
  0x1f   : > { %2128 = vmatpush1.bf16.msra.mxu1 %v3151_v26  ;;  %v3216_v7 = vld [vmem:[%s4556_s1 + $0x500] ss:$8 sps:$4 sm:$0xff]   ;;  %v3222_v11 = vld [vmem:[%s4556_s1 + $0x510] ss:$8 sps:$4 sm:$0xff]   ;;  %v3230_v13 = vld [vmem:[%s4556_s1 + $0x524] ss:$8 sps:$4 sm:$0xff]  }
  0x20   : > { %2340 = vmatpush1.bf16.msra.mxu0 %v3152_v27  ;;  %2129 = vmatprep.subr.bf16.mxu1 %v3153_v28  ;;  %v3225_v14 = vld [vmem:[%s4556_s1 + $0x120] ss:$8 sps:$4 sm:$0xff]   ;;  %v3233_v16 = vld [vmem:[%s4556_s1 + $0x134] ss:$8 sps:$4 sm:$0xff]   ;;  %v3231_v18 = vld [vmem:[%s4556_s1 + $0x130] ss:$8 sps:$4 sm:$0xff]  }
  0x21   : > { %2341 = vmatprep.subr.bf16.mxu0 %v3155_v29  ;;  %v3228_v15 = vld [vmem:[%s4556_s1 + $0x520] ss:$8 sps:$4 sm:$0xff]   ;;  %v3236_v17 = vld [vmem:[%s4556_s1 + $0x534] ss:$8 sps:$4 sm:$0xff]   ;;  %v3234_v19 = vld [vmem:[%s4556_s1 + $0x530] ss:$8 sps:$4 sm:$0xff]  }
  0x22   : > { %v3239_v20 = vld [vmem:[%s4556_s1 + $0x144] ss:$8 sps:$4 sm:$0xff]   ;;  %v3237_v22 = vld [vmem:[%s4556_s1 + $0x140] ss:$8 sps:$4 sm:$0xff]   ;;  %v3245_v24 = vld [vmem:[%s4556_s1 + $0x154] ss:$8 sps:$4 sm:$0xff]  }
  0x23   : > { %2130 = vmatpush1.bf16.msra.mxu1 %v3157_v30  ;;  %v3242_v21 = vld [vmem:[%s4556_s1 + $0x544] ss:$8 sps:$4 sm:$0xff]   ;;  %v3240_v23 = vld [vmem:[%s4556_s1 + $0x540] ss:$8 sps:$4 sm:$0xff]   ;;  %v3248_v25 = vld [vmem:[%s4556_s1 + $0x554] ss:$8 sps:$4 sm:$0xff]  }
  0x24   : > { %2342 = vmatpush1.bf16.msra.mxu0 %v3158_v31  ;;  %2131 = vmatprep.subr.bf16.mxu1 %v3159_v32  ;;  %v3243_v26 = vld [vmem:[%s4556_s1 + $0x150] ss:$8 sps:$4 sm:$0xff]   ;;  %v3297_v28 = vld [vmem:[%s3778_s5 + $0x94] ss:$72 sps:$4 sm:$0xff]   ;;  %v3251_v29 = vld [vmem:[%s4556_s1 + $0x164] ss:$8 sps:$4 sm:$0xff]  }
  0x25   : > { %2343 = vmatprep.subr.bf16.mxu0 %v3161_v33  ;;  %v3246_v27 = vld [vmem:[%s4556_s1 + $0x550] ss:$8 sps:$4 sm:$0xff]   ;;  %v3254_v30 = vld [vmem:[%s4556_s1 + $0x564] ss:$8 sps:$4 sm:$0xff]   ;;  %v3302_v31 = vld [vmem:[%s3778_s5 + $0xb4] ss:$72 sps:$4 sm:$0xff]  }
  0x26   : > { %v3249_v32 = vld [vmem:[%s4556_s1 + $0x160] ss:$8 sps:$4 sm:$0xff]   ;;  %v3267_v48 = vld [vmem:[%s4556_s1 + $0x190] ss:$8 sps:$4 sm:$0xff]   ;;  %v3278_v51 = vld [vmem:[%s4556_s1 + $0x5a4] ss:$8 sps:$4 sm:$0xff]  }
  0x27   : > { %2132 = vmatpush1.bf16.msra.mxu1 %v3163_v34  ;;  %v3252_v33 = vld [vmem:[%s4556_s1 + $0x560] ss:$8 sps:$4 sm:$0xff]   ;;  %v3307_v34 = vld [vmem:[%s3778_s5 + $0x90] ss:$72 sps:$4 sm:$0xff]  }
  0x28   : > { %2344 = vmatpush1.bf16.msra.mxu0 %v3164_v35  ;;  %2133 = vmatprep.subr.bf16.mxu1 %v3165_v36  ;;  %v3308_v35 = vld [vmem:[%s3778_s5 + $0xb0] ss:$72 sps:$4 sm:$0xff]   ;;  %v3257_v36 = vld [vmem:[%s4556_s1 + $0x174] ss:$8 sps:$4 sm:$0xff]  }
  0x29   : > { %2345 = vmatprep.subr.bf16.mxu0 %v3167_v37  ;;  %v3260_v37 = vld [vmem:[%s4556_s1 + $0x574] ss:$8 sps:$4 sm:$0xff]  }
  0x2b   : > { %2134 = vmatpush1.bf16.msra.mxu1 %v3169_v38  ;;  %v3255_v38 = vld [vmem:[%s4556_s1 + $0x170] ss:$8 sps:$4 sm:$0xff]  }
  0x2c   : > { %2346 = vmatpush1.bf16.msra.mxu0 %v3170_v39  ;;  %2135 = vmatprep.subr.bf16.mxu1 %v3171_v40  ;;  %v3258_v39 = vld [vmem:[%s4556_s1 + $0x570] ss:$8 sps:$4 sm:$0xff]   ;;  %v3317_v40 = vld [vmem:[%s3778_s5 + $0xc] ss:$72 sps:$4 sm:$0xff]  }
  0x2d   : > { %2347 = vmatprep.subr.bf16.mxu0 %v3173_v41  ;;  %v3263_v41 = vld [vmem:[%s4556_s1 + $0x184] ss:$8 sps:$4 sm:$0xff]  }
  0x2f   : > { %2136 = vmatpush1.bf16.msra.mxu1 %v3175_v42  ;;  %v3266_v42 = vld [vmem:[%s4556_s1 + $0x584] ss:$8 sps:$4 sm:$0xff]  }
  0x30   : > { %2348 = vmatpush1.bf16.msra.mxu0 %v3176_v43  ;;  %2137 = vmatprep.subr.bf16.mxu1 %v3177_v44  ;;  %v3323_v43 = vld [vmem:[%s3778_s5 + $0x2c] ss:$72 sps:$4 sm:$0xff]   ;;  %v3261_v44 = vld [vmem:[%s4556_s1 + $0x180] ss:$8 sps:$4 sm:$0xff]  }
  0x31   : > { %2349 = vmatprep.subr.bf16.mxu0 %v3179_v45  ;;  %v3264_v45 = vld [vmem:[%s4556_s1 + $0x580] ss:$8 sps:$4 sm:$0xff]  }
  0x33   : > { %2138 = vmatpush1.bf16.msra.mxu1 %v3181_v46  ;;  %v3269_v46 = vld [vmem:[%s4556_s1 + $0x194] ss:$8 sps:$4 sm:$0xff]  }
  0x34   : > { %2350 = vmatpush1.bf16.msra.mxu0 %v3182_v47  ;;  %2139 = vmatprep.subr.bf16.mxu1 %v3183_v49  ;;  %v3272_v47 = vld [vmem:[%s4556_s1 + $0x594] ss:$8 sps:$4 sm:$0xff]   ;;  %v3270_v49 = vld [vmem:[%s4556_s1 + $0x590] ss:$8 sps:$4 sm:$0xff]  }
  0x35   : > { %2351 = vmatprep.subr.bf16.mxu0 %v3185_v50  ;;  %v3275_v50 = vld [vmem:[%s4556_s1 + $0x1a4] ss:$8 sps:$4 sm:$0xff]  }
  0x37   : > { %2140 = vmatpush1.bf16.msra.mxu1 %v3187_v52  ;;  %v3273_v52 = vld [vmem:[%s4556_s1 + $0x1a0] ss:$8 sps:$4 sm:$0xff]  }
  0x38   : > { %2352 = vmatpush1.bf16.msra.mxu0 %v3188_v53  ;;  %2141 = vmatprep.subr.bf16.mxu1 %v3189_v54  ;;  %v3276_v53 = vld [vmem:[%s4556_s1 + $0x5a0] ss:$8 sps:$4 sm:$0xff]   ;;  %v3281_v54 = vld [vmem:[%s4556_s1 + $0x1b4] ss:$8 sps:$4 sm:$0xff]  }
  0x39   : > { %2353 = vmatprep.subr.bf16.mxu0 %v3191_v55  ;;  %v3284_v55 = vld [vmem:[%s4556_s1 + $0x5b4] ss:$8 sps:$4 sm:$0xff]  }
  0x3b   : > { %2142 = vmatpush1.bf16.msra.mxu1 %v3193_v56  ;;  %v3279_v56 = vld [vmem:[%s4556_s1 + $0x1b0] ss:$8 sps:$4 sm:$0xff]  }
  0x3c   : > { %2354 = vmatpush1.bf16.msra.mxu0 %v3194_v57  ;;  %2143 = vmatprep.subr.bf16.mxu1 %v3195_v58  ;;  %v3282_v57 = vld [vmem:[%s4556_s1 + $0x5b0] ss:$8 sps:$4 sm:$0xff]   ;;  %v3287_v58 = vld [vmem:[%s4556_s1 + $0x1c4] ss:$8 sps:$4 sm:$0xff]  }
  0x3d   : > { %2355 = vmatprep.subr.bf16.mxu0 %v3197_v59  ;;  %v3290_v59 = vld [vmem:[%s4556_s1 + $0x5c4] ss:$8 sps:$4 sm:$0xff]  }
  0x3f   : > { %2144 = vmatpush1.bf16.msra.mxu1 %v3199_v60  ;;  %v3285_v60 = vld [vmem:[%s4556_s1 + $0x1c0] ss:$8 sps:$4 sm:$0xff]  }
  0x40   : > { %2356 = vmatpush1.bf16.msra.mxu0 %v3200_v61  ;;  %2145 = vmatprep.subr.bf16.mxu1 %v3201_v62  ;;  %v3288_v61 = vld [vmem:[%s4556_s1 + $0x5c0] ss:$8 sps:$4 sm:$0xff]   ;;  %v3293_v62 = vld [vmem:[%s4556_s1 + $0x1d4] ss:$8 sps:$4 sm:$0xff]  }
  0x41   : > { %2357 = vmatprep.subr.bf16.mxu0 %v3203_v63  ;;  %v3296_v63 = vld [vmem:[%s4556_s1 + $0x5d4] ss:$8 sps:$4 sm:$0xff]  }
  0x43   : > { %2146 = vmatpush1.bf16.msra.mxu1 %v3205_v0  ;;  %v3291_v0 = vld [vmem:[%s4556_s1 + $0x1d0] ss:$8 sps:$4 sm:$0xff]  }
  0x44   : > { %2358 = vmatpush1.bf16.msra.mxu0 %v3206_v1  ;;  %2168 = vmatprep.subr.bf16.mxu1 %v3212_v2  ;;  %v3294_v1 = vld [vmem:[%s4556_s1 + $0x5d0] ss:$8 sps:$4 sm:$0xff]   ;;  %v3301_v2 = vld [vmem:[%s4556_s1 + $0x1e4] ss:$8 sps:$4 sm:$0xff]  }
  0x45   : > { %2380 = vmatprep.subr.bf16.mxu0 %v3218_v3  ;;  %v3306_v3 = vld [vmem:[%s4556_s1 + $0x5e4] ss:$8 sps:$4 sm:$0xff]  }
  0x46   : > { %2148 = vmatmul.mubr.bf16.vlgmr.msra.gmra.mrb[0].mxu1 %v3207_v4  ;;  %v3299_v4 = vld [vmem:[%s4556_s1 + $0x1e0] ss:$8 sps:$4 sm:$0xff]  }
  0x47   : > { %2360 = vmatmul.mubr.bf16.vlgmr.msra.gmra.mrb[0].mxu0 %v3213_v6  ;;  %2169 = vmatpush1.bf16.msra.mxu1 %v3210_v5  ;;  %v3304_v5 = vld [vmem:[%s4556_s1 + $0x5e0] ss:$8 sps:$4 sm:$0xff]   ;;  %v3311_v6 = vld [vmem:[%s4556_s1 + $0x1f4] ss:$8 sps:$4 sm:$0xff]  }
  0x48   : > { %2381 = vmatpush1.bf16.msra.mxu0 %v3216_v7  ;;  %2170 = vmatprep.subr.bf16.mxu1 %v3221_v8  ;;  %v3314_v7 = vld [vmem:[%s4556_s1 + $0x5f4] ss:$8 sps:$4 sm:$0xff]   ;;  %v3309_v8 = vld [vmem:[%s4556_s1 + $0x1f0] ss:$8 sps:$4 sm:$0xff]  }
  0x49   : > { %2382 = vmatprep.subr.bf16.mxu0 %v3224_v9  ;;  %2157 = vmatprep.mubr.bf16.mxu1 %v3297_v28  ;;  %v3312_v9 = vld [vmem:[%s4556_s1 + $0x5f0] ss:$8 sps:$4 sm:$0xff]   ;;  %v3341_v28 = vld [vmem:[%s4556_s1 + $0x234] ss:$8 sps:$4 sm:$0xff]  }
  0x4a   : > { %2369 = vmatprep.mubr.bf16.mxu0 %v3302_v31  ;;  %v3342_v31 = vld [vmem:[%s4556_s1 + $0x630] ss:$8 sps:$4 sm:$0xff]  }
  0x4b   : > { %2171 = vmatpush1.bf16.msra.mxu1 %v3219_v10  ;;  %v3320_v10 = vld [vmem:[%s4556_s1 + $0x204] ss:$8 sps:$4 sm:$0xff]  }
  0x4c   : > { %2383 = vmatpush1.bf16.msra.mxu0 %v3222_v11  ;;  %2172 = vmatprep.subr.bf16.mxu1 %v3227_v12  ;;  %v3326_v11 = vld [vmem:[%s4556_s1 + $0x604] ss:$8 sps:$4 sm:$0xff]   ;;  %v3315_v12 = vld [vmem:[%s3778_s5 + $0x8] ss:$72 sps:$4 sm:$0xff]  }
  0x4d   : > { %2384 = vmatprep.subr.bf16.mxu0 %v3230_v13  ;;  %v3318_v13 = vld [vmem:[%s4556_s1 + $0x200] ss:$8 sps:$4 sm:$0xff]  }
  0x4e   : > { %2158 = vmatmul.mubr.bf16.gmra.mrb[4].mxu1 %v3307_v34  ;;  %v3350_v34 = vld [vmem:[%s4556_s1 + $0x644] ss:$8 sps:$4 sm:$0xff]  }
  0x4f   : > { %2173 = vmatpush1.bf16.msra.mxu1 %v3225_v14  ;;  %2370 = vmatmul.mubr.bf16.gmra.mrb[4].mxu0 %v3308_v35  ;;  %v3321_v14 = vld [vmem:[%s3778_s5 + $0x28] ss:$72 sps:$4 sm:$0xff]   ;;  %v3431_v35 = vld [vmem:[%s3778_s5 + $0x34] ss:$72 sps:$4 sm:$0xff]  }
  0x50   : > { %2385 = vmatpush1.bf16.msra.mxu0 %v3228_v15  ;;  %2174 = vmatprep.subr.bf16.mxu1 %v3233_v16  ;;  %v3324_v15 = vld [vmem:[%s4556_s1 + $0x600] ss:$8 sps:$4 sm:$0xff]   ;;  %v3329_v16 = vld [vmem:[%s4556_s1 + $0x214] ss:$8 sps:$4 sm:$0xff]  }
  0x51   : > { %2386 = vmatprep.subr.bf16.mxu0 %v3236_v17  ;;  %2200 = vmatprep.mubr.bf16.mxu1 %v3317_v40  ;;  %v3332_v17 = vld [vmem:[%s4556_s1 + $0x614] ss:$8 sps:$4 sm:$0xff]   ;;  %v3351_v40 = vld [vmem:[%s4556_s1 + $0x250] ss:$8 sps:$4 sm:$0xff]  }
  0x52   : > { %2412 = vmatprep.mubr.bf16.mxu0 %v3323_v43  ;;  %v3362_v43 = vld [vmem:[%s4556_s1 + $0x664] ss:$8 sps:$4 sm:$0xff]  }
  0x53   : > { %2175 = vmatpush1.bf16.msra.mxu1 %v3231_v18  ;;  %v3327_v18 = vld [vmem:[%s4556_s1 + $0x210] ss:$8 sps:$4 sm:$0xff]  }
  0x54   : > { %2387 = vmatpush1.bf16.msra.mxu0 %v3234_v19  ;;  %2176 = vmatprep.subr.bf16.mxu1 %v3239_v20  ;;  %v3330_v19 = vld [vmem:[%s4556_s1 + $0x610] ss:$8 sps:$4 sm:$0xff]   ;;  %v3405_v20 = vld [vmem:[%s3778_s5 + $0x9c] ss:$72 sps:$4 sm:$0xff]  }
  0x55   : > { %2388 = vmatprep.subr.bf16.mxu0 %v3242_v21  ;;  %v3335_v21 = vld [vmem:[%s4556_s1 + $0x224] ss:$8 sps:$4 sm:$0xff]  }
  0x57   : > { %2177 = vmatpush1.bf16.msra.mxu1 %v3237_v22  ;;  %v3338_v22 = vld [vmem:[%s4556_s1 + $0x624] ss:$8 sps:$4 sm:$0xff]  }
  0x58   : > { %2389 = vmatpush1.bf16.msra.mxu0 %v3240_v23  ;;  %2178 = vmatprep.subr.bf16.mxu1 %v3245_v24  ;;  %v3410_v23 = vld [vmem:[%s3778_s5 + $0xbc] ss:$72 sps:$4 sm:$0xff]   ;;  %v3333_v24 = vld [vmem:[%s4556_s1 + $0x220] ss:$8 sps:$4 sm:$0xff]  }
  0x59   : > { %2390 = vmatprep.subr.bf16.mxu0 %v3248_v25  ;;  %v3336_v25 = vld [vmem:[%s4556_s1 + $0x620] ss:$8 sps:$4 sm:$0xff]  }
  0x5b   : > { %2179 = vmatpush1.bf16.msra.mxu1 %v3243_v26  ;;  %v3415_v26 = vld [vmem:[%s3778_s5 + $0x98] ss:$72 sps:$4 sm:$0xff]  }
  0x5c   : > { %2391 = vmatpush1.bf16.msra.mxu0 %v3246_v27  ;;  %2180 = vmatprep.subr.bf16.mxu1 %v3251_v29  ;;  %v3416_v27 = vld [vmem:[%s3778_s5 + $0xb8] ss:$72 sps:$4 sm:$0xff]   ;;  %v3344_v29 = vld [vmem:[%s4556_s1 + $0x634] ss:$8 sps:$4 sm:$0xff]  }
  0x5d   : > { %2392 = vmatprep.subr.bf16.mxu0 %v3254_v30  ;;  %v3339_v30 = vld [vmem:[%s4556_s1 + $0x230] ss:$8 sps:$4 sm:$0xff]  }
  0x5f   : > { %2181 = vmatpush1.bf16.msra.mxu1 %v3249_v32  ;;  %v3425_v32 = vld [vmem:[%s3778_s5 + $0x14] ss:$72 sps:$4 sm:$0xff]  }
  0x60   : > { %2393 = vmatpush1.bf16.msra.mxu0 %v3252_v33  ;;  %2182 = vmatprep.subr.bf16.mxu1 %v3257_v36  ;;  %v3347_v33 = vld [vmem:[%s4556_s1 + $0x244] ss:$8 sps:$4 sm:$0xff]   ;;  %v3345_v36 = vld [vmem:[%s4556_s1 + $0x240] ss:$8 sps:$4 sm:$0xff]  }
  0x61   : > { %2394 = vmatprep.subr.bf16.mxu0 %v3260_v37  ;;  %v3348_v37 = vld [vmem:[%s4556_s1 + $0x640] ss:$8 sps:$4 sm:$0xff]  }
  0x63   : > { %2183 = vmatpush1.bf16.msra.mxu1 %v3255_v38  ;;  %v3353_v38 = vld [vmem:[%s4556_s1 + $0x254] ss:$8 sps:$4 sm:$0xff]  }
  0x64   : > { %2395 = vmatpush1.bf16.msra.mxu0 %v3258_v39  ;;  %2184 = vmatprep.subr.bf16.mxu1 %v3263_v41  ;;  %v3356_v39 = vld [vmem:[%s4556_s1 + $0x654] ss:$8 sps:$4 sm:$0xff]   ;;  %v3354_v41 = vld [vmem:[%s4556_s1 + $0x650] ss:$8 sps:$4 sm:$0xff]  }
  0x65   : > { %2396 = vmatprep.subr.bf16.mxu0 %v3266_v42  ;;  %v3359_v42 = vld [vmem:[%s4556_s1 + $0x264] ss:$8 sps:$4 sm:$0xff]  }
  0x67   : > { %2185 = vmatpush1.bf16.msra.mxu1 %v3261_v44  ;;  %v3357_v44 = vld [vmem:[%s4556_s1 + $0x260] ss:$8 sps:$4 sm:$0xff]  }
  0x68   : > { %2397 = vmatpush1.bf16.msra.mxu0 %v3264_v45  ;;  %2186 = vmatprep.subr.bf16.mxu1 %v3269_v46  ;;  %v3360_v45 = vld [vmem:[%s4556_s1 + $0x660] ss:$8 sps:$4 sm:$0xff]   ;;  %v3365_v46 = vld [vmem:[%s4556_s1 + $0x274] ss:$8 sps:$4 sm:$0xff]  }
  0x69   : > { %2398 = vmatprep.subr.bf16.mxu0 %v3272_v47  ;;  %v3368_v47 = vld [vmem:[%s4556_s1 + $0x674] ss:$8 sps:$4 sm:$0xff]  }
  0x6b   : > { %2187 = vmatpush1.bf16.msra.mxu1 %v3267_v48  ;;  %v3363_v48 = vld [vmem:[%s4556_s1 + $0x270] ss:$8 sps:$4 sm:$0xff]  }
  0x6c   : > { %2399 = vmatpush1.bf16.msra.mxu0 %v3270_v49  ;;  %2188 = vmatprep.subr.bf16.mxu1 %v3275_v50  ;;  %v3366_v49 = vld [vmem:[%s4556_s1 + $0x670] ss:$8 sps:$4 sm:$0xff]   ;;  %v3371_v50 = vld [vmem:[%s4556_s1 + $0x284] ss:$8 sps:$4 sm:$0xff]  }
  0x6d   : > { %2400 = vmatprep.subr.bf16.mxu0 %v3278_v51  ;;  %v3374_v51 = vld [vmem:[%s4556_s1 + $0x684] ss:$8 sps:$4 sm:$0xff]  }
  0x6f   : > { %2189 = vmatpush1.bf16.msra.mxu1 %v3273_v52  ;;  %v3369_v52 = vld [vmem:[%s4556_s1 + $0x280] ss:$8 sps:$4 sm:$0xff]  }
  0x70   : > { %2401 = vmatpush1.bf16.msra.mxu0 %v3276_v53  ;;  %2190 = vmatprep.subr.bf16.mxu1 %v3281_v54  ;;  %v3372_v53 = vld [vmem:[%s4556_s1 + $0x680] ss:$8 sps:$4 sm:$0xff]   ;;  %v3377_v54 = vld [vmem:[%s4556_s1 + $0x294] ss:$8 sps:$4 sm:$0xff]  }
  0x71   : > { %2402 = vmatprep.subr.bf16.mxu0 %v3284_v55  ;;  %v3380_v55 = vld [vmem:[%s4556_s1 + $0x694] ss:$8 sps:$4 sm:$0xff]  }
  0x73   : > { %2191 = vmatpush1.bf16.msra.mxu1 %v3279_v56  ;;  %v3375_v56 = vld [vmem:[%s4556_s1 + $0x290] ss:$8 sps:$4 sm:$0xff]  }
  0x74   : > { %2403 = vmatpush1.bf16.msra.mxu0 %v3282_v57  ;;  %2192 = vmatprep.subr.bf16.mxu1 %v3287_v58  ;;  %v3378_v57 = vld [vmem:[%s4556_s1 + $0x690] ss:$8 sps:$4 sm:$0xff]   ;;  %v3383_v58 = vld [vmem:[%s4556_s1 + $0x2a4] ss:$8 sps:$4 sm:$0xff]  }
  0x75   : > { %2404 = vmatprep.subr.bf16.mxu0 %v3290_v59  ;;  %v3386_v59 = vld [vmem:[%s4556_s1 + $0x6a4] ss:$8 sps:$4 sm:$0xff]  }
  0x77   : > { %2193 = vmatpush1.bf16.msra.mxu1 %v3285_v60  ;;  %v3381_v60 = vld [vmem:[%s4556_s1 + $0x2a0] ss:$8 sps:$4 sm:$0xff]  }
  0x78   : > { %2405 = vmatpush1.bf16.msra.mxu0 %v3288_v61  ;;  %2194 = vmatprep.subr.bf16.mxu1 %v3293_v62  ;;  %v3384_v61 = vld [vmem:[%s4556_s1 + $0x6a0] ss:$8 sps:$4 sm:$0xff]   ;;  %v3389_v62 = vld [vmem:[%s4556_s1 + $0x2b4] ss:$8 sps:$4 sm:$0xff]  }
  0x79   : > { %2406 = vmatprep.subr.bf16.mxu0 %v3296_v63  ;;  %v3392_v63 = vld [vmem:[%s4556_s1 + $0x6b4] ss:$8 sps:$4 sm:$0xff]  }
  0x7b   : > { %2195 = vmatpush1.bf16.msra.mxu1 %v3291_v0  ;;  %v3387_v0 = vld [vmem:[%s4556_s1 + $0x2b0] ss:$8 sps:$4 sm:$0xff]  }
  0x7c   : > { %2407 = vmatpush1.bf16.msra.mxu0 %v3294_v1  ;;  %2196 = vmatprep.subr.bf16.mxu1 %v3301_v2  ;;  %v3390_v1 = vld [vmem:[%s4556_s1 + $0x6b0] ss:$8 sps:$4 sm:$0xff]   ;;  %v3395_v2 = vld [vmem:[%s4556_s1 + $0x2c4] ss:$8 sps:$4 sm:$0xff]  }
  0x7d   : > { %2408 = vmatprep.subr.bf16.mxu0 %v3306_v3  ;;  %v3398_v3 = vld [vmem:[%s4556_s1 + $0x6c4] ss:$8 sps:$4 sm:$0xff]  }
  0x7f   : > { %2197 = vmatpush1.bf16.msra.mxu1 %v3299_v4  ;;  %v3393_v4 = vld [vmem:[%s4556_s1 + $0x2c0] ss:$8 sps:$4 sm:$0xff]  }
  0x80   : > { %2409 = vmatpush1.bf16.msra.mxu0 %v3304_v5  ;;  %2198 = vmatprep.subr.bf16.mxu1 %v3311_v6  ;;  %v3396_v5 = vld [vmem:[%s4556_s1 + $0x6c0] ss:$8 sps:$4 sm:$0xff]   ;;  %v3401_v6 = vld [vmem:[%s4556_s1 + $0x2d4] ss:$8 sps:$4 sm:$0xff]  }
  0x81   : > { %2410 = vmatprep.subr.bf16.mxu0 %v3314_v7  ;;  %v3404_v7 = vld [vmem:[%s4556_s1 + $0x6d4] ss:$8 sps:$4 sm:$0xff]  }
  0x83   : > { %2199 = vmatpush1.bf16.msra.mxu1 %v3309_v8  ;;  %v3399_v8 = vld [vmem:[%s4556_s1 + $0x2d0] ss:$8 sps:$4 sm:$0xff]  }
  0x84   : > { %2411 = vmatpush1.bf16.msra.mxu0 %v3312_v9  ;;  %2221 = vmatprep.subr.bf16.mxu1 %v3320_v10  ;;  %v3402_v9 = vld [vmem:[%s4556_s1 + $0x6d0] ss:$8 sps:$4 sm:$0xff]   ;;  %v3409_v10 = vld [vmem:[%s4556_s1 + $0x2e4] ss:$8 sps:$4 sm:$0xff]  }
  0x85   : > { %2433 = vmatprep.subr.bf16.mxu0 %v3326_v11  ;;  %v3414_v11 = vld [vmem:[%s4556_s1 + $0x6e4] ss:$8 sps:$4 sm:$0xff]  }
  0x86   : > { %2201 = vmatmul.mubr.bf16.vlgmr.msra.gmra.mrb[0].mxu1 %v3315_v12  ;;  %v3407_v12 = vld [vmem:[%s4556_s1 + $0x2e0] ss:$8 sps:$4 sm:$0xff]  }
  0x87   : > { %2413 = vmatmul.mubr.bf16.vlgmr.msra.gmra.mrb[0].mxu0 %v3321_v14  ;;  %2222 = vmatpush1.bf16.msra.mxu1 %v3318_v13  ;;  %v3412_v13 = vld [vmem:[%s4556_s1 + $0x6e0] ss:$8 sps:$4 sm:$0xff]   ;;  %v3419_v14 = vld [vmem:[%s4556_s1 + $0x2f4] ss:$8 sps:$4 sm:$0xff]  }
  0x88   : > { %2434 = vmatpush1.bf16.msra.mxu0 %v3324_v15  ;;  %2223 = vmatprep.subr.bf16.mxu1 %v3329_v16  ;;  %v3422_v15 = vld [vmem:[%s4556_s1 + $0x6f4] ss:$8 sps:$4 sm:$0xff]   ;;  %v3417_v16 = vld [vmem:[%s4556_s1 + $0x2f0] ss:$8 sps:$4 sm:$0xff]  }
  0x89   : > { %2435 = vmatprep.subr.bf16.mxu0 %v3332_v17  ;;  %2210 = vmatprep.mubr.bf16.mxu1 %v3405_v20  ;;  %v3420_v17 = vld [vmem:[%s4556_s1 + $0x6f0] ss:$8 sps:$4 sm:$0xff]  }
  0x8a   : > { %2422 = vmatprep.mubr.bf16.mxu0 %v3410_v23  ;;  %v3423_v20 = vld [vmem:[%s3778_s5 + $0x10] ss:$72 sps:$4 sm:$0xff]   ;;  %v3432_v23 = vld [vmem:[%s4556_s1 + $0x700] ss:$8 sps:$4 sm:$0xff]  }
  0x8b   : > { %2224 = vmatpush1.bf16.msra.mxu1 %v3327_v18  ;;  %v3428_v18 = vld [vmem:[%s4556_s1 + $0x304] ss:$8 sps:$4 sm:$0xff]  }
  0x8c   : > { %2436 = vmatpush1.bf16.msra.mxu0 %v3330_v19  ;;  %2225 = vmatprep.subr.bf16.mxu1 %v3335_v21  ;;  %v3434_v19 = vld [vmem:[%s4556_s1 + $0x704] ss:$8 sps:$4 sm:$0xff]   ;;  %v3426_v21 = vld [vmem:[%s4556_s1 + $0x300] ss:$8 sps:$4 sm:$0xff]  }
  0x8d   : > { %2437 = vmatprep.subr.bf16.mxu0 %v3338_v22  ;;  %v3429_v22 = vld [vmem:[%s3778_s5 + $0x30] ss:$72 sps:$4 sm:$0xff]  }
  0x8e   : > { %2211 = vmatmul.mubr.bf16.gmra.mrb[4].mxu1 %v3415_v26  ;;  %v3513_v26 = vld [vmem:[%s3778_s5 + $0xa4] ss:$72 sps:$4 sm:$0xff]  }
  0x8f   : > { %2423 = vmatmul.mubr.bf16.gmra.mrb[4].mxu0 %v3416_v27  ;;  %2226 = vmatpush1.bf16.msra.mxu1 %v3333_v24  ;;  %v3437_v24 = vld [vmem:[%s4556_s1 + $0x314] ss:$8 sps:$4 sm:$0xff]   ;;  %v3515_v27 = vld [vmem:[%s3778_s5 + $0xc4] ss:$72 sps:$4 sm:$0xff]  }
  0x90   : > { %2438 = vmatpush1.bf16.msra.mxu0 %v3336_v25  ;;  %2227 = vmatprep.subr.bf16.mxu1 %v3341_v28  ;;  %v3440_v25 = vld [vmem:[%s4556_s1 + $0x714] ss:$8 sps:$4 sm:$0xff]   ;;  %v3435_v28 = vld [vmem:[%s4556_s1 + $0x310] ss:$8 sps:$4 sm:$0xff]  }
  0x91   : > { %2439 = vmatprep.subr.bf16.mxu0 %v3344_v29  ;;  %2253 = vmatprep.mubr.bf16.mxu1 %v3425_v32  ;;  %v3438_v29 = vld [vmem:[%s4556_s1 + $0x710] ss:$8 sps:$4 sm:$0xff]   ;;  %v3441_v32 = vld [vmem:[%s4556_s1 + $0x320] ss:$8 sps:$4 sm:$0xff]  }
  0x92   : > { %2465 = vmatprep.mubr.bf16.mxu0 %v3431_v35  ;;  %v3521_v35 = vld [vmem:[%s3778_s5 + $0xc0] ss:$72 sps:$4 sm:$0xff]  }
  0x93   : > { %2228 = vmatpush1.bf16.msra.mxu1 %v3339_v30  ;;  %v3443_v30 = vld [vmem:[%s4556_s1 + $0x324] ss:$8 sps:$4 sm:$0xff]  }
  0x94   : > { %2440 = vmatpush1.bf16.msra.mxu0 %v3342_v31  ;;  %2229 = vmatprep.subr.bf16.mxu1 %v3347_v33  ;;  %v3446_v31 = vld [vmem:[%s4556_s1 + $0x724] ss:$8 sps:$4 sm:$0xff]   ;;  %v3444_v33 = vld [vmem:[%s4556_s1 + $0x720] ss:$8 sps:$4 sm:$0xff]  }
  0x95   : > { %2441 = vmatprep.subr.bf16.mxu0 %v3350_v34  ;;  %v3517_v34 = vld [vmem:[%s3778_s5 + $0xa0] ss:$72 sps:$4 sm:$0xff]  }
  0x97   : > { %2230 = vmatpush1.bf16.msra.mxu1 %v3345_v36  ;;  %v3449_v36 = vld [vmem:[%s4556_s1 + $0x334] ss:$8 sps:$4 sm:$0xff]  }
  0x98   : > { %2442 = vmatpush1.bf16.msra.mxu0 %v3348_v37  ;;  %2231 = vmatprep.subr.bf16.mxu1 %v3353_v38  ;;  %v3452_v37 = vld [vmem:[%s4556_s1 + $0x734] ss:$8 sps:$4 sm:$0xff]  }
  0x99   : > { %2443 = vmatprep.subr.bf16.mxu0 %v3356_v39  ;;  %v3533_v38 = vld [vmem:[%s3778_s5 + $0x1c] ss:$72 sps:$4 sm:$0xff]  }
  0x9a   : > { %v3536_v39 = vld [vmem:[%s3778_s5 + $0x3c] ss:$72 sps:$4 sm:$0xff]  }
  0x9b   : > { %2232 = vmatpush1.bf16.msra.mxu1 %v3351_v40  ;;  %v3447_v40 = vld [vmem:[%s4556_s1 + $0x330] ss:$8 sps:$4 sm:$0xff]  }
  0x9c   : > { %2444 = vmatpush1.bf16.msra.mxu0 %v3354_v41  ;;  %2233 = vmatprep.subr.bf16.mxu1 %v3359_v42  ;;  %v3450_v41 = vld [vmem:[%s4556_s1 + $0x730] ss:$8 sps:$4 sm:$0xff]   ;;  %v3455_v42 = vld [vmem:[%s4556_s1 + $0x344] ss:$8 sps:$4 sm:$0xff]  }
  0x9d   : > { %2445 = vmatprep.subr.bf16.mxu0 %v3362_v43  ;;  %v3458_v43 = vld [vmem:[%s4556_s1 + $0x744] ss:$8 sps:$4 sm:$0xff]  }
  0x9f   : > { %2234 = vmatpush1.bf16.msra.mxu1 %v3357_v44  ;;  %v3453_v44 = vld [vmem:[%s4556_s1 + $0x340] ss:$8 sps:$4 sm:$0xff]  }
  0xa0   : > { %2446 = vmatpush1.bf16.msra.mxu0 %v3360_v45  ;;  %2235 = vmatprep.subr.bf16.mxu1 %v3365_v46  ;;  %v3456_v45 = vld [vmem:[%s4556_s1 + $0x740] ss:$8 sps:$4 sm:$0xff]   ;;  %v3461_v46 = vld [vmem:[%s4556_s1 + $0x354] ss:$8 sps:$4 sm:$0xff]  }
  0xa1   : > { %2447 = vmatprep.subr.bf16.mxu0 %v3368_v47  ;;  %v3464_v47 = vld [vmem:[%s4556_s1 + $0x754] ss:$8 sps:$4 sm:$0xff]  }
  0xa3   : > { %2236 = vmatpush1.bf16.msra.mxu1 %v3363_v48  ;;  %v3459_v48 = vld [vmem:[%s4556_s1 + $0x350] ss:$8 sps:$4 sm:$0xff]  }
  0xa4   : > { %2448 = vmatpush1.bf16.msra.mxu0 %v3366_v49  ;;  %2237 = vmatprep.subr.bf16.mxu1 %v3371_v50  ;;  %v3462_v49 = vld [vmem:[%s4556_s1 + $0x750] ss:$8 sps:$4 sm:$0xff]   ;;  %v3467_v50 = vld [vmem:[%s4556_s1 + $0x364] ss:$8 sps:$4 sm:$0xff]  }
  0xa5   : > { %2449 = vmatprep.subr.bf16.mxu0 %v3374_v51  ;;  %v3470_v51 = vld [vmem:[%s4556_s1 + $0x764] ss:$8 sps:$4 sm:$0xff]  }
  0xa7   : > { %2238 = vmatpush1.bf16.msra.mxu1 %v3369_v52  ;;  %v3465_v52 = vld [vmem:[%s4556_s1 + $0x360] ss:$8 sps:$4 sm:$0xff]  }
  0xa8   : > { %2450 = vmatpush1.bf16.msra.mxu0 %v3372_v53  ;;  %2239 = vmatprep.subr.bf16.mxu1 %v3377_v54  ;;  %v3468_v53 = vld [vmem:[%s4556_s1 + $0x760] ss:$8 sps:$4 sm:$0xff]   ;;  %v3473_v54 = vld [vmem:[%s4556_s1 + $0x374] ss:$8 sps:$4 sm:$0xff]  }
  0xa9   : > { %2451 = vmatprep.subr.bf16.mxu0 %v3380_v55  ;;  %v3476_v55 = vld [vmem:[%s4556_s1 + $0x774] ss:$8 sps:$4 sm:$0xff]  }
  0xab   : > { %2240 = vmatpush1.bf16.msra.mxu1 %v3375_v56  ;;  %v3471_v56 = vld [vmem:[%s4556_s1 + $0x370] ss:$8 sps:$4 sm:$0xff]  }
  0xac   : > { %2452 = vmatpush1.bf16.msra.mxu0 %v3378_v57  ;;  %2241 = vmatprep.subr.bf16.mxu1 %v3383_v58  ;;  %v3474_v57 = vld [vmem:[%s4556_s1 + $0x770] ss:$8 sps:$4 sm:$0xff]   ;;  %v3479_v58 = vld [vmem:[%s4556_s1 + $0x384] ss:$8 sps:$4 sm:$0xff]  }
  0xad   : > { %2453 = vmatprep.subr.bf16.mxu0 %v3386_v59  ;;  %v3482_v59 = vld [vmem:[%s4556_s1 + $0x784] ss:$8 sps:$4 sm:$0xff]  }
  0xaf   : > { %2242 = vmatpush1.bf16.msra.mxu1 %v3381_v60  ;;  %v3477_v60 = vld [vmem:[%s4556_s1 + $0x380] ss:$8 sps:$4 sm:$0xff]  }
  0xb0   : > { %2454 = vmatpush1.bf16.msra.mxu0 %v3384_v61  ;;  %2243 = vmatprep.subr.bf16.mxu1 %v3389_v62  ;;  %v3480_v61 = vld [vmem:[%s4556_s1 + $0x780] ss:$8 sps:$4 sm:$0xff]   ;;  %v3485_v62 = vld [vmem:[%s4556_s1 + $0x394] ss:$8 sps:$4 sm:$0xff]  }
  0xb1   : > { %2455 = vmatprep.subr.bf16.mxu0 %v3392_v63  ;;  %v3488_v63 = vld [vmem:[%s4556_s1 + $0x794] ss:$8 sps:$4 sm:$0xff]  }
  0xb3   : > { %2244 = vmatpush1.bf16.msra.mxu1 %v3387_v0  ;;  %v3483_v0 = vld [vmem:[%s4556_s1 + $0x390] ss:$8 sps:$4 sm:$0xff]  }
  0xb4   : > { %2456 = vmatpush1.bf16.msra.mxu0 %v3390_v1  ;;  %2245 = vmatprep.subr.bf16.mxu1 %v3395_v2  ;;  %v3486_v1 = vld [vmem:[%s4556_s1 + $0x790] ss:$8 sps:$4 sm:$0xff]   ;;  %v3491_v2 = vld [vmem:[%s4556_s1 + $0x3a4] ss:$8 sps:$4 sm:$0xff]  }
  0xb5   : > { %2457 = vmatprep.subr.bf16.mxu0 %v3398_v3  ;;  %v3494_v3 = vld [vmem:[%s4556_s1 + $0x7a4] ss:$8 sps:$4 sm:$0xff]  }
  0xb7   : > { %2246 = vmatpush1.bf16.msra.mxu1 %v3393_v4  ;;  %v3489_v4 = vld [vmem:[%s4556_s1 + $0x3a0] ss:$8 sps:$4 sm:$0xff]  }
  0xb8   : > { %2458 = vmatpush1.bf16.msra.mxu0 %v3396_v5  ;;  %2247 = vmatprep.subr.bf16.mxu1 %v3401_v6  ;;  %v3492_v5 = vld [vmem:[%s4556_s1 + $0x7a0] ss:$8 sps:$4 sm:$0xff]   ;;  %v3497_v6 = vld [vmem:[%s4556_s1 + $0x3b4] ss:$8 sps:$4 sm:$0xff]  }
  0xb9   : > { %2459 = vmatprep.subr.bf16.mxu0 %v3404_v7  ;;  %v3500_v7 = vld [vmem:[%s4556_s1 + $0x7b4] ss:$8 sps:$4 sm:$0xff]  }
  0xbb   : > { %2248 = vmatpush1.bf16.msra.mxu1 %v3399_v8  ;;  %v3495_v8 = vld [vmem:[%s4556_s1 + $0x3b0] ss:$8 sps:$4 sm:$0xff]  }
  0xbc   : > { %2460 = vmatpush1.bf16.msra.mxu0 %v3402_v9  ;;  %2249 = vmatprep.subr.bf16.mxu1 %v3409_v10  ;;  %v3498_v9 = vld [vmem:[%s4556_s1 + $0x7b0] ss:$8 sps:$4 sm:$0xff]   ;;  %v3503_v10 = vld [vmem:[%s4556_s1 + $0x3c4] ss:$8 sps:$4 sm:$0xff]  }
  0xbd   : > { %2461 = vmatprep.subr.bf16.mxu0 %v3414_v11  ;;  %v3506_v11 = vld [vmem:[%s4556_s1 + $0x7c4] ss:$8 sps:$4 sm:$0xff]  }
  0xbf   : > { %2250 = vmatpush1.bf16.msra.mxu1 %v3407_v12  ;;  %v3501_v12 = vld [vmem:[%s4556_s1 + $0x3c0] ss:$8 sps:$4 sm:$0xff]  }
  0xc0   : > { %2462 = vmatpush1.bf16.msra.mxu0 %v3412_v13  ;;  %2251 = vmatprep.subr.bf16.mxu1 %v3419_v14  ;;  %v3504_v13 = vld [vmem:[%s4556_s1 + $0x7c0] ss:$8 sps:$4 sm:$0xff]   ;;  %v3509_v14 = vld [vmem:[%s4556_s1 + $0x3d4] ss:$8 sps:$4 sm:$0xff]  }
  0xc1   : > { %2463 = vmatprep.subr.bf16.mxu0 %v3422_v15  ;;  %v3512_v15 = vld [vmem:[%s4556_s1 + $0x7d4] ss:$8 sps:$4 sm:$0xff]  }
  0xc3   : > { %2252 = vmatpush1.bf16.msra.mxu1 %v3417_v16  ;;  %v3507_v16 = vld [vmem:[%s4556_s1 + $0x3d0] ss:$8 sps:$4 sm:$0xff]  }
  0xc4   : > { %2464 = vmatpush1.bf16.msra.mxu0 %v3420_v17  ;;  %2274 = vmatprep.subr.bf16.mxu1 %v3428_v18  ;;  %v3510_v17 = vld [vmem:[%s4556_s1 + $0x7d0] ss:$8 sps:$4 sm:$0xff]   ;;  %v3520_v18 = vld [vmem:[%s4556_s1 + $0x3e4] ss:$8 sps:$4 sm:$0xff]  }
  0xc5   : > { %2486 = vmatprep.subr.bf16.mxu0 %v3434_v19  ;;  %v3524_v19 = vld [vmem:[%s4556_s1 + $0x7e4] ss:$8 sps:$4 sm:$0xff]  }
  0xc6   : > { %2254 = vmatmul.mubr.bf16.vlgmr.msra.gmra.mrb[0].mxu1 %v3423_v20  ;;  %v3518_v20 = vld [vmem:[%s4556_s1 + $0x3e0] ss:$8 sps:$4 sm:$0xff]  }
  0xc7   : > { %2466 = vmatmul.mubr.bf16.vlgmr.msra.gmra.mrb[0].mxu0 %v3429_v22  ;;  %2275 = vmatpush1.bf16.msra.mxu1 %v3426_v21  ;;  %v3522_v21 = vld [vmem:[%s4556_s1 + $0x7e0] ss:$8 sps:$4 sm:$0xff]   ;;  %v3527_v22 = vld [vmem:[%s4556_s1 + $0x3f4] ss:$8 sps:$4 sm:$0xff]  }
  0xc8   : > { %2487 = vmatpush1.bf16.msra.mxu0 %v3432_v23  ;;  %2276 = vmatprep.subr.bf16.mxu1 %v3437_v24  ;;  %v3530_v23 = vld [vmem:[%s4556_s1 + $0x7f4] ss:$8 sps:$4 sm:$0xff]   ;;  %v3525_v24 = vld [vmem:[%s4556_s1 + $0x3f0] ss:$8 sps:$4 sm:$0xff]  }
  0xc9   : > { %2488 = vmatprep.subr.bf16.mxu0 %v3440_v25  ;;  %2263 = vmatprep.mubr.bf16.mxu1 %v3513_v26  ;;  %v3528_v25 = vld [vmem:[%s4556_s1 + $0x7f0] ss:$8 sps:$4 sm:$0xff]   ;;  %v3539_v26 = vld [vmem:[%s4556_s1 + $0x804] ss:$8 sps:$4 sm:$0xff]  }
  0xca   : > { %2475 = vmatprep.mubr.bf16.mxu0 %v3515_v27  ;;  %v3531_v27 = vld [vmem:[%s3778_s5 + $0x18] ss:$72 sps:$4 sm:$0xff]  }
  0xcb   : > { %2277 = vmatpush1.bf16.msra.mxu1 %v3435_v28  ;;  %v3534_v28 = vld [vmem:[%s3778_s5 + $0x38] ss:$72 sps:$4 sm:$0xff]  }
  0xcc   : > { %2489 = vmatpush1.bf16.msra.mxu0 %v3438_v29  ;;  %2278 = vmatprep.subr.bf16.mxu1 %v3443_v30  ;;  %v3537_v29 = vld [vmem:[%s4556_s1 + $0x800] ss:$8 sps:$4 sm:$0xff]   ;;  %v3542_v30 = vld [vmem:[%s4556_s1 + $0x814] ss:$8 sps:$4 sm:$0xff]  }
  0xcd   : > { %2490 = vmatprep.subr.bf16.mxu0 %v3446_v31  ;;  %v3543_v31 = vld [vmem:[%s3778_s5 + $0xac] ss:$72 sps:$4 sm:$0xff]  }
  0xce   : > { %2264 = vmatmul.mubr.bf16.gmra.mrb[4].mxu1 %v3517_v34  ;;  %v3551_v34 = vld [vmem:[%s4556_s1 + $0x824] ss:$8 sps:$4 sm:$0xff]  }
  0xcf   : > { %2476 = vmatmul.mubr.bf16.gmra.mrb[4].mxu0 %v3521_v35  ;;  %2279 = vmatpush1.bf16.msra.mxu1 %v3441_v32  ;;  %v3545_v32 = vld [vmem:[%s3778_s5 + $0xcc] ss:$72 sps:$4 sm:$0xff]   ;;  %v3547_v35 = vld [vmem:[%s3778_s5 + $0xa8] ss:$72 sps:$4 sm:$0xff]  }
  0xd0   : > { %2491 = vmatpush1.bf16.msra.mxu0 %v3444_v33  ;;  %2280 = vmatprep.subr.bf16.mxu1 %v3449_v36  ;;  %v3540_v33 = vld [vmem:[%s4556_s1 + $0x810] ss:$8 sps:$4 sm:$0xff]  }
  0xd1   : > { %2492 = vmatprep.subr.bf16.mxu0 %v3452_v37  ;;  %2306 = vmatprep.mubr.bf16.mxu1 %v3533_v38  ;;  %v3548_v36 = vld [vmem:[%s3778_s5 + $0xc8] ss:$72 sps:$4 sm:$0xff]   ;;  %v3554_v38 = vld [vmem:[%s4556_s1 + $0x834] ss:$8 sps:$4 sm:$0xff]  }
  0xd2   : > { %2518 = vmatprep.mubr.bf16.mxu0 %v3536_v39  ;;  %v3549_v37 = vld [vmem:[%s4556_s1 + $0x820] ss:$8 sps:$4 sm:$0xff]   ;;  %v3593_v39 = vld [vmem:[%s3778_s5 + $0x44] ss:$72 sps:$4 sm:$0xff]  }
  0xd3   : > { %2281 = vmatpush1.bf16.msra.mxu1 %v3447_v40  ;;  %v3596_v40 = vld [vmem:[%s3778_s5 + $0xd4] ss:$72 sps:$4 sm:$0xff]  }
  0xd4   : > { %2493 = vmatpush1.bf16.msra.mxu0 %v3450_v41  ;;  %2282 = vmatprep.subr.bf16.mxu1 %v3455_v42  ;;  %v3552_v41 = vld [vmem:[%s4556_s1 + $0x830] ss:$8 sps:$4 sm:$0xff]   ;;  %v3557_v42 = vld [vmem:[%s4556_s1 + $0x844] ss:$8 sps:$4 sm:$0xff]  }
  0xd5   : > { %2494 = vmatprep.subr.bf16.mxu0 %v3458_v43  ;;  %v3555_v43 = vld [vmem:[%s4556_s1 + $0x840] ss:$8 sps:$4 sm:$0xff]  }
  0xd7   : > { %2283 = vmatpush1.bf16.msra.mxu1 %v3453_v44  ;;  %v3560_v44 = vld [vmem:[%s4556_s1 + $0x854] ss:$8 sps:$4 sm:$0xff]  }
  0xd8   : > { %2495 = vmatpush1.bf16.msra.mxu0 %v3456_v45  ;;  %2284 = vmatprep.subr.bf16.mxu1 %v3461_v46  ;;  %v3558_v45 = vld [vmem:[%s4556_s1 + $0x850] ss:$8 sps:$4 sm:$0xff]   ;;  %v3563_v46 = vld [vmem:[%s4556_s1 + $0x864] ss:$8 sps:$4 sm:$0xff]  }
  0xd9   : > { %2496 = vmatprep.subr.bf16.mxu0 %v3464_v47  ;;  %v3561_v47 = vld [vmem:[%s4556_s1 + $0x860] ss:$8 sps:$4 sm:$0xff]  }
  0xdb   : > { %2285 = vmatpush1.bf16.msra.mxu1 %v3459_v48  ;;  %v3566_v48 = vld [vmem:[%s4556_s1 + $0x874] ss:$8 sps:$4 sm:$0xff]  }
  0xdc   : > { %2497 = vmatpush1.bf16.msra.mxu0 %v3462_v49  ;;  %2286 = vmatprep.subr.bf16.mxu1 %v3467_v50  ;;  %v3564_v49 = vld [vmem:[%s4556_s1 + $0x870] ss:$8 sps:$4 sm:$0xff]   ;;  %v3569_v50 = vld [vmem:[%s4556_s1 + $0x884] ss:$8 sps:$4 sm:$0xff]  }
  0xdd   : > { %2498 = vmatprep.subr.bf16.mxu0 %v3470_v51  ;;  %v3567_v51 = vld [vmem:[%s4556_s1 + $0x880] ss:$8 sps:$4 sm:$0xff]  }
  0xdf   : > { %2287 = vmatpush1.bf16.msra.mxu1 %v3465_v52  ;;  %v3572_v52 = vld [vmem:[%s4556_s1 + $0x894] ss:$8 sps:$4 sm:$0xff]  }
  0xe0   : > { %2499 = vmatpush1.bf16.msra.mxu0 %v3468_v53  ;;  %2288 = vmatprep.subr.bf16.mxu1 %v3473_v54  ;;  %v3570_v53 = vld [vmem:[%s4556_s1 + $0x890] ss:$8 sps:$4 sm:$0xff]   ;;  %v3575_v54 = vld [vmem:[%s4556_s1 + $0x8a4] ss:$8 sps:$4 sm:$0xff]  }
  0xe1   : > { %2500 = vmatprep.subr.bf16.mxu0 %v3476_v55  ;;  %v3573_v55 = vld [vmem:[%s4556_s1 + $0x8a0] ss:$8 sps:$4 sm:$0xff]  }
  0xe3   : > { %2289 = vmatpush1.bf16.msra.mxu1 %v3471_v56  ;;  %v3578_v56 = vld [vmem:[%s4556_s1 + $0x8b4] ss:$8 sps:$4 sm:$0xff]  }
  0xe4   : > { %2501 = vmatpush1.bf16.msra.mxu0 %v3474_v57  ;;  %2290 = vmatprep.subr.bf16.mxu1 %v3479_v58  ;;  %v3576_v57 = vld [vmem:[%s4556_s1 + $0x8b0] ss:$8 sps:$4 sm:$0xff]   ;;  %v3581_v58 = vld [vmem:[%s4556_s1 + $0x8c4] ss:$8 sps:$4 sm:$0xff]  }
  0xe5   : > { %2502 = vmatprep.subr.bf16.mxu0 %v3482_v59  ;;  %v3579_v59 = vld [vmem:[%s4556_s1 + $0x8c0] ss:$8 sps:$4 sm:$0xff]  }
  0xe7   : > { %2291 = vmatpush1.bf16.msra.mxu1 %v3477_v60  ;;  %v3584_v60 = vld [vmem:[%s4556_s1 + $0x8d4] ss:$8 sps:$4 sm:$0xff]  }
  0xe8   : > { %2503 = vmatpush1.bf16.msra.mxu0 %v3480_v61  ;;  %2292 = vmatprep.subr.bf16.mxu1 %v3485_v62  ;;  %v3582_v61 = vld [vmem:[%s4556_s1 + $0x8d0] ss:$8 sps:$4 sm:$0xff]   ;;  %v3587_v62 = vld [vmem:[%s4556_s1 + $0x8e4] ss:$8 sps:$4 sm:$0xff]  }
  0xe9   : > { %2504 = vmatprep.subr.bf16.mxu0 %v3488_v63  ;;  %v3585_v63 = vld [vmem:[%s4556_s1 + $0x8e0] ss:$8 sps:$4 sm:$0xff]  }
  0xeb   : > { %2293 = vmatpush1.bf16.msra.mxu1 %v3483_v0  ;;  %v3590_v0 = vld [vmem:[%s4556_s1 + $0x8f4] ss:$8 sps:$4 sm:$0xff]  }
  0xec   : > { %2505 = vmatpush1.bf16.msra.mxu0 %v3486_v1  ;;  %2294 = vmatprep.subr.bf16.mxu1 %v3491_v2  ;;  %v3588_v1 = vld [vmem:[%s4556_s1 + $0x8f0] ss:$8 sps:$4 sm:$0xff]   ;;  %v3591_v2 = vld [vmem:[%s3778_s5 + $0x40] ss:$72 sps:$4 sm:$0xff]  }
  0xed   : > { %2506 = vmatprep.subr.bf16.mxu0 %v3494_v3  ;;  %v3594_v3 = vld [vmem:[%s3778_s5 + $0xd0] ss:$72 sps:$4 sm:$0xff]  }
  0xef   : > { %2295 = vmatpush1.bf16.msra.mxu1 %v3489_v4 }
  0xf0   : > { %2507 = vmatpush1.bf16.msra.mxu0 %v3492_v5  ;;  %2296 = vmatprep.subr.bf16.mxu1 %v3497_v6 }
  0xf1   : > { %2508 = vmatprep.subr.bf16.mxu0 %v3500_v7 }
  0xf3   : > { %2297 = vmatpush1.bf16.msra.mxu1 %v3495_v8 }
  0xf4   : > { %2509 = vmatpush1.bf16.msra.mxu0 %v3498_v9  ;;  %2298 = vmatprep.subr.bf16.mxu1 %v3503_v10 }
  0xf5   : > { %2510 = vmatprep.subr.bf16.mxu0 %v3506_v11 }
  0xf7   : > { %2299 = vmatpush1.bf16.msra.mxu1 %v3501_v12 }
  0xf8   : > { %2511 = vmatpush1.bf16.msra.mxu0 %v3504_v13  ;;  %2300 = vmatprep.subr.bf16.mxu1 %v3509_v14 }
  0xf9   : > { %2512 = vmatprep.subr.bf16.mxu0 %v3512_v15 }
  0xfb   : > { %2301 = vmatpush1.bf16.msra.mxu1 %v3507_v16 }
  0xfc   : > { %2513 = vmatpush1.bf16.msra.mxu0 %v3510_v17  ;;  %2302 = vmatprep.subr.bf16.mxu1 %v3520_v18 }
  0xfd   : > { %2514 = vmatprep.subr.bf16.mxu0 %v3524_v19 }
  0xff   : > { %2303 = vmatpush1.bf16.msra.mxu1 %v3518_v20  ;;  %v2600_v20 = vlaneseq }
 0x100   : > { %2515 = vmatpush1.bf16.msra.mxu0 %v3522_v21  ;;  %2304 = vmatprep.subr.bf16.mxu1 %v3527_v22 }
 0x101   : > { %2516 = vmatprep.subr.bf16.mxu0 %v3530_v23  ;;  %v2601_v21 = vshrl.u32 %v2600_v20, 7 }
 0x103   : > { %2305 = vmatpush1.bf16.msra.mxu1 %v3525_v24 }
 0x104   : > { %2517 = vmatpush1.bf16.msra.mxu0 %v3528_v25  ;;  %3006 = vmatprep.subr.bf16.mxu1 %v3539_v26 }
 0x105   : > { %2539 = vmatprep.subr.bf16.mxu0 %v3539_v26 }
 0x106   : > { %2307 = vmatmul.mubr.bf16.vlgmr.msra.gmra.mrb[0].mxu1 %v3531_v27 }
 0x107   : > { %2519 = vmatmul.mubr.bf16.vlgmr.msra.gmra.mrb[0].mxu0 %v3534_v28  ;;  %3022 = vmatpush1.bf16.msra.mxu1 %v3537_v29 }
 0x108   : > { %2540 = vmatpush1.bf16.msra.mxu0 %v3537_v29  ;;  %3007 = vmatprep.subr.bf16.mxu1 %v3542_v30 }
 0x109   : > { %2541 = vmatprep.subr.bf16.mxu0 %v3542_v30  ;;  %2316 = vmatprep.mubr.bf16.mxu1 %v3543_v31 }
 0x10a   : > { %2528 = vmatprep.mubr.bf16.mxu0 %v3545_v32 }
 0x10b   : > { %3023 = vmatpush1.bf16.msra.mxu1 %v3540_v33 }
 0x10c   : > { %2542 = vmatpush1.bf16.msra.mxu0 %v3540_v33  ;;  %3008 = vmatprep.subr.bf16.mxu1 %v3551_v34 }
 0x10d   : > { %2543 = vmatprep.subr.bf16.mxu0 %v3551_v34  ;;  %v2602_v34 = vsub.s32 0, %v2601_v21 }
 0x10e   : > { %2317 = vmatmul.mubr.bf16.gmra.mrb[4].mxu1 %v3547_v35 }
 0x10f   : > { %2529 = vmatmul.mubr.bf16.gmra.mrb[4].mxu0 %v3548_v36  ;;  %3024 = vmatpush1.bf16.msra.mxu1 %v3549_v37 }
 0x110   : > { %2544 = vmatpush1.bf16.msra.mxu0 %v3549_v37  ;;  %3009 = vmatprep.subr.bf16.mxu1 %v3554_v38  ;;  %v2598_v37 = vld [vmem:[%s4557_s2] sm:$0x3] }
 0x111   : > { %2545 = vmatprep.subr.bf16.mxu0 %v3554_v38  ;;  %2571 = vmatprep.mubr.bf16.mxu0 %v3593_v39 }
 0x112   : > { %2581 = vmatprep.mubr.bf16.mxu1 %v3596_v40  ;;  %v2606_v40 = vsub.s32 1, %v2601_v21 }
 0x113   : > { %3025 = vmatpush1.bf16.msra.mxu1 %v3552_v41 }
 0x114   : > { %2546 = vmatpush1.bf16.msra.mxu0 %v3552_v41  ;;  %3010 = vmatprep.subr.bf16.mxu1 %v3557_v42 }
 0x115   : > { %2547 = vmatprep.subr.bf16.mxu0 %v3557_v42 }
 0x117   : > { %3026 = vmatpush1.bf16.msra.mxu1 %v3555_v43 }
 0x118   : > { %2548 = vmatpush1.bf16.msra.mxu0 %v3555_v43  ;;  %3011 = vmatprep.subr.bf16.mxu1 %v3560_v44 }
 0x119   : > { %2549 = vmatprep.subr.bf16.mxu0 %v3560_v44  ;;  %v2603_v44 = vrot.slane %v2598_v37, %v2602_v34 }
 0x11b   : > { %3027 = vmatpush1.bf16.msra.mxu1 %v3558_v45 }
 0x11c   : > { %2550 = vmatpush1.bf16.msra.mxu0 %v3558_v45  ;;  %3012 = vmatprep.subr.bf16.mxu1 %v3563_v46 }
 0x11d   : > { %2551 = vmatprep.subr.bf16.mxu0 %v3563_v46  ;;  %v2607_v46 = vrot.slane %v2598_v37, %v2606_v40 }
 0x11f   : > { %3028 = vmatpush1.bf16.msra.mxu1 %v3561_v47 }
 0x120   : > { %2552 = vmatpush1.bf16.msra.mxu0 %v3561_v47  ;;  %3013 = vmatprep.subr.bf16.mxu1 %v3566_v48 }
 0x121   : > { %2553 = vmatprep.subr.bf16.mxu0 %v3566_v48 }
 0x123   : > { %3029 = vmatpush1.bf16.msra.mxu1 %v3564_v49 }
 0x124   : > { %2554 = vmatpush1.bf16.msra.mxu0 %v3564_v49  ;;  %3014 = vmatprep.subr.bf16.mxu1 %v3569_v50 }
 0x125   : > { %2555 = vmatprep.subr.bf16.mxu0 %v3569_v50 }
 0x127   : > { %3030 = vmatpush1.bf16.msra.mxu1 %v3567_v51 }
 0x128   : > { %2556 = vmatpush1.bf16.msra.mxu0 %v3567_v51  ;;  %3015 = vmatprep.subr.bf16.mxu1 %v3572_v52 }
 0x129   : > { %2557 = vmatprep.subr.bf16.mxu0 %v3572_v52 }
 0x12b   : > { %3031 = vmatpush1.bf16.msra.mxu1 %v3570_v53 }
 0x12c   : > { %2558 = vmatpush1.bf16.msra.mxu0 %v3570_v53  ;;  %3016 = vmatprep.subr.bf16.mxu1 %v3575_v54 }
 0x12d   : > { %2559 = vmatprep.subr.bf16.mxu0 %v3575_v54 }
 0x12f   : > { %3032 = vmatpush1.bf16.msra.mxu1 %v3573_v55 }
 0x130   : > { %2560 = vmatpush1.bf16.msra.mxu0 %v3573_v55  ;;  %3017 = vmatprep.subr.bf16.mxu1 %v3578_v56 }
 0x131   : > { %2561 = vmatprep.subr.bf16.mxu0 %v3578_v56 }
 0x133   : > { %3033 = vmatpush1.bf16.msra.mxu1 %v3576_v57 }
 0x134   : > { %2562 = vmatpush1.bf16.msra.mxu0 %v3576_v57  ;;  %3018 = vmatprep.subr.bf16.mxu1 %v3581_v58 }
 0x135   : > { %2563 = vmatprep.subr.bf16.mxu0 %v3581_v58 }
 0x137   : > { %3034 = vmatpush1.bf16.msra.mxu1 %v3579_v59 }
 0x138   : > { %2564 = vmatpush1.bf16.msra.mxu0 %v3579_v59  ;;  %3019 = vmatprep.subr.bf16.mxu1 %v3584_v60 }
 0x139   : > { %2565 = vmatprep.subr.bf16.mxu0 %v3584_v60 }
 0x13b   : > { %3035 = vmatpush1.bf16.msra.mxu1 %v3582_v61 }
 0x13c   : > { %2566 = vmatpush1.bf16.msra.mxu0 %v3582_v61  ;;  %3020 = vmatprep.subr.bf16.mxu1 %v3587_v62 }
 0x13d   : > { %2567 = vmatprep.subr.bf16.mxu0 %v3587_v62 }
 0x13f   : > { %3036 = vmatpush1.bf16.msra.mxu1 %v3585_v63 }
 0x140   : > { %2568 = vmatpush1.bf16.msra.mxu0 %v3585_v63  ;;  %3021 = vmatprep.subr.bf16.mxu1 %v3590_v0 }
 0x141   : > { %2569 = vmatprep.subr.bf16.mxu0 %v3590_v0 }
 0x143   : > { %3037 = vmatpush1.bf16.msra.mxu1 %v3588_v1 }
 0x144   : > { %2570 = vmatpush1.bf16.msra.mxu0 %v3588_v1 }
 0x146   : > { %2582 = vmatmul.mubr.bf16.vlgmr.msra.gmra.mrb[8].mxu1 %v3594_v3 }
 0x147   : > { %2572 = vmatmul.mubr.bf16.vlgmr.msra.gmra.mrb[0].mxu0 %v3591_v2 }
 0x1d9   : > { %v2308_v4 = vpop.f32.mrb[0].mxu1 }
 0x1da   : > { %v2310_v5 = vpop.f32.mrb[1].mxu1 }
 0x1db   : > { %v2312_v6 = vpop.f32.mrb[2].mxu1 }
 0x1dc   : > { %v2314_v7 = vpop.f32.mrb[3].mxu1 }
 0x1e1   : > { %v2318_v8 = vpop.f32.mrb[4].mxu1 }
 0x1e2   : > { %v2530_v9 = vpop.f32.mrb[4].mxu0  ;;  %v2320_v11 = vpop.f32.mrb[5].mxu1 }
 0x1e3   : > { %v3042_v10 = vadd.f32 %v2530_v9, %v2318_v8  ;;  %v2532_v12 = vpop.f32.mrb[5].mxu0  ;;  %v2322_v14 = vpop.f32.mrb[6].mxu1 }
 0x1e4   : > { %v3044_v13 = vadd.f32 %v2532_v12, %v2320_v11  ;;  %v2534_v15 = vpop.f32.mrb[6].mxu0  ;;  %v2324_v17 = vpop.f32.mrb[7].mxu1 }
 0x1e5   : > { %v3046_v16 = vadd.f32 %v2534_v15, %v2322_v14  ;;  %v2536_v18 = vpop.f32.mrb[7].mxu0 }
 0x1e6   : > { %v3048_v19 = vadd.f32 %v2536_v18, %v2324_v17 }
 0x219   : > { %v2583_v23 = vpop.f32.mrb[8].mxu1 }
 0x21a   : > { %v2573_v22 = vpop.f32.mrb[0].mxu0  ;;  %v3043_v25 = vadd.f32 %v3042_v10, %v2583_v23  ;;  %v2585_v27 = vpop.f32.mrb[9].mxu1 }
 0x21b   : > { %v3038_v24 = vadd.f32 %v2573_v22, %v2308_v4  ;;  %v2575_v26 = vpop.f32.mrb[1].mxu0  ;;  %v3045_v29 = vadd.f32 %v3044_v13, %v2585_v27  ;;  %v2587_v31 = vpop.f32.mrb[10].mxu1 }
 0x21c   : > { %v3039_v28 = vadd.f32 %v2575_v26, %v2310_v5  ;;  %v2577_v30 = vpop.f32.mrb[2].mxu0  ;;  %v3047_v33 = vadd.f32 %v3046_v16, %v2587_v31  ;;  %v2589_v36 = vpop.f32.mrb[11].mxu1 }
 0x21d   : > { %v3040_v32 = vadd.f32 %v2577_v30, %v2312_v6  ;;  %v2579_v35 = vpop.f32.mrb[3].mxu0  ;;  %v3049_v39 = vadd.f32 %v3048_v19, %v2589_v36 }
 0x21e   : > { %v3041_v38 = vadd.f32 %v2579_v35, %v2314_v7 }
 0x21f   : > { %v2592_v41 = vmax.f32 %v3038_v24, %v3040_v32 }
 0x220   : > { %v2593_v42 = vmax.f32 %v3039_v28, %v3041_v38 }
 0x221   : > { %v2594_v43 = vmax.f32 %v2592_v41, %v3043_v25 }
 0x222   : > { %v2595_v45 = vmax.f32 %v2593_v42, %v3045_v29 }
 0x223   : > { %v2596_v47 = vmax.f32 %v2594_v43, %v3047_v33 }
 0x224   : > { %v2597_v48 = vmax.f32 %v2595_v45, %v3049_v39 }
 0x225   : > { %v2610_v49 = vadd.f32 %v2603_v44, %v2596_v47 }
 0x226   : > { %v2611_v50 = vadd.f32 %v2607_v46, %v2597_v48 }
 0x227   : > { %v2612_v51 = vmax.f32 %v2610_v49, 0.0 }
 0x228   : > { %v2613_v52 = vmax.f32 %v2611_v50, 0.0 }
 0x229   : > { %2614 = vst [vmem:[%s170_s18] sm:$0xff] %v2612_v51 }
 0x22a   : > { %2615 = vst [vmem:[%s170_s18 + $0x8] sm:$0xff] %v2613_v52 }
 0x22b PF: > { %s13_s12 = sadd.s32 1, %s3603_s12  }
 0x22c   : > { %p10_p4 = scmp.ge.s32.totalorder %s13_s12, 4  }
 0x22e   :  { %12 = sbr.rel (!%p10_p4) target bundleno = 1 (0x1), region = 62 }

</bundles_post_ra>
